<compile_context>
chip_gen: v7x
topology: tpu7x:2x2x1
jax: 0.10.0
libtpu: 0.0.40
codegen_flags: <defaults>
</compile_context>

<pallas_src>
import functools

import jax
import jax.numpy as jnp
from jax.experimental import pallas as pl
from jax.experimental.pallas import tpu as pltpu

# ----------------------------------------------------------------------------
# Model configuration (small, structurally faithful to MobRecon_DS)
# ----------------------------------------------------------------------------
LATENT_SIZE = 32            # cfg.MODEL.LATENT_SIZE (small)
KPTS_NUM = 21               # cfg.MODEL.KPTS_NUM
SPIRAL_LEN = 9              # cfg.MODEL.SPIRAL.LEN
OUT_CHANNELS = [8, 16, 32]  # cfg.MODEL.SPIRAL.OUT_CHANNELS (small)
NUM_VERT = [196, 98, 49, 25]  # mesh vertex counts, fine -> coarse

# TODO(synk): real spiral_indices / up_transform come from template.ply +
# transform.pkl via spiral_tramsform(); here they are synthesized
# deterministically with the same shapes/roles.


def _cdiv(a, b):
    return -(-a // b)


def _round_up(x, m):
    return _cdiv(x, m) * m


# ----------------------------------------------------------------------------
# Pallas kernel 1: fused matmul + bias + activation (single K step, M tiling)
# ----------------------------------------------------------------------------
def _mm_bias_act_kernel(x_ref, w_ref, b_ref, o_ref, *, act):
    y = jnp.dot(x_ref[...], w_ref[...], preferred_element_type=jnp.float32)
    y = y + b_ref[...]
    if act == "relu":
        y = jnp.maximum(y, 0.0)
    elif act == "sigmoid":
        y = jax.nn.sigmoid(y)
    o_ref[...] = y.astype(o_ref.dtype)


def pallas_linear(x, w, b, act="none", out_dtype=jnp.float32):
    """act(x @ w + b) on the MXU.

    K <= 288 and N <= 64 for every call in this model, so K is a single
    full-width block (no accumulator, no 3rd grid axis) and N is untiled
    (block dim == full array dim).  Only M is tiled (and only when it exceeds
    128).  Operands are bf16, accumulation is f32, output dtype selectable so
    intermediate activations can stay bf16 end-to-end.
    """
    M, K = x.shape
    K2, N = w.shape
    assert K == K2
    n_tiles = max(1, _cdiv(M, 128))
    tm = _round_up(_cdiv(M, n_tiles), 16)      # 16 = bf16 sublane packing
    Mp = tm * n_tiles

    xb = x.astype(jnp.bfloat16)
    if Mp != M:
        xb = jnp.pad(xb, ((0, Mp - M), (0, 0)))
    wb = w.astype(jnp.bfloat16)
    b2 = b.reshape(1, N).astype(jnp.float32)

    out_bytes = jnp.dtype(out_dtype).itemsize
    cost = pl.CostEstimate(
        flops=2 * M * K * N, transcendentals=0,
        bytes_accessed=M * K * 2 + K * N * 2 + N * 4 + M * N * out_bytes)

    out = pl.pallas_call(
        functools.partial(_mm_bias_act_kernel, act=act),
        out_shape=jax.ShapeDtypeStruct((Mp, N), out_dtype),
        grid=(n_tiles,),
        in_specs=[
            pl.BlockSpec((tm, K), lambda i: (i, 0)),
            pl.BlockSpec((K, N), lambda i: (0, 0)),
            pl.BlockSpec((1, N), lambda i: (0, 0)),
        ],
        out_specs=pl.BlockSpec((tm, N), lambda i: (i, 0)),
        compiler_params=pltpu.CompilerParams(
            dimension_semantics=("parallel",)),
        cost_estimate=cost,
    )(xb, wb, b2)
    return out[:M] if Mp != M else out


# ----------------------------------------------------------------------------
# Backbone glue (im2col conv, bilinear sampling)
# ----------------------------------------------------------------------------
def conv3x3_s2(x_nhwc, w, b, act="relu", out_dtype=jnp.float32):
    """3x3 conv, stride 2, SAME padding, via im2col (bf16) + Pallas matmul.

    Weight layout is (kh, kw, Cin) flattened x Cout; real PyTorch Conv2d
    weights (Cout, Cin, kh, kw) must be permuted to (kh, kw, Cin, Cout) and
    reshaped before use.

    # TODO(synk): the (B,Ho,Wo,9C) patch tensor is still materialized once in
    # HBM (bf16, <= ~110 KB at these sizes); for larger images switch to an
    # in-kernel 9-tap accumulation or lax.conv_general_dilated.
    """
    B, H, W, C = x_nhwc.shape
    Ho, Wo = H // 2, W // 2
    xp = jnp.pad(x_nhwc, ((0, 0), (1, 1), (1, 1), (0, 0))).astype(jnp.bfloat16)
    cols = [xp[:, i:i + Ho * 2:2, j:j + Wo * 2:2, :]
            for i in range(3) for j in range(3)]
    patches = jnp.concatenate(cols, axis=-1).reshape(-1, 9 * C)
    y = pallas_linear(patches, w, b, act, out_dtype=out_dtype)
    return y.reshape(B, Ho, Wo, -1)


def bilinear_sample(feat, uv):
    """grid_sample(feat, uv, bilinear, align_corners=True) — as in MobRecon's
    Reg2DDecode3D.index().  feat: (B,H,W,C) NHWC, uv: (B,N,2) in [-1,1]."""
    B, H, W, C = feat.shape
    x = (uv[..., 0] + 1.0) * 0.5 * (W - 1)
    y = (uv[..., 1] + 1.0) * 0.5 * (H - 1)
    x0 = jnp.floor(x)
    y0 = jnp.floor(y)
    wx = (x - x0)[..., None]
    wy = (y - y0)[..., None]
    x0i = jnp.clip(x0, 0, W - 1).astype(jnp.int32)
    x1i = jnp.clip(x0 + 1, 0, W - 1).astype(jnp.int32)
    y0i = jnp.clip(y0, 0, H - 1).astype(jnp.int32)
    y1i = jnp.clip(y0 + 1, 0, H - 1).astype(jnp.int32)
    b_idx = jnp.arange(B)[:, None]
    v00 = feat[b_idx, y0i, x0i]
    v01 = feat[b_idx, y0i, x1i]
    v10 = feat[b_idx, y1i, x0i]
    v11 = feat[b_idx, y1i, x1i]
    return (v00 * (1 - wx) * (1 - wy) + v01 * wx * (1 - wy)
            + v10 * (1 - wx) * wy + v11 * wx * wy)


# ----------------------------------------------------------------------------
# Pallas kernel 2: fully fused 3D decoder (VMEM resident, one launch)
# ----------------------------------------------------------------------------
def _decoder_kernel(feat_ref, de_w, de_b, up,
                    p2, w2, b2, p1, w1, b1, p0, w0, b0,
                    ph, wh, bh, o_ref):
    # de_layer_conv (1x1, no bn/relu) commutes exactly with the bilinear
    # sampling in index() (interp weights sum to 1), so it is applied to the
    # sampled (K, latent) features here, inside the fused kernel.
    x = jnp.dot(feat_ref[0], de_w[...],
                preferred_element_type=jnp.float32) + de_b[...]      # (21, 32)
    # bmm with the learned `upsample` matrix: keypoints -> coarsest mesh.
    x = jnp.dot(up[...], x.astype(jnp.bfloat16),
                preferred_element_type=jnp.float32)                  # (25, 32)

    def spiral_block(x, p_ref, w_ref, b_ref, relu):
        # Pool(up_transform) + spiral gather + linear, re-expressed as
        #   y = sum_s P_s @ (x @ W_s) + b   with   P_s = onehot(idx[:, s]) @ U
        # (P_s precomputed at init) — every op is a lane-dense 2-D MXU matmul,
        # no in-kernel gather/reshape, no HBM traffic between mesh levels.
        # Ordering (x @ W_s first) minimizes flops since C_out <= C_in here.
        xb = x.astype(jnp.bfloat16)
        v_out, c_out = p_ref.shape[1], w_ref.shape[2]
        acc = jnp.zeros((v_out, c_out), jnp.float32)
        for s in range(SPIRAL_LEN):
            z = jnp.dot(xb, w_ref[s],
                        preferred_element_type=jnp.float32).astype(jnp.bfloat16)
            acc = acc + jnp.dot(p_ref[s], z,
                                preferred_element_type=jnp.float32)
        acc = acc + b_ref[...]
        return jnp.maximum(acc, 0.0) if relu else acc

    x = spiral_block(x, p2, w2, b2, True)      # 25 -> 49, C 32
    x = spiral_block(x, p1, w1, b1, True)      # 49 -> 98, C 16
    x = spiral_block(x, p0, w0, b0, True)      # 98 -> 196, C 8
    x = spiral_block(x, ph, wh, bh, False)     # head: 196 verts -> 3D coords
    o_ref[0] = x.astype(o_ref.dtype)


def _full_spec(arr):
    nd = arr.ndim
    return pl.BlockSpec(arr.shape, lambda b, _nd=nd: (0,) * _nd)


def _decoder_flops_per_item():
    fl = 2 * KPTS_NUM * LATENT_SIZE * OUT_CHANNELS[2]          # de_layer_conv
    fl += 2 * NUM_VERT[3] * KPTS_NUM * OUT_CHANNELS[2]         # upsample bmm
    levels = ((NUM_VERT[2], NUM_VERT[3], OUT_CHANNELS[2], OUT_CHANNELS[2]),
              (NUM_VERT[1], NUM_VERT[2], OUT_CHANNELS[2], OUT_CHANNELS[1]),
              (NUM_VERT[0], NUM_VERT[1], OUT_CHANNELS[1], OUT_CHANNELS[0]),
              (NUM_VERT[0], NUM_VERT[0], OUT_CHANNELS[0], 3))
    for vo, vi, ci, co in levels:
        fl += 2 * SPIRAL_LEN * (vi * ci * co + vo * vi * co)
    return fl


def decoder3d_forward(p, uv, latent):
    B = latent.shape[0]
    uv_n = jnp.clip((uv - 0.5) * 2.0, -1.0, 1.0)
    sampled = bilinear_sample(latent, uv_n).astype(jnp.bfloat16)   # (B, K, LS)

    statics = p["dec_statics"]
    bytes_accessed = (sampled.size * 2
                      + sum(int(a.size) * a.dtype.itemsize for a in statics)
                      + B * NUM_VERT[0] * 3 * 4)
    cost = pl.CostEstimate(flops=B * _decoder_flops_per_item(),
                           transcendentals=0,
                           bytes_accessed=bytes_accessed)

    verts = pl.pallas_call(
        _decoder_kernel,
        out_shape=jax.ShapeDtypeStruct((B, NUM_VERT[0], 3), jnp.float32),
        grid=(B,),
        in_specs=[pl.BlockSpec((1, KPTS_NUM, LATENT_SIZE),
                               lambda b: (b, 0, 0))]
                 + [_full_spec(a) for a in statics],
        out_specs=pl.BlockSpec((1, NUM_VERT[0], 3), lambda b: (b, 0, 0)),
        compiler_params=pltpu.CompilerParams(
            dimension_semantics=("parallel",)),
        cost_estimate=cost,
    )(sampled, *statics)
    return verts


# ----------------------------------------------------------------------------
# Parameters (deterministic, synthetic) + precomputed fused-decoder operands
# ----------------------------------------------------------------------------
def init_params(key):
    ks = iter(jax.random.split(key, 40))

    def w(shape, scale=0.05):
        return jax.random.normal(next(ks), shape, jnp.float32) * scale

    def zeros(shape):
        return jnp.zeros(shape, jnp.float32)

    p = {}
    # ---- DenseStack_Backnone (reduced conv backbone, same output contract:
    #      latent feature map + pred2d_pt in [0,1]) ----
    p["c1_w"], p["c1_b"] = w((9 * 3, 16)), zeros((16,))
    p["c2_w"], p["c2_b"] = w((9 * 16, 32)), zeros((32,))
    p["c3_w"], p["c3_b"] = w((9 * 32, LATENT_SIZE)), zeros((LATENT_SIZE,))
    p["fc1_w"], p["fc1_b"] = w((LATENT_SIZE, 64)), zeros((64,))
    p["fc2_w"], p["fc2_b"] = w((64, KPTS_NUM * 2)), zeros((KPTS_NUM * 2,))

    # ---- Reg2DDecode3D ----
    de_w, de_b = w((LATENT_SIZE, OUT_CHANNELS[-1])), zeros((OUT_CHANNELS[-1],))
    upsample = jnp.ones((NUM_VERT[-1], KPTS_NUM), jnp.float32) * 0.01
    up_transform = [w((NUM_VERT[i], NUM_VERT[i + 1]), scale=0.1)
                    for i in range(len(NUM_VERT) - 1)]

    def spiral_idx(V):
        v = jnp.arange(V)[:, None]
        s = jnp.arange(SPIRAL_LEN)[None, :]
        return ((v + s) % V).astype(jnp.int32)

    idx = [spiral_idx(NUM_VERT[0]), spiral_idx(NUM_VERT[1]),
           spiral_idx(NUM_VERT[2])]

    w2, b2 = w((SPIRAL_LEN * OUT_CHANNELS[2], OUT_CHANNELS[2])), zeros((OUT_CHANNELS[2],))
    w1, b1 = w((SPIRAL_LEN * OUT_CHANNELS[2], OUT_CHANNELS[1])), zeros((OUT_CHANNELS[1],))
    w0, b0 = w((SPIRAL_LEN * OUT_CHANNELS[1], OUT_CHANNELS[0])), zeros((OUT_CHANNELS[0],))
    wh, bh = w((SPIRAL_LEN * OUT_CHANNELS[0], 3)), zeros((3,))

    # ---- Precompute fused-decoder operands: Pool + spiral gather folded into
    #      static per-tap matrices P_s = onehot(idx[:, s]) @ U. ----
    def onehot(ix, n):
        return jax.nn.one_hot(ix, n, dtype=jnp.float32)

    def pool_gather(ix, U):
        return jnp.stack([onehot(ix[:, s], U.shape[0]) @ U
                          for s in range(SPIRAL_LEN)])

    P2 = pool_gather(idx[2], up_transform[2])              # (S, 49, 25)
    P1 = pool_gather(idx[1], up_transform[1])              # (S, 98, 49)
    P0 = pool_gather(idx[0], up_transform[0])              # (S, 196, 98)
    Ph = jnp.stack([onehot(idx[0][:, s], NUM_VERT[0])
                    for s in range(SPIRAL_LEN)])            # (S, 196, 196)

    bf = lambda a: a.astype(jnp.bfloat16)
    row = lambda a: a.reshape(1, -1).astype(jnp.float32)
    p["dec_statics"] = (
        bf(de_w), row(de_b), bf(upsample),
        bf(P2), bf(w2.reshape(SPIRAL_LEN, OUT_CHANNELS[2], OUT_CHANNELS[2])), row(b2),
        bf(P1), bf(w1.reshape(SPIRAL_LEN, OUT_CHANNELS[2], OUT_CHANNELS[1])), row(b1),
        bf(P0), bf(w0.reshape(SPIRAL_LEN, OUT_CHANNELS[1], OUT_CHANNELS[0])), row(b0),
        bf(Ph), bf(wh.reshape(SPIRAL_LEN, OUT_CHANNELS[0], 3)), row(bh),
    )
    return p


# ----------------------------------------------------------------------------
# Forward pass
# ----------------------------------------------------------------------------
def backbone_forward(p, x_nhwc):
    # Intermediate activations stay bf16 (no f32 HBM round trips); the final
    # latent map is f32 for the fc / bilinear-sampling path.
    h = conv3x3_s2(x_nhwc, p["c1_w"], p["c1_b"], "relu",
                   out_dtype=jnp.bfloat16)                     # (B,16,16,16)
    h = conv3x3_s2(h, p["c2_w"], p["c2_b"], "relu",
                   out_dtype=jnp.bfloat16)                     # (B, 8, 8,32)
    latent = conv3x3_s2(h, p["c3_w"], p["c3_b"], "relu",
                        out_dtype=jnp.float32)                 # (B, 4, 4,LS)
    # 2-to-4-row matmuls: plain jnp so XLA fuses them with mean/sigmoid
    # (pallas_call overhead >> compute at M == batch size).
    pooled = jnp.mean(latent, axis=(1, 2))                     # (B, LS)
    h2 = jax.nn.relu(pooled @ p["fc1_w"] + p["fc1_b"])
    uv = jax.nn.sigmoid(h2 @ p["fc2_w"] + p["fc2_b"])          # (B, 2*K)
    return latent, uv.reshape(uv.shape[0], KPTS_NUM, 2)


def _single_stream(p, x_nchw3):
    x_nhwc = jnp.transpose(x_nchw3, (0, 2, 3, 1))
    latent, pred2d_pt = backbone_forward(p, x_nhwc)
    pred3d = decoder3d_forward(p, pred2d_pt, latent)
    return pred3d, pred2d_pt


def mobrecon_ds_forward(p, x_nchw):
    """Matches MobRecon_DS.forward: x is NCHW with 3 or 6 channels."""
    if x_nchw.shape[1] == 6:
        B = x_nchw.shape[0]
        # Run both RGB streams as one doubled batch instead of two sequential
        # forward passes (halves kernel launches, doubles M per matmul).
        x_stacked = jnp.concatenate([x_nchw[:, :3], x_nchw[:, 3:]], axis=0)
        pred3d_s, pred2d_s = _single_stream(p, x_stacked)
        pred3d = jnp.concatenate([pred3d_s[:B], pred3d_s[B:]], axis=-1)
        pred2d_pt = jnp.concatenate([pred2d_s[:B], pred2d_s[B:]], axis=-1)
    else:
        pred3d, pred2d_pt = _single_stream(p, x_nchw)
    return {"verts": pred3d, "joint_img": pred2d_pt}


# ----------------------------------------------------------------------------
# Demo
# ----------------------------------------------------------------------------
if __name__ == "__main__":
    key = jax.random.PRNGKey(0)
    pkey, xkey3, xkey6 = jax.random.split(key, 3)
    params = init_params(pkey)

    fwd = jax.jit(mobrecon_ds_forward)

    # 3-channel path (PyTorch-style NCHW input).
    x3 = jax.random.normal(xkey3, (2, 3, 32, 32), jnp.float32)
    out3 = fwd(params, x3)
    jax.block_until_ready(out3)
    assert out3["verts"].shape == (2, NUM_VERT[0], 3)
    assert out3["joint_img"].shape == (2, KPTS_NUM, 2)
    assert bool(jnp.all(jnp.isfinite(out3["verts"])))

    # 6-channel (stereo) path exercises the batch-stacked fast path.
    x6 = jax.random.normal(xkey6, (2, 6, 32, 32), jnp.float32)
    out6 = fwd(params, x6)
    jax.block_until_ready(out6)
    assert out6["verts"].shape == (2, NUM_VERT[0], 6)
    assert out6["joint_img"].shape == (2, KPTS_NUM, 4)
    assert bool(jnp.all(jnp.isfinite(out6["verts"])))

    print("KERNEL_OK")
</pallas_src>

<mosaic_0001>
module attributes {stable_mosaic.version = 11 : i64} {
  func.func @_mm_bias_act_kernel(%arg0: i32, %arg1: memref<128x27xbf16, #tpu.memory_space<vmem>>, %arg2: memref<27x16xbf16, #tpu.memory_space<vmem>>, %arg3: memref<1x16xf32, #tpu.memory_space<vmem>>, %arg4: memref<128x16xbf16, #tpu.memory_space<vmem>>) attributes {dimension_semantics = [#tpu.dimension_semantics<parallel>], iteration_bounds = array<i64: 4>, scalar_prefetch = 0 : i64, scratch_operands = 0 : i64, tpu.core_type = #tpu.core_type<tc>, window_params = [{transform_indices = @transform_0, window_bounds = array<i64: 128, 27>}, {pipeline_mode = #tpu.pipeline_mode<synchronous>, transform_indices = @transform_1, window_bounds = array<i64: 27, 16>}, {pipeline_mode = #tpu.pipeline_mode<synchronous>, transform_indices = @transform_2, window_bounds = array<i64: 1, 16>}, {transform_indices = @transform_3, window_bounds = array<i64: 128, 16>}]} {
    %c0 = arith.constant 0 : index
    %c0_0 = arith.constant 0 : index
    %0 = vector.load %arg1[%c0, %c0_0] : memref<128x27xbf16, #tpu.memory_space<vmem>>, vector<128x27xbf16>
    %c0_1 = arith.constant 0 : index
    %c0_2 = arith.constant 0 : index
    %1 = vector.load %arg2[%c0_1, %c0_2] : memref<27x16xbf16, #tpu.memory_space<vmem>>, vector<27x16xbf16>
    %cst = arith.constant dense<0.000000e+00> : vector<128x16xf32>
    %2 = tpu.matmul %0, %1, %cst {dimension_numbers = #tpu.dot_dimension_numbers<[1], [0], [0], [1], [0, 0, 1, 1], [], []>} : vector<128x27xbf16>, vector<27x16xbf16>, vector<128x16xf32> -> vector<128x16xf32>
    %c0_3 = arith.constant 0 : index
    %c0_4 = arith.constant 0 : index
    %3 = vector.load %arg3[%c0_3, %c0_4] : memref<1x16xf32, #tpu.memory_space<vmem>>, vector<1x16xf32>
    %4 = vector.broadcast %3 : vector<1x16xf32> to vector<128x16xf32>
    %5 = arith.addf %2, %4 : vector<128x16xf32>
    %cst_5 = arith.constant 0.000000e+00 : f32
    %6 = vector.broadcast %cst_5 : f32 to vector<128x16xf32>
    %7 = arith.maximumf %5, %6 : vector<128x16xf32>
    %8 = arith.truncf %7 : vector<128x16xf32> to vector<128x16xbf16>
    %c0_6 = arith.constant 0 : index
    %c0_7 = arith.constant 0 : index
    %9 = vector.load %arg4[%c0_6, %c0_7] : memref<128x16xbf16, #tpu.memory_space<vmem>>, vector<128x16xbf16>
    tpu.vector_store %arg4[%c0_6, %c0_7], %8 {strides = array<i32>} : memref<128x16xbf16, #tpu.memory_space<vmem>>, vector<128x16xbf16>,
    return
  }
  func.func @transform_0(%arg0: i32) -> (i32, i32) {
    %c0_i32 = arith.constant 0 : i32
    %c0_i32_0 = arith.constant 0 : i32
    return %arg0, %c0_i32 : i32, i32
  }
  func.func @transform_1(%arg0: i32) -> (i32, i32) {
    %c0_i32 = arith.constant 0 : i32
    %c0_i32_0 = arith.constant 0 : i32
    %c0_i32_1 = arith.constant 0 : i32
    return %c0_i32, %c0_i32_0 : i32, i32
  }
  func.func @transform_2(%arg0: i32) -> (i32, i32) {
    %c0_i32 = arith.constant 0 : i32
    %c0_i32_0 = arith.constant 0 : i32
    %c0_i32_1 = arith.constant 0 : i32
    return %c0_i32, %c0_i32_0 : i32, i32
  }
  func.func @transform_3(%arg0: i32) -> (i32, i32) {
    %c0_i32 = arith.constant 0 : i32
    %c0_i32_0 = arith.constant 0 : i32
    return %arg0, %c0_i32 : i32, i32
  }
}

module attributes {stable_mosaic.version = 11 : i64} {
  func.func @_mm_bias_act_kernel(%arg0: i32, %arg1: memref<128x144xbf16, #tpu.memory_space<vmem>>, %arg2: memref<144x32xbf16, #tpu.memory_space<vmem>>, %arg3: memref<1x32xf32, #tpu.memory_space<vmem>>, %arg4: memref<128x32xbf16, #tpu.memory_space<vmem>>) attributes {dimension_semantics = [#tpu.dimension_semantics<parallel>], iteration_bounds = array<i64: 1>, scalar_prefetch = 0 : i64, scratch_operands = 0 : i64, tpu.core_type = #tpu.core_type<tc>, window_params = [{transform_indices = @transform_0, window_bounds = array<i64: 128, 144>}, {pipeline_mode = #tpu.pipeline_mode<synchronous>, transform_indices = @transform_1, window_bounds = array<i64: 144, 32>}, {pipeline_mode = #tpu.pipeline_mode<synchronous>, transform_indices = @transform_2, window_bounds = array<i64: 1, 32>}, {transform_indices = @transform_3, window_bounds = array<i64: 128, 32>}]} {
    %c0 = arith.constant 0 : index
    %c0_0 = arith.constant 0 : index
    %0 = vector.load %arg1[%c0, %c0_0] : memref<128x144xbf16, #tpu.memory_space<vmem>>, vector<128x144xbf16>
    %c0_1 = arith.constant 0 : index
    %c0_2 = arith.constant 0 : index
    %1 = vector.load %arg2[%c0_1, %c0_2] : memref<144x32xbf16, #tpu.memory_space<vmem>>, vector<144x32xbf16>
    %cst = arith.constant dense<0.000000e+00> : vector<128x32xf32>
    %2 = tpu.matmul %0, %1, %cst {dimension_numbers = #tpu.dot_dimension_numbers<[1], [0], [0], [1], [0, 0, 1, 1], [], []>} : vector<128x144xbf16>, vector<144x32xbf16>, vector<128x32xf32> -> vector<128x32xf32>
    %c0_3 = arith.constant 0 : index
    %c0_4 = arith.constant 0 : index
    %3 = vector.load %arg3[%c0_3, %c0_4] : memref<1x32xf32, #tpu.memory_space<vmem>>, vector<1x32xf32>
    %4 = vector.broadcast %3 : vector<1x32xf32> to vector<128x32xf32>
    %5 = arith.addf %2, %4 : vector<128x32xf32>
    %cst_5 = arith.constant 0.000000e+00 : f32
    %6 = vector.broadcast %cst_5 : f32 to vector<128x32xf32>
    %7 = arith.maximumf %5, %6 : vector<128x32xf32>
    %8 = arith.truncf %7 : vector<128x32xf32> to vector<128x32xbf16>
    %c0_6 = arith.constant 0 : index
    %c0_7 = arith.constant 0 : index
    %9 = vector.load %arg4[%c0_6, %c0_7] : memref<128x32xbf16, #tpu.memory_space<vmem>>, vector<128x32xbf16>
    tpu.vector_store %arg4[%c0_6, %c0_7], %8 {strides = array<i32>} : memref<128x32xbf16, #tpu.memory_space<vmem>>, vector<128x32xbf16>,
    return
  }
  func.func @transform_0(%arg0: i32) -> (i32, i32) {
    %c0_i32 = arith.constant 0 : i32
    %c0_i32_0 = arith.constant 0 : i32
    return %arg0, %c0_i32 : i32, i32
  }
  func.func @transform_1(%arg0: i32) -> (i32, i32) {
    %c0_i32 = arith.constant 0 : i32
    %c0_i32_0 = arith.constant 0 : i32
    %c0_i32_1 = arith.constant 0 : i32
    return %c0_i32, %c0_i32_0 : i32, i32
  }
  func.func @transform_2(%arg0: i32) -> (i32, i32) {
    %c0_i32 = arith.constant 0 : i32
    %c0_i32_0 = arith.constant 0 : i32
    %c0_i32_1 = arith.constant 0 : i32
    return %c0_i32, %c0_i32_0 : i32, i32
  }
  func.func @transform_3(%arg0: i32) -> (i32, i32) {
    %c0_i32 = arith.constant 0 : i32
    %c0_i32_0 = arith.constant 0 : i32
    return %arg0, %c0_i32 : i32, i32
  }
}

module attributes {stable_mosaic.version = 11 : i64} {
  func.func @_mm_bias_act_kernel(%arg0: i32, %arg1: memref<32x288xbf16, #tpu.memory_space<vmem>>, %arg2: memref<288x32xbf16, #tpu.memory_space<vmem>>, %arg3: memref<1x32xf32, #tpu.memory_space<vmem>>, %arg4: memref<32x32xf32, #tpu.memory_space<vmem>>) attributes {dimension_semantics = [#tpu.dimension_semantics<parallel>], iteration_bounds = array<i64: 1>, scalar_prefetch = 0 : i64, scratch_operands = 0 : i64, tpu.core_type = #tpu.core_type<tc>, window_params = [{transform_indices = @transform_0, window_bounds = array<i64: 32, 288>}, {pipeline_mode = #tpu.pipeline_mode<synchronous>, transform_indices = @transform_1, window_bounds = array<i64: 288, 32>}, {pipeline_mode = #tpu.pipeline_mode<synchronous>, transform_indices = @transform_2, window_bounds = array<i64: 1, 32>}, {transform_indices = @transform_3, window_bounds = array<i64: 32, 32>}]} {
    %c0 = arith.constant 0 : index
    %c0_0 = arith.constant 0 : index
    %0 = vector.load %arg1[%c0, %c0_0] : memref<32x288xbf16, #tpu.memory_space<vmem>>, vector<32x288xbf16>
    %c0_1 = arith.constant 0 : index
    %c0_2 = arith.constant 0 : index
    %1 = vector.load %arg2[%c0_1, %c0_2] : memref<288x32xbf16, #tpu.memory_space<vmem>>, vector<288x32xbf16>
    %cst = arith.constant dense<0.000000e+00> : vector<32x32xf32>
    %2 = tpu.matmul %0, %1, %cst {dimension_numbers = #tpu.dot_dimension_numbers<[1], [0], [0], [1], [0, 0, 1, 1], [], []>} : vector<32x288xbf16>, vector<288x32xbf16>, vector<32x32xf32> -> vector<32x32xf32>
    %c0_3 = arith.constant 0 : index
    %c0_4 = arith.constant 0 : index
    %3 = vector.load %arg3[%c0_3, %c0_4] : memref<1x32xf32, #tpu.memory_space<vmem>>, vector<1x32xf32>
    %4 = vector.broadcast %3 : vector<1x32xf32> to vector<32x32xf32>
    %5 = arith.addf %2, %4 : vector<32x32xf32>
    %cst_5 = arith.constant 0.000000e+00 : f32
    %6 = vector.broadcast %cst_5 : f32 to vector<32x32xf32>
    %7 = arith.maximumf %5, %6 : vector<32x32xf32>
    %c0_6 = arith.constant 0 : index
    %c0_7 = arith.constant 0 : index
    %8 = vector.load %arg4[%c0_6, %c0_7] : memref<32x32xf32, #tpu.memory_space<vmem>>, vector<32x32xf32>
    tpu.vector_store %arg4[%c0_6, %c0_7], %7 {strides = array<i32>} : memref<32x32xf32, #tpu.memory_space<vmem>>, vector<32x32xf32>,
    return
  }
  func.func @transform_0(%arg0: i32) -> (i32, i32) {
    %c0_i32 = arith.constant 0 : i32
    %c0_i32_0 = arith.constant 0 : i32
    return %arg0, %c0_i32 : i32, i32
  }
  func.func @transform_1(%arg0: i32) -> (i32, i32) {
    %c0_i32 = arith.constant 0 : i32
    %c0_i32_0 = arith.constant 0 : i32
    %c0_i32_1 = arith.constant 0 : i32
    return %c0_i32, %c0_i32_0 : i32, i32
  }
  func.func @transform_2(%arg0: i32) -> (i32, i32) {
    %c0_i32 = arith.constant 0 : i32
    %c0_i32_0 = arith.constant 0 : i32
    %c0_i32_1 = arith.constant 0 : i32
    return %c0_i32, %c0_i32_0 : i32, i32
  }
  func.func @transform_3(%arg0: i32) -> (i32, i32) {
    %c0_i32 = arith.constant 0 : i32
    %c0_i32_0 = arith.constant 0 : i32
    return %arg0, %c0_i32 : i32, i32
  }
}

module attributes {stable_mosaic.version = 11 : i64} {
  func.func @_decoder_kernel(%arg0: i32, %arg1: memref<1x21x32xbf16, #tpu.memory_space<vmem>>, %arg2: memref<32x32xbf16, #tpu.memory_space<vmem>>, %arg3: memref<1x32xf32, #tpu.memory_space<vmem>>, %arg4: memref<25x21xbf16, #tpu.memory_space<vmem>>, %arg5: memref<9x49x25xbf16, #tpu.memory_space<vmem>>, %arg6: memref<9x32x32xbf16, #tpu.memory_space<vmem>>, %arg7: memref<1x32xf32, #tpu.memory_space<vmem>>, %arg8: memref<9x98x49xbf16, #tpu.memory_space<vmem>>, %arg9: memref<9x32x16xbf16, #tpu.memory_space<vmem>>, %arg10: memref<1x16xf32, #tpu.memory_space<vmem>>, %arg11: memref<9x196x98xbf16, #tpu.memory_space<vmem>>, %arg12: memref<9x16x8xbf16, #tpu.memory_space<vmem>>, %arg13: memref<1x8xf32, #tpu.memory_space<vmem>>, %arg14: memref<9x196x196xbf16, #tpu.memory_space<vmem>>, %arg15: memref<9x8x3xbf16, #tpu.memory_space<vmem>>, %arg16: memref<1x3xf32, #tpu.memory_space<vmem>>, %arg17: memref<1x196x3xf32, #tpu.memory_space<vmem>>) attributes {dimension_semantics = [#tpu.dimension_semantics<parallel>], iteration_bounds = array<i64: 2>, scalar_prefetch = 0 : i64, scratch_operands = 0 : i64, tpu.core_type = #tpu.core_type<tc>, window_params = [{transform_indices = @transform_0, window_bounds = array<i64: 1, 21, 32>}, {pipeline_mode = #tpu.pipeline_mode<synchronous>, transform_indices = @transform_1, window_bounds = array<i64: 32, 32>}, {pipeline_mode = #tpu.pipeline_mode<synchronous>, transform_indices = @transform_2, window_bounds = array<i64: 1, 32>}, {pipeline_mode = #tpu.pipeline_mode<synchronous>, transform_indices = @transform_3, window_bounds = array<i64: 25, 21>}, {pipeline_mode = #tpu.pipeline_mode<synchronous>, transform_indices = @transform_4, window_bounds = array<i64: 9, 49, 25>}, {pipeline_mode = #tpu.pipeline_mode<synchronous>, transform_indices = @transform_5, window_bounds = array<i64: 9, 32, 32>}, {pipeline_mode = #tpu.pipeline_mode<synchronous>, transform_indices = @transform_6, window_bounds = array<i64: 1, 32>}, {pipeline_mode = #tpu.pipeline_mode<synchronous>, transform_indices = @transform_7, window_bounds = array<i64: 9, 98, 49>}, {pipeline_mode = #tpu.pipeline_mode<synchronous>, transform_indices = @transform_8, window_bounds = array<i64: 9, 32, 16>}, {pipeline_mode = #tpu.pipeline_mode<synchronous>, transform_indices = @transform_9, window_bounds = array<i64: 1, 16>}, {pipeline_mode = #tpu.pipeline_mode<synchronous>, transform_indices = @transform_10, window_bounds = array<i64: 9, 196, 98>}, {pipeline_mode = #tpu.pipeline_mode<synchronous>, transform_indices = @transform_11, window_bounds = array<i64: 9, 16, 8>}, {pipeline_mode = #tpu.pipeline_mode<synchronous>, transform_indices = @transform_12, window_bounds = array<i64: 1, 8>}, {pipeline_mode = #tpu.pipeline_mode<synchronous>, transform_indices = @transform_13, window_bounds = array<i64: 9, 196, 196>}, {pipeline_mode = #tpu.pipeline_mode<synchronous>, transform_indices = @transform_14, window_bounds = array<i64: 9, 8, 3>}, {pipeline_mode = #tpu.pipeline_mode<synchronous>, transform_indices = @transform_15, window_bounds = array<i64: 1, 3>}, {transform_indices = @transform_16, window_bounds = array<i64: 1, 196, 3>}]} {
    %c0 = arith.constant 0 : index
    %c0_0 = arith.constant 0 : index
    %c0_1 = arith.constant 0 : index
    %0 = vector.load %arg1[%c0, %c0_0, %c0_1] : memref<1x21x32xbf16, #tpu.memory_space<vmem>>, vector<1x21x32xbf16>
    %1 = vector.shape_cast %0 : vector<1x21x32xbf16> to vector<21x32xbf16>
    %c0_2 = arith.constant 0 : index
    %c0_3 = arith.constant 0 : index
    %2 = vector.load %arg2[%c0_2, %c0_3] : memref<32x32xbf16, #tpu.memory_space<vmem>>, vector<32x32xbf16>
    %cst = arith.constant dense<0.000000e+00> : vector<21x32xf32>
    %3 = tpu.matmul %1, %2, %cst {dimension_numbers = #tpu.dot_dimension_numbers<[1], [0], [0], [1], [0, 0, 1, 1], [], []>} : vector<21x32xbf16>, vector<32x32xbf16>, vector<21x32xf32> -> vector<21x32xf32>
    %c0_4 = arith.constant 0 : index
    %c0_5 = arith.constant 0 : index
    %4 = vector.load %arg3[%c0_4, %c0_5] : memref<1x32xf32, #tpu.memory_space<vmem>>, vector<1x32xf32>
    %5 = vector.broadcast %4 : vector<1x32xf32> to vector<21x32xf32>
    %6 = arith.addf %3, %5 : vector<21x32xf32>
    %c0_6 = arith.constant 0 : index
    %c0_7 = arith.constant 0 : index
    %7 = vector.load %arg4[%c0_6, %c0_7] : memref<25x21xbf16, #tpu.memory_space<vmem>>, vector<25x21xbf16>
    %8 = arith.truncf %6 : vector<21x32xf32> to vector<21x32xbf16>
    %cst_8 = arith.constant dense<0.000000e+00> : vector<25x32xf32>
    %9 = tpu.matmul %7, %8, %cst_8 {dimension_numbers = #tpu.dot_dimension_numbers<[1], [0], [0], [1], [0, 0, 1, 1], [], []>} : vector<25x21xbf16>, vector<21x32xbf16>, vector<25x32xf32> -> vector<25x32xf32>
    %10 = arith.truncf %9 : vector<25x32xf32> to vector<25x32xbf16>
    %cst_9 = arith.constant 0.000000e+00 : f32
    %11 = vector.broadcast %cst_9 : f32 to vector<49x32xf32>
    %c0_10 = arith.constant 0 : index
    %c0_11 = arith.constant 0 : index
    %c0_12 = arith.constant 0 : index
    %12 = vector.load %arg6[%c0_10, %c0_11, %c0_12] : memref<9x32x32xbf16, #tpu.memory_space<vmem>>, vector<1x32x32xbf16>
    %13 = vector.shape_cast %12 : vector<1x32x32xbf16> to vector<32x32xbf16>
    %cst_13 = arith.constant dense<0.000000e+00> : vector<25x32xf32>
    %14 = tpu.matmul %10, %13, %cst_13 {dimension_numbers = #tpu.dot_dimension_numbers<[1], [0], [0], [1], [0, 0, 1, 1], [], []>} : vector<25x32xbf16>, vector<32x32xbf16>, vector<25x32xf32> -> vector<25x32xf32>
    %15 = arith.truncf %14 : vector<25x32xf32> to vector<25x32xbf16>
    %c0_14 = arith.constant 0 : index
    %c0_15 = arith.constant 0 : index
    %c0_16 = arith.constant 0 : index
    %16 = vector.load %arg5[%c0_14, %c0_15, %c0_16] : memref<9x49x25xbf16, #tpu.memory_space<vmem>>, vector<1x49x25xbf16>
    %17 = vector.shape_cast %16 : vector<1x49x25xbf16> to vector<49x25xbf16>
    %cst_17 = arith.constant dense<0.000000e+00> : vector<49x32xf32>
    %18 = tpu.matmul %17, %15, %cst_17 {dimension_numbers = #tpu.dot_dimension_numbers<[1], [0], [0], [1], [0, 0, 1, 1], [], []>} : vector<49x25xbf16>, vector<25x32xbf16>, vector<49x32xf32> -> vector<49x32xf32>
    %19 = arith.addf %11, %18 : vector<49x32xf32>
    %c1 = arith.constant 1 : index
    %c0_18 = arith.constant 0 : index
    %c0_19 = arith.constant 0 : index
    %20 = vector.load %arg6[%c1, %c0_18, %c0_19] : memref<9x32x32xbf16, #tpu.memory_space<vmem>>, vector<1x32x32xbf16>
    %21 = vector.shape_cast %20 : vector<1x32x32xbf16> to vector<32x32xbf16>
    %cst_20 = arith.constant dense<0.000000e+00> : vector<25x32xf32>
    %22 = tpu.matmul %10, %21, %cst_20 {dimension_numbers = #tpu.dot_dimension_numbers<[1], [0], [0], [1], [0, 0, 1, 1], [], []>} : vector<25x32xbf16>, vector<32x32xbf16>, vector<25x32xf32> -> vector<25x32xf32>
    %23 = arith.truncf %22 : vector<25x32xf32> to vector<25x32xbf16>
    %c1_21 = arith.constant 1 : index
    %c0_22 = arith.constant 0 : index
    %c0_23 = arith.constant 0 : index
    %24 = vector.load %arg5[%c1_21, %c0_22, %c0_23] : memref<9x49x25xbf16, #tpu.memory_space<vmem>>, vector<1x49x25xbf16>
    %25 = vector.shape_cast %24 : vector<1x49x25xbf16> to vector<49x25xbf16>
    %cst_24 = arith.constant dense<0.000000e+00> : vector<49x32xf32>
    %26 = tpu.matmul %25, %23, %cst_24 {dimension_numbers = #tpu.dot_dimension_numbers<[1], [0], [0], [1], [0, 0, 1, 1], [], []>} : vector<49x25xbf16>, vector<25x32xbf16>, vector<49x32xf32> -> vector<49x32xf32>
    %27 = arith.addf %19, %26 : vector<49x32xf32>
    %c2 = arith.constant 2 : index
    %c0_25 = arith.constant 0 : index
    %c0_26 = arith.constant 0 : index
    %28 = vector.load %arg6[%c2, %c0_25, %c0_26] : memref<9x32x32xbf16, #tpu.memory_space<vmem>>, vector<1x32x32xbf16>
    %29 = vector.shape_cast %28 : vector<1x32x32xbf16> to vector<32x32xbf16>
    %cst_27 = arith.constant dense<0.000000e+00> : vector<25x32xf32>
    %30 = tpu.matmul %10, %29, %cst_27 {dimension_numbers = #tpu.dot_dimension_numbers<[1], [0], [0], [1], [0, 0, 1, 1], [], []>} : vector<25x32xbf16>, vector<32x32xbf16>, vector<25x32xf32> -> vector<25x32xf32>
    %31 = arith.truncf %30 : vector<25x32xf32> to vector<25x32xbf16>
    %c2_28 = arith.constant 2 : index
    %c0_29 = arith.constant 0 : index
    %c0_30 = arith.constant 0 : index
    %32 = vector.load %arg5[%c2_28, %c0_29, %c0_30] : memref<9x49x25xbf16, #tpu.memory_space<vmem>>, vector<1x49x25xbf16>
    %33 = vector.shape_cast %32 : vector<1x49x25xbf16> to vector<49x25xbf16>
    %cst_31 = arith.constant dense<0.000000e+00> : vector<49x32xf32>
    %34 = tpu.matmul %33, %31, %cst_31 {dimension_numbers = #tpu.dot_dimension_numbers<[1], [0], [0], [1], [0, 0, 1, 1], [], []>} : vector<49x25xbf16>, vector<25x32xbf16>, vector<49x32xf32> -> vector<49x32xf32>
    %35 = arith.addf %27, %34 : vector<49x32xf32>
    %c3 = arith.constant 3 : index
    %c0_32 = arith.constant 0 : index
    %c0_33 = arith.constant 0 : index
    %36 = vector.load %arg6[%c3, %c0_32, %c0_33] : memref<9x32x32xbf16, #tpu.memory_space<vmem>>, vector<1x32x32xbf16>
    %37 = vector.shape_cast %36 : vector<1x32x32xbf16> to vector<32x32xbf16>
    %cst_34 = arith.constant dense<0.000000e+00> : vector<25x32xf32>
    %38 = tpu.matmul %10, %37, %cst_34 {dimension_numbers = #tpu.dot_dimension_numbers<[1], [0], [0], [1], [0, 0, 1, 1], [], []>} : vector<25x32xbf16>, vector<32x32xbf16>, vector<25x32xf32> -> vector<25x32xf32>
    %39 = arith.truncf %38 : vector<25x32xf32> to vector<25x32xbf16>
    %c3_35 = arith.constant 3 : index
    %c0_36 = arith.constant 0 : index
    %c0_37 = arith.constant 0 : index
    %40 = vector.load %arg5[%c3_35, %c0_36, %c0_37] : memref<9x49x25xbf16, #tpu.memory_space<vmem>>, vector<1x49x25xbf16>
    %41 = vector.shape_cast %40 : vector<1x49x25xbf16> to vector<49x25xbf16>
    %cst_38 = arith.constant dense<0.000000e+00> : vector<49x32xf32>
    %42 = tpu.matmul %41, %39, %cst_38 {dimension_numbers = #tpu.dot_dimension_numbers<[1], [0], [0], [1], [0, 0, 1, 1], [], []>} : vector<49x25xbf16>, vector<25x32xbf16>, vector<49x32xf32> -> vector<49x32xf32>
    %43 = arith.addf %35, %42 : vector<49x32xf32>
    %c4 = arith.constant 4 : index
    %c0_39 = arith.constant 0 : index
    %c0_40 = arith.constant 0 : index
    %44 = vector.load %arg6[%c4, %c0_39, %c0_40] : memref<9x32x32xbf16, #tpu.memory_space<vmem>>, vector<1x32x32xbf16>
    %45 = vector.shape_cast %44 : vector<1x32x32xbf16> to vector<32x32xbf16>
    %cst_41 = arith.constant dense<0.000000e+00> : vector<25x32xf32>
    %46 = tpu.matmul %10, %45, %cst_41 {dimension_numbers = #tpu.dot_dimension_numbers<[1], [0], [0], [1], [0, 0, 1, 1], [], []>} : vector<25x32xbf16>, vector<32x32xbf16>, vector<25x32xf32> -> vector<25x32xf32>
    %47 = arith.truncf %46 : vector<25x32xf32> to vector<25x32xbf16>
    %c4_42 = arith.constant 4 : index
    %c0_43 = arith.constant 0 : index
    %c0_44 = arith.constant 0 : index
    %48 = vector.load %arg5[%c4_42, %c0_43, %c0_44] : memref<9x49x25xbf16, #tpu.memory_space<vmem>>, vector<1x49x25xbf16>
    %49 = vector.shape_cast %48 : vector<1x49x25xbf16> to vector<49x25xbf16>
    %cst_45 = arith.constant dense<0.000000e+00> : vector<49x32xf32>
    %50 = tpu.matmul %49, %47, %cst_45 {dimension_numbers = #tpu.dot_dimension_numbers<[1], [0], [0], [1], [0, 0, 1, 1], [], []>} : vector<49x25xbf16>, vector<25x32xbf16>, vector<49x32xf32> -> vector<49x32xf32>
    %51 = arith.addf %43, %50 : vector<49x32xf32>
    %c5 = arith.constant 5 : index
    %c0_46 = arith.constant 0 : index
    %c0_47 = arith.constant 0 : index
    %52 = vector.load %arg6[%c5, %c0_46, %c0_47] : memref<9x32x32xbf16, #tpu.memory_space<vmem>>, vector<1x32x32xbf16>
    %53 = vector.shape_cast %52 : vector<1x32x32xbf16> to vector<32x32xbf16>
    %cst_48 = arith.constant dense<0.000000e+00> : vector<25x32xf32>
    %54 = tpu.matmul %10, %53, %cst_48 {dimension_numbers = #tpu.dot_dimension_numbers<[1], [0], [0], [1], [0, 0, 1, 1], [], []>} : vector<25x32xbf16>, vector<32x32xbf16>, vector<25x32xf32> -> vector<25x32xf32>
    %55 = arith.truncf %54 : vector<25x32xf32> to vector<25x32xbf16>
    %c5_49 = arith.constant 5 : index
    %c0_50 = arith.constant 0 : index
    %c0_51 = arith.constant 0 : index
    %56 = vector.load %arg5[%c5_49, %c0_50, %c0_51] : memref<9x49x25xbf16, #tpu.memory_space<vmem>>, vector<1x49x25xbf16>
    %57 = vector.shape_cast %56 : vector<1x49x25xbf16> to vector<49x25xbf16>
    %cst_52 = arith.constant dense<0.000000e+00> : vector<49x32xf32>
    %58 = tpu.matmul %57, %55, %cst_52 {dimension_numbers = #tpu.dot_dimension_numbers<[1], [0], [0], [1], [0, 0, 1, 1], [], []>} : vector<49x25xbf16>, vector<25x32xbf16>, vector<49x32xf32> -> vector<49x32xf32>
    %59 = arith.addf %51, %58 : vector<49x32xf32>
    %c6 = arith.constant 6 : index
    %c0_53 = arith.constant 0 : index
    %c0_54 = arith.constant 0 : index
    %60 = vector.load %arg6[%c6, %c0_53, %c0_54] : memref<9x32x32xbf16, #tpu.memory_space<vmem>>, vector<1x32x32xbf16>
    %61 = vector.shape_cast %60 : vector<1x32x32xbf16> to vector<32x32xbf16>
    %cst_55 = arith.constant dense<0.000000e+00> : vector<25x32xf32>
    %62 = tpu.matmul %10, %61, %cst_55 {dimension_numbers = #tpu.dot_dimension_numbers<[1], [0], [0], [1], [0, 0, 1, 1], [], []>} : vector<25x32xbf16>, vector<32x32xbf16>, vector<25x32xf32> -> vector<25x32xf32>
    %63 = arith.truncf %62 : vector<25x32xf32> to vector<25x32xbf16>
    %c6_56 = arith.constant 6 : index
    %c0_57 = arith.constant 0 : index
    %c0_58 = arith.constant 0 : index
    %64 = vector.load %arg5[%c6_56, %c0_57, %c0_58] : memref<9x49x25xbf16, #tpu.memory_space<vmem>>, vector<1x49x25xbf16>
    %65 = vector.shape_cast %64 : vector<1x49x25xbf16> to vector<49x25xbf16>
    %cst_59 = arith.constant dense<0.000000e+00> : vector<49x32xf32>
    %66 = tpu.matmul %65, %63, %cst_59 {dimension_numbers = #tpu.dot_dimension_numbers<[1], [0], [0], [1], [0, 0, 1, 1], [], []>} : vector<49x25xbf16>, vector<25x32xbf16>, vector<49x32xf32> -> vector<49x32xf32>
    %67 = arith.addf %59, %66 : vector<49x32xf32>
    %c7 = arith.constant 7 : index
    %c0_60 = arith.constant 0 : index
    %c0_61 = arith.constant 0 : index
    %68 = vector.load %arg6[%c7, %c0_60, %c0_61] : memref<9x32x32xbf16, #tpu.memory_space<vmem>>, vector<1x32x32xbf16>
    %69 = vector.shape_cast %68 : vector<1x32x32xbf16> to vector<32x32xbf16>
    %cst_62 = arith.constant dense<0.000000e+00> : vector<25x32xf32>
    %70 = tpu.matmul %10, %69, %cst_62 {dimension_numbers = #tpu.dot_dimension_numbers<[1], [0], [0], [1], [0, 0, 1, 1], [], []>} : vector<25x32xbf16>, vector<32x32xbf16>, vector<25x32xf32> -> vector<25x32xf32>
    %71 = arith.truncf %70 : vector<25x32xf32> to vector<25x32xbf16>
    %c7_63 = arith.constant 7 : index
    %c0_64 = arith.constant 0 : index
    %c0_65 = arith.constant 0 : index
    %72 = vector.load %arg5[%c7_63, %c0_64, %c0_65] : memref<9x49x25xbf16, #tpu.memory_space<vmem>>, vector<1x49x25xbf16>
    %73 = vector.shape_cast %72 : vector<1x49x25xbf16> to vector<49x25xbf16>
    %cst_66 = arith.constant dense<0.000000e+00> : vector<49x32xf32>
    %74 = tpu.matmul %73, %71, %cst_66 {dimension_numbers = #tpu.dot_dimension_numbers<[1], [0], [0], [1], [0, 0, 1, 1], [], []>} : vector<49x25xbf16>, vector<25x32xbf16>, vector<49x32xf32> -> vector<49x32xf32>
    %75 = arith.addf %67, %74 : vector<49x32xf32>
    %c8 = arith.constant 8 : index
    %c0_67 = arith.constant 0 : index
    %c0_68 = arith.constant 0 : index
    %76 = vector.load %arg6[%c8, %c0_67, %c0_68] : memref<9x32x32xbf16, #tpu.memory_space<vmem>>, vector<1x32x32xbf16>
    %77 = vector.shape_cast %76 : vector<1x32x32xbf16> to vector<32x32xbf16>
    %cst_69 = arith.constant dense<0.000000e+00> : vector<25x32xf32>
    %78 = tpu.matmul %10, %77, %cst_69 {dimension_numbers = #tpu.dot_dimension_numbers<[1], [0], [0], [1], [0, 0, 1, 1], [], []>} : vector<25x32xbf16>, vector<32x32xbf16>, vector<25x32xf32> -> vector<25x32xf32>
    %79 = arith.truncf %78 : vector<25x32xf32> to vector<25x32xbf16>
    %c8_70 = arith.constant 8 : index
    %c0_71 = arith.constant 0 : index
    %c0_72 = arith.constant 0 : index
    %80 = vector.load %arg5[%c8_70, %c0_71, %c0_72] : memref<9x49x25xbf16, #tpu.memory_space<vmem>>, vector<1x49x25xbf16>
    %81 = vector.shape_cast %80 : vector<1x49x25xbf16> to vector<49x25xbf16>
    %cst_73 = arith.constant dense<0.000000e+00> : vector<49x32xf32>
    %82 = tpu.matmul %81, %79, %cst_73 {dimension_numbers = #tpu.dot_dimension_numbers<[1], [0], [0], [1], [0, 0, 1, 1], [], []>} : vector<49x25xbf16>, vector<25x32xbf16>, vector<49x32xf32> -> vector<49x32xf32>
    %83 = arith.addf %75, %82 : vector<49x32xf32>
    %c0_74 = arith.constant 0 : index
    %c0_75 = arith.constant 0 : index
    %84 = vector.load %arg7[%c0_74, %c0_75] : memref<1x32xf32, #tpu.memory_space<vmem>>, vector<1x32xf32>
    %85 = vector.broadcast %84 : vector<1x32xf32> to vector<49x32xf32>
    %86 = arith.addf %83, %85 : vector<49x32xf32>
    %cst_76 = arith.constant 0.000000e+00 : f32
    %87 = vector.broadcast %cst_76 : f32 to vector<49x32xf32>
    %88 = arith.maximumf %86, %87 : vector<49x32xf32>
    %89 = arith.truncf %88 : vector<49x32xf32> to vector<49x32xbf16>
    %cst_77 = arith.constant 0.000000e+00 : f32
    %90 = vector.broadcast %cst_77 : f32 to vector<98x16xf32>
    %c0_78 = arith.constant 0 : index
    %c0_79 = arith.constant 0 : index
    %c0_80 = arith.constant 0 : index
    %91 = vector.load %arg9[%c0_78, %c0_79, %c0_80] : memref<9x32x16xbf16, #tpu.memory_space<vmem>>, vector<1x32x16xbf16>
    %92 = vector.shape_cast %91 : vector<1x32x16xbf16> to vector<32x16xbf16>
    %cst_81 = arith.constant dense<0.000000e+00> : vector<49x16xf32>
    %93 = tpu.matmul %89, %92, %cst_81 {dimension_numbers = #tpu.dot_dimension_numbers<[1], [0], [0], [1], [0, 0, 1, 1], [], []>} : vector<49x32xbf16>, vector<32x16xbf16>, vector<49x16xf32> -> vector<49x16xf32>
    %94 = arith.truncf %93 : vector<49x16xf32> to vector<49x16xbf16>
    %c0_82 = arith.constant 0 : index
    %c0_83 = arith.constant 0 : index
    %c0_84 = arith.constant 0 : index
    %95 = vector.load %arg8[%c0_82, %c0_83, %c0_84] : memref<9x98x49xbf16, #tpu.memory_space<vmem>>, vector<1x98x49xbf16>
    %96 = vector.shape_cast %95 : vector<1x98x49xbf16> to vector<98x49xbf16>
    %cst_85 = arith.constant dense<0.000000e+00> : vector<98x16xf32>
    %97 = tpu.matmul %96, %94, %cst_85 {dimension_numbers = #tpu.dot_dimension_numbers<[1], [0], [0], [1], [0, 0, 1, 1], [], []>} : vector<98x49xbf16>, vector<49x16xbf16>, vector<98x16xf32> -> vector<98x16xf32>
    %98 = arith.addf %90, %97 : vector<98x16xf32>
    %c1_86 = arith.constant 1 : index
    %c0_87 = arith.constant 0 : index
    %c0_88 = arith.constant 0 : index
    %99 = vector.load %arg9[%c1_86, %c0_87, %c0_88] : memref<9x32x16xbf16, #tpu.memory_space<vmem>>, vector<1x32x16xbf16>
    %100 = vector.shape_cast %99 : vector<1x32x16xbf16> to vector<32x16xbf16>
    %cst_89 = arith.constant dense<0.000000e+00> : vector<49x16xf32>
    %101 = tpu.matmul %89, %100, %cst_89 {dimension_numbers = #tpu.dot_dimension_numbers<[1], [0], [0], [1], [0, 0, 1, 1], [], []>} : vector<49x32xbf16>, vector<32x16xbf16>, vector<49x16xf32> -> vector<49x16xf32>
    %102 = arith.truncf %101 : vector<49x16xf32> to vector<49x16xbf16>
    %c1_90 = arith.constant 1 : index
    %c0_91 = arith.constant 0 : index
    %c0_92 = arith.constant 0 : index
    %103 = vector.load %arg8[%c1_90, %c0_91, %c0_92] : memref<9x98x49xbf16, #tpu.memory_space<vmem>>, vector<1x98x49xbf16>
    %104 = vector.shape_cast %103 : vector<1x98x49xbf16> to vector<98x49xbf16>
    %cst_93 = arith.constant dense<0.000000e+00> : vector<98x16xf32>
    %105 = tpu.matmul %104, %102, %cst_93 {dimension_numbers = #tpu.dot_dimension_numbers<[1], [0], [0], [1], [0, 0, 1, 1], [], []>} : vector<98x49xbf16>, vector<49x16xbf16>, vector<98x16xf32> -> vector<98x16xf32>
    %106 = arith.addf %98, %105 : vector<98x16xf32>
    %c2_94 = arith.constant 2 : index
    %c0_95 = arith.constant 0 : index
    %c0_96 = arith.constant 0 : index
    %107 = vector.load %arg9[%c2_94, %c0_95, %c0_96] : memref<9x32x16xbf16, #tpu.memory_space<vmem>>, vector<1x32x16xbf16>
    %108 = vector.shape_cast %107 : vector<1x32x16xbf16> to vector<32x16xbf16>
    %cst_97 = arith.constant dense<0.000000e+00> : vector<49x16xf32>
    %109 = tpu.matmul %89, %108, %cst_97 {dimension_numbers = #tpu.dot_dimension_numbers<[1], [0], [0], [1], [0, 0, 1, 1], [], []>} : vector<49x32xbf16>, vector<32x16xbf16>, vector<49x16xf32> -> vector<49x16xf32>
    %110 = arith.truncf %109 : vector<49x16xf32> to vector<49x16xbf16>
    %c2_98 = arith.constant 2 : index
    %c0_99 = arith.constant 0 : index
    %c0_100 = arith.constant 0 : index
    %111 = vector.load %arg8[%c2_98, %c0_99, %c0_100] : memref<9x98x49xbf16, #tpu.memory_space<vmem>>, vector<1x98x49xbf16>
    %112 = vector.shape_cast %111 : vector<1x98x49xbf16> to vector<98x49xbf16>
    %cst_101 = arith.constant dense<0.000000e+00> : vector<98x16xf32>
    %113 = tpu.matmul %112, %110, %cst_101 {dimension_numbers = #tpu.dot_dimension_numbers<[1], [0], [0], [1], [0, 0, 1, 1], [], []>} : vector<98x49xbf16>, vector<49x16xbf16>, vector<98x16xf32> -> vector<98x16xf32>
    %114 = arith.addf %106, %113 : vector<98x16xf32>
    %c3_102 = arith.constant 3 : index
    %c0_103 = arith.constant 0 : index
    %c0_104 = arith.constant 0 : index
    %115 = vector.load %arg9[%c3_102, %c0_103, %c0_104] : memref<9x32x16xbf16, #tpu.memory_space<vmem>>, vector<1x32x16xbf16>
    %116 = vector.shape_cast %115 : vector<1x32x16xbf16> to vector<32x16xbf16>
    %cst_105 = arith.constant dense<0.000000e+00> : vector<49x16xf32>
    %117 = tpu.matmul %89, %116, %cst_105 {dimension_numbers = #tpu.dot_dimension_numbers<[1], [0], [0], [1], [0, 0, 1, 1], [], []>} : vector<49x32xbf16>, vector<32x16xbf16>, vector<49x16xf32> -> vector<49x16xf32>
    %118 = arith.truncf %117 : vector<49x16xf32> to vector<49x16xbf16>
    %c3_106 = arith.constant 3 : index
    %c0_107 = arith.constant 0 : index
    %c0_108 = arith.constant 0 : index
    %119 = vector.load %arg8[%c3_106, %c0_107, %c0_108] : memref<9x98x49xbf16, #tpu.memory_space<vmem>>, vector<1x98x49xbf16>
    %120 = vector.shape_cast %119 : vector<1x98x49xbf16> to vector<98x49xbf16>
    %cst_109 = arith.constant dense<0.000000e+00> : vector<98x16xf32>
    %121 = tpu.matmul %120, %118, %cst_109 {dimension_numbers = #tpu.dot_dimension_numbers<[1], [0], [0], [1], [0, 0, 1, 1], [], []>} : vector<98x49xbf16>, vector<49x16xbf16>, vector<98x16xf32> -> vector<98x16xf32>
    %122 = arith.addf %114, %121 : vector<98x16xf32>
    %c4_110 = arith.constant 4 : index
    %c0_111 = arith.constant 0 : index
    %c0_112 = arith.constant 0 : index
    %123 = vector.load %arg9[%c4_110, %c0_111, %c0_112] : memref<9x32x16xbf16, #tpu.memory_space<vmem>>, vector<1x32x16xbf16>
    %124 = vector.shape_cast %123 : vector<1x32x16xbf16> to vector<32x16xbf16>
    %cst_113 = arith.constant dense<0.000000e+00> : vector<49x16xf32>
    %125 = tpu.matmul %89, %124, %cst_113 {dimension_numbers = #tpu.dot_dimension_numbers<[1], [0], [0], [1], [0, 0, 1, 1], [], []>} : vector<49x32xbf16>, vector<32x16xbf16>, vector<49x16xf32> -> vector<49x16xf32>
    %126 = arith.truncf %125 : vector<49x16xf32> to vector<49x16xbf16>
    %c4_114 = arith.constant 4 : index
    %c0_115 = arith.constant 0 : index
    %c0_116 = arith.constant 0 : index
    %127 = vector.load %arg8[%c4_114, %c0_115, %c0_116] : memref<9x98x49xbf16, #tpu.memory_space<vmem>>, vector<1x98x49xbf16>
    %128 = vector.shape_cast %127 : vector<1x98x49xbf16> to vector<98x49xbf16>
    %cst_117 = arith.constant dense<0.000000e+00> : vector<98x16xf32>
    %129 = tpu.matmul %128, %126, %cst_117 {dimension_numbers = #tpu.dot_dimension_numbers<[1], [0], [0], [1], [0, 0, 1, 1], [], []>} : vector<98x49xbf16>, vector<49x16xbf16>, vector<98x16xf32> -> vector<98x16xf32>
    %130 = arith.addf %122, %129 : vector<98x16xf32>
    %c5_118 = arith.constant 5 : index
    %c0_119 = arith.constant 0 : index
    %c0_120 = arith.constant 0 : index
    %131 = vector.load %arg9[%c5_118, %c0_119, %c0_120] : memref<9x32x16xbf16, #tpu.memory_space<vmem>>, vector<1x32x16xbf16>
    %132 = vector.shape_cast %131 : vector<1x32x16xbf16> to vector<32x16xbf16>
    %cst_121 = arith.constant dense<0.000000e+00> : vector<49x16xf32>
    %133 = tpu.matmul %89, %132, %cst_121 {dimension_numbers = #tpu.dot_dimension_numbers<[1], [0], [0], [1], [0, 0, 1, 1], [], []>} : vector<49x32xbf16>, vector<32x16xbf16>, vector<49x16xf32> -> vector<49x16xf32>
    %134 = arith.truncf %133 : vector<49x16xf32> to vector<49x16xbf16>
    %c5_122 = arith.constant 5 : index
    %c0_123 = arith.constant 0 : index
    %c0_124 = arith.constant 0 : index
    %135 = vector.load %arg8[%c5_122, %c0_123, %c0_124] : memref<9x98x49xbf16, #tpu.memory_space<vmem>>, vector<1x98x49xbf16>
    %136 = vector.shape_cast %135 : vector<1x98x49xbf16> to vector<98x49xbf16>
    %cst_125 = arith.constant dense<0.000000e+00> : vector<98x16xf32>
    %137 = tpu.matmul %136, %134, %cst_125 {dimension_numbers = #tpu.dot_dimension_numbers<[1], [0], [0], [1], [0, 0, 1, 1], [], []>} : vector<98x49xbf16>, vector<49x16xbf16>, vector<98x16xf32> -> vector<98x16xf32>
    %138 = arith.addf %130, %137 : vector<98x16xf32>
    %c6_126 = arith.constant 6 : index
    %c0_127 = arith.constant 0 : index
    %c0_128 = arith.constant 0 : index
    %139 = vector.load %arg9[%c6_126, %c0_127, %c0_128] : memref<9x32x16xbf16, #tpu.memory_space<vmem>>, vector<1x32x16xbf16>
    %140 = vector.shape_cast %139 : vector<1x32x16xbf16> to vector<32x16xbf16>
    %cst_129 = arith.constant dense<0.000000e+00> : vector<49x16xf32>
    %141 = tpu.matmul %89, %140, %cst_129 {dimension_numbers = #tpu.dot_dimension_numbers<[1], [0], [0], [1], [0, 0, 1, 1], [], []>} : vector<49x32xbf16>, vector<32x16xbf16>, vector<49x16xf32> -> vector<49x16xf32>
    %142 = arith.truncf %141 : vector<49x16xf32> to vector<49x16xbf16>
    %c6_130 = arith.constant 6 : index
    %c0_131 = arith.constant 0 : index
    %c0_132 = arith.constant 0 : index
    %143 = vector.load %arg8[%c6_130, %c0_131, %c0_132] : memref<9x98x49xbf16, #tpu.memory_space<vmem>>, vector<1x98x49xbf16>
    %144 = vector.shape_cast %143 : vector<1x98x49xbf16> to vector<98x49xbf16>
    %cst_133 = arith.constant dense<0.000000e+00> : vector<98x16xf32>
    %145 = tpu.matmul %144, %142, %cst_133 {dimension_numbers = #tpu.dot_dimension_numbers<[1], [0], [0], [1], [0, 0, 1, 1], [], []>} : vector<98x49xbf16>, vector<49x16xbf16>, vector<98x16xf32> -> vector<98x16xf32>
    %146 = arith.addf %138, %145 : vector<98x16xf32>
    %c7_134 = arith.constant 7 : index
    %c0_135 = arith.constant 0 : index
    %c0_136 = arith.constant 0 : index
    %147 = vector.load %arg9[%c7_134, %c0_135, %c0_136] : memref<9x32x16xbf16, #tpu.memory_space<vmem>>, vector<1x32x16xbf16>
    %148 = vector.shape_cast %147 : vector<1x32x16xbf16> to vector<32x16xbf16>
    %cst_137 = arith.constant dense<0.000000e+00> : vector<49x16xf32>
    %149 = tpu.matmul %89, %148, %cst_137 {dimension_numbers = #tpu.dot_dimension_numbers<[1], [0], [0], [1], [0, 0, 1, 1], [], []>} : vector<49x32xbf16>, vector<32x16xbf16>, vector<49x16xf32> -> vector<49x16xf32>
    %150 = arith.truncf %149 : vector<49x16xf32> to vector<49x16xbf16>
    %c7_138 = arith.constant 7 : index
    %c0_139 = arith.constant 0 : index
    %c0_140 = arith.constant 0 : index
    %151 = vector.load %arg8[%c7_138, %c0_139, %c0_140] : memref<9x98x49xbf16, #tpu.memory_space<vmem>>, vector<1x98x49xbf16>
    %152 = vector.shape_cast %151 : vector<1x98x49xbf16> to vector<98x49xbf16>
    %cst_141 = arith.constant dense<0.000000e+00> : vector<98x16xf32>
    %153 = tpu.matmul %152, %150, %cst_141 {dimension_numbers = #tpu.dot_dimension_numbers<[1], [0], [0], [1], [0, 0, 1, 1], [], []>} : vector<98x49xbf16>, vector<49x16xbf16>, vector<98x16xf32> -> vector<98x16xf32>
    %154 = arith.addf %146, %153 : vector<98x16xf32>
    %c8_142 = arith.constant 8 : index
    %c0_143 = arith.constant 0 : index
    %c0_144 = arith.constant 0 : index
    %155 = vector.load %arg9[%c8_142, %c0_143, %c0_144] : memref<9x32x16xbf16, #tpu.memory_space<vmem>>, vector<1x32x16xbf16>
    %156 = vector.shape_cast %155 : vector<1x32x16xbf16> to vector<32x16xbf16>
    %cst_145 = arith.constant dense<0.000000e+00> : vector<49x16xf32>
    %157 = tpu.matmul %89, %156, %cst_145 {dimension_numbers = #tpu.dot_dimension_numbers<[1], [0], [0], [1], [0, 0, 1, 1], [], []>} : vector<49x32xbf16>, vector<32x16xbf16>, vector<49x16xf32> -> vector<49x16xf32>
    %158 = arith.truncf %157 : vector<49x16xf32> to vector<49x16xbf16>
    %c8_146 = arith.constant 8 : index
    %c0_147 = arith.constant 0 : index
    %c0_148 = arith.constant 0 : index
    %159 = vector.load %arg8[%c8_146, %c0_147, %c0_148] : memref<9x98x49xbf16, #tpu.memory_space<vmem>>, vector<1x98x49xbf16>
    %160 = vector.shape_cast %159 : vector<1x98x49xbf16> to vector<98x49xbf16>
    %cst_149 = arith.constant dense<0.000000e+00> : vector<98x16xf32>
    %161 = tpu.matmul %160, %158, %cst_149 {dimension_numbers = #tpu.dot_dimension_numbers<[1], [0], [0], [1], [0, 0, 1, 1], [], []>} : vector<98x49xbf16>, vector<49x16xbf16>, vector<98x16xf32> -> vector<98x16xf32>
    %162 = arith.addf %154, %161 : vector<98x16xf32>
    %c0_150 = arith.constant 0 : index
    %c0_151 = arith.constant 0 : index
    %163 = vector.load %arg10[%c0_150, %c0_151] : memref<1x16xf32, #tpu.memory_space<vmem>>, vector<1x16xf32>
    %164 = vector.broadcast %163 : vector<1x16xf32> to vector<98x16xf32>
    %165 = arith.addf %162, %164 : vector<98x16xf32>
    %cst_152 = arith.constant 0.000000e+00 : f32
    %166 = vector.broadcast %cst_152 : f32 to vector<98x16xf32>
    %167 = arith.maximumf %165, %166 : vector<98x16xf32>
    %168 = arith.truncf %167 : vector<98x16xf32> to vector<98x16xbf16>
    %cst_153 = arith.constant 0.000000e+00 : f32
    %169 = vector.broadcast %cst_153 : f32 to vector<196x8xf32>
    %c0_154 = arith.constant 0 : index
    %c0_155 = arith.constant 0 : index
    %c0_156 = arith.constant 0 : index
    %170 = vector.load %arg12[%c0_154, %c0_155, %c0_156] : memref<9x16x8xbf16, #tpu.memory_space<vmem>>, vector<1x16x8xbf16>
    %171 = vector.shape_cast %170 : vector<1x16x8xbf16> to vector<16x8xbf16>
    %cst_157 = arith.constant dense<0.000000e+00> : vector<98x8xf32>
    %172 = tpu.matmul %168, %171, %cst_157 {dimension_numbers = #tpu.dot_dimension_numbers<[1], [0], [0], [1], [0, 0, 1, 1], [], []>} : vector<98x16xbf16>, vector<16x8xbf16>, vector<98x8xf32> -> vector<98x8xf32>
    %173 = arith.truncf %172 : vector<98x8xf32> to vector<98x8xbf16>
    %c0_158 = arith.constant 0 : index
    %c0_159 = arith.constant 0 : index
    %c0_160 = arith.constant 0 : index
    %174 = vector.load %arg11[%c0_158, %c0_159, %c0_160] : memref<9x196x98xbf16, #tpu.memory_space<vmem>>, vector<1x196x98xbf16>
    %175 = vector.shape_cast %174 : vector<1x196x98xbf16> to vector<196x98xbf16>
    %cst_161 = arith.constant dense<0.000000e+00> : vector<196x8xf32>
    %176 = tpu.matmul %175, %173, %cst_161 {dimension_numbers = #tpu.dot_dimension_numbers<[1], [0], [0], [1], [0, 0, 1, 1], [], []>} : vector<196x98xbf16>, vector<98x8xbf16>, vector<196x8xf32> -> vector<196x8xf32>
    %177 = arith.addf %169, %176 : vector<196x8xf32>
    %c1_162 = arith.constant 1 : index
    %c0_163 = arith.constant 0 : index
    %c0_164 = arith.constant 0 : index
    %178 = vector.load %arg12[%c1_162, %c0_163, %c0_164] : memref<9x16x8xbf16, #tpu.memory_space<vmem>>, vector<1x16x8xbf16>
    %179 = vector.shape_cast %178 : vector<1x16x8xbf16> to vector<16x8xbf16>
    %cst_165 = arith.constant dense<0.000000e+00> : vector<98x8xf32>
    %180 = tpu.matmul %168, %179, %cst_165 {dimension_numbers = #tpu.dot_dimension_numbers<[1], [0], [0], [1], [0, 0, 1, 1], [], []>} : vector<98x16xbf16>, vector<16x8xbf16>, vector<98x8xf32> -> vector<98x8xf32>
    %181 = arith.truncf %180 : vector<98x8xf32> to vector<98x8xbf16>
    %c1_166 = arith.constant 1 : index
    %c0_167 = arith.constant 0 : index
    %c0_168 = arith.constant 0 : index
    %182 = vector.load %arg11[%c1_166, %c0_167, %c0_168] : memref<9x196x98xbf16, #tpu.memory_space<vmem>>, vector<1x196x98xbf16>
    %183 = vector.shape_cast %182 : vector<1x196x98xbf16> to vector<196x98xbf16>
    %cst_169 = arith.constant dense<0.000000e+00> : vector<196x8xf32>
    %184 = tpu.matmul %183, %181, %cst_169 {dimension_numbers = #tpu.dot_dimension_numbers<[1], [0], [0], [1], [0, 0, 1, 1], [], []>} : vector<196x98xbf16>, vector<98x8xbf16>, vector<196x8xf32> -> vector<196x8xf32>
    %185 = arith.addf %177, %184 : vector<196x8xf32>
    %c2_170 = arith.constant 2 : index
    %c0_171 = arith.constant 0 : index
    %c0_172 = arith.constant 0 : index
    %186 = vector.load %arg12[%c2_170, %c0_171, %c0_172] : memref<9x16x8xbf16, #tpu.memory_space<vmem>>, vector<1x16x8xbf16>
    %187 = vector.shape_cast %186 : vector<1x16x8xbf16> to vector<16x8xbf16>
    %cst_173 = arith.constant dense<0.000000e+00> : vector<98x8xf32>
    %188 = tpu.matmul %168, %187, %cst_173 {dimension_numbers = #tpu.dot_dimension_numbers<[1], [0], [0], [1], [0, 0, 1, 1], [], []>} : vector<98x16xbf16>, vector<16x8xbf16>, vector<98x8xf32> -> vector<98x8xf32>
    %189 = arith.truncf %188 : vector<98x8xf32> to vector<98x8xbf16>
    %c2_174 = arith.constant 2 : index
    %c0_175 = arith.constant 0 : index
    %c0_176 = arith.constant 0 : index
    %190 = vector.load %arg11[%c2_174, %c0_175, %c0_176] : memref<9x196x98xbf16, #tpu.memory_space<vmem>>, vector<1x196x98xbf16>
    %191 = vector.shape_cast %190 : vector<1x196x98xbf16> to vector<196x98xbf16>
    %cst_177 = arith.constant dense<0.000000e+00> : vector<196x8xf32>
    %192 = tpu.matmul %191, %189, %cst_177 {dimension_numbers = #tpu.dot_dimension_numbers<[1], [0], [0], [1], [0, 0, 1, 1], [], []>} : vector<196x98xbf16>, vector<98x8xbf16>, vector<196x8xf32> -> vector<196x8xf32>
    %193 = arith.addf %185, %192 : vector<196x8xf32>
    %c3_178 = arith.constant 3 : index
    %c0_179 = arith.constant 0 : index
    %c0_180 = arith.constant 0 : index
    %194 = vector.load %arg12[%c3_178, %c0_179, %c0_180] : memref<9x16x8xbf16, #tpu.memory_space<vmem>>, vector<1x16x8xbf16>
    %195 = vector.shape_cast %194 : vector<1x16x8xbf16> to vector<16x8xbf16>
    %cst_181 = arith.constant dense<0.000000e+00> : vector<98x8xf32>
    %196 = tpu.matmul %168, %195, %cst_181 {dimension_numbers = #tpu.dot_dimension_numbers<[1], [0], [0], [1], [0, 0, 1, 1], [], []>} : vector<98x16xbf16>, vector<16x8xbf16>, vector<98x8xf32> -> vector<98x8xf32>
    %197 = arith.truncf %196 : vector<98x8xf32> to vector<98x8xbf16>
    %c3_182 = arith.constant 3 : index
    %c0_183 = arith.constant 0 : index
    %c0_184 = arith.constant 0 : index
    %198 = vector.load %arg11[%c3_182, %c0_183, %c0_184] : memref<9x196x98xbf16, #tpu.memory_space<vmem>>, vector<1x196x98xbf16>
    %199 = vector.shape_cast %198 : vector<1x196x98xbf16> to vector<196x98xbf16>
    %cst_185 = arith.constant dense<0.000000e+00> : vector<196x8xf32>
    %200 = tpu.matmul %199, %197, %cst_185 {dimension_numbers = #tpu.dot_dimension_numbers<[1], [0], [0], [1], [0, 0, 1, 1], [], []>} : vector<196x98xbf16>, vector<98x8xbf16>, vector<196x8xf32> -> vector<196x8xf32>
    %201 = arith.addf %193, %200 : vector<196x8xf32>
    %c4_186 = arith.constant 4 : index
    %c0_187 = arith.constant 0 : index
    %c0_188 = arith.constant 0 : index
    %202 = vector.load %arg12[%c4_186, %c0_187, %c0_188] : memref<9x16x8xbf16, #tpu.memory_space<vmem>>, vector<1x16x8xbf16>
    %203 = vector.shape_cast %202 : vector<1x16x8xbf16> to vector<16x8xbf16>
    %cst_189 = arith.constant dense<0.000000e+00> : vector<98x8xf32>
    %204 = tpu.matmul %168, %203, %cst_189 {dimension_numbers = #tpu.dot_dimension_numbers<[1], [0], [0], [1], [0, 0, 1, 1], [], []>} : vector<98x16xbf16>, vector<16x8xbf16>, vector<98x8xf32> -> vector<98x8xf32>
    %205 = arith.truncf %204 : vector<98x8xf32> to vector<98x8xbf16>
    %c4_190 = arith.constant 4 : index
    %c0_191 = arith.constant 0 : index
    %c0_192 = arith.constant 0 : index
    %206 = vector.load %arg11[%c4_190, %c0_191, %c0_192] : memref<9x196x98xbf16, #tpu.memory_space<vmem>>, vector<1x196x98xbf16>
    %207 = vector.shape_cast %206 : vector<1x196x98xbf16> to vector<196x98xbf16>
    %cst_193 = arith.constant dense<0.000000e+00> : vector<196x8xf32>
    %208 = tpu.matmul %207, %205, %cst_193 {dimension_numbers = #tpu.dot_dimension_numbers<[1], [0], [0], [1], [0, 0, 1, 1], [], []>} : vector<196x98xbf16>, vector<98x8xbf16>, vector<196x8xf32> -> vector<196x8xf32>
    %209 = arith.addf %201, %208 : vector<196x8xf32>
    %c5_194 = arith.constant 5 : index
    %c0_195 = arith.constant 0 : index
    %c0_196 = arith.constant 0 : index
    %210 = vector.load %arg12[%c5_194, %c0_195, %c0_196] : memref<9x16x8xbf16, #tpu.memory_space<vmem>>, vector<1x16x8xbf16>
    %211 = vector.shape_cast %210 : vector<1x16x8xbf16> to vector<16x8xbf16>
    %cst_197 = arith.constant dense<0.000000e+00> : vector<98x8xf32>
    %212 = tpu.matmul %168, %211, %cst_197 {dimension_numbers = #tpu.dot_dimension_numbers<[1], [0], [0], [1], [0, 0, 1, 1], [], []>} : vector<98x16xbf16>, vector<16x8xbf16>, vector<98x8xf32> -> vector<98x8xf32>
    %213 = arith.truncf %212 : vector<98x8xf32> to vector<98x8xbf16>
    %c5_198 = arith.constant 5 : index
    %c0_199 = arith.constant 0 : index
    %c0_200 = arith.constant 0 : index
    %214 = vector.load %arg11[%c5_198, %c0_199, %c0_200] : memref<9x196x98xbf16, #tpu.memory_space<vmem>>, vector<1x196x98xbf16>
    %215 = vector.shape_cast %214 : vector<1x196x98xbf16> to vector<196x98xbf16>
    %cst_201 = arith.constant dense<0.000000e+00> : vector<196x8xf32>
    %216 = tpu.matmul %215, %213, %cst_201 {dimension_numbers = #tpu.dot_dimension_numbers<[1], [0], [0], [1], [0, 0, 1, 1], [], []>} : vector<196x98xbf16>, vector<98x8xbf16>, vector<196x8xf32> -> vector<196x8xf32>
    %217 = arith.addf %209, %216 : vector<196x8xf32>
    %c6_202 = arith.constant 6 : index
    %c0_203 = arith.constant 0 : index
    %c0_204 = arith.constant 0 : index
    %218 = vector.load %arg12[%c6_202, %c0_203, %c0_204] : memref<9x16x8xbf16, #tpu.memory_space<vmem>>, vector<1x16x8xbf16>
    %219 = vector.shape_cast %218 : vector<1x16x8xbf16> to vector<16x8xbf16>
    %cst_205 = arith.constant dense<0.000000e+00> : vector<98x8xf32>
    %220 = tpu.matmul %168, %219, %cst_205 {dimension_numbers = #tpu.dot_dimension_numbers<[1], [0], [0], [1], [0, 0, 1, 1], [], []>} : vector<98x16xbf16>, vector<16x8xbf16>, vector<98x8xf32> -> vector<98x8xf32>
    %221 = arith.truncf %220 : vector<98x8xf32> to vector<98x8xbf16>
    %c6_206 = arith.constant 6 : index
    %c0_207 = arith.constant 0 : index
    %c0_208 = arith.constant 0 : index
    %222 = vector.load %arg11[%c6_206, %c0_207, %c0_208] : memref<9x196x98xbf16, #tpu.memory_space<vmem>>, vector<1x196x98xbf16>
    %223 = vector.shape_cast %222 : vector<1x196x98xbf16> to vector<196x98xbf16>
    %cst_209 = arith.constant dense<0.000000e+00> : vector<196x8xf32>
    %224 = tpu.matmul %223, %221, %cst_209 {dimension_numbers = #tpu.dot_dimension_numbers<[1], [0], [0], [1], [0, 0, 1, 1], [], []>} : vector<196x98xbf16>, vector<98x8xbf16>, vector<196x8xf32> -> vector<196x8xf32>
    %225 = arith.addf %217, %224 : vector<196x8xf32>
    %c7_210 = arith.constant 7 : index
    %c0_211 = arith.constant 0 : index
    %c0_212 = arith.constant 0 : index
    %226 = vector.load %arg12[%c7_210, %c0_211, %c0_212] : memref<9x16x8xbf16, #tpu.memory_space<vmem>>, vector<1x16x8xbf16>
    %227 = vector.shape_cast %226 : vector<1x16x8xbf16> to vector<16x8xbf16>
    %cst_213 = arith.constant dense<0.000000e+00> : vector<98x8xf32>
    %228 = tpu.matmul %168, %227, %cst_213 {dimension_numbers = #tpu.dot_dimension_numbers<[1], [0], [0], [1], [0, 0, 1, 1], [], []>} : vector<98x16xbf16>, vector<16x8xbf16>, vector<98x8xf32> -> vector<98x8xf32>
    %229 = arith.truncf %228 : vector<98x8xf32> to vector<98x8xbf16>
    %c7_214 = arith.constant 7 : index
    %c0_215 = arith.constant 0 : index
    %c0_216 = arith.constant 0 : index
    %230 = vector.load %arg11[%c7_214, %c0_215, %c0_216] : memref<9x196x98xbf16, #tpu.memory_space<vmem>>, vector<1x196x98xbf16>
    %231 = vector.shape_cast %230 : vector<1x196x98xbf16> to vector<196x98xbf16>
    %cst_217 = arith.constant dense<0.000000e+00> : vector<196x8xf32>
    %232 = tpu.matmul %231, %229, %cst_217 {dimension_numbers = #tpu.dot_dimension_numbers<[1], [0], [0], [1], [0, 0, 1, 1], [], []>} : vector<196x98xbf16>, vector<98x8xbf16>, vector<196x8xf32> -> vector<196x8xf32>
    %233 = arith.addf %225, %232 : vector<196x8xf32>
    %c8_218 = arith.constant 8 : index
    %c0_219 = arith.constant 0 : index
    %c0_220 = arith.constant 0 : index
    %234 = vector.load %arg12[%c8_218, %c0_219, %c0_220] : memref<9x16x8xbf16, #tpu.memory_space<vmem>>, vector<1x16x8xbf16>
    %235 = vector.shape_cast %234 : vector<1x16x8xbf16> to vector<16x8xbf16>
    %cst_221 = arith.constant dense<0.000000e+00> : vector<98x8xf32>
    %236 = tpu.matmul %168, %235, %cst_221 {dimension_numbers = #tpu.dot_dimension_numbers<[1], [0], [0], [1], [0, 0, 1, 1], [], []>} : vector<98x16xbf16>, vector<16x8xbf16>, vector<98x8xf32> -> vector<98x8xf32>
    %237 = arith.truncf %236 : vector<98x8xf32> to vector<98x8xbf16>
    %c8_222 = arith.constant 8 : index
    %c0_223 = arith.constant 0 : index
    %c0_224 = arith.constant 0 : index
    %238 = vector.load %arg11[%c8_222, %c0_223, %c0_224] : memref<9x196x98xbf16, #tpu.memory_space<vmem>>, vector<1x196x98xbf16>
    %239 = vector.shape_cast %238 : vector<1x196x98xbf16> to vector<196x98xbf16>
    %cst_225 = arith.constant dense<0.000000e+00> : vector<196x8xf32>
    %240 = tpu.matmul %239, %237, %cst_225 {dimension_numbers = #tpu.dot_dimension_numbers<[1], [0], [0], [1], [0, 0, 1, 1], [], []>} : vector<196x98xbf16>, vector<98x8xbf16>, vector<196x8xf32> -> vector<196x8xf32>
    %241 = arith.addf %233, %240 : vector<196x8xf32>
    %c0_226 = arith.constant 0 : index
    %c0_227 = arith.constant 0 : index
    %242 = vector.load %arg13[%c0_226, %c0_227] : memref<1x8xf32, #tpu.memory_space<vmem>>, vector<1x8xf32>
    %243 = vector.broadcast %242 : vector<1x8xf32> to vector<196x8xf32>
    %244 = arith.addf %241, %243 : vector<196x8xf32>
    %cst_228 = arith.constant 0.000000e+00 : f32
    %245 = vector.broadcast %cst_228 : f32 to vector<196x8xf32>
    %246 = arith.maximumf %244, %245 : vector<196x8xf32>
    %247 = arith.truncf %246 : vector<196x8xf32> to vector<196x8xbf16>
    %cst_229 = arith.constant 0.000000e+00 : f32
    %248 = vector.broadcast %cst_229 : f32 to vector<196x3xf32>
    %c0_230 = arith.constant 0 : index
    %c0_231 = arith.constant 0 : index
    %c0_232 = arith.constant 0 : index
    %249 = vector.load %arg15[%c0_230, %c0_231, %c0_232] : memref<9x8x3xbf16, #tpu.memory_space<vmem>>, vector<1x8x3xbf16>
    %250 = vector.shape_cast %249 : vector<1x8x3xbf16> to vector<8x3xbf16>
    %cst_233 = arith.constant dense<0.000000e+00> : vector<196x3xf32>
    %251 = tpu.matmul %247, %250, %cst_233 {dimension_numbers = #tpu.dot_dimension_numbers<[1], [0], [0], [1], [0, 0, 1, 1], [], []>} : vector<196x8xbf16>, vector<8x3xbf16>, vector<196x3xf32> -> vector<196x3xf32>
    %252 = arith.truncf %251 : vector<196x3xf32> to vector<196x3xbf16>
    %c0_234 = arith.constant 0 : index
    %c0_235 = arith.constant 0 : index
    %c0_236 = arith.constant 0 : index
    %253 = vector.load %arg14[%c0_234, %c0_235, %c0_236] : memref<9x196x196xbf16, #tpu.memory_space<vmem>>, vector<1x196x196xbf16>
    %254 = vector.shape_cast %253 : vector<1x196x196xbf16> to vector<196x196xbf16>
    %cst_237 = arith.constant dense<0.000000e+00> : vector<196x3xf32>
    %255 = tpu.matmul %254, %252, %cst_237 {dimension_numbers = #tpu.dot_dimension_numbers<[1], [0], [0], [1], [0, 0, 1, 1], [], []>} : vector<196x196xbf16>, vector<196x3xbf16>, vector<196x3xf32> -> vector<196x3xf32>
    %256 = arith.addf %248, %255 : vector<196x3xf32>
    %c1_238 = arith.constant 1 : index
    %c0_239 = arith.constant 0 : index
    %c0_240 = arith.constant 0 : index
    %257 = vector.load %arg15[%c1_238, %c0_239, %c0_240] : memref<9x8x3xbf16, #tpu.memory_space<vmem>>, vector<1x8x3xbf16>
    %258 = vector.shape_cast %257 : vector<1x8x3xbf16> to vector<8x3xbf16>
    %cst_241 = arith.constant dense<0.000000e+00> : vector<196x3xf32>
    %259 = tpu.matmul %247, %258, %cst_241 {dimension_numbers = #tpu.dot_dimension_numbers<[1], [0], [0], [1], [0, 0, 1, 1], [], []>} : vector<196x8xbf16>, vector<8x3xbf16>, vector<196x3xf32> -> vector<196x3xf32>
    %260 = arith.truncf %259 : vector<196x3xf32> to vector<196x3xbf16>
    %c1_242 = arith.constant 1 : index
    %c0_243 = arith.constant 0 : index
    %c0_244 = arith.constant 0 : index
    %261 = vector.load %arg14[%c1_242, %c0_243, %c0_244] : memref<9x196x196xbf16, #tpu.memory_space<vmem>>, vector<1x196x196xbf16>
    %262 = vector.shape_cast %261 : vector<1x196x196xbf16> to vector<196x196xbf16>
    %cst_245 = arith.constant dense<0.000000e+00> : vector<196x3xf32>
    %263 = tpu.matmul %262, %260, %cst_245 {dimension_numbers = #tpu.dot_dimension_numbers<[1], [0], [0], [1], [0, 0, 1, 1], [], []>} : vector<196x196xbf16>, vector<196x3xbf16>, vector<196x3xf32> -> vector<196x3xf32>
    %264 = arith.addf %256, %263 : vector<196x3xf32>
    %c2_246 = arith.constant 2 : index
    %c0_247 = arith.constant 0 : index
    %c0_248 = arith.constant 0 : index
    %265 = vector.load %arg15[%c2_246, %c0_247, %c0_248] : memref<9x8x3xbf16, #tpu.memory_space<vmem>>, vector<1x8x3xbf16>
    %266 = vector.shape_cast %265 : vector<1x8x3xbf16> to vector<8x3xbf16>
    %cst_249 = arith.constant dense<0.000000e+00> : vector<196x3xf32>
    %267 = tpu.matmul %247, %266, %cst_249 {dimension_numbers = #tpu.dot_dimension_numbers<[1], [0], [0], [1], [0, 0, 1, 1], [], []>} : vector<196x8xbf16>, vector<8x3xbf16>, vector<196x3xf32> -> vector<196x3xf32>
    %268 = arith.truncf %267 : vector<196x3xf32> to vector<196x3xbf16>
    %c2_250 = arith.constant 2 : index
    %c0_251 = arith.constant 0 : index
    %c0_252 = arith.constant 0 : index
    %269 = vector.load %arg14[%c2_250, %c0_251, %c0_252] : memref<9x196x196xbf16, #tpu.memory_space<vmem>>, vector<1x196x196xbf16>
    %270 = vector.shape_cast %269 : vector<1x196x196xbf16> to vector<196x196xbf16>
    %cst_253 = arith.constant dense<0.000000e+00> : vector<196x3xf32>
    %271 = tpu.matmul %270, %268, %cst_253 {dimension_numbers = #tpu.dot_dimension_numbers<[1], [0], [0], [1], [0, 0, 1, 1], [], []>} : vector<196x196xbf16>, vector<196x3xbf16>, vector<196x3xf32> -> vector<196x3xf32>
    %272 = arith.addf %264, %271 : vector<196x3xf32>
    %c3_254 = arith.constant 3 : index
    %c0_255 = arith.constant 0 : index
    %c0_256 = arith.constant 0 : index
    %273 = vector.load %arg15[%c3_254, %c0_255, %c0_256] : memref<9x8x3xbf16, #tpu.memory_space<vmem>>, vector<1x8x3xbf16>
    %274 = vector.shape_cast %273 : vector<1x8x3xbf16> to vector<8x3xbf16>
    %cst_257 = arith.constant dense<0.000000e+00> : vector<196x3xf32>
    %275 = tpu.matmul %247, %274, %cst_257 {dimension_numbers = #tpu.dot_dimension_numbers<[1], [0], [0], [1], [0, 0, 1, 1], [], []>} : vector<196x8xbf16>, vector<8x3xbf16>, vector<196x3xf32> -> vector<196x3xf32>
    %276 = arith.truncf %275 : vector<196x3xf32> to vector<196x3xbf16>
    %c3_258 = arith.constant 3 : index
    %c0_259 = arith.constant 0 : index
    %c0_260 = arith.constant 0 : index
    %277 = vector.load %arg14[%c3_258, %c0_259, %c0_260] : memref<9x196x196xbf16, #tpu.memory_space<vmem>>, vector<1x196x196xbf16>
    %278 = vector.shape_cast %277 : vector<1x196x196xbf16> to vector<196x196xbf16>
    %cst_261 = arith.constant dense<0.000000e+00> : vector<196x3xf32>
    %279 = tpu.matmul %278, %276, %cst_261 {dimension_numbers = #tpu.dot_dimension_numbers<[1], [0], [0], [1], [0, 0, 1, 1], [], []>} : vector<196x196xbf16>, vector<196x3xbf16>, vector<196x3xf32> -> vector<196x3xf32>
    %280 = arith.addf %272, %279 : vector<196x3xf32>
    %c4_262 = arith.constant 4 : index
    %c0_263 = arith.constant 0 : index
    %c0_264 = arith.constant 0 : index
    %281 = vector.load %arg15[%c4_262, %c0_263, %c0_264] : memref<9x8x3xbf16, #tpu.memory_space<vmem>>, vector<1x8x3xbf16>
    %282 = vector.shape_cast %281 : vector<1x8x3xbf16> to vector<8x3xbf16>
    %cst_265 = arith.constant dense<0.000000e+00> : vector<196x3xf32>
    %283 = tpu.matmul %247, %282, %cst_265 {dimension_numbers = #tpu.dot_dimension_numbers<[1], [0], [0], [1], [0, 0, 1, 1], [], []>} : vector<196x8xbf16>, vector<8x3xbf16>, vector<196x3xf32> -> vector<196x3xf32>
    %284 = arith.truncf %283 : vector<196x3xf32> to vector<196x3xbf16>
    %c4_266 = arith.constant 4 : index
    %c0_267 = arith.constant 0 : index
    %c0_268 = arith.constant 0 : index
    %285 = vector.load %arg14[%c4_266, %c0_267, %c0_268] : memref<9x196x196xbf16, #tpu.memory_space<vmem>>, vector<1x196x196xbf16>
    %286 = vector.shape_cast %285 : vector<1x196x196xbf16> to vector<196x196xbf16>
    %cst_269 = arith.constant dense<0.000000e+00> : vector<196x3xf32>
    %287 = tpu.matmul %286, %284, %cst_269 {dimension_numbers = #tpu.dot_dimension_numbers<[1], [0], [0], [1], [0, 0, 1, 1], [], []>} : vector<196x196xbf16>, vector<196x3xbf16>, vector<196x3xf32> -> vector<196x3xf32>
    %288 = arith.addf %280, %287 : vector<196x3xf32>
    %c5_270 = arith.constant 5 : index
    %c0_271 = arith.constant 0 : index
    %c0_272 = arith.constant 0 : index
    %289 = vector.load %arg15[%c5_270, %c0_271, %c0_272] : memref<9x8x3xbf16, #tpu.memory_space<vmem>>, vector<1x8x3xbf16>
    %290 = vector.shape_cast %289 : vector<1x8x3xbf16> to vector<8x3xbf16>
    %cst_273 = arith.constant dense<0.000000e+00> : vector<196x3xf32>
    %291 = tpu.matmul %247, %290, %cst_273 {dimension_numbers = #tpu.dot_dimension_numbers<[1], [0], [0], [1], [0, 0, 1, 1], [], []>} : vector<196x8xbf16>, vector<8x3xbf16>, vector<196x3xf32> -> vector<196x3xf32>
    %292 = arith.truncf %291 : vector<196x3xf32> to vector<196x3xbf16>
    %c5_274 = arith.constant 5 : index
    %c0_275 = arith.constant 0 : index
    %c0_276 = arith.constant 0 : index
    %293 = vector.load %arg14[%c5_274, %c0_275, %c0_276] : memref<9x196x196xbf16, #tpu.memory_space<vmem>>, vector<1x196x196xbf16>
    %294 = vector.shape_cast %293 : vector<1x196x196xbf16> to vector<196x196xbf16>
    %cst_277 = arith.constant dense<0.000000e+00> : vector<196x3xf32>
    %295 = tpu.matmul %294, %292, %cst_277 {dimension_numbers = #tpu.dot_dimension_numbers<[1], [0], [0], [1], [0, 0, 1, 1], [], []>} : vector<196x196xbf16>, vector<196x3xbf16>, vector<196x3xf32> -> vector<196x3xf32>
    %296 = arith.addf %288, %295 : vector<196x3xf32>
    %c6_278 = arith.constant 6 : index
    %c0_279 = arith.constant 0 : index
    %c0_280 = arith.constant 0 : index
    %297 = vector.load %arg15[%c6_278, %c0_279, %c0_280] : memref<9x8x3xbf16, #tpu.memory_space<vmem>>, vector<1x8x3xbf16>
    %298 = vector.shape_cast %297 : vector<1x8x3xbf16> to vector<8x3xbf16>
    %cst_281 = arith.constant dense<0.000000e+00> : vector<196x3xf32>
    %299 = tpu.matmul %247, %298, %cst_281 {dimension_numbers = #tpu.dot_dimension_numbers<[1], [0], [0], [1], [0, 0, 1, 1], [], []>} : vector<196x8xbf16>, vector<8x3xbf16>, vector<196x3xf32> -> vector<196x3xf32>
    %300 = arith.truncf %299 : vector<196x3xf32> to vector<196x3xbf16>
    %c6_282 = arith.constant 6 : index
    %c0_283 = arith.constant 0 : index
    %c0_284 = arith.constant 0 : index
    %301 = vector.load %arg14[%c6_282, %c0_283, %c0_284] : memref<9x196x196xbf16, #tpu.memory_space<vmem>>, vector<1x196x196xbf16>
    %302 = vector.shape_cast %301 : vector<1x196x196xbf16> to vector<196x196xbf16>
    %cst_285 = arith.constant dense<0.000000e+00> : vector<196x3xf32>
    %303 = tpu.matmul %302, %300, %cst_285 {dimension_numbers = #tpu.dot_dimension_numbers<[1], [0], [0], [1], [0, 0, 1, 1], [], []>} : vector<196x196xbf16>, vector<196x3xbf16>, vector<196x3xf32> -> vector<196x3xf32>
    %304 = arith.addf %296, %303 : vector<196x3xf32>
    %c7_286 = arith.constant 7 : index
    %c0_287 = arith.constant 0 : index
    %c0_288 = arith.constant 0 : index
    %305 = vector.load %arg15[%c7_286, %c0_287, %c0_288] : memref<9x8x3xbf16, #tpu.memory_space<vmem>>, vector<1x8x3xbf16>
    %306 = vector.shape_cast %305 : vector<1x8x3xbf16> to vector<8x3xbf16>
    %cst_289 = arith.constant dense<0.000000e+00> : vector<196x3xf32>
    %307 = tpu.matmul %247, %306, %cst_289 {dimension_numbers = #tpu.dot_dimension_numbers<[1], [0], [0], [1], [0, 0, 1, 1], [], []>} : vector<196x8xbf16>, vector<8x3xbf16>, vector<196x3xf32> -> vector<196x3xf32>
    %308 = arith.truncf %307 : vector<196x3xf32> to vector<196x3xbf16>
    %c7_290 = arith.constant 7 : index
    %c0_291 = arith.constant 0 : index
    %c0_292 = arith.constant 0 : index
    %309 = vector.load %arg14[%c7_290, %c0_291, %c0_292] : memref<9x196x196xbf16, #tpu.memory_space<vmem>>, vector<1x196x196xbf16>
    %310 = vector.shape_cast %309 : vector<1x196x196xbf16> to vector<196x196xbf16>
    %cst_293 = arith.constant dense<0.000000e+00> : vector<196x3xf32>
    %311 = tpu.matmul %310, %308, %cst_293 {dimension_numbers = #tpu.dot_dimension_numbers<[1], [0], [0], [1], [0, 0, 1, 1], [], []>} : vector<196x196xbf16>, vector<196x3xbf16>, vector<196x3xf32> -> vector<196x3xf32>
    %312 = arith.addf %304, %311 : vector<196x3xf32>
    %c8_294 = arith.constant 8 : index
    %c0_295 = arith.constant 0 : index
    %c0_296 = arith.constant 0 : index
    %313 = vector.load %arg15[%c8_294, %c0_295, %c0_296] : memref<9x8x3xbf16, #tpu.memory_space<vmem>>, vector<1x8x3xbf16>
    %314 = vector.shape_cast %313 : vector<1x8x3xbf16> to vector<8x3xbf16>
    %cst_297 = arith.constant dense<0.000000e+00> : vector<196x3xf32>
    %315 = tpu.matmul %247, %314, %cst_297 {dimension_numbers = #tpu.dot_dimension_numbers<[1], [0], [0], [1], [0, 0, 1, 1], [], []>} : vector<196x8xbf16>, vector<8x3xbf16>, vector<196x3xf32> -> vector<196x3xf32>
    %316 = arith.truncf %315 : vector<196x3xf32> to vector<196x3xbf16>
    %c8_298 = arith.constant 8 : index
    %c0_299 = arith.constant 0 : index
    %c0_300 = arith.constant 0 : index
    %317 = vector.load %arg14[%c8_298, %c0_299, %c0_300] : memref<9x196x196xbf16, #tpu.memory_space<vmem>>, vector<1x196x196xbf16>
    %318 = vector.shape_cast %317 : vector<1x196x196xbf16> to vector<196x196xbf16>
    %cst_301 = arith.constant dense<0.000000e+00> : vector<196x3xf32>
    %319 = tpu.matmul %318, %316, %cst_301 {dimension_numbers = #tpu.dot_dimension_numbers<[1], [0], [0], [1], [0, 0, 1, 1], [], []>} : vector<196x196xbf16>, vector<196x3xbf16>, vector<196x3xf32> -> vector<196x3xf32>
    %320 = arith.addf %312, %319 : vector<196x3xf32>
    %c0_302 = arith.constant 0 : index
    %c0_303 = arith.constant 0 : index
    %321 = vector.load %arg16[%c0_302, %c0_303] : memref<1x3xf32, #tpu.memory_space<vmem>>, vector<1x3xf32>
    %322 = vector.broadcast %321 : vector<1x3xf32> to vector<196x3xf32>
    %323 = arith.addf %320, %322 : vector<196x3xf32>
    %c0_304 = arith.constant 0 : index
    %c0_305 = arith.constant 0 : index
    %c0_306 = arith.constant 0 : index
    %324 = vector.load %arg17[%c0_304, %c0_305, %c0_306] : memref<1x196x3xf32, #tpu.memory_space<vmem>>, vector<1x196x3xf32>
    %325 = vector.shape_cast %324 : vector<1x196x3xf32> to vector<196x3xf32>
    %326 = vector.shape_cast %323 : vector<196x3xf32> to vector<1x196x3xf32>
    tpu.vector_store %arg17[%c0_304, %c0_305, %c0_306], %326 {strides = array<i32>} : memref<1x196x3xf32, #tpu.memory_space<vmem>>, vector<1x196x3xf32>,
    return
  }
  func.func @transform_0(%arg0: i32) -> (i32, i32, i32) {
    %c0_i32 = arith.constant 0 : i32
    %c0_i32_0 = arith.constant 0 : i32
    %c0_i32_1 = arith.constant 0 : i32
    return %arg0, %c0_i32, %c0_i32_0 : i32, i32, i32
  }
  func.func @transform_1(%arg0: i32) -> (i32, i32) {
    %c0_i32 = arith.constant 0 : i32
    %c0_i32_0 = arith.constant 0 : i32
    %c0_i32_1 = arith.constant 0 : i32
    return %c0_i32, %c0_i32_0 : i32, i32
  }
  func.func @transform_2(%arg0: i32) -> (i32, i32) {
    %c0_i32 = arith.constant 0 : i32
    %c0_i32_0 = arith.constant 0 : i32
    %c0_i32_1 = arith.constant 0 : i32
    return %c0_i32, %c0_i32_0 : i32, i32
  }
  func.func @transform_3(%arg0: i32) -> (i32, i32) {
    %c0_i32 = arith.constant 0 : i32
    %c0_i32_0 = arith.constant 0 : i32
    %c0_i32_1 = arith.constant 0 : i32
    return %c0_i32, %c0_i32_0 : i32, i32
  }
  func.func @transform_4(%arg0: i32) -> (i32, i32, i32) {
    %c0_i32 = arith.constant 0 : i32
    %c0_i32_0 = arith.constant 0 : i32
    %c0_i32_1 = arith.constant 0 : i32
    %c0_i32_2 = arith.constant 0 : i32
    return %c0_i32, %c0_i32_0, %c0_i32_1 : i32, i32, i32
  }
  func.func @transform_5(%arg0: i32) -> (i32, i32, i32) {
    %c0_i32 = arith.constant 0 : i32
    %c0_i32_0 = arith.constant 0 : i32
    %c0_i32_1 = arith.constant 0 : i32
    %c0_i32_2 = arith.constant 0 : i32
    return %c0_i32, %c0_i32_0, %c0_i32_1 : i32, i32, i32
  }
  func.func @transform_6(%arg0: i32) -> (i32, i32) {
    %c0_i32 = arith.constant 0 : i32
    %c0_i32_0 = arith.constant 0 : i32
    %c0_i32_1 = arith.constant 0 : i32
    return %c0_i32, %c0_i32_0 : i32, i32
  }
  func.func @transform_7(%arg0: i32) -> (i32, i32, i32) {
    %c0_i32 = arith.constant 0 : i32
    %c0_i32_0 = arith.constant 0 : i32
    %c0_i32_1 = arith.constant 0 : i32
    %c0_i32_2 = arith.constant 0 : i32
    return %c0_i32, %c0_i32_0, %c0_i32_1 : i32, i32, i32
  }
  func.func @transform_8(%arg0: i32) -> (i32, i32, i32) {
    %c0_i32 = arith.constant 0 : i32
    %c0_i32_0 = arith.constant 0 : i32
    %c0_i32_1 = arith.constant 0 : i32
    %c0_i32_2 = arith.constant 0 : i32
    return %c0_i32, %c0_i32_0, %c0_i32_1 : i32, i32, i32
  }
  func.func @transform_9(%arg0: i32) -> (i32, i32) {
    %c0_i32 = arith.constant 0 : i32
    %c0_i32_0 = arith.constant 0 : i32
    %c0_i32_1 = arith.constant 0 : i32
    return %c0_i32, %c0_i32_0 : i32, i32
  }
  func.func @transform_10(%arg0: i32) -> (i32, i32, i32) {
    %c0_i32 = arith.constant 0 : i32
    %c0_i32_0 = arith.constant 0 : i32
    %c0_i32_1 = arith.constant 0 : i32
    %c0_i32_2 = arith.constant 0 : i32
    return %c0_i32, %c0_i32_0, %c0_i32_1 : i32, i32, i32
  }
  func.func @transform_11(%arg0: i32) -> (i32, i32, i32) {
    %c0_i32 = arith.constant 0 : i32
    %c0_i32_0 = arith.constant 0 : i32
    %c0_i32_1 = arith.constant 0 : i32
    %c0_i32_2 = arith.constant 0 : i32
    return %c0_i32, %c0_i32_0, %c0_i32_1 : i32, i32, i32
  }
  func.func @transform_12(%arg0: i32) -> (i32, i32) {
    %c0_i32 = arith.constant 0 : i32
    %c0_i32_0 = arith.constant 0 : i32
    %c0_i32_1 = arith.constant 0 : i32
    return %c0_i32, %c0_i32_0 : i32, i32
  }
  func.func @transform_13(%arg0: i32) -> (i32, i32, i32) {
    %c0_i32 = arith.constant 0 : i32
    %c0_i32_0 = arith.constant 0 : i32
    %c0_i32_1 = arith.constant 0 : i32
    %c0_i32_2 = arith.constant 0 : i32
    return %c0_i32, %c0_i32_0, %c0_i32_1 : i32, i32, i32
  }
  func.func @transform_14(%arg0: i32) -> (i32, i32, i32) {
    %c0_i32 = arith.constant 0 : i32
    %c0_i32_0 = arith.constant 0 : i32
    %c0_i32_1 = arith.constant 0 : i32
    %c0_i32_2 = arith.constant 0 : i32
    return %c0_i32, %c0_i32_0, %c0_i32_1 : i32, i32, i32
  }
  func.func @transform_15(%arg0: i32) -> (i32, i32) {
    %c0_i32 = arith.constant 0 : i32
    %c0_i32_0 = arith.constant 0 : i32
    %c0_i32_1 = arith.constant 0 : i32
    return %c0_i32, %c0_i32_0 : i32, i32
  }
  func.func @transform_16(%arg0: i32) -> (i32, i32, i32) {
    %c0_i32 = arith.constant 0 : i32
    %c0_i32_0 = arith.constant 0 : i32
    %c0_i32_1 = arith.constant 0 : i32
    return %arg0, %c0_i32, %c0_i32_0 : i32, i32, i32
  }
}

</mosaic_0001>

<bundles_post_ra>
// kernel: mobrecon_ds_forward.4
= control target key start
LH: loop header
LB: loop body
LE: loop exit
PB: predicated region body
PF: predicated region fallthrough
CT: control target
= control target key end

     0   :  { %s679_s12 = smov 0   ;;  %s772_s0 = inlined_call_operand.vmem [shape: bf16[512,27], index: 0, kind: input, shape index: {}]   ;;  %s773_s1 = inlined_call_operand.vmem [shape: bf16[27,16], index: 1, kind: input, shape index: {}]   ;;  %s774_s2 = inlined_call_operand.vmem [shape: f32[1,16], index: 2, kind: input, shape index: {}]   ;;  %s775_s3 = inlined_call_operand.vmem [shape: bf16[512,16], index: 3, kind: output, shape index: {}]  }
   0x1 LB: > { %s535_s13 = sadd.s32 4294967295, %s656_s12   ;;  %p539_p0 = scmp.ge.s32.totalorder %s656_s12, 1  ;;  %s656_s12 = sphi %s679_s12, %s13_s12  }
   0x2   : > { %p138_p1 = scmp.lt.s32.totalorder %s656_s12, 5 }
   0x4   : > { %p139_p2 = pnand %p539_p0, %p138_p1 }
   0x5   : > { %v640_v0 = vld [vmem:[%s773_s1] sm:$0xff] (!%p139_p2)   ;;  %vm278_vm0 = vcmask (!%p139_p2), 1044480   ;;  %v641_v1 = vld [vmem:[%s773_s1 + $0x8] sm:$0x3f] (!%p139_p2)   ;;  %vm279_vm1 = vcmask (!%p139_p2), 1045504   ;;  %s540_s18 = sshll.u32 (!%p139_p2), %s535_s13, 4 }
   0x6   : > { %142 = sbr.rel (%p139_p2) target bundleno = 249 (0xf9), region = 32  ;;  %607 = vmatprep.subr.bf16.mxu0 (!%p139_p2), %v640_v0  ;;  %627 = vmatprep.subr.bf16.mxu1 (!%p139_p2), %v640_v0  ;;  %v658_v2 = vmov (!%p139_p2), 65535   ;;  %p163_p3 = scmp.lt.s32.totalorder (!%p139_p2), %s540_s18, 63  ;;  %vm253_vm2 = vcmask (!%p139_p2), 220160   ;;  %v712_v14 = vld [vmem:[%s774_s2] ss:$0 sm:$0xff] (!%p139_p2) }
   0x7   : > { %608 = vmatpush3.bf16.msra.mxu0 (!%p139_p2), %v640_v0  ;;  %629 = vmatpush3.bf16.msra.mxu1 (!%p139_p2), %v640_v0  ;;  %v280_v3 = vsel (!%p139_p2), %vm278_vm0, 4294967295, %v658_v2  ;;  %vm462_vm3 = vcmask (!%p139_p2), 125952  }
   0x8   : > { %v281_v4 = vsel (!%p139_p2), %vm279_vm1, %v280_v3, 0 }
   0x9   : > { %v283_v5 = vand.u32 (!%p139_p2), %v641_v1, %v281_v4 }
   0xb   : > { %609 = vmatprep.subr.bf16.mxu0 (!%p139_p2), %v283_v5  ;;  %628 = vmatprep.subr.bf16.mxu1 (!%p139_p2), %v283_v5 }
   0xc   : > { %610 = vmatpush3.bf16.msra.mxu0 (!%p139_p2), %v283_v5  ;;  %630 = vmatpush3.bf16.msra.mxu1 (!%p139_p2), %v283_v5 }
   0xd   : > { %s777_s18 = smov (!%p163_p3, %s540_s18), 63 }
   0xe   : > { %s541_s19 = sshll.u32 %s777_s18, 2 }
   0xf   : > { %s166_s22 = scalar_lea.vmem %s772_s0, %s541_s19  ;;  %s724_s27 = scalar_lea.vmem %s775_s3, %s541_s19 }
  0x10   : > { %v642_v6 = vld [vmem:[%s166_s22] sm:$0xff]   ;;  %v644_v8 = vld [vmem:[%s166_s22 + $0x8] sm:$0xff]   ;;  %v646_v10 = vld [vmem:[%s166_s22 + $0x10] sm:$0xff]  }
  0x11   : > { %v643_v7 = vld [vmem:[%s166_s22 + $0x20] sm:$0xff]   ;;  %611 = vmatprep.mubr.msk.bf16.mxu0 %vm253_vm2, %v642_v6  ;;  %v645_v9 = vld [vmem:[%s166_s22 + $0x28] sm:$0xff]   ;;  %v647_v11 = vld [vmem:[%s166_s22 + $0x30] sm:$0xff]  }
  0x12   : > { %619 = vmatprep.mubr.msk.bf16.mxu1 %vm253_vm2, %v643_v7  ;;  %612 = vmatmul.mubr.msk.bf16.vlgmr.msra.gmra.mrb[0].mxu0 %vm253_vm2, %v644_v8  ;;  %v648_v12 = vld [vmem:[%s166_s22 + $0x18] sm:$0xff]  }
  0x13   : > { %620 = vmatmul.mubr.msk.bf16.vlgmr.msra.gmra.mrb[0].mxu1 %vm253_vm2, %v645_v9  ;;  %615 = vmatprep.mubr.msk.bf16.mxu0 %vm253_vm2, %v646_v10  ;;  %v649_v13 = vld [vmem:[%s166_s22 + $0x38] sm:$0xff]  }
  0x14   : > { %623 = vmatprep.mubr.msk.bf16.mxu1 %vm253_vm2, %v647_v11 }
  0x1a   : > { %616 = vmatmul.mubr.msk.bf16.gmra.mrb[4].mxu0 %vm253_vm2, %v648_v12 }
  0x1b   : > { %624 = vmatmul.mubr.msk.bf16.gmra.mrb[4].mxu1 %vm253_vm2, %v649_v13 }
  0xe5   : > { %v613_v15 = vpop.f32.mrb[0].mxu0 }
  0xe6   : > { %v328_v16 = vadd.f32 %v613_v15, %v712_v14  ;;  %v621_v17 = vpop.f32.mrb[0].mxu1  ;;  %v319_v18 = vpop.f32.mrb[1].mxu0 }
  0xe7   : > { %v360_v19 = vadd.f32 %v621_v17, %v712_v14  ;;  %v320_v20 = vadd.f32 %v712_v14, %v319_v18  ;;  %v351_v21 = vpop.f32.mrb[1].mxu1  ;;  %v614_v22 = vpop.f32.mrb[2].mxu0 }
  0xe8   : > { %v384_v23 = vmax.f32 %v328_v16, 0.0  ;;  %v352_v24 = vadd.f32 %v712_v14, %v351_v21  ;;  %v331_v25 = vadd.f32 %v614_v22, %v712_v14  ;;  %v622_v26 = vpop.f32.mrb[2].mxu1  ;;  %v322_v27 = vpop.f32.mrb[3].mxu0 }
  0xe9   : > { %v392_v28 = vmax.f32 %v360_v19, 0.0  ;;  %v382_v29 = vmax.f32 %v320_v20, 0.0  ;;  %v363_v30 = vadd.f32 %v622_v26, %v712_v14  ;;  %v323_v31 = vadd.f32 %v712_v14, %v322_v27  ;;  %v354_v32 = vpop.f32.mrb[3].mxu1 }
  0xea   : > { %v583_v33 = vpack.c.bf16 %v384_v23, %v384_v23  ;;  %v390_v34 = vmax.f32 %v352_v24, 0.0  ;;  %v385_v35 = vmax.f32 %v331_v25, 0.0  ;;  %v355_v36 = vadd.f32 %v712_v14, %v354_v32 }
  0xeb   : > { %v591_v37 = vpack.c.bf16 %v392_v28, %v392_v28  ;;  %v581_v38 = vpack.c.bf16 %v382_v29, %v382_v29  ;;  %v393_v39 = vmax.f32 %v363_v30, 0.0  ;;  %v383_v40 = vmax.f32 %v323_v31, 0.0 }
  0xec   : > { %465 = vst.msk [vmem:[%s724_s27 + $0x8] sm:$0xf] %vm462_vm3, %v583_v33  ;;  %v589_v41 = vpack.c.bf16 %v390_v34, %v390_v34  ;;  %v584_v42 = vpack.c.bf16 %v385_v35, %v385_v35  ;;  %v391_v43 = vmax.f32 %v355_v36, 0.0 }
  0xed   : > { %473 = vst.msk [vmem:[%s724_s27 + $0x28] sm:$0xf] %vm462_vm3, %v591_v37  ;;  %463 = vst.msk [vmem:[%s724_s27] sm:$0xf] %vm462_vm3, %v581_v38  ;;  %v592_v44 = vpack.c.bf16 %v393_v39, %v393_v39  ;;  %v582_v45 = vpack.c.bf16 %v383_v40, %v383_v40  ;;  %v617_v46 = vpop.f32.mrb[4].mxu0 }
  0xee   : > { %471 = vst.msk [vmem:[%s724_s27 + $0x20] sm:$0xf] %vm462_vm3, %v589_v41  ;;  %466 = vst.msk [vmem:[%s724_s27 + $0xc] sm:$0xf] %vm462_vm3, %v584_v42  ;;  %v590_v47 = vpack.c.bf16 %v391_v43, %v391_v43  ;;  %v344_v48 = vadd.f32 %v617_v46, %v712_v14  ;;  %v625_v49 = vpop.f32.mrb[4].mxu1  ;;  %v335_v50 = vpop.f32.mrb[5].mxu0 }
  0xef   : > { %474 = vst.msk [vmem:[%s724_s27 + $0x2c] sm:$0xf] %vm462_vm3, %v592_v44  ;;  %464 = vst.msk [vmem:[%s724_s27 + $0x4] sm:$0xf] %vm462_vm3, %v582_v45  ;;  %v376_v51 = vadd.f32 %v625_v49, %v712_v14  ;;  %v336_v52 = vadd.f32 %v712_v14, %v335_v50  ;;  %v367_v53 = vpop.f32.mrb[5].mxu1  ;;  %v618_v54 = vpop.f32.mrb[6].mxu0 }
  0xf0   : > { %472 = vst.msk [vmem:[%s724_s27 + $0x24] sm:$0xf] %vm462_vm3, %v590_v47  ;;  %v388_v55 = vmax.f32 %v344_v48, 0.0  ;;  %v368_v56 = vadd.f32 %v712_v14, %v367_v53  ;;  %v347_v57 = vadd.f32 %v618_v54, %v712_v14  ;;  %v626_v58 = vpop.f32.mrb[6].mxu1  ;;  %v338_v59 = vpop.f32.mrb[7].mxu0 }
  0xf1   : > { %v396_v60 = vmax.f32 %v376_v51, 0.0  ;;  %v386_v61 = vmax.f32 %v336_v52, 0.0  ;;  %v379_v62 = vadd.f32 %v626_v58, %v712_v14  ;;  %v339_v63 = vadd.f32 %v712_v14, %v338_v59  ;;  %v370_v0 = vpop.f32.mrb[7].mxu1 }
  0xf2   : > { %v587_v1 = vpack.c.bf16 %v388_v55, %v388_v55  ;;  %v394_v2 = vmax.f32 %v368_v56, 0.0  ;;  %v389_v3 = vmax.f32 %v347_v57, 0.0  ;;  %v371_v4 = vadd.f32 %v712_v14, %v370_v0 }
  0xf3   : > { %v595_v5 = vpack.c.bf16 %v396_v60, %v396_v60  ;;  %v585_v6 = vpack.c.bf16 %v386_v61, %v386_v61  ;;  %v397_v7 = vmax.f32 %v379_v62, 0.0  ;;  %v387_v8 = vmax.f32 %v339_v63, 0.0 }
  0xf4   : > { %469 = vst.msk [vmem:[%s724_s27 + $0x18] sm:$0xf] %vm462_vm3, %v587_v1  ;;  %v593_v9 = vpack.c.bf16 %v394_v2, %v394_v2  ;;  %v588_v10 = vpack.c.bf16 %v389_v3, %v389_v3  ;;  %v395_v11 = vmax.f32 %v371_v4, 0.0 }
  0xf5   : > { %477 = vst.msk [vmem:[%s724_s27 + $0x38] sm:$0xf] %vm462_vm3, %v595_v5  ;;  %467 = vst.msk [vmem:[%s724_s27 + $0x10] sm:$0xf] %vm462_vm3, %v585_v6  ;;  %v596_v12 = vpack.c.bf16 %v397_v7, %v397_v7  ;;  %v586_v13 = vpack.c.bf16 %v387_v8, %v387_v8 }
  0xf6   : > { %475 = vst.msk [vmem:[%s724_s27 + $0x30] sm:$0xf] %vm462_vm3, %v593_v9  ;;  %470 = vst.msk [vmem:[%s724_s27 + $0x1c] sm:$0xf] %vm462_vm3, %v588_v10  ;;  %v594_v14 = vpack.c.bf16 %v395_v11, %v395_v11 }
  0xf7   : > { %478 = vst.msk [vmem:[%s724_s27 + $0x3c] sm:$0xf] %vm462_vm3, %v596_v12  ;;  %468 = vst.msk [vmem:[%s724_s27 + $0x14] sm:$0xf] %vm462_vm3, %v586_v13 }
  0xf8   : > { %476 = vst.msk [vmem:[%s724_s27 + $0x34] sm:$0xf] %vm462_vm3, %v594_v14 }
  0xf9 PF: > { %s13_s12 = sadd.s32 1, %s656_s12  }
  0xfa   : > { %p10_p4 = scmp.ge.s32.totalorder %s13_s12, 6  }
  0xfc   :  { %12 = sbr.rel (!%p10_p4) target bundleno = 1 (0x1), region = 62 }

// kernel: mobrecon_ds_forward.5
= control target key start
LH: loop header
LB: loop body
LE: loop exit
PB: predicated region body
PF: predicated region fallthrough
CT: control target
= control target key end

     0   :  { %v523_v0 = vmov 0   ;;  %vm182_vm0 = vcmask 130048   ;;  %vm384_vm1 = vcmask 257024   ;;  %s712_s1 = inlined_call_operand.vmem [shape: bf16[144,32], index: 1, kind: input, shape index: {}]   ;;  %s713_s0 = inlined_call_operand.vmem [shape: bf16[128,144], index: 0, kind: input, shape index: {}]   ;;  %s714_s2 = inlined_call_operand.vmem [shape: f32[1,32], index: 2, kind: input, shape index: {}]   ;;  %s715_s3 = inlined_call_operand.vmem [shape: bf16[128,32], index: 3, kind: output, shape index: {}]  }
   0x1   :  { %207 = vmatprep.subr.bf16.mxu0 %v523_v0  ;;  %471 = vmatprep.subr.bf16.mxu1 %v523_v0  ;;  %v490_v1 = vld [vmem:[%s712_s1] sm:$0xff]   ;;  %v491_v2 = vld [vmem:[%s712_s1 + $0x8] sm:$0xff]   ;;  %v492_v3 = vld [vmem:[%s712_s1 + $0x10] sm:$0xff]  }
   0x2   :  { %208 = vmatpush1.bf16.msra.mxu0 %v490_v1  ;;  %480 = vmatpush1.bf16.msra.mxu1 %v490_v1  ;;  %v493_v4 = vld [vmem:[%s712_s1 + $0x18] sm:$0xff]   ;;  %v501_v5 = vld [vmem:[%s713_s0 + $0x4] ss:$8 sps:$4 sm:$0xff]   ;;  %v496_v9 = vld [vmem:[%s712_s1 + $0x30] sm:$0xff]  }
   0x3   :  { %209 = vmatprep.subr.bf16.mxu0 %v523_v0  ;;  %472 = vmatprep.subr.bf16.mxu1 %v523_v0  ;;  %v504_v6 = vld [vmem:[%s713_s0 + $0x44] ss:$8 sps:$4 sm:$0xff]   ;;  %v497_v10 = vld [vmem:[%s712_s1 + $0x38] sm:$0xff]   ;;  %v499_v12 = vld [vmem:[%s713_s0] ss:$8 sps:$4 sm:$0xff]  }
   0x4   :  { %431 = vmatprep.mubr.msk.bf16.mxu0 %vm182_vm0, %v501_v5  ;;  %435 = vmatprep.mubr.msk.bf16.mxu1 %vm182_vm0, %v504_v6  ;;  %v494_v7 = vld [vmem:[%s712_s1 + $0x20] sm:$0xff]   ;;  %v495_v8 = vld [vmem:[%s712_s1 + $0x28] sm:$0xff]   ;;  %v505_v14 = vld [vmem:[%s713_s0 + $0x14] ss:$8 sps:$4 sm:$0xff]  }
   0x5   :  { %v498_v11 = vld [vmem:[%s712_s1 + $0x40] sm:$0xff]   ;;  %v507_v15 = vld [vmem:[%s713_s0 + $0x54] ss:$8 sps:$4 sm:$0xff]   ;;  %v509_v16 = vld [vmem:[%s713_s0 + $0x10] ss:$8 sps:$4 sm:$0xff]  }
   0x6   :  { %210 = vmatpush1.bf16.msra.mxu0 %v491_v2  ;;  %481 = vmatpush1.bf16.msra.mxu1 %v491_v2  ;;  %v502_v13 = vld [vmem:[%s713_s0 + $0x40] ss:$8 sps:$4 sm:$0xff]   ;;  %v510_v17 = vld [vmem:[%s713_s0 + $0x50] ss:$8 sps:$4 sm:$0xff]   ;;  %v511_v18 = vld [vmem:[%s713_s0 + $0x24] ss:$8 sps:$4 sm:$0xff]  }
   0x7   :  { %211 = vmatprep.subr.bf16.mxu0 %v523_v0  ;;  %473 = vmatprep.subr.bf16.mxu1 %v523_v0  ;;  %v513_v19 = vld [vmem:[%s713_s0 + $0x64] ss:$8 sps:$4 sm:$0xff]   ;;  %v515_v20 = vld [vmem:[%s713_s0 + $0x20] ss:$8 sps:$4 sm:$0xff]   ;;  %v517_v22 = vld [vmem:[%s713_s0 + $0x34] ss:$8 sps:$4 sm:$0xff]  }
   0x8   :  { %v516_v21 = vld [vmem:[%s713_s0 + $0x60] ss:$8 sps:$4 sm:$0xff]   ;;  %v519_v23 = vld [vmem:[%s713_s0 + $0x74] ss:$8 sps:$4 sm:$0xff]   ;;  %v521_v24 = vld [vmem:[%s713_s0 + $0x30] ss:$8 sps:$4 sm:$0xff]  }
   0x9   :  { %v522_v25 = vld [vmem:[%s713_s0 + $0x70] ss:$8 sps:$4 sm:$0xff]   ;;  %v630_v26 = vld [vmem:[%s714_s2] ss:$0 sm:$0xff] }
   0xa   :  { %212 = vmatpush1.bf16.msra.mxu0 %v492_v3  ;;  %482 = vmatpush1.bf16.msra.mxu1 %v492_v3 }
   0xb   :  { %213 = vmatprep.subr.bf16.mxu0 %v523_v0  ;;  %474 = vmatprep.subr.bf16.mxu1 %v523_v0 }
   0xe   :  { %214 = vmatpush1.bf16.msra.mxu0 %v493_v4  ;;  %483 = vmatpush1.bf16.msra.mxu1 %v493_v4 }
   0xf   :  { %215 = vmatprep.subr.bf16.mxu0 %v523_v0  ;;  %475 = vmatprep.subr.bf16.mxu1 %v523_v0 }
  0x12   :  { %216 = vmatpush1.bf16.msra.mxu0 %v494_v7  ;;  %484 = vmatpush1.bf16.msra.mxu1 %v494_v7 }
  0x13   :  { %217 = vmatprep.subr.bf16.mxu0 %v523_v0  ;;  %476 = vmatprep.subr.bf16.mxu1 %v523_v0 }
  0x16   :  { %218 = vmatpush1.bf16.msra.mxu0 %v495_v8  ;;  %485 = vmatpush1.bf16.msra.mxu1 %v495_v8 }
  0x17   :  { %219 = vmatprep.subr.bf16.mxu0 %v523_v0  ;;  %477 = vmatprep.subr.bf16.mxu1 %v523_v0 }
  0x1a   :  { %220 = vmatpush1.bf16.msra.mxu0 %v496_v9  ;;  %486 = vmatpush1.bf16.msra.mxu1 %v496_v9 }
  0x1b   :  { %221 = vmatprep.subr.bf16.mxu0 %v523_v0  ;;  %478 = vmatprep.subr.bf16.mxu1 %v523_v0 }
  0x1e   :  { %222 = vmatpush1.bf16.msra.mxu0 %v497_v10  ;;  %487 = vmatpush1.bf16.msra.mxu1 %v497_v10 }
  0x1f   :  { %223 = vmatprep.subr.bf16.mxu0 %v523_v0  ;;  %479 = vmatprep.subr.bf16.mxu1 %v523_v0 }
  0x22   :  { %224 = vmatpush1.bf16.msra.mxu0 %v498_v11  ;;  %488 = vmatpush1.bf16.msra.mxu1 %v498_v11 }
  0x25   :  { %240 = vmatmul.mubr.bf16.vlgmr.msra.gmra.mrb[0].mxu0 %v499_v12  ;;  %272 = vmatmul.mubr.bf16.vlgmr.msra.gmra.mrb[0].mxu1 %v502_v13 }
  0x26   :  { %432 = vmatprep.mubr.msk.bf16.mxu0 %vm182_vm0, %v505_v14  ;;  %436 = vmatprep.mubr.msk.bf16.mxu1 %vm182_vm0, %v507_v15 }
  0x2d   :  { %248 = vmatmul.mubr.bf16.gmra.mrb[4].mxu0 %v509_v16  ;;  %280 = vmatmul.mubr.bf16.gmra.mrb[4].mxu1 %v510_v17 }
  0x2e   :  { %433 = vmatprep.mubr.msk.bf16.mxu0 %vm182_vm0, %v511_v18  ;;  %437 = vmatprep.mubr.msk.bf16.mxu1 %vm182_vm0, %v513_v19 }
  0x35   :  { %256 = vmatmul.mubr.bf16.gmra.mrb[8].mxu0 %v515_v20  ;;  %288 = vmatmul.mubr.bf16.gmra.mrb[8].mxu1 %v516_v21 }
  0x36   :  { %434 = vmatprep.mubr.msk.bf16.mxu0 %vm182_vm0, %v517_v22  ;;  %438 = vmatprep.mubr.msk.bf16.mxu1 %vm182_vm0, %v519_v23 }
  0x3d   :  { %264 = vmatmul.mubr.bf16.gmra.mrb[12].mxu0 %v521_v24  ;;  %296 = vmatmul.mubr.bf16.gmra.mrb[12].mxu1 %v522_v25 }
  0xf8   :  { %v241_v27 = vpop.f32.mrb[0].mxu0  ;;  %v273_v28 = vpop.f32.mrb[0].mxu1 }
  0xf9   :  { %v242_v29 = vadd.f32 %v630_v26, %v241_v27  ;;  %v274_v30 = vadd.f32 %v630_v26, %v273_v28  ;;  %v243_v31 = vpop.f32.mrb[1].mxu0  ;;  %v275_v32 = vpop.f32.mrb[1].mxu1 }
  0xfa   :  { %v244_v33 = vpop.f32.mrb[2].mxu0  ;;  %v276_v34 = vpop.f32.mrb[2].mxu1 }
  0xfb   :  { %v304_v35 = vmax.f32 %v242_v29, 0.0  ;;  %v312_v36 = vmax.f32 %v274_v30, 0.0  ;;  %v245_v37 = vadd.f32 %v630_v26, %v244_v33  ;;  %v277_v38 = vadd.f32 %v630_v26, %v276_v34  ;;  %v246_v39 = vpop.f32.mrb[3].mxu0  ;;  %v278_v40 = vpop.f32.mrb[3].mxu1 }
  0xfd   :  { %v455_v41 = vpack.c.bf16 %v304_v35, %v304_v35  ;;  %v463_v42 = vpack.c.bf16 %v312_v36, %v312_v36  ;;  %v305_v43 = vmax.f32 %v245_v37, 0.0  ;;  %v313_v44 = vmax.f32 %v277_v38, 0.0 }
  0xff   :  { %385 = vst.msk [vmem:[%s715_s3] sm:$0xf] %vm384_vm1, %v455_v41  ;;  %393 = vst.msk [vmem:[%s715_s3 + $0x20] sm:$0xf] %vm384_vm1, %v463_v42  ;;  %v456_v45 = vpack.c.bf16 %v305_v43, %v305_v43  ;;  %v464_v46 = vpack.c.bf16 %v313_v44, %v313_v44 }
 0x100   :  { %v249_v47 = vpop.f32.mrb[4].mxu0  ;;  %v281_v48 = vpop.f32.mrb[4].mxu1 }
 0x101   :  { %386 = vst.msk [vmem:[%s715_s3 + $0x4] sm:$0xf] %vm384_vm1, %v456_v45  ;;  %394 = vst.msk [vmem:[%s715_s3 + $0x24] sm:$0xf] %vm384_vm1, %v464_v46  ;;  %v250_v49 = vadd.f32 %v630_v26, %v249_v47  ;;  %v282_v50 = vadd.f32 %v630_v26, %v281_v48  ;;  %v251_v51 = vpop.f32.mrb[5].mxu0  ;;  %v283_v52 = vpop.f32.mrb[5].mxu1 }
 0x102   :  { %v252_v53 = vpop.f32.mrb[6].mxu0  ;;  %v284_v54 = vpop.f32.mrb[6].mxu1 }
 0x103   :  { %v306_v55 = vmax.f32 %v250_v49, 0.0  ;;  %v314_v56 = vmax.f32 %v282_v50, 0.0  ;;  %v253_v57 = vadd.f32 %v630_v26, %v252_v53  ;;  %v285_v58 = vadd.f32 %v630_v26, %v284_v54  ;;  %v254_v59 = vpop.f32.mrb[7].mxu0  ;;  %v286_v60 = vpop.f32.mrb[7].mxu1 }
 0x105   :  { %v457_v61 = vpack.c.bf16 %v306_v55, %v306_v55  ;;  %v465_v62 = vpack.c.bf16 %v314_v56, %v314_v56  ;;  %v307_v63 = vmax.f32 %v253_v57, 0.0  ;;  %v315_v0 = vmax.f32 %v285_v58, 0.0 }
 0x107   :  { %387 = vst.msk [vmem:[%s715_s3 + $0x8] sm:$0xf] %vm384_vm1, %v457_v61  ;;  %395 = vst.msk [vmem:[%s715_s3 + $0x28] sm:$0xf] %vm384_vm1, %v465_v62  ;;  %v458_v1 = vpack.c.bf16 %v307_v63, %v307_v63  ;;  %v466_v2 = vpack.c.bf16 %v315_v0, %v315_v0 }
 0x108   :  { %v257_v3 = vpop.f32.mrb[8].mxu0  ;;  %v289_v4 = vpop.f32.mrb[8].mxu1 }
 0x109   :  { %388 = vst.msk [vmem:[%s715_s3 + $0xc] sm:$0xf] %vm384_vm1, %v458_v1  ;;  %396 = vst.msk [vmem:[%s715_s3 + $0x2c] sm:$0xf] %vm384_vm1, %v466_v2  ;;  %v258_v5 = vadd.f32 %v630_v26, %v257_v3  ;;  %v290_v6 = vadd.f32 %v630_v26, %v289_v4  ;;  %v259_v7 = vpop.f32.mrb[9].mxu0  ;;  %v291_v8 = vpop.f32.mrb[9].mxu1 }
 0x10a   :  { %v260_v9 = vpop.f32.mrb[10].mxu0  ;;  %v292_v10 = vpop.f32.mrb[10].mxu1 }
 0x10b   :  { %v308_v11 = vmax.f32 %v258_v5, 0.0  ;;  %v316_v12 = vmax.f32 %v290_v6, 0.0  ;;  %v261_v13 = vadd.f32 %v630_v26, %v260_v9  ;;  %v293_v14 = vadd.f32 %v630_v26, %v292_v10  ;;  %v262_v15 = vpop.f32.mrb[11].mxu0  ;;  %v294_v16 = vpop.f32.mrb[11].mxu1 }
 0x10d   :  { %v459_v17 = vpack.c.bf16 %v308_v11, %v308_v11  ;;  %v467_v18 = vpack.c.bf16 %v316_v12, %v316_v12  ;;  %v309_v19 = vmax.f32 %v261_v13, 0.0  ;;  %v317_v20 = vmax.f32 %v293_v14, 0.0 }
 0x10f   :  { %389 = vst.msk [vmem:[%s715_s3 + $0x10] sm:$0xf] %vm384_vm1, %v459_v17  ;;  %397 = vst.msk [vmem:[%s715_s3 + $0x30] sm:$0xf] %vm384_vm1, %v467_v18  ;;  %v460_v21 = vpack.c.bf16 %v309_v19, %v309_v19  ;;  %v468_v22 = vpack.c.bf16 %v317_v20, %v317_v20 }
 0x110   :  { %v265_v23 = vpop.f32.mrb[12].mxu0  ;;  %v297_v24 = vpop.f32.mrb[12].mxu1 }
 0x111   :  { %390 = vst.msk [vmem:[%s715_s3 + $0x14] sm:$0xf] %vm384_vm1, %v460_v21  ;;  %398 = vst.msk [vmem:[%s715_s3 + $0x34] sm:$0xf] %vm384_vm1, %v468_v22  ;;  %v266_v25 = vadd.f32 %v630_v26, %v265_v23  ;;  %v298_v27 = vadd.f32 %v630_v26, %v297_v24  ;;  %v267_v28 = vpop.f32.mrb[13].mxu0  ;;  %v299_v29 = vpop.f32.mrb[13].mxu1 }
 0x112   :  { %v268_v30 = vpop.f32.mrb[14].mxu0  ;;  %v300_v31 = vpop.f32.mrb[14].mxu1 }
 0x113   :  { %v310_v32 = vmax.f32 %v266_v25, 0.0  ;;  %v318_v33 = vmax.f32 %v298_v27, 0.0  ;;  %v269_v34 = vadd.f32 %v630_v26, %v268_v30  ;;  %v301_v35 = vadd.f32 %v630_v26, %v300_v31  ;;  %v270_v36 = vpop.f32.mrb[15].mxu0  ;;  %v302_v37 = vpop.f32.mrb[15].mxu1 }
 0x115   :  { %v461_v38 = vpack.c.bf16 %v310_v32, %v310_v32  ;;  %v469_v39 = vpack.c.bf16 %v318_v33, %v318_v33  ;;  %v311_v40 = vmax.f32 %v269_v34, 0.0  ;;  %v319_v41 = vmax.f32 %v301_v35, 0.0 }
 0x117   :  { %391 = vst.msk [vmem:[%s715_s3 + $0x18] sm:$0xf] %vm384_vm1, %v461_v38  ;;  %399 = vst.msk [vmem:[%s715_s3 + $0x38] sm:$0xf] %vm384_vm1, %v469_v39  ;;  %v462_v42 = vpack.c.bf16 %v311_v40, %v311_v40  ;;  %v470_v43 = vpack.c.bf16 %v319_v41, %v319_v41 }
 0x119   :  { %392 = vst.msk [vmem:[%s715_s3 + $0x1c] sm:$0xf] %vm384_vm1, %v462_v42  ;;  %400 = vst.msk [vmem:[%s715_s3 + $0x3c] sm:$0xf] %vm384_vm1, %v470_v43 }

// kernel: mobrecon_ds_forward.6
= control target key start
LH: loop header
LB: loop body
LE: loop exit
PB: predicated region body
PF: predicated region fallthrough
CT: control target
= control target key end

     0   :  { %vm204_vm0 = vcmask 261120   ;;  %s527_s1 = inlined_call_operand.vmem [shape: bf16[288,32], index: 1, kind: input, shape index: {}]   ;;  %s528_s0 = inlined_call_operand.vmem [shape: bf16[32,288], index: 0, kind: input, shape index: {}]   ;;  %s529_s2 = inlined_call_operand.vmem [shape: f32[1,32], index: 2, kind: input, shape index: {}]   ;;  %s530_s3 = inlined_call_operand.vmem [shape: f32[32,32], index: 3, kind: output, shape index: {}]  }
   0x1   :  { %v388_v0 = vld [vmem:[%s527_s1 + $0x40] sm:$0xff]   ;;  %v390_v2 = vld [vmem:[%s527_s1 + $0x48] sm:$0xff]   ;;  %v392_v4 = vld [vmem:[%s527_s1 + $0x50] sm:$0xff]  }
   0x2   :  { %v389_v1 = vld [vmem:[%s527_s1] sm:$0xff]   ;;  %348 = vmatprep.subr.bf16.mxu0 %v388_v0  ;;  %v391_v3 = vld [vmem:[%s527_s1 + $0x8] sm:$0xff]   ;;  %v393_v5 = vld [vmem:[%s527_s1 + $0x10] sm:$0xff]  }
   0x3   :  { %349 = vmatpush3.bf16.msra.mxu0 %v389_v1  ;;  %v394_v6 = vld [vmem:[%s527_s1 + $0x58] sm:$0xff]   ;;  %v396_v8 = vld [vmem:[%s527_s1 + $0x60] sm:$0xff]   ;;  %v398_v11 = vld [vmem:[%s527_s1 + $0x68] sm:$0xff]  }
   0x4   :  { %350 = vmatprep.subr.bf16.mxu0 %v390_v2  ;;  %v395_v7 = vld [vmem:[%s527_s1 + $0x18] sm:$0xff]   ;;  %v397_v9 = vld [vmem:[%s527_s1 + $0x20] sm:$0xff]   ;;  %v399_v12 = vld [vmem:[%s527_s1 + $0x28] sm:$0xff]  }
   0x5   :  { %v403_v10 = vld [vmem:[%s527_s1 + $0x80] sm:$0xff]   ;;  %v400_v13 = vld [vmem:[%s527_s1 + $0x70] sm:$0xff]   ;;  %v408_v15 = vld [vmem:[%s527_s1 + $0x88] sm:$0xff]  }
   0x6   :  { %380 = vmatprep.subr.bf16.mxu1 %v403_v10  ;;  %v407_v14 = vld [vmem:[%s528_s0 + $0x4] ss:$12 sps:$4 sm:$0xff]   ;;  %v409_v16 = vld [vmem:[%s528_s0 + $0x8] ss:$12 sps:$4 sm:$0xff]   ;;  %v410_v17 = vld [vmem:[%s528_s0 + $0x20] ss:$12 sps:$4 sm:$0xff]  }
   0x7   :  { %351 = vmatpush3.bf16.msra.mxu0 %v391_v3  ;;  %381 = vmatpush3.bf16.msra.mxu1 %v403_v10  ;;  %v401_v18 = vld [vmem:[%s527_s1 + $0x30] sm:$0xff]   ;;  %v402_v19 = vld [vmem:[%s527_s1 + $0x78] sm:$0xff]   ;;  %v405_v21 = vld [vmem:[%s528_s0] ss:$12 sps:$4 sm:$0xff]  }
   0x8   :  { %352 = vmatprep.subr.bf16.mxu0 %v392_v4  ;;  %243 = vmatprep.mubr.bf16.mxu0 %v407_v14  ;;  %v404_v20 = vld [vmem:[%s527_s1 + $0x38] sm:$0xff]   ;;  %v321_v30 = vld [vmem:[%s529_s2] ss:$0 sm:$0xff] }
   0x9   :  { %382 = vmatprep.subr.bf16.mxu1 %v408_v15  ;;  %384 = vmatprep.mubr.msk.bf16.mxu1 %vm204_vm0, %v409_v16  ;;  %v411_v22 = vld [vmem:[%s528_s0 + $0x1c] ss:$12 sps:$4 sm:$0xff]   ;;  %v413_v23 = vld [vmem:[%s528_s0 + $0x18] ss:$12 sps:$4 sm:$0xff]  }
   0xb   :  { %353 = vmatpush3.bf16.msra.mxu0 %v393_v5  ;;  %383 = vmatpush3.bf16.msra.mxu1 %v408_v15 }
   0xc   :  { %354 = vmatprep.subr.bf16.mxu0 %v394_v6 }
   0xe   :  { %385 = vmatmul.mubr.msk.bf16.vlgmr.msra.gmra.mrb[0].mxu1 %vm204_vm0, %v410_v17 }
   0xf   :  { %355 = vmatpush3.bf16.msra.mxu0 %v395_v7 }
  0x10   :  { %356 = vmatprep.subr.bf16.mxu0 %v396_v8 }
  0x13   :  { %357 = vmatpush3.bf16.msra.mxu0 %v397_v9 }
  0x14   :  { %358 = vmatprep.subr.bf16.mxu0 %v398_v11 }
  0x17   :  { %359 = vmatpush3.bf16.msra.mxu0 %v399_v12 }
  0x18   :  { %360 = vmatprep.subr.bf16.mxu0 %v400_v13 }
  0x1b   :  { %361 = vmatpush3.bf16.msra.mxu0 %v401_v18 }
  0x1c   :  { %362 = vmatprep.subr.bf16.mxu0 %v402_v19 }
  0x1f   :  { %363 = vmatpush3.bf16.msra.mxu0 %v404_v20 }
  0x22   :  { %244 = vmatmul.mubr.bf16.vlgmr.msra.gmra.mrb[0].mxu0 %v405_v21 }
  0x23   :  { %251 = vmatprep.mubr.bf16.mxu0 %v411_v22 }
  0x2a   :  { %252 = vmatmul.mubr.bf16.gmra.mrb[4].mxu0 %v413_v23 }
  0xe1   :  { %v386_v24 = vpop.f32.mrb[0].mxu1 }
  0xe2   :  { %v294_v25 = vpop.f32.mrb[1].mxu1 }
  0xe3   :  { %v387_v26 = vpop.f32.mrb[2].mxu1 }
  0xe4   :  { %v297_v27 = vpop.f32.mrb[3].mxu1 }
  0xf5   :  { %v364_v28 = vpop.f32.mrb[0].mxu0 }
  0xf6   :  { %v365_v29 = vpop.f32.mrb[1].mxu0 }
  0xf7   :  { %v366_v31 = vadd.f32 %v365_v29, %v364_v28  ;;  %v367_v32 = vpop.f32.mrb[2].mxu0 }
  0xf8   :  { %v368_v33 = vpop.f32.mrb[3].mxu0 }
  0xf9   :  { %v369_v34 = vadd.f32 %v368_v33, %v367_v32  ;;  %v246_v35 = vadd.f32 %v366_v31, %v321_v30 }
  0xfb   :  { %v295_v36 = vadd.f32 %v294_v25, %v246_v35  ;;  %v249_v37 = vadd.f32 %v369_v34, %v321_v30 }
  0xfd   :  { %v309_v38 = vmax.f32 %v295_v36, 0.0  ;;  %v298_v39 = vadd.f32 %v297_v27, %v249_v37  ;;  %v370_v40 = vpop.f32.mrb[4].mxu0 }
  0xfe   :  { %v371_v41 = vpop.f32.mrb[5].mxu0 }
  0xff   :  { %313 = vst.msk [vmem:[%s530_s3] sm:$0xff] %vm204_vm0, %v309_v38  ;;  %v310_v42 = vmax.f32 %v298_v39, 0.0  ;;  %v372_v43 = vadd.f32 %v371_v41, %v370_v40  ;;  %v373_v44 = vpop.f32.mrb[6].mxu0 }
 0x100   :  { %v374_v45 = vpop.f32.mrb[7].mxu0 }
 0x101   :  { %314 = vst.msk [vmem:[%s530_s3 + $0x8] sm:$0xff] %vm204_vm0, %v310_v42  ;;  %v254_v46 = vadd.f32 %v372_v43, %v321_v30  ;;  %v375_v47 = vadd.f32 %v374_v45, %v373_v44 }
 0x103   :  { %v303_v48 = vadd.f32 %v386_v24, %v254_v46  ;;  %v257_v49 = vadd.f32 %v375_v47, %v321_v30 }
 0x105   :  { %v311_v50 = vmax.f32 %v303_v48, 0.0  ;;  %v306_v51 = vadd.f32 %v387_v26, %v257_v49 }
 0x107   :  { %315 = vst.msk [vmem:[%s530_s3 + $0x10] sm:$0xff] %vm204_vm0, %v311_v50  ;;  %v312_v52 = vmax.f32 %v306_v51, 0.0 }
 0x109   :  { %316 = vst.msk [vmem:[%s530_s3 + $0x18] sm:$0xff] %vm204_vm0, %v312_v52 }

// kernel: mobrecon_ds_forward.7
= control target key start
LH: loop header
LB: loop body
LE: loop exit
PB: predicated region body
PF: predicated region fallthrough
CT: control target
= control target key end

     0   :  { %s17956_s21 = smov 0   ;;  %s22710_s0 = inlined_call_operand.vmem [shape: bf16[2,21,32], index: 0, kind: input, shape index: {}]   ;;  %s22711_s1 = inlined_call_operand.vmem [shape: bf16[32,32], index: 1, kind: input, shape index: {}]   ;;  %s22712_s2 = inlined_call_operand.vmem [shape: f32[1,32], index: 2, kind: input, shape index: {}]   ;;  %s22713_s3 = inlined_call_operand.vmem [shape: bf16[25,21], index: 3, kind: input, shape index: {}]   ;;  %s22714_s4 = inlined_call_operand.vmem [shape: bf16[9,49,25], index: 4, kind: input, shape index: {}]   ;;  %s22715_s5 = inlined_call_operand.vmem [shape: bf16[9,32,32], index: 5, kind: input, shape index: {}]   ;;  %s22716_s6 = inlined_call_operand.vmem [shape: f32[1,32], index: 6, kind: input, shape index: {}]   ;;  %s22717_s7 = inlined_call_operand.vmem [shape: bf16[9,98,49], index: 7, kind: input, shape index: {}]   ;;  %s22718_s8 = inlined_call_operand.vmem [shape: bf16[9,32,16], index: 8, kind: input, shape index: {}]   ;;  %s22719_s9 = inlined_call_operand.vmem [shape: f32[1,16], index: 9, kind: input, shape index: {}]   ;;  %s22720_s10 = inlined_call_operand.vmem [shape: bf16[9,196,98], index: 10, kind: input, shape index: {}]   ;;  %s22721_s11 = inlined_call_operand.vmem [shape: bf16[9,16,8], index: 11, kind: input, shape index: {}]   ;;  %s22722_s12 = inlined_call_operand.vmem [shape: f32[1,8], index: 12, kind: input, shape index: {}]   ;;  %s22723_s13 = inlined_call_operand.vmem [shape: bf16[9,196,196], index: 13, kind: input, shape index: {}]   ;;  %s22724_s14 = inlined_call_operand.vmem [shape: bf16[9,8,3], index: 14, kind: input, shape index: {}]   ;;  %s22725_s15 = inlined_call_operand.vmem [shape: f32[1,3], index: 15, kind: input, shape index: {}]   ;;  %s22726_s16 = inlined_call_operand.vmem [shape: f32[2,196,3], index: 16, kind: output, shape index: {}]  }
   0x1   :  { %22727 = sst [smem:[#allocation2_spill]] %s22710_s0 }
   0x2 LB: > { %s12855_s22 = sadd.s32 4294967295, %s17865_s21   ;;  %p12859_p0 = scmp.ge.s32.totalorder %s17865_s21, 1  ;;  %s17865_s21 = sphi %s17956_s21, %s26_s21  }
   0x3   : > { %p462_p1 = scmp.lt.s32.totalorder %s17865_s21, 3 }
   0x5   : > { %p463_p2 = pnand %p12859_p0, %p462_p1 }
   0x6   : > { %v17250_v0 = vld [vmem:[%s22711_s1] sm:$0xff] (!%p463_p2)   ;;  %p512_p3 = scmp.lt.s32.totalorder (!%p463_p2), %s12855_s22, 1  ;;  %v17251_v1 = vld [vmem:[%s22711_s1 + $0x8] sm:$0xff] (!%p463_p2)   ;;  %vm557_vm0 = vcmask (!%p463_p2), 261120   ;;  %s22728_s30 = sld [smem:[#allocation2_spill]] (!%p463_p2)  ;;  %vm628_vm1 = vcmask (!%p463_p2), 171008  }
   0x7   : > { %466 = sbr.rel (%p463_p2) target bundleno = 6269 (0x187d), region = 84  ;;  %15218 = vmatprep.subr.bf16.mxu0 (!%p463_p2), %v17250_v0  ;;  %v17254_v4 = vld [vmem:[%s22713_s3] sm:$0xff] (!%p463_p2)   ;;  %vm635_vm2 = vcmask (!%p463_p2), 1041408   ;;  %vm636_vm3 = vcmask (!%p463_p2), 1042432   ;;  %v17867_v11 = vmov (!%p463_p2), 65535   ;;  %v17257_v20 = vld [vmem:[%s22715_s5 + $0x10] sm:$0xff] (!%p463_p2)  }
   0x8   : > { %15219 = vmatpush3.bf16.msra.mxu0 (!%p463_p2), %v17250_v0  ;;  %15230 = vmatprep.mubr.msk.bf16.mxu1 (!%p463_p2), %vm628_vm1, %v17254_v4  ;;  %v17256_v5 = vld [vmem:[%s22715_s5] sm:$0xff] (!%p463_p2)   ;;  %v637_v12 = vsel (!%p463_p2), %vm635_vm2, 4294967295, %v17867_v11  ;;  %v17255_v21 = vld [vmem:[%s22713_s3 + $0x8] sm:$0x1f] (!%p463_p2)   ;;  %v17259_v23 = vld [vmem:[%s22715_s5 + $0x18] sm:$0xff] (!%p463_p2)   ;;  %vm867_vm4 = vcmask (!%p463_p2), 203776  }
   0x9   : > { %15220 = vmatprep.subr.bf16.mxu0 (!%p463_p2), %v17251_v1  ;;  %v12862_v6 = vld [vmem:[%s22712_s2] ss:$0 sm:$0xff] (!%p463_p2)  ;;  %v638_v17 = vsel (!%p463_p2), %vm636_vm3, %v637_v12, 0  ;;  %v17258_v22 = vld [vmem:[%s22715_s5 + $0x8] sm:$0xff] (!%p463_p2)   ;;  %v17262_v32 = vld [vmem:[%s22715_s5 + $0x30] sm:$0xff] (!%p463_p2)   ;;  %vm880_vm5 = vcmask (!%p463_p2), 1043456  }
   0xa   : > { %v17260_v24 = vld [vmem:[%s22715_s5 + $0x20] sm:$0xff] (!%p463_p2)   ;;  %v17261_v31 = vld [vmem:[%s22715_s5 + $0x28] sm:$0xff] (!%p463_p2)   ;;  %v17263_v33 = vld [vmem:[%s22715_s5 + $0x38] sm:$0xff] (!%p463_p2)   ;;  %vm881_vm6 = vcmask (!%p463_p2), 1044480   ;;  %v882_v45 = vsel (!%p463_p2), %vm880_vm5, 4294967295, %v17867_v11  ;;  %vm17869_vm7 = vmmov (!%p463_p2), 0  }
   0xb   : > { %v17264_v34 = vld [vmem:[%s22715_s5 + $0x40] sm:$0xff] (!%p463_p2)   ;;  %v17265_v35 = vld [vmem:[%s22715_s5 + $0x48] sm:$0xff] (!%p463_p2)   ;;  %v17266_v36 = vld [vmem:[%s22715_s5 + $0x50] sm:$0xff] (!%p463_p2)   ;;  %v18069_v50 = vsel (!%p463_p2), %vm881_vm6, %v882_v45, 0  ;;  %vm2596_vm8 = vcmask (!%p463_p2), 1040384   ;;  %vm2574_vm9 = vcmask (!%p463_p2), 400384  }
   0xc   : > { %15221 = vmatpush3.bf16.msra.mxu0 (!%p463_p2), %v17251_v1  ;;  %v17267_v37 = vld [vmem:[%s22715_s5 + $0x58] sm:$0xff] (!%p463_p2)   ;;  %v17268_v38 = vld [vmem:[%s22715_s5 + $0x60] sm:$0xff] (!%p463_p2)   ;;  %v17269_v39 = vld [vmem:[%s22715_s5 + $0x68] sm:$0xff] (!%p463_p2)   ;;  %vm4682_vm10 = vcmask (!%p463_p2), 130048   ;;  %vm5017_vm11 = vcmask (!%p463_p2), 801792   ;;  %vm8280_vm12 = vcmask (!%p463_p2), 64512  }
   0xd   : > { %15234 = vmatprep.subr.bf16.mxu0 (!%p463_p2), %v17256_v5  ;;  %v17270_v40 = vld [vmem:[%s22715_s5 + $0x70] sm:$0xff] (!%p463_p2)   ;;  %v17271_v41 = vld [vmem:[%s22715_s5 + $0x78] sm:$0xff] (!%p463_p2)   ;;  %v17272_v42 = vld [vmem:[%s22715_s5 + $0x80] sm:$0xff] (!%p463_p2)   ;;  %vm8791_vm13 = vcmask (!%p463_p2), 556032   ;;  %vm12773_vm14 = vcmask (!%p463_p2), 23552   ;;  %vm12798_vm15 = vcmask (!%p463_p2), 19456  }
   0xe   : > { %s22730_s22 = smov (!%p512_p3, %s12855_s22), 1  ;;  %v17273_v43 = vld [vmem:[%s22715_s5 + $0x88] sm:$0xff]   ;;  %v17274_v44 = vld [vmem:[%s22714_s4 + $0x1c] sm:$0xff]   ;;  %v17285_v45 = vld [vmem:[%s22714_s4 + $0x50] ss:$0 sps:$4 sm:$0x11]  }
   0xf   : > { %s17236_s27 = smul.u32 12, %s22730_s22  ;;  %v17275_v0 = vld [vmem:[%s22714_s4 + $0x24] sm:$0xff]  }
  0x10   : > { %v17278_v12 = vld [vmem:[%s22714_s4] sm:$0xff]   ;;  %s17237_s18 = smul.u32 200, %s22730_s22 }
  0x11   : > { %s516_s0 = scalar_lea.vmem %s22728_s30, %s17236_s27 }
  0x12   : > { %v17252_v2 = vld [vmem:[%s516_s0] sm:$0xff]   ;;  %v17253_v3 = vld [vmem:[%s516_s0 + $0x8] ss:$0 sps:$4 sm:$0x77]   ;;  %s22607_s25 = scalar_lea.vmem %s22726_s16, %s17237_s18 }
  0x13   : > { %15222 = vmatprep.mubr.msk.bf16.mxu0 %vm557_vm0, %v17252_v2 }
  0x14   : > { %15223 = vmatmul.mubr.msk.bf16.vlgmr.msra.gmra.mrb[0].mxu0 %vm557_vm0, %v17253_v3  ;;  %v17276_v3 = vld [vmem:[%s22714_s4 + $0x2c] sm:$0xff]  }
  0x15   : > { %15235 = vmatpush3.bf16.msra.mxu0 %v17256_v5 }
  0x16   : > { %15236 = vmatprep.subr.bf16.mxu0 %v17258_v22 }
  0x19   : > { %15237 = vmatpush3.bf16.msra.mxu0 %v17258_v22 }
  0xe7   : > { %v15224_v7 = vpop.f32.mrb[0].mxu0 }
  0xe8   : > { %v607_v8 = vadd.f32 %v15224_v7, %v12862_v6  ;;  %v598_v9 = vpop.f32.mrb[1].mxu0 }
  0xe9   : > { %v15225_v10 = vpop.f32.mrb[2].mxu0  ;;  %v599_v15 = vadd.f32 %v12862_v6, %v598_v9  ;;  %v17277_v9 = vld [vmem:[%s22714_s4 + $0x34] ss:$0 sps:$4 sm:$0x11]  }
  0xea   : > { %v601_v13 = vpop.f32.mrb[3].mxu0  ;;  %v617_v14 = vpack.c.bf16 %v607_v8, %v607_v8 }
  0xeb   : > { %v602_v16 = vadd.f32 %v12862_v6, %v601_v13 }
  0xec   : > { %v640_v19 = vand.u32 %v638_v17, %v617_v14 }
  0xed   : > { %v616_v18 = vpack.c.bf16 %v602_v16, %v599_v15 }
  0xef   : > { %15226 = vmatprep.subr.bf16.mxu1 %v616_v18 }
  0xf0   : > { %15227 = vmatpush3.bf16.msra.mxu1 %v616_v18  ;;  %v17279_v18 = vld [vmem:[%s22714_s4 + $0x8] sm:$0xff]  }
  0xf1   : > { %15228 = vmatprep.subr.bf16.mxu1 %v640_v19 }
  0xf4   : > { %15229 = vmatpush3.bf16.msra.mxu1 %v640_v19 }
  0xf5   : > { %15242 = vmatprep.subr.bf16.mxu1 %v17257_v20 }
  0xf7   : > { %15231 = vmatmul.mubr.msk.bf16.vlgmr.msra.gmra.mrb[0].mxu1 %vm628_vm1, %v17255_v21  ;;  %v17280_v21 = vld [vmem:[%s22714_s4 + $0x10] sm:$0xff]  }
  0xf8   : > { %15243 = vmatpush3.bf16.msra.mxu1 %v17257_v20 }
  0xf9   : > { %15244 = vmatprep.subr.bf16.mxu1 %v17259_v23 }
  0xfc   : > { %15245 = vmatpush3.bf16.msra.mxu1 %v17259_v23 }
  0xfd   : > { %15274 = vmatprep.subr.bf16.mxu1 %v17260_v24 }
 0x1ca   : > { %v15232_v25 = vpop.f32.mrb[0].mxu1 }
 0x1cb   : > { %v676_v26 = vpop.f32.mrb[1].mxu1 }
 0x1cc   : > { %v15233_v27 = vpop.f32.mrb[2].mxu1 }
 0x1cd   : > { %v692_v28 = vpack.c.bf16 %v15233_v27, %v15232_v25  ;;  %v679_v29 = vpop.f32.mrb[3].mxu1  ;;  %v17281_v27 = vld [vmem:[%s22714_s4 + $0x18] ss:$0 sps:$4 sm:$0x11]  }
 0x1ce   : > { %v691_v30 = vpack.c.bf16 %v679_v29, %v676_v26 }
 0x1d0   : > { %15238 = vmatprep.mubr.msk.bf16.mxu0 %vm557_vm0, %v691_v30  ;;  %15246 = vmatprep.mubr.msk.bf16.mxu1 %vm557_vm0, %v691_v30 }
 0x1d1   : > { %15239 = vmatmul.mubr.msk.bf16.vlgmr.msra.gmra.mrb[4].mxu0 %vm557_vm0, %v692_v28  ;;  %15247 = vmatmul.mubr.msk.bf16.vlgmr.msra.gmra.mrb[4].mxu1 %vm557_vm0, %v692_v28 }
 0x1d2   : > { %15275 = vmatpush3.bf16.msra.mxu1 %v17260_v24  ;;  %15278 = vmatprep.mubr.msk.bf16.mxu1 %vm557_vm0, %v691_v30 }
 0x1d3   : > { %15276 = vmatprep.subr.bf16.mxu1 %v17261_v31  ;;  %15254 = vmatprep.mubr.msk.bf16.mxu0 %vm867_vm4, %v17274_v44 }
 0x1d6   : > { %15277 = vmatpush3.bf16.msra.mxu1 %v17261_v31 }
 0x1d7   : > { %15294 = vmatprep.subr.bf16.mxu1 %v17262_v32 }
 0x1d9   : > { %15279 = vmatmul.mubr.msk.bf16.vlgmr.msra.gmra.mrb[8].mxu1 %vm557_vm0, %v692_v28 }
 0x1da   : > { %15295 = vmatpush3.bf16.msra.mxu1 %v17262_v32  ;;  %15298 = vmatprep.mubr.msk.bf16.mxu1 %vm557_vm0, %v691_v30 }
 0x1db   : > { %15296 = vmatprep.subr.bf16.mxu1 %v17263_v33 }
 0x1de   : > { %15297 = vmatpush3.bf16.msra.mxu1 %v17263_v33 }
 0x1df   : > { %15314 = vmatprep.subr.bf16.mxu1 %v17264_v34 }
 0x1e1   : > { %15299 = vmatmul.mubr.msk.bf16.vlgmr.msra.gmra.mrb[12].mxu1 %vm557_vm0, %v692_v28 }
 0x1e2   : > { %15315 = vmatpush3.bf16.msra.mxu1 %v17264_v34  ;;  %15318 = vmatprep.mubr.msk.bf16.mxu1 %vm557_vm0, %v691_v30 }
 0x1e3   : > { %15316 = vmatprep.subr.bf16.mxu1 %v17265_v35 }
 0x1e6   : > { %15317 = vmatpush3.bf16.msra.mxu1 %v17265_v35 }
 0x1e7   : > { %15334 = vmatprep.subr.bf16.mxu1 %v17266_v36 }
 0x1e9   : > { %15319 = vmatmul.mubr.msk.bf16.vlgmr.msra.gmra.mrb[16].mxu1 %vm557_vm0, %v692_v28 }
 0x1ea   : > { %15335 = vmatpush3.bf16.msra.mxu1 %v17266_v36  ;;  %15338 = vmatprep.mubr.msk.bf16.mxu1 %vm557_vm0, %v691_v30  ;;  %v17283_v36 = vld [vmem:[%s22714_s4 + $0x40] sm:$0xff]  }
 0x1eb   : > { %15336 = vmatprep.subr.bf16.mxu1 %v17267_v37 }
 0x1ee   : > { %15337 = vmatpush3.bf16.msra.mxu1 %v17267_v37 }
 0x1ef   : > { %15354 = vmatprep.subr.bf16.mxu1 %v17268_v38 }
 0x1f1   : > { %15339 = vmatmul.mubr.msk.bf16.vlgmr.msra.gmra.mrb[20].mxu1 %vm557_vm0, %v692_v28 }
 0x1f2   : > { %15355 = vmatpush3.bf16.msra.mxu1 %v17268_v38  ;;  %15358 = vmatprep.mubr.msk.bf16.mxu1 %vm557_vm0, %v691_v30 }
 0x1f3   : > { %15356 = vmatprep.subr.bf16.mxu1 %v17269_v39 }
 0x1f6   : > { %15357 = vmatpush3.bf16.msra.mxu1 %v17269_v39  ;;  %v17284_v39 = vld [vmem:[%s22714_s4 + $0x48] sm:$0xff]  }
 0x1f7   : > { %15374 = vmatprep.subr.bf16.mxu1 %v17270_v40 }
 0x1f9   : > { %15359 = vmatmul.mubr.msk.bf16.vlgmr.msra.gmra.mrb[24].mxu1 %vm557_vm0, %v692_v28 }
 0x1fa   : > { %15375 = vmatpush3.bf16.msra.mxu1 %v17270_v40  ;;  %15378 = vmatprep.mubr.msk.bf16.mxu1 %vm557_vm0, %v691_v30 }
 0x1fb   : > { %15376 = vmatprep.subr.bf16.mxu1 %v17271_v41 }
 0x1fe   : > { %15377 = vmatpush3.bf16.msra.mxu1 %v17271_v41 }
 0x1ff   : > { %15394 = vmatprep.subr.bf16.mxu1 %v17272_v42 }
 0x201   : > { %15379 = vmatmul.mubr.msk.bf16.vlgmr.msra.gmra.mrb[28].mxu1 %vm557_vm0, %v692_v28 }
 0x202   : > { %15395 = vmatpush3.bf16.msra.mxu1 %v17272_v42  ;;  %15398 = vmatprep.mubr.msk.bf16.mxu1 %vm557_vm0, %v691_v30  ;;  %v17282_v30 = vld [vmem:[%s22714_s4 + $0x38] sm:$0xff]  }
 0x203   : > { %15396 = vmatprep.subr.bf16.mxu1 %v17273_v43 }
 0x206   : > { %15397 = vmatpush3.bf16.msra.mxu1 %v17273_v43 }
 0x209   : > { %15399 = vmatmul.mubr.msk.bf16.vlgmr.msra.gmra.mrb[32].mxu1 %vm557_vm0, %v692_v28 }
 0x2a4   : > { %v15240_v46 = vpop.f32.mrb[4].mxu0  ;;  %v15248_v47 = vpop.f32.mrb[4].mxu1 }
 0x2a5   : > { %v749_v48 = vpop.f32.mrb[5].mxu0  ;;  %v824_v49 = vpop.f32.mrb[5].mxu1 }
 0x2a6   : > { %v15241_v51 = vpop.f32.mrb[6].mxu0  ;;  %v15249_v52 = vpop.f32.mrb[6].mxu1 }
 0x2a7   : > { %v765_v53 = vpack.c.bf16 %v15241_v51, %v15240_v46  ;;  %v840_v54 = vpack.c.bf16 %v15249_v52, %v15248_v47  ;;  %v752_v55 = vpop.f32.mrb[7].mxu0  ;;  %v827_v56 = vpop.f32.mrb[7].mxu1 }
 0x2a8   : > { %v764_v57 = vpack.c.bf16 %v752_v55, %v749_v48  ;;  %v839_v58 = vpack.c.bf16 %v827_v56, %v824_v49  ;;  %v17286_v48 = vld [vmem:[%s22714_s4 + $0x54] sm:$0xff]   ;;  %v17287_v55 = vld [vmem:[%s22714_s4 + $0x5c] sm:$0xff]  }
 0x2a9   : > { %v885_v59 = vand.u32 %v18069_v50, %v840_v54  ;;  %v982_v60 = vand.u32 %v18069_v50, %v765_v53 }
 0x2aa   : > { %15250 = vmatprep.subr.bf16.mxu0 %v839_v58 }
 0x2ab   : > { %15251 = vmatpush3.bf16.msra.mxu0 %v839_v58  ;;  %v17288_v58 = vld [vmem:[%s22714_s4 + $0x64] sm:$0xff]  }
 0x2ac   : > { %15252 = vmatprep.subr.bf16.mxu0 %v885_v59  ;;  %v15280_v61 = vpop.f32.mrb[8].mxu1 }
 0x2ad   : > { %v1099_v62 = vpop.f32.mrb[9].mxu1 }
 0x2ae   : > { %v15281_v63 = vpop.f32.mrb[10].mxu1 }
 0x2af   : > { %v1115_v1 = vpack.c.bf16 %v15281_v63, %v15280_v61  ;;  %15253 = vmatpush3.bf16.msra.mxu0 %v885_v59  ;;  %v1102_v2 = vpop.f32.mrb[11].mxu1  ;;  %v17289_v61 = vld [vmem:[%s22714_s4 + $0x6c] ss:$0 sps:$4 sm:$0x11]   ;;  %v17292_v63 = vld [vmem:[%s22714_s4 + $0x80] sm:$0xff]  }
 0x2b0   : > { %v1114_v4 = vpack.c.bf16 %v1102_v2, %v1099_v62  ;;  %15262 = vmatprep.subr.bf16.mxu0 %v764_v57  ;;  %v17290_v62 = vld [vmem:[%s22714_s4 + $0x70] sm:$0xff]  }
 0x2b1   : > { %v1155_v5 = vand.u32 %v1115_v1, %v18069_v50  ;;  %v17294_v1 = vld [vmem:[%s22714_s4 + $0x8c] sm:$0xff]   ;;  %v17295_v2 = vld [vmem:[%s22714_s4 + $0x94] sm:$0xff]  }
 0x2b2   : > { %15255 = vmatmul.mubr.msk.bf16.vlgmr.msra.gmra.mrb[8].mxu0 %vm867_vm4, %v17275_v0  ;;  %v17293_v0 = vld [vmem:[%s22714_s4 + $0x88] ss:$0 sps:$4 sm:$0x11]  }
 0x2b3   : > { %15263 = vmatpush3.bf16.msra.mxu0 %v764_v57  ;;  %15258 = vmatprep.mubr.msk.bf16.mxu0 %vm867_vm4, %v17276_v3  ;;  %v17296_v3 = vld [vmem:[%s22714_s4 + $0x9c] sm:$0xff]  }
 0x2b4   : > { %15264 = vmatprep.subr.bf16.mxu0 %v982_v60  ;;  %v15300_v6 = vpop.f32.mrb[12].mxu1 }
 0x2b5   : > { %v1279_v7 = vpop.f32.mrb[13].mxu1 }
 0x2b6   : > { %v15301_v8 = vpop.f32.mrb[14].mxu1 }
 0x2b7   : > { %v1295_v10 = vpack.c.bf16 %v15301_v8, %v15300_v6  ;;  %15265 = vmatpush3.bf16.msra.mxu0 %v982_v60  ;;  %v1282_v11 = vpop.f32.mrb[15].mxu1  ;;  %v17299_v6 = vld [vmem:[%s22714_s4 + $0xb0] sm:$0xff]   ;;  %v17301_v8 = vld [vmem:[%s22714_s4 + $0xc0] ss:$0 sps:$4 sm:$0x11]  }
 0x2b8   : > { %v1294_v13 = vpack.c.bf16 %v1282_v11, %v1279_v7  ;;  %15282 = vmatprep.subr.bf16.mxu0 %v1114_v4  ;;  %v17300_v7 = vld [vmem:[%s22714_s4 + $0xb8] sm:$0xff]  }
 0x2b9   : > { %v1335_v14 = vand.u32 %v1295_v10, %v18069_v50  ;;  %v17303_v10 = vld [vmem:[%s22714_s4 + $0xcc] sm:$0xff]   ;;  %v17304_v11 = vld [vmem:[%s22714_s4 + $0xd4] sm:$0xff]  }
 0x2ba   : > { %15259 = vmatmul.mubr.msk.bf16.gmra.mrb[12].mxu0 %vm867_vm4, %v17277_v9  ;;  %v17302_v9 = vld [vmem:[%s22714_s4 + $0xc4] sm:$0xff]  }
 0x2bb   : > { %15266 = vmatprep.mubr.msk.bf16.mxu0 %vm867_vm4, %v17278_v12  ;;  %v17305_v12 = vld [vmem:[%s22714_s4 + $0xdc] ss:$0 sps:$4 sm:$0x11]  }
 0x2bc   : > { %v15320_v15 = vpop.f32.mrb[16].mxu1 }
 0x2bd   : > { %v1459_v16 = vpop.f32.mrb[17].mxu1 }
 0x2be   : > { %v15321_v17 = vpop.f32.mrb[18].mxu1 }
 0x2bf   : > { %v1475_v19 = vpack.c.bf16 %v15321_v17, %v15320_v15  ;;  %v1462_v20 = vpop.f32.mrb[19].mxu1  ;;  %v17308_v15 = vld [vmem:[%s22714_s4 + $0xf0] sm:$0xff]   ;;  %v17310_v17 = vld [vmem:[%s22718_s8] sm:$0xff]  }
 0x2c0   : > { %v1474_v22 = vpack.c.bf16 %v1462_v20, %v1459_v16  ;;  %v17309_v16 = vld [vmem:[%s22714_s4 + $0xf8] ss:$0 sps:$4 sm:$0x11]   ;;  %15414 = vmatprep.subr.bf16.mxu1 %v17310_v17 }
 0x2c1   : > { %v1515_v23 = vand.u32 %v1475_v19, %v18069_v50  ;;  %15415 = vmatpush3.bf16.msra.mxu1 %v17310_v17 }
 0x2c2   : > { %15267 = vmatmul.mubr.msk.bf16.vlgmr.msra.gmra.mrb[8].mxu0 %vm867_vm4, %v17279_v18  ;;  %v17311_v18 = vld [vmem:[%s22718_s8 + $0x8] sm:$0xff]  }
 0x2c3   : > { %15283 = vmatpush3.bf16.msra.mxu0 %v1114_v4  ;;  %15270 = vmatprep.mubr.msk.bf16.mxu0 %vm867_vm4, %v17280_v21  ;;  %v17297_v4 = vld [vmem:[%s22714_s4 + $0xa4] ss:$0 sps:$4 sm:$0x11]  }
 0x2c4   : > { %15284 = vmatprep.subr.bf16.mxu0 %v1155_v5  ;;  %v15340_v24 = vpop.f32.mrb[20].mxu1  ;;  %15416 = vmatprep.subr.bf16.mxu1 %v17311_v18 }
 0x2c5   : > { %v1639_v25 = vpop.f32.mrb[21].mxu1  ;;  %15417 = vmatpush3.bf16.msra.mxu1 %v17311_v18 }
 0x2c6   : > { %v15341_v26 = vpop.f32.mrb[22].mxu1 }
 0x2c7   : > { %15285 = vmatpush3.bf16.msra.mxu0 %v1155_v5  ;;  %v1655_v28 = vpack.c.bf16 %v15341_v26, %v15340_v24  ;;  %v1642_v29 = vpop.f32.mrb[23].mxu1  ;;  %v17298_v5 = vld [vmem:[%s22714_s4 + $0xa8] sm:$0xff]  }
 0x2c8   : > { %15302 = vmatprep.subr.bf16.mxu0 %v1294_v13  ;;  %v1654_v31 = vpack.c.bf16 %v1642_v29, %v1639_v25 }
 0x2c9   : > { %v1695_v32 = vand.u32 %v1655_v28, %v18069_v50 }
 0x2ca   : > { %15271 = vmatmul.mubr.msk.bf16.gmra.mrb[16].mxu0 %vm867_vm4, %v17281_v27 }
 0x2cb   : > { %15286 = vmatprep.mubr.msk.bf16.mxu0 %vm867_vm4, %v17282_v30 }
 0x2cc   : > { %v15360_v33 = vpop.f32.mrb[24].mxu1 }
 0x2cd   : > { %v1819_v34 = vpop.f32.mrb[25].mxu1 }
 0x2ce   : > { %v15361_v35 = vpop.f32.mrb[26].mxu1 }
 0x2cf   : > { %v1835_v37 = vpack.c.bf16 %v15361_v35, %v15360_v33  ;;  %v1822_v38 = vpop.f32.mrb[27].mxu1 }
 0x2d0   : > { %v1834_v40 = vpack.c.bf16 %v1822_v38, %v1819_v34 }
 0x2d1   : > { %v1875_v41 = vand.u32 %v1835_v37, %v18069_v50 }
 0x2d2   : > { %15287 = vmatmul.mubr.msk.bf16.vlgmr.msra.gmra.mrb[8].mxu0 %vm867_vm4, %v17283_v36 }
 0x2d3   : > { %15303 = vmatpush3.bf16.msra.mxu0 %v1294_v13  ;;  %15290 = vmatprep.mubr.msk.bf16.mxu0 %vm867_vm4, %v17284_v39  ;;  %v17306_v13 = vld [vmem:[%s22714_s4 + $0xe0] sm:$0xff]  }
 0x2d4   : > { %15304 = vmatprep.subr.bf16.mxu0 %v1335_v14  ;;  %v15380_v42 = vpop.f32.mrb[28].mxu1 }
 0x2d5   : > { %v1999_v43 = vpop.f32.mrb[29].mxu1 }
 0x2d6   : > { %v15381_v44 = vpop.f32.mrb[30].mxu1 }
 0x2d7   : > { %15305 = vmatpush3.bf16.msra.mxu0 %v1335_v14  ;;  %v2015_v46 = vpack.c.bf16 %v15381_v44, %v15380_v42  ;;  %v2002_v47 = vpop.f32.mrb[31].mxu1  ;;  %v17307_v14 = vld [vmem:[%s22714_s4 + $0xe8] sm:$0xff]  }
 0x2d8   : > { %15322 = vmatprep.subr.bf16.mxu0 %v1474_v22  ;;  %v2014_v49 = vpack.c.bf16 %v2002_v47, %v1999_v43 }
 0x2d9   : > { %v2055_v51 = vand.u32 %v2015_v46, %v18069_v50 }
 0x2da   : > { %15291 = vmatmul.mubr.msk.bf16.gmra.mrb[20].mxu0 %vm867_vm4, %v17285_v45 }
 0x2db   : > { %15306 = vmatprep.mubr.msk.bf16.mxu0 %vm867_vm4, %v17286_v48 }
 0x2dc   : > { %v15400_v52 = vpop.f32.mrb[32].mxu1 }
 0x2dd   : > { %v2179_v53 = vpop.f32.mrb[33].mxu1 }
 0x2de   : > { %v15401_v54 = vpop.f32.mrb[34].mxu1 }
 0x2df   : > { %v2195_v56 = vpack.c.bf16 %v15401_v54, %v15400_v52  ;;  %v2182_v57 = vpop.f32.mrb[35].mxu1 }
 0x2e0   : > { %v2194_v59 = vpack.c.bf16 %v2182_v57, %v2179_v53 }
 0x2e1   : > { %v2235_v60 = vand.u32 %v2195_v56, %v18069_v50  ;;  %v17291_v50 = vld [vmem:[%s22714_s4 + $0x78] sm:$0xff]  }
 0x2e2   : > { %15307 = vmatmul.mubr.msk.bf16.vlgmr.msra.gmra.mrb[8].mxu0 %vm867_vm4, %v17287_v55 }
 0x2e3   : > { %15323 = vmatpush3.bf16.msra.mxu0 %v1474_v22  ;;  %15310 = vmatprep.mubr.msk.bf16.mxu0 %vm867_vm4, %v17288_v58 }
 0x2e4   : > { %15324 = vmatprep.subr.bf16.mxu0 %v1515_v23 }
 0x2e7   : > { %15325 = vmatpush3.bf16.msra.mxu0 %v1515_v23  ;;  %v18229_v23 = vld [vmem:[%s22718_s8 + $0x10] sm:$0xff]  }
 0x2e8   : > { %15342 = vmatprep.subr.bf16.mxu0 %v1654_v31  ;;  %15426 = vmatprep.subr.bf16.mxu1 %v18229_v23 }
 0x2ea   : > { %15311 = vmatmul.mubr.msk.bf16.gmra.mrb[24].mxu0 %vm867_vm4, %v17289_v61 }
 0x2eb   : > { %15326 = vmatprep.mubr.msk.bf16.mxu0 %vm867_vm4, %v17290_v62 }
 0x2f2   : > { %15327 = vmatmul.mubr.msk.bf16.vlgmr.msra.gmra.mrb[8].mxu0 %vm867_vm4, %v17291_v50 }
 0x2f3   : > { %15343 = vmatpush3.bf16.msra.mxu0 %v1654_v31  ;;  %15330 = vmatprep.mubr.msk.bf16.mxu0 %vm867_vm4, %v17292_v63 }
 0x2f4   : > { %15344 = vmatprep.subr.bf16.mxu0 %v1695_v32 }
 0x2f7   : > { %15345 = vmatpush3.bf16.msra.mxu0 %v1695_v32 }
 0x2f8   : > { %15362 = vmatprep.subr.bf16.mxu0 %v1834_v40 }
 0x2fa   : > { %15331 = vmatmul.mubr.msk.bf16.gmra.mrb[28].mxu0 %vm867_vm4, %v17293_v0 }
 0x2fb   : > { %15346 = vmatprep.mubr.msk.bf16.mxu0 %vm867_vm4, %v17294_v1 }
 0x302   : > { %15347 = vmatmul.mubr.msk.bf16.vlgmr.msra.gmra.mrb[8].mxu0 %vm867_vm4, %v17295_v2 }
 0x303   : > { %15363 = vmatpush3.bf16.msra.mxu0 %v1834_v40  ;;  %15350 = vmatprep.mubr.msk.bf16.mxu0 %vm867_vm4, %v17296_v3 }
 0x304   : > { %15364 = vmatprep.subr.bf16.mxu0 %v1875_v41 }
 0x307   : > { %15365 = vmatpush3.bf16.msra.mxu0 %v1875_v41 }
 0x308   : > { %15382 = vmatprep.subr.bf16.mxu0 %v2014_v49 }
 0x30a   : > { %15351 = vmatmul.mubr.msk.bf16.gmra.mrb[32].mxu0 %vm867_vm4, %v17297_v4 }
 0x30b   : > { %15366 = vmatprep.mubr.msk.bf16.mxu0 %vm867_vm4, %v17298_v5 }
 0x312   : > { %15367 = vmatmul.mubr.msk.bf16.vlgmr.msra.gmra.mrb[8].mxu0 %vm867_vm4, %v17299_v6 }
 0x313   : > { %15383 = vmatpush3.bf16.msra.mxu0 %v2014_v49  ;;  %15370 = vmatprep.mubr.msk.bf16.mxu0 %vm867_vm4, %v17300_v7 }
 0x314   : > { %15384 = vmatprep.subr.bf16.mxu0 %v2055_v51 }
 0x317   : > { %15385 = vmatpush3.bf16.msra.mxu0 %v2055_v51 }
 0x318   : > { %15402 = vmatprep.subr.bf16.mxu0 %v2194_v59 }
 0x31a   : > { %15371 = vmatmul.mubr.msk.bf16.gmra.mrb[36].mxu0 %vm867_vm4, %v17301_v8 }
 0x31b   : > { %15386 = vmatprep.mubr.msk.bf16.mxu0 %vm867_vm4, %v17302_v9  ;;  %v13069_v9 = vld [vmem:[%s22716_s6] ss:$0 sm:$0xff] }
 0x322   : > { %15387 = vmatmul.mubr.msk.bf16.vlgmr.msra.gmra.mrb[8].mxu0 %vm867_vm4, %v17303_v10 }
 0x323   : > { %15403 = vmatpush3.bf16.msra.mxu0 %v2194_v59  ;;  %15390 = vmatprep.mubr.msk.bf16.mxu0 %vm867_vm4, %v17304_v11 }
 0x324   : > { %15404 = vmatprep.subr.bf16.mxu0 %v2235_v60 }
 0x327   : > { %15405 = vmatpush3.bf16.msra.mxu0 %v2235_v60 }
 0x32a   : > { %15391 = vmatmul.mubr.msk.bf16.gmra.mrb[40].mxu0 %vm867_vm4, %v17305_v12 }
 0x32b   : > { %15406 = vmatprep.mubr.msk.bf16.mxu0 %vm867_vm4, %v17306_v13 }
 0x332   : > { %15407 = vmatmul.mubr.msk.bf16.vlgmr.msra.gmra.mrb[8].mxu0 %vm867_vm4, %v17307_v14 }
 0x333   : > { %15410 = vmatprep.mubr.msk.bf16.mxu0 %vm867_vm4, %v17308_v15 }
 0x33a   : > { %15411 = vmatmul.mubr.msk.bf16.gmra.mrb[44].mxu0 %vm867_vm4, %v17309_v16 }
 0x38d   : > { %v15260_v19 = vpop.f32.mrb[12].mxu0 }
 0x38e   : > { %v937_v20 = vpop.f32.mrb[13].mxu0 }
 0x38f   : > { %v15261_v21 = vpop.f32.mrb[14].mxu0 }
 0x390   : > { %v940_v22 = vpop.f32.mrb[15].mxu0 }
 0x39d   : > { %v15272_v24 = vpop.f32.mrb[16].mxu0 }
 0x39e   : > { %v1043_v25 = vadd.f32 %v15272_v24, %v15260_v19  ;;  %v1034_v26 = vpop.f32.mrb[17].mxu0 }
 0x39f   : > { %v1035_v27 = vadd.f32 %v1034_v26, %v937_v20  ;;  %v15273_v28 = vpop.f32.mrb[18].mxu0 }
 0x3a0   : > { %v1037_v29 = vpop.f32.mrb[19].mxu0  ;;  %v17313_v28 = vld [vmem:[%s22718_s8 + $0x18] sm:$0xff]  }
 0x3a1   : > { %v1038_v30 = vadd.f32 %v1037_v29, %v940_v22 }
 0x3ad   : > { %v15292_v31 = vpop.f32.mrb[20].mxu0 }
 0x3ae   : > { %v1227_v32 = vadd.f32 %v15292_v31, %v1043_v25  ;;  %v1207_v33 = vpop.f32.mrb[21].mxu0 }
 0x3af   : > { %v1225_v34 = vadd.f32 %v1207_v33, %v1035_v27  ;;  %v15293_v35 = vpop.f32.mrb[22].mxu0 }
 0x3b0   : > { %v1210_v36 = vpop.f32.mrb[23].mxu0 }
 0x3b1   : > { %v1226_v37 = vadd.f32 %v1210_v36, %v1038_v30 }
 0x3bd   : > { %v15312_v38 = vpop.f32.mrb[24].mxu0 }
 0x3be   : > { %v1407_v39 = vadd.f32 %v15312_v38, %v1227_v32  ;;  %v1387_v40 = vpop.f32.mrb[25].mxu0 }
 0x3bf   : > { %v1405_v41 = vadd.f32 %v1387_v40, %v1225_v34  ;;  %v15313_v42 = vpop.f32.mrb[26].mxu0 }
 0x3c0   : > { %v1390_v43 = vpop.f32.mrb[27].mxu0 }
 0x3c1   : > { %v1406_v44 = vadd.f32 %v1390_v43, %v1226_v37 }
 0x3cd   : > { %v15332_v45 = vpop.f32.mrb[28].mxu0 }
 0x3ce   : > { %v1587_v46 = vadd.f32 %v15332_v45, %v1407_v39  ;;  %v1567_v47 = vpop.f32.mrb[29].mxu0 }
 0x3cf   : > { %v1585_v48 = vadd.f32 %v1567_v47, %v1405_v41  ;;  %v15333_v49 = vpop.f32.mrb[30].mxu0 }
 0x3d0   : > { %v1570_v51 = vpop.f32.mrb[31].mxu0 }
 0x3d1   : > { %v1586_v52 = vadd.f32 %v1570_v51, %v1406_v44 }
 0x3dd   : > { %v15352_v53 = vpop.f32.mrb[32].mxu0 }
 0x3de   : > { %v1767_v54 = vadd.f32 %v15352_v53, %v1587_v46  ;;  %v1747_v55 = vpop.f32.mrb[33].mxu0 }
 0x3df   : > { %v1765_v56 = vadd.f32 %v1747_v55, %v1585_v48  ;;  %v15353_v57 = vpop.f32.mrb[34].mxu0 }
 0x3e0   : > { %v1750_v58 = vpop.f32.mrb[35].mxu0 }
 0x3e1   : > { %v1766_v59 = vadd.f32 %v1750_v58, %v1586_v52 }
 0x3ed   : > { %v15372_v60 = vpop.f32.mrb[36].mxu0 }
 0x3ee   : > { %v1947_v61 = vadd.f32 %v15372_v60, %v1767_v54  ;;  %v1927_v62 = vpop.f32.mrb[37].mxu0 }
 0x3ef   : > { %v1945_v50 = vadd.f32 %v1927_v62, %v1765_v56  ;;  %v15373_v63 = vpop.f32.mrb[38].mxu0 }
 0x3f0   : > { %v1930_v0 = vpop.f32.mrb[39].mxu0 }
 0x3f1   : > { %v1946_v1 = vadd.f32 %v1930_v0, %v1766_v59  ;;  %v17870_v0 = vmov 0  }
 0x3fd   : > { %v15392_v2 = vpop.f32.mrb[40].mxu0 }
 0x3fe   : > { %v2127_v3 = vadd.f32 %v15392_v2, %v1947_v61  ;;  %v2107_v4 = vpop.f32.mrb[41].mxu0  ;;  %v17320_v2 = vld [vmem:[%s22718_s8 + $0x20] sm:$0xff]  }
 0x3ff   : > { %v2125_v5 = vadd.f32 %v2107_v4, %v1945_v50  ;;  %v15393_v6 = vpop.f32.mrb[42].mxu0  ;;  %v17314_v4 = vld [vmem:[%s22717_s7 + $0x34] sm:$0xff]  }
 0x400   : > { %v2110_v7 = vpop.f32.mrb[43].mxu0  ;;  %v17321_v6 = vld [vmem:[%s22718_s8 + $0x28] sm:$0xff]  }
 0x401   : > { %v2126_v8 = vadd.f32 %v2110_v7, %v1946_v1  ;;  %v18277_v1 = vsel %vm2596_vm8, 65535, %v17870_v0  ;;  %v17316_v7 = vld [vmem:[%s22717_s7 + $0x3c] sm:$0xff]  }
 0x405   : > { %v15408_v10 = vpop.f32.mrb[8].mxu0 }
 0x406   : > { %v2317_v11 = vadd.f32 %v15408_v10, %v13069_v9  ;;  %v2271_v12 = vpop.f32.mrb[9].mxu0  ;;  %v17330_v10 = vld [vmem:[%s22718_s8 + $0x30] sm:$0xff]  }
 0x407   : > { %v2315_v13 = vadd.f32 %v13069_v9, %v2271_v12  ;;  %v15409_v14 = vpop.f32.mrb[10].mxu0  ;;  %v17318_v12 = vld [vmem:[%s22717_s7 + $0x44] sm:$0xff]  }
 0x408   : > { %v2318_v15 = vadd.f32 %v15409_v14, %v13069_v9  ;;  %v2274_v16 = vpop.f32.mrb[11].mxu0  ;;  %v2324_v18 = vmax.f32 %v2317_v11, 0.0  ;;  %v17322_v14 = vld [vmem:[%s22717_s7 + $0x4c] sm:$0xff]  }
 0x409   : > { %v2316_v17 = vadd.f32 %v13069_v9, %v2274_v16  ;;  %v2322_v20 = vmax.f32 %v2315_v13, 0.0  ;;  %v17319_v13 = vld [vmem:[%s22717_s7 + $0x64] ss:$0 sps:$4 sm:$0x11]   ;;  %v17331_v16 = vld [vmem:[%s22718_s8 + $0x38] sm:$0xff]  }
 0x40a   : > { %v2325_v19 = vmax.f32 %v2318_v15, 0.0  ;;  %v17323_v15 = vld [vmem:[%s22717_s7] sm:$0xff]  }
 0x40b   : > { %v2323_v21 = vmax.f32 %v2316_v17, 0.0  ;;  %v17324_v17 = vld [vmem:[%s22717_s7 + $0x8] sm:$0xff]  }
 0x40c   : > { %v18235_v22 = vpack.c.bf16 %v2325_v19, %v2324_v18  ;;  %v17325_v18 = vld [vmem:[%s22717_s7 + $0x10] sm:$0xff]   ;;  %v17326_v19 = vld [vmem:[%s22717_s7 + $0x18] sm:$0xff]  }
 0x40d   : > { %v18237_v24 = vpack.c.bf16 %v2323_v21, %v2322_v20  ;;  %v15412_v25 = vpop.f32.mrb[44].mxu0  ;;  %v17327_v20 = vld [vmem:[%s22717_s7 + $0x20] sm:$0xff]   ;;  %v17328_v21 = vld [vmem:[%s22717_s7 + $0x28] sm:$0xff]  }
 0x40e   : > { %v2307_v26 = vadd.f32 %v15412_v25, %v2127_v3  ;;  %v2287_v27 = vpop.f32.mrb[45].mxu0  ;;  %v17329_v25 = vld [vmem:[%s22717_s7 + $0x30] ss:$0 sps:$4 sm:$0x11]  }
 0x40f   : > { %v2305_v29 = vadd.f32 %v2287_v27, %v2125_v5  ;;  %v15413_v30 = vpop.f32.mrb[46].mxu0  ;;  %15418 = vmatprep.mubr.msk.bf16.mxu1 %vm557_vm0, %v18237_v24  ;;  %v17315_v5 = vld [vmem:[%s22717_s7 + $0x54] sm:$0xff]  }
 0x410   : > { %v2321_v31 = vadd.f32 %v13069_v9, %v2307_v26  ;;  %v2290_v32 = vpop.f32.mrb[47].mxu0  ;;  %15419 = vmatmul.mubr.msk.bf16.vlgmr.msra.gmra.mrb[36].mxu1 %vm557_vm0, %v18235_v22 }
 0x411   : > { %v2319_v33 = vadd.f32 %v13069_v9, %v2305_v29  ;;  %v2306_v34 = vadd.f32 %v2290_v32, %v2126_v8  ;;  %15427 = vmatpush3.bf16.msra.mxu1 %v18229_v23  ;;  %v17868_v23 = vmov 0.0   ;;  %v17317_v8 = vld [vmem:[%s22717_s7 + $0x5c] sm:$0xff]  }
 0x412   : > { %15428 = vmatprep.subr.bf16.mxu1 %v17313_v28  ;;  %v2328_v36 = vmax.f32 %v2321_v31, 0.0  ;;  %15438 = vmatprep.subr.bf16.mxu0 %v17868_v23 }
 0x413   : > { %v2320_v35 = vadd.f32 %v13069_v9, %v2306_v34  ;;  %v2326_v37 = vmax.f32 %v2319_v33, 0.0  ;;  %15446 = vmatprep.mubr.msk.bf16.mxu0 %vm17869_vm7, %v17868_v23 }
 0x414   : > { %v18249_v40 = vpack.c.bf16 %v2328_v36, %v2328_v36 }
 0x415   : > { %v2327_v38 = vmax.f32 %v2320_v35, 0.0  ;;  %15429 = vmatpush3.bf16.msra.mxu1 %v17313_v28 }
 0x416   : > { %17196 = vmatprep.subr.bf16.mxu1 %v17868_v23 }
 0x417   : > { %v18247_v39 = vpack.c.bf16 %v2327_v38, %v2326_v37 }
 0x419   : > { %15422 = vmatprep.mubr.msk.bf16.mxu1 %vm557_vm0, %v18247_v39 }
 0x41a   : > { %15423 = vmatmul.mubr.msk.bf16.gmra.mrb[40].mxu1 %vm557_vm0, %v18249_v40 }
 0x41b   : > { %15430 = vmatprep.mubr.msk.bf16.mxu1 %vm557_vm0, %v18237_v24 }
 0x422   : > { %15431 = vmatmul.mubr.msk.bf16.vlgmr.msra.gmra.mrb[44].mxu1 %vm557_vm0, %v18235_v22 }
 0x423   : > { %15434 = vmatprep.mubr.msk.bf16.mxu1 %vm557_vm0, %v18247_v39 }
 0x42a   : > { %15435 = vmatmul.mubr.msk.bf16.gmra.mrb[48].mxu1 %vm557_vm0, %v18249_v40 }
 0x42b   : > { %15462 = vmatprep.mubr.msk.bf16.mxu1 %vm17869_vm7, %v17868_v23 }
 0x4e3   : > { %v15420_v41 = vpop.f32.mrb[36].mxu1 }
 0x4e4   : > { %v2395_v42 = vpop.f32.mrb[37].mxu1 }
 0x4e5   : > { %v15421_v43 = vpop.f32.mrb[38].mxu1 }
 0x4e6   : > { %v2426_v44 = vpack.c.bf16 %v15421_v43, %v15420_v41  ;;  %v2398_v45 = vpop.f32.mrb[39].mxu1 }
 0x4e7   : > { %v2425_v46 = vpack.c.bf16 %v2398_v45, %v2395_v42 }
 0x4ed   : > { %v18269_v47 = vpop.f32.mrb[40].mxu1 }
 0x4ee   : > { %v2411_v48 = vpop.f32.mrb[41].mxu1  ;;  %v2428_v9 = vpack.c.bf16 %v18269_v47, %v18269_v47 }
 0x4ef   : > { %v15425_v49 = vpop.f32.mrb[42].mxu1 }
 0x4f0   : > { %v2414_v51 = vpop.f32.mrb[43].mxu1  ;;  %v2745_v11 = vand.u32 %v18277_v1, %v2428_v9 }
 0x4f1   : > { %v2427_v52 = vpack.c.bf16 %v2414_v51, %v2411_v48 }
 0x4f5   : > { %v15432_v53 = vpop.f32.mrb[44].mxu1 }
 0x4f6   : > { %v2493_v54 = vpop.f32.mrb[45].mxu1 }
 0x4f7   : > { %v15433_v55 = vpop.f32.mrb[46].mxu1 }
 0x4f8   : > { %v2524_v56 = vpack.c.bf16 %v15433_v55, %v15432_v53  ;;  %v2496_v57 = vpop.f32.mrb[47].mxu1 }
 0x4f9   : > { %v2523_v58 = vpack.c.bf16 %v2496_v57, %v2493_v54 }
 0x4fb   : > { %15439 = vmatpush3.bf16.msra.mxu0 %v2523_v58  ;;  %17200 = vmatpush3.bf16.msra.mxu1 %v2523_v58 }
 0x4fc   : > { %15440 = vmatprep.subr.bf16.mxu0 %v17868_v23  ;;  %17197 = vmatprep.subr.bf16.mxu1 %v17868_v23 }
 0x4fd   : > { %v15436_v59 = vpop.f32.mrb[48].mxu1 }
 0x4fe   : > { %v2509_v60 = vpop.f32.mrb[49].mxu1  ;;  %v2526_v50 = vpack.c.bf16 %v15436_v59, %v15436_v59 }
 0x4ff   : > { %v15437_v61 = vpop.f32.mrb[50].mxu1  ;;  %15441 = vmatpush3.bf16.msra.mxu0 %v2524_v56  ;;  %17201 = vmatpush3.bf16.msra.mxu1 %v2524_v56 }
 0x500   : > { %v2512_v62 = vpop.f32.mrb[51].mxu1  ;;  %15442 = vmatprep.subr.bf16.mxu0 %v17868_v23  ;;  %17198 = vmatprep.subr.bf16.mxu1 %v17868_v23  ;;  %v2600_v3 = vand.u32 %v18277_v1, %v2526_v50 }
 0x501   : > { %v2525_v63 = vpack.c.bf16 %v2512_v62, %v2509_v60 }
 0x503   : > { %15443 = vmatpush3.bf16.msra.mxu0 %v2525_v63  ;;  %17202 = vmatpush3.bf16.msra.mxu1 %v2525_v63 }
 0x504   : > { %15444 = vmatprep.subr.bf16.mxu0 %v17868_v23  ;;  %17199 = vmatprep.subr.bf16.mxu1 %v17868_v23 }
 0x507   : > { %15445 = vmatpush3.bf16.msra.mxu0 %v2600_v3  ;;  %17203 = vmatpush3.bf16.msra.mxu1 %v2600_v3 }
 0x508   : > { %15474 = vmatprep.subr.bf16.mxu0 %v17868_v23  ;;  %15510 = vmatprep.subr.bf16.mxu1 %v17320_v2 }
 0x50a   : > { %15447 = vmatmul.mubr.msk.bf16.vlgmr.msra.gmra.mrb[48].mxu0 %vm2574_vm9, %v17314_v4  ;;  %15463 = vmatmul.mubr.msk.bf16.vlgmr.msra.gmra.mrb[52].mxu1 %vm2574_vm9, %v17315_v5 }
 0x50b   : > { %15475 = vmatpush3.bf16.msra.mxu0 %v2425_v46  ;;  %15450 = vmatprep.mubr.msk.bf16.mxu0 %vm17869_vm7, %v17868_v23 }
 0x50c   : > { %15476 = vmatprep.subr.bf16.mxu0 %v17868_v23  ;;  %15466 = vmatprep.mubr.msk.bf16.mxu1 %vm17869_vm7, %v17868_v23 }
 0x50d   : > { %15511 = vmatpush3.bf16.msra.mxu1 %v17320_v2 }
 0x50e   : > { %15512 = vmatprep.subr.bf16.mxu1 %v17321_v6 }
 0x50f   : > { %15477 = vmatpush3.bf16.msra.mxu0 %v2426_v44 }
 0x510   : > { %15478 = vmatprep.subr.bf16.mxu0 %v17868_v23 }
 0x511   : > { %15513 = vmatpush3.bf16.msra.mxu1 %v17321_v6 }
 0x512   : > { %15451 = vmatmul.mubr.msk.bf16.gmra.mrb[52].mxu0 %vm2574_vm9, %v17316_v7  ;;  %15467 = vmatmul.mubr.msk.bf16.gmra.mrb[56].mxu1 %vm2574_vm9, %v17317_v8 }
 0x513   : > { %15479 = vmatpush3.bf16.msra.mxu0 %v2427_v52  ;;  %15454 = vmatprep.mubr.msk.bf16.mxu0 %vm17869_vm7, %v17868_v23 }
 0x514   : > { %15480 = vmatprep.subr.bf16.mxu0 %v17868_v23  ;;  %15470 = vmatprep.mubr.msk.bf16.mxu1 %vm17869_vm7, %v17868_v23 }
 0x515   : > { %15522 = vmatprep.subr.bf16.mxu1 %v17868_v23 }
 0x517   : > { %15481 = vmatpush3.bf16.msra.mxu0 %v2745_v11 }
 0x518   : > { %15558 = vmatprep.subr.bf16.mxu0 %v17330_v10 }
 0x51a   : > { %15455 = vmatmul.mubr.msk.bf16.gmra.mrb[56].mxu0 %vm2574_vm9, %v17318_v12  ;;  %15471 = vmatmul.mubr.msk.bf16.gmra.mrb[60].mxu1 %vm2574_vm9, %v17319_v13  ;;  %v17339_v12 = vld [vmem:[%s22718_s8 + $0x40] sm:$0xff]  }
 0x51b   : > { %15514 = vmatprep.mubr.msk.bf16.mxu1 %vm557_vm0, %v18237_v24  ;;  %15458 = vmatprep.mubr.msk.bf16.mxu0 %vm17869_vm7, %v17868_v23 }
 0x522   : > { %15459 = vmatmul.mubr.msk.bf16.gmra.mrb[60].mxu0 %vm2574_vm9, %v17322_v14  ;;  %15515 = vmatmul.mubr.msk.bf16.vlgmr.msra.gmra.mrb[64].mxu1 %vm557_vm0, %v18235_v22 }
 0x523   : > { %15518 = vmatprep.mubr.msk.bf16.mxu1 %vm557_vm0, %v18247_v39  ;;  %15482 = vmatprep.mubr.msk.bf16.mxu0 %vm17869_vm7, %v17868_v23 }
 0x52a   : > { %15483 = vmatmul.mubr.msk.bf16.vlgmr.msra.gmra.mrb[64].mxu0 %vm2574_vm9, %v17323_v15  ;;  %15519 = vmatmul.mubr.msk.bf16.gmra.mrb[68].mxu1 %vm557_vm0, %v18249_v40  ;;  %v17332_v15 = vld [vmem:[%s22717_s7 + $0x68] sm:$0xff]  }
 0x52b   : > { %15486 = vmatprep.mubr.msk.bf16.mxu0 %vm17869_vm7, %v17868_v23  ;;  %15559 = vmatpush3.bf16.msra.mxu0 %v17330_v10 }
 0x52c   : > { %15560 = vmatprep.subr.bf16.mxu0 %v17331_v16  ;;  %15530 = vmatprep.mubr.msk.bf16.mxu1 %vm17869_vm7, %v17868_v23 }
 0x52f   : > { %15561 = vmatpush3.bf16.msra.mxu0 %v17331_v16 }
 0x530   : > { %15570 = vmatprep.subr.bf16.mxu0 %v17868_v23 }
 0x532   : > { %15487 = vmatmul.mubr.msk.bf16.gmra.mrb[68].mxu0 %vm2574_vm9, %v17324_v17 }
 0x533   : > { %15490 = vmatprep.mubr.msk.bf16.mxu0 %vm17869_vm7, %v17868_v23 }
 0x53a   : > { %15491 = vmatmul.mubr.msk.bf16.gmra.mrb[72].mxu0 %vm2574_vm9, %v17325_v18 }
 0x53b   : > { %15494 = vmatprep.mubr.msk.bf16.mxu0 %vm17869_vm7, %v17868_v23 }
 0x542   : > { %15495 = vmatmul.mubr.msk.bf16.gmra.mrb[76].mxu0 %vm2574_vm9, %v17326_v19 }
 0x543   : > { %15498 = vmatprep.mubr.msk.bf16.mxu0 %vm17869_vm7, %v17868_v23 }
 0x54a   : > { %15499 = vmatmul.mubr.msk.bf16.gmra.mrb[80].mxu0 %vm2574_vm9, %v17327_v20 }
 0x54b   : > { %15502 = vmatprep.mubr.msk.bf16.mxu0 %vm17869_vm7, %v17868_v23 }
 0x552   : > { %15503 = vmatmul.mubr.msk.bf16.gmra.mrb[84].mxu0 %vm2574_vm9, %v17328_v21  ;;  %v17340_v21 = vld [vmem:[%s22718_s8 + $0x48] sm:$0xff]  }
 0x553   : > { %15506 = vmatprep.mubr.msk.bf16.mxu0 %vm17869_vm7, %v17868_v23 }
 0x55a   : > { %15507 = vmatmul.mubr.msk.bf16.gmra.mrb[88].mxu0 %vm2574_vm9, %v17329_v25 }
 0x55b   : > { %15562 = vmatprep.mubr.msk.bf16.mxu0 %vm557_vm0, %v18237_v24 }
 0x562   : > { %15563 = vmatmul.mubr.msk.bf16.vlgmr.msra.gmra.mrb[92].mxu0 %vm557_vm0, %v18235_v22 }
 0x563   : > { %15566 = vmatprep.mubr.msk.bf16.mxu0 %vm557_vm0, %v18247_v39 }
 0x56a   : > { %15567 = vmatmul.mubr.msk.bf16.gmra.mrb[96].mxu0 %vm557_vm0, %v18249_v40 }
 0x56b   : > { %15578 = vmatprep.mubr.msk.bf16.mxu0 %vm17869_vm7, %v17868_v23 }
 0x5dd   : > { %v18403_v26 = vpop.f32.mrb[52].mxu1  ;;  %v2636_v27 = vpop.f32.mrb[48].mxu0 }
 0x5de   : > { %v15464_v28 = vpop.f32.mrb[53].mxu1  ;;  %v15448_v29 = vpop.f32.mrb[49].mxu0 }
 0x5df   : > { %v18405_v30 = vpop.f32.mrb[54].mxu1  ;;  %v2639_v31 = vpop.f32.mrb[50].mxu0 }
 0x5e0   : > { %v15465_v32 = vpop.f32.mrb[55].mxu1  ;;  %v15449_v33 = vpop.f32.mrb[51].mxu0 }
 0x5e5   : > { %v18407_v34 = vpop.f32.mrb[56].mxu1  ;;  %v2644_v35 = vpop.f32.mrb[52].mxu0 }
 0x5e6   : > { %v15468_v36 = vpop.f32.mrb[57].mxu1  ;;  %v15452_v37 = vpop.f32.mrb[53].mxu0 }
 0x5e7   : > { %v18409_v38 = vpop.f32.mrb[58].mxu1  ;;  %v2647_v41 = vpop.f32.mrb[54].mxu0 }
 0x5e8   : > { %v15469_v42 = vpop.f32.mrb[59].mxu1  ;;  %v15453_v43 = vpop.f32.mrb[55].mxu0 }
 0x5ed   : > { %v18411_v44 = vpop.f32.mrb[60].mxu1  ;;  %v2652_v45 = vpop.f32.mrb[56].mxu0 }
 0x5ee   : > { %v15472_v46 = vpop.f32.mrb[61].mxu1  ;;  %v15456_v47 = vpop.f32.mrb[57].mxu0 }
 0x5ef   : > { %v2687_v48 = vpop.f32.mrb[62].mxu1  ;;  %v2655_v49 = vpop.f32.mrb[58].mxu0 }
 0x5f0   : > { %v15473_v51 = vpop.f32.mrb[63].mxu1  ;;  %v15457_v52 = vpop.f32.mrb[59].mxu0 }
 0x5f5   : > { %v15516_v53 = vpop.f32.mrb[64].mxu1  ;;  %v2660_v54 = vpop.f32.mrb[60].mxu0 }
 0x5f6   : > { %v2886_v55 = vpop.f32.mrb[65].mxu1  ;;  %v15460_v56 = vpop.f32.mrb[61].mxu0 }
 0x5f7   : > { %v15517_v57 = vpop.f32.mrb[66].mxu1  ;;  %v2663_v58 = vpop.f32.mrb[62].mxu0  ;;  %v17336_v56 = vld [vmem:[%s22717_s7 + $0x88] sm:$0xff]  }
 0x5f8   : > { %v2917_v59 = vpack.c.bf16 %v15517_v57, %v15516_v53  ;;  %v2889_v60 = vpop.f32.mrb[67].mxu1  ;;  %v15461_v61 = vpop.f32.mrb[63].mxu0 }
 0x5f9   : > { %v2916_v62 = vpack.c.bf16 %v2889_v60, %v2886_v55  ;;  %v17337_v61 = vld [vmem:[%s22717_s7 + $0x90] sm:$0xff]  }
 0x5fb   : > { %15523 = vmatpush3.bf16.msra.mxu1 %v2916_v62 }
 0x5fc   : > { %15524 = vmatprep.subr.bf16.mxu1 %v17868_v23 }
 0x5fd   : > { %v15520_v50 = vpop.f32.mrb[68].mxu1  ;;  %v2781_v63 = vpop.f32.mrb[64].mxu0 }
 0x5fe   : > { %v2902_v2 = vpop.f32.mrb[69].mxu1  ;;  %v18414_v3 = vadd.f32 %v2781_v63, %v2636_v27  ;;  %v15484_v4 = vpop.f32.mrb[65].mxu0  ;;  %v2919_v10 = vpack.c.bf16 %v15520_v50, %v15520_v50  ;;  %v17333_v27 = vld [vmem:[%s22717_s7 + $0x70] sm:$0xff]  }
 0x5ff   : > { %v15521_v5 = vpop.f32.mrb[70].mxu1  ;;  %15525 = vmatpush3.bf16.msra.mxu1 %v2917_v59  ;;  %v2784_v6 = vpop.f32.mrb[66].mxu0 }
 0x600   : > { %v2905_v7 = vpop.f32.mrb[71].mxu1  ;;  %15526 = vmatprep.subr.bf16.mxu1 %v17868_v23  ;;  %v18417_v8 = vadd.f32 %v2784_v6, %v2639_v31  ;;  %v15485_v9 = vpop.f32.mrb[67].mxu0  ;;  %v2989_v13 = vand.u32 %v2919_v10, %v18277_v1 }
 0x601   : > { %v2918_v11 = vpack.c.bf16 %v2905_v7, %v2902_v2  ;;  %v17338_v2 = vld [vmem:[%s22717_s7 + $0x98] ss:$0 sps:$4 sm:$0x11]  }
 0x603   : > { %15527 = vmatpush3.bf16.msra.mxu1 %v2918_v11 }
 0x604   : > { %15528 = vmatprep.subr.bf16.mxu1 %v17868_v23 }
 0x605   : > { %v2789_v14 = vpop.f32.mrb[68].mxu0 }
 0x606   : > { %v18427_v16 = vadd.f32 %v2789_v14, %v2644_v35  ;;  %v15488_v17 = vpop.f32.mrb[69].mxu0  ;;  %v17348_v14 = vld [vmem:[%s22718_s8 + $0x50] sm:$0xff]  }
 0x607   : > { %15529 = vmatpush3.bf16.msra.mxu1 %v2989_v13  ;;  %v2792_v18 = vpop.f32.mrb[70].mxu0  ;;  %v17341_v17 = vld [vmem:[%s22717_s7 + $0x9c] sm:$0xff]  }
 0x608   : > { %v18429_v19 = vadd.f32 %v2792_v18, %v2647_v41  ;;  %v15489_v20 = vpop.f32.mrb[71].mxu0  ;;  %15606 = vmatprep.subr.bf16.mxu1 %v17339_v12  ;;  %v17334_v41 = vld [vmem:[%s22717_s7 + $0x78] sm:$0xff]  }
 0x609   : > { %v17349_v18 = vld [vmem:[%s22718_s8 + $0x58] sm:$0xff]   ;;  %v17342_v20 = vld [vmem:[%s22717_s7 + $0xa4] sm:$0xff]  }
 0x60a   : > { %15531 = vmatmul.mubr.msk.bf16.vlgmr.msra.gmra.mrb[72].mxu1 %vm2574_vm9, %v17332_v15 }
 0x60b   : > { %15534 = vmatprep.mubr.msk.bf16.mxu1 %vm17869_vm7, %v17868_v23  ;;  %15607 = vmatpush3.bf16.msra.mxu1 %v17339_v12 }
 0x60c   : > { %15608 = vmatprep.subr.bf16.mxu1 %v17340_v21 }
 0x60d   : > { %v2797_v25 = vpop.f32.mrb[72].mxu0 }
 0x60e   : > { %v18440_v28 = vadd.f32 %v2797_v25, %v2652_v45  ;;  %v15492_v29 = vpop.f32.mrb[73].mxu0  ;;  %v17344_v25 = vld [vmem:[%s22717_s7 + $0xb4] sm:$0xff]  }
 0x60f   : > { %v2800_v31 = vpop.f32.mrb[74].mxu0  ;;  %15609 = vmatpush3.bf16.msra.mxu1 %v17340_v21  ;;  %v17343_v21 = vld [vmem:[%s22717_s7 + $0xac] sm:$0xff]   ;;  %v17346_v29 = vld [vmem:[%s22717_s7 + $0xc4] sm:$0xff]  }
 0x610   : > { %v18442_v32 = vadd.f32 %v2800_v31, %v2655_v49  ;;  %v15493_v33 = vpop.f32.mrb[75].mxu0  ;;  %15618 = vmatprep.subr.bf16.mxu1 %v17868_v23  ;;  %v17335_v49 = vld [vmem:[%s22717_s7 + $0x80] sm:$0xff]   ;;  %v17347_v31 = vld [vmem:[%s22717_s7 + $0xcc] ss:$0 sps:$4 sm:$0x11]  }
 0x612   : > { %15535 = vmatmul.mubr.msk.bf16.gmra.mrb[76].mxu1 %vm2574_vm9, %v17333_v27  ;;  %v17345_v27 = vld [vmem:[%s22717_s7 + $0xbc] sm:$0xff]  }
 0x613   : > { %15538 = vmatprep.mubr.msk.bf16.mxu1 %vm17869_vm7, %v17868_v23 }
 0x615   : > { %v2805_v35 = vpop.f32.mrb[76].mxu0 }
 0x616   : > { %v18448_v36 = vadd.f32 %v2805_v35, %v2660_v54  ;;  %v15496_v37 = vpop.f32.mrb[77].mxu0 }
 0x617   : > { %v2808_v42 = vpop.f32.mrb[78].mxu0 }
 0x618   : > { %v18453_v43 = vadd.f32 %v2808_v42, %v2663_v58  ;;  %v15497_v45 = vpop.f32.mrb[79].mxu0 }
 0x61a   : > { %15539 = vmatmul.mubr.msk.bf16.gmra.mrb[80].mxu1 %vm2574_vm9, %v17334_v41 }
 0x61b   : > { %15542 = vmatprep.mubr.msk.bf16.mxu1 %vm17869_vm7, %v17868_v23 }
 0x61d   : > { %v2813_v46 = vpop.f32.mrb[80].mxu0 }
 0x61e   : > { %v18459_v47 = vadd.f32 %v2813_v46, %v18403_v26  ;;  %v15500_v48 = vpop.f32.mrb[81].mxu0 }
 0x61f   : > { %v2816_v51 = vpop.f32.mrb[82].mxu0 }
 0x620   : > { %v18465_v52 = vadd.f32 %v2816_v51, %v18405_v30  ;;  %v15501_v53 = vpop.f32.mrb[83].mxu0 }
 0x622   : > { %15543 = vmatmul.mubr.msk.bf16.gmra.mrb[84].mxu1 %vm2574_vm9, %v17335_v49 }
 0x623   : > { %15546 = vmatprep.mubr.msk.bf16.mxu1 %vm17869_vm7, %v17868_v23 }
 0x625   : > { %v2821_v54 = vpop.f32.mrb[84].mxu0 }
 0x626   : > { %v18471_v55 = vadd.f32 %v2821_v54, %v18407_v34  ;;  %v15504_v26 = vpop.f32.mrb[85].mxu0 }
 0x627   : > { %v2824_v57 = vpop.f32.mrb[86].mxu0 }
 0x628   : > { %v18477_v58 = vadd.f32 %v2824_v57, %v18409_v38  ;;  %v15505_v30 = vpop.f32.mrb[87].mxu0 }
 0x62a   : > { %15547 = vmatmul.mubr.msk.bf16.gmra.mrb[88].mxu1 %vm2574_vm9, %v17336_v56 }
 0x62b   : > { %15550 = vmatprep.mubr.msk.bf16.mxu1 %vm17869_vm7, %v17868_v23 }
 0x62d   : > { %v2829_v59 = vpop.f32.mrb[88].mxu0 }
 0x62e   : > { %v18483_v60 = vadd.f32 %v2829_v59, %v18411_v44  ;;  %v15508_v34 = vpop.f32.mrb[89].mxu0 }
 0x62f   : > { %v2832_v62 = vpop.f32.mrb[90].mxu0 }
 0x630   : > { %v15509_v50 = vpop.f32.mrb[91].mxu0 }
 0x632   : > { %15551 = vmatmul.mubr.msk.bf16.gmra.mrb[92].mxu1 %vm2574_vm9, %v17337_v61 }
 0x633   : > { %15554 = vmatprep.mubr.msk.bf16.mxu1 %vm17869_vm7, %v17868_v23 }
 0x635   : > { %v15564_v38 = vpop.f32.mrb[92].mxu0 }
 0x636   : > { %v3143_v63 = vpop.f32.mrb[93].mxu0 }
 0x637   : > { %v15565_v44 = vpop.f32.mrb[94].mxu0 }
 0x638   : > { %v3174_v4 = vpack.c.bf16 %v15565_v44, %v15564_v38  ;;  %v3146_v5 = vpop.f32.mrb[95].mxu0 }
 0x639   : > { %v3173_v6 = vpack.c.bf16 %v3146_v5, %v3143_v63 }
 0x63a   : > { %15555 = vmatmul.mubr.msk.bf16.gmra.mrb[96].mxu1 %vm2574_vm9, %v17338_v2 }
 0x63b   : > { %15571 = vmatpush3.bf16.msra.mxu0 %v3173_v6  ;;  %15610 = vmatprep.mubr.msk.bf16.mxu1 %vm557_vm0, %v18237_v24 }
 0x63c   : > { %15572 = vmatprep.subr.bf16.mxu0 %v17868_v23 }
 0x63d   : > { %v15568_v7 = vpop.f32.mrb[96].mxu0 }
 0x63e   : > { %v3159_v9 = vpop.f32.mrb[97].mxu0  ;;  %v3176_v12 = vpack.c.bf16 %v15568_v7, %v15568_v7 }
 0x63f   : > { %v15569_v10 = vpop.f32.mrb[98].mxu0  ;;  %15573 = vmatpush3.bf16.msra.mxu0 %v3174_v4 }
 0x640   : > { %v3162_v11 = vpop.f32.mrb[99].mxu0  ;;  %15574 = vmatprep.subr.bf16.mxu0 %v17868_v23  ;;  %v3246_v15 = vand.u32 %v3176_v12, %v18277_v1 }
 0x641   : > { %v3175_v13 = vpack.c.bf16 %v3162_v11, %v3159_v9 }
 0x642   : > { %15611 = vmatmul.mubr.msk.bf16.vlgmr.msra.gmra.mrb[100].mxu1 %vm557_vm0, %v18235_v22 }
 0x643   : > { %15575 = vmatpush3.bf16.msra.mxu0 %v3175_v13  ;;  %15614 = vmatprep.mubr.msk.bf16.mxu1 %vm557_vm0, %v18247_v39 }
 0x644   : > { %15576 = vmatprep.subr.bf16.mxu0 %v17868_v23 }
 0x647   : > { %15577 = vmatpush3.bf16.msra.mxu0 %v3246_v15 }
 0x648   : > { %15654 = vmatprep.subr.bf16.mxu0 %v17348_v14 }
 0x64a   : > { %15579 = vmatmul.mubr.msk.bf16.vlgmr.msra.gmra.mrb[100].mxu0 %vm2574_vm9, %v17341_v17  ;;  %15615 = vmatmul.mubr.msk.bf16.gmra.mrb[104].mxu1 %vm557_vm0, %v18249_v40 }
 0x64b   : > { %15582 = vmatprep.mubr.msk.bf16.mxu0 %vm17869_vm7, %v17868_v23  ;;  %15655 = vmatpush3.bf16.msra.mxu0 %v17348_v14 }
 0x64c   : > { %15656 = vmatprep.subr.bf16.mxu0 %v17349_v18  ;;  %15626 = vmatprep.mubr.msk.bf16.mxu1 %vm17869_vm7, %v17868_v23 }
 0x64f   : > { %15657 = vmatpush3.bf16.msra.mxu0 %v17349_v18 }
 0x650   : > { %15666 = vmatprep.subr.bf16.mxu0 %v17868_v23 }
 0x652   : > { %15583 = vmatmul.mubr.msk.bf16.gmra.mrb[104].mxu0 %vm2574_vm9, %v17342_v20 }
 0x653   : > { %15586 = vmatprep.mubr.msk.bf16.mxu0 %vm17869_vm7, %v17868_v23 }
 0x65a   : > { %15587 = vmatmul.mubr.msk.bf16.gmra.mrb[108].mxu0 %vm2574_vm9, %v17343_v21 }
 0x65b   : > { %15590 = vmatprep.mubr.msk.bf16.mxu0 %vm17869_vm7, %v17868_v23 }
 0x662   : > { %15591 = vmatmul.mubr.msk.bf16.gmra.mrb[112].mxu0 %vm2574_vm9, %v17344_v25 }
 0x663   : > { %15594 = vmatprep.mubr.msk.bf16.mxu0 %vm17869_vm7, %v17868_v23 }
 0x66a   : > { %15595 = vmatmul.mubr.msk.bf16.gmra.mrb[116].mxu0 %vm2574_vm9, %v17345_v27 }
 0x66b   : > { %15598 = vmatprep.mubr.msk.bf16.mxu0 %vm17869_vm7, %v17868_v23 }
 0x672   : > { %15599 = vmatmul.mubr.msk.bf16.gmra.mrb[120].mxu0 %vm2574_vm9, %v17346_v29 }
 0x673   : > { %15602 = vmatprep.mubr.msk.bf16.mxu0 %vm17869_vm7, %v17868_v23 }
 0x67a   : > { %15603 = vmatmul.mubr.msk.bf16.gmra.mrb[124].mxu0 %vm2574_vm9, %v17347_v31 }
 0x67b   : > { %15658 = vmatprep.mubr.msk.bf16.mxu0 %vm557_vm0, %v18237_v24 }
 0x682   : > { %15659 = vmatmul.mubr.msk.bf16.vlgmr.msra.gmra.mrb[128].mxu0 %vm557_vm0, %v18235_v22 }
 0x683   : > { %15662 = vmatprep.mubr.msk.bf16.mxu0 %vm557_vm0, %v18247_v39 }
 0x68a   : > { %15663 = vmatmul.mubr.msk.bf16.gmra.mrb[132].mxu0 %vm557_vm0, %v18249_v40 }
 0x68b   : > { %15674 = vmatprep.mubr.msk.bf16.mxu0 %vm17869_vm7, %v17868_v23 }
 0x6dd   : > { %v3025_v33 = vpop.f32.mrb[72].mxu1 }
 0x6de   : > { %v3079_v35 = vadd.f32 %v3025_v33, %v18414_v3  ;;  %v15532_v37 = vpop.f32.mrb[73].mxu1 }
 0x6df   : > { %v3028_v41 = vpop.f32.mrb[74].mxu1 }
 0x6e0   : > { %v3080_v42 = vadd.f32 %v3028_v41, %v18417_v8  ;;  %v15533_v45 = vpop.f32.mrb[75].mxu1 }
 0x6e5   : > { %v3033_v46 = vpop.f32.mrb[76].mxu1 }
 0x6e6   : > { %v3081_v48 = vadd.f32 %v3033_v46, %v18427_v16  ;;  %v15536_v49 = vpop.f32.mrb[77].mxu1 }
 0x6e7   : > { %v3036_v51 = vpop.f32.mrb[78].mxu1  ;;  %v17350_v49 = vld [vmem:[%s22717_s7 + $0xd0] sm:$0xff]  }
 0x6e8   : > { %v18570_v53 = vadd.f32 %v3036_v51, %v18429_v19  ;;  %v15537_v54 = vpop.f32.mrb[79].mxu1 }
 0x6ed   : > { %v3041_v26 = vpop.f32.mrb[80].mxu1 }
 0x6ee   : > { %v18573_v56 = vadd.f32 %v3041_v26, %v18440_v28  ;;  %v15540_v57 = vpop.f32.mrb[81].mxu1 }
 0x6ef   : > { %v3044_v3 = vpop.f32.mrb[82].mxu1  ;;  %v17358_v57 = vld [vmem:[%s22718_s8 + $0x68] sm:$0xff]  }
 0x6f0   : > { %v18576_v30 = vadd.f32 %v3044_v3, %v18442_v32  ;;  %v15541_v8 = vpop.f32.mrb[83].mxu1 }
 0x6f5   : > { %v3049_v59 = vpop.f32.mrb[84].mxu1 }
 0x6f6   : > { %v18579_v34 = vadd.f32 %v3049_v59, %v18448_v36  ;;  %v15544_v16 = vpop.f32.mrb[85].mxu1 }
 0x6f7   : > { %v3052_v61 = vpop.f32.mrb[86].mxu1 }
 0x6f8   : > { %v18582_v19 = vadd.f32 %v3052_v61, %v18453_v43  ;;  %v15545_v62 = vpop.f32.mrb[87].mxu1 }
 0x6fd   : > { %v3057_v50 = vpop.f32.mrb[88].mxu1 }
 0x6fe   : > { %v18585_v28 = vadd.f32 %v3057_v50, %v18459_v47  ;;  %v15548_v38 = vpop.f32.mrb[89].mxu1 }
 0x6ff   : > { %v3060_v63 = vpop.f32.mrb[90].mxu1  ;;  %v17352_v38 = vld [vmem:[%s22717_s7 + $0xe0] sm:$0xff]  }
 0x700   : > { %v18588_v32 = vadd.f32 %v3060_v63, %v18465_v52  ;;  %v15549_v2 = vpop.f32.mrb[91].mxu1 }
 0x705   : > { %v3065_v44 = vpop.f32.mrb[92].mxu1 }
 0x706   : > { %v18591_v36 = vadd.f32 %v3065_v44, %v18471_v55  ;;  %v15552_v4 = vpop.f32.mrb[93].mxu1 }
 0x707   : > { %v3068_v5 = vpop.f32.mrb[94].mxu1 }
 0x708   : > { %v18594_v43 = vadd.f32 %v3068_v5, %v18477_v58  ;;  %v15553_v6 = vpop.f32.mrb[95].mxu1  ;;  %v17353_v5 = vld [vmem:[%s22717_s7 + $0xe8] sm:$0xff]  }
 0x70d   : > { %v3073_v7 = vpop.f32.mrb[96].mxu1 }
 0x70e   : > { %v18597_v47 = vadd.f32 %v3073_v7, %v18483_v60  ;;  %v15556_v9 = vpop.f32.mrb[97].mxu1 }
 0x70f   : > { %v3076_v10 = vpop.f32.mrb[98].mxu1 }
 0x710   : > { %v15557_v11 = vpop.f32.mrb[99].mxu1 }
 0x711   : > { %v17354_v11 = vld [vmem:[%s22717_s7 + $0xf0] sm:$0xff]  }
 0x715   : > { %v15612_v52 = vpop.f32.mrb[100].mxu1 }
 0x716   : > { %v3400_v12 = vpop.f32.mrb[101].mxu1 }
 0x717   : > { %v15613_v13 = vpop.f32.mrb[102].mxu1 }
 0x718   : > { %v3431_v14 = vpack.c.bf16 %v15613_v13, %v15612_v52  ;;  %v3403_v15 = vpop.f32.mrb[103].mxu1 }
 0x719   : > { %v3430_v55 = vpack.c.bf16 %v3403_v15, %v3400_v12  ;;  %v17355_v15 = vld [vmem:[%s22717_s7 + $0xf8] sm:$0xff]  }
 0x71b   : > { %15619 = vmatpush3.bf16.msra.mxu1 %v3430_v55 }
 0x71c   : > { %15620 = vmatprep.subr.bf16.mxu1 %v17868_v23 }
 0x71d   : > { %v3282_v17 = vpop.f32.mrb[100].mxu0  ;;  %v15616_v58 = vpop.f32.mrb[104].mxu1 }
 0x71e   : > { %v18600_v18 = vadd.f32 %v3282_v17, %v3079_v35  ;;  %v15580_v20 = vpop.f32.mrb[101].mxu0  ;;  %v3416_v21 = vpop.f32.mrb[105].mxu1  ;;  %v3433_v33 = vpack.c.bf16 %v15616_v58, %v15616_v58  ;;  %v17357_v35 = vld [vmem:[%s22718_s8 + $0x60] sm:$0xff]  }
 0x71f   : > { %v3285_v60 = vpop.f32.mrb[102].mxu0  ;;  %v15617_v25 = vpop.f32.mrb[106].mxu1  ;;  %15621 = vmatpush3.bf16.msra.mxu1 %v3431_v14  ;;  %v17356_v20 = vld [vmem:[%s22717_s7 + $0x100] ss:$0 sps:$4 sm:$0x11]  }
 0x720   : > { %v18602_v27 = vadd.f32 %v3285_v60, %v3080_v42  ;;  %v3419_v29 = vpop.f32.mrb[107].mxu1  ;;  %15622 = vmatprep.subr.bf16.mxu1 %v17868_v23  ;;  %v15581_v31 = vpop.f32.mrb[103].mxu0  ;;  %v3503_v41 = vand.u32 %v3433_v33, %v18277_v1 }
 0x721   : > { %v3432_v37 = vpack.c.bf16 %v3419_v29, %v3416_v21 }
 0x723   : > { %15623 = vmatpush3.bf16.msra.mxu1 %v3432_v37 }
 0x724   : > { %15624 = vmatprep.subr.bf16.mxu1 %v17868_v23 }
 0x725   : > { %v3290_v45 = vpop.f32.mrb[104].mxu0 }
 0x726   : > { %v18610_v46 = vadd.f32 %v3290_v45, %v3081_v48  ;;  %v15584_v42 = vpop.f32.mrb[105].mxu0  ;;  %v17366_v45 = vld [vmem:[%s22718_s8 + $0x70] sm:$0xff]  }
 0x727   : > { %v3293_v51 = vpop.f32.mrb[106].mxu0  ;;  %15625 = vmatpush3.bf16.msra.mxu1 %v3503_v41 }
 0x728   : > { %v18616_v54 = vadd.f32 %v3293_v51, %v18570_v53  ;;  %v15585_v26 = vpop.f32.mrb[107].mxu0  ;;  %15702 = vmatprep.subr.bf16.mxu1 %v17357_v35  ;;  %v17351_v53 = vld [vmem:[%s22717_s7 + $0xd8] sm:$0xff]  }
 0x729   : > { %v17367_v51 = vld [vmem:[%s22718_s8 + $0x78] sm:$0xff]   ;;  %v17360_v26 = vld [vmem:[%s22717_s7 + $0x10c] sm:$0xff]  }
 0x72a   : > { %15627 = vmatmul.mubr.msk.bf16.vlgmr.msra.gmra.mrb[108].mxu1 %vm2574_vm9, %v17350_v49  ;;  %v17359_v49 = vld [vmem:[%s22717_s7 + $0x104] sm:$0xff]  }
 0x72b   : > { %15630 = vmatprep.mubr.msk.bf16.mxu1 %vm17869_vm7, %v17868_v23  ;;  %15703 = vmatpush3.bf16.msra.mxu1 %v17357_v35 }
 0x72c   : > { %15704 = vmatprep.subr.bf16.mxu1 %v17358_v57 }
 0x72d   : > { %v3298_v48 = vpop.f32.mrb[108].mxu0 }
 0x72e   : > { %v18625_v3 = vadd.f32 %v3298_v48, %v18573_v56  ;;  %v15588_v8 = vpop.f32.mrb[109].mxu0  ;;  %v17362_v48 = vld [vmem:[%s22717_s7 + $0x11c] sm:$0xff]  }
 0x72f   : > { %v3301_v59 = vpop.f32.mrb[110].mxu0  ;;  %15705 = vmatpush3.bf16.msra.mxu1 %v17358_v57  ;;  %v17361_v57 = vld [vmem:[%s22717_s7 + $0x114] sm:$0xff]   ;;  %v17363_v8 = vld [vmem:[%s22717_s7 + $0x124] sm:$0xff]  }
 0x730   : > { %v18631_v16 = vadd.f32 %v3301_v59, %v18576_v30  ;;  %v15589_v61 = vpop.f32.mrb[111].mxu0  ;;  %15714 = vmatprep.subr.bf16.mxu1 %v17868_v23  ;;  %v17365_v59 = vld [vmem:[%s22717_s7 + $0x134] ss:$0 sps:$4 sm:$0x11]  }
 0x732   : > { %15631 = vmatmul.mubr.msk.bf16.gmra.mrb[112].mxu1 %vm2574_vm9, %v17351_v53  ;;  %v17364_v53 = vld [vmem:[%s22717_s7 + $0x12c] sm:$0xff]  }
 0x733   : > { %15634 = vmatprep.mubr.msk.bf16.mxu1 %vm17869_vm7, %v17868_v23 }
 0x735   : > { %v3306_v56 = vpop.f32.mrb[112].mxu0 }
 0x736   : > { %v18638_v62 = vadd.f32 %v3306_v56, %v18579_v34  ;;  %v15592_v50 = vpop.f32.mrb[113].mxu0 }
 0x737   : > { %v3309_v63 = vpop.f32.mrb[114].mxu0 }
 0x738   : > { %v18644_v30 = vadd.f32 %v3309_v63, %v18582_v19  ;;  %v15593_v2 = vpop.f32.mrb[115].mxu0 }
 0x73a   : > { %15635 = vmatmul.mubr.msk.bf16.gmra.mrb[116].mxu1 %vm2574_vm9, %v17352_v38 }
 0x73b   : > { %15638 = vmatprep.mubr.msk.bf16.mxu1 %vm17869_vm7, %v17868_v23 }
 0x73d   : > { %v3314_v44 = vpop.f32.mrb[116].mxu0 }
 0x73e   : > { %v18650_v4 = vadd.f32 %v3314_v44, %v18585_v28  ;;  %v15596_v34 = vpop.f32.mrb[117].mxu0 }
 0x73f   : > { %v3317_v6 = vpop.f32.mrb[118].mxu0 }
 0x740   : > { %v18656_v7 = vadd.f32 %v3317_v6, %v18588_v32  ;;  %v15597_v19 = vpop.f32.mrb[119].mxu0 }
 0x742   : > { %15639 = vmatmul.mubr.msk.bf16.gmra.mrb[120].mxu1 %vm2574_vm9, %v17353_v5 }
 0x743   : > { %15642 = vmatprep.mubr.msk.bf16.mxu1 %vm17869_vm7, %v17868_v23 }
 0x745   : > { %v3322_v9 = vpop.f32.mrb[120].mxu0 }
 0x746   : > { %v18662_v10 = vadd.f32 %v3322_v9, %v18591_v36  ;;  %v15600_v28 = vpop.f32.mrb[121].mxu0 }
 0x747   : > { %v3325_v52 = vpop.f32.mrb[122].mxu0 }
 0x748   : > { %v18668_v12 = vadd.f32 %v3325_v52, %v18594_v43  ;;  %v15601_v32 = vpop.f32.mrb[123].mxu0 }
 0x74a   : > { %15643 = vmatmul.mubr.msk.bf16.gmra.mrb[124].mxu1 %vm2574_vm9, %v17354_v11 }
 0x74b   : > { %15646 = vmatprep.mubr.msk.bf16.mxu1 %vm17869_vm7, %v17868_v23 }
 0x74d   : > { %v3330_v13 = vpop.f32.mrb[124].mxu0 }
 0x74e   : > { %v18674_v14 = vadd.f32 %v3330_v13, %v18597_v47  ;;  %v15604_v36 = vpop.f32.mrb[125].mxu0 }
 0x74f   : > { %v3333_v55 = vpop.f32.mrb[126].mxu0 }
 0x750   : > { %v15605_v17 = vpop.f32.mrb[127].mxu0 }
 0x752   : > { %15647 = vmatmul.mubr.msk.bf16.gmra.mrb[128].mxu1 %vm2574_vm9, %v17355_v15 }
 0x753   : > { %15650 = vmatprep.mubr.msk.bf16.mxu1 %vm17869_vm7, %v17868_v23 }
 0x755   : > { %v15660_v43 = vpop.f32.mrb[128].mxu0 }
 0x756   : > { %v3657_v58 = vpop.f32.mrb[129].mxu0 }
 0x757   : > { %v15661_v47 = vpop.f32.mrb[130].mxu0 }
 0x758   : > { %v3688_v21 = vpack.c.bf16 %v15661_v47, %v15660_v43  ;;  %v3660_v60 = vpop.f32.mrb[131].mxu0 }
 0x759   : > { %v3687_v25 = vpack.c.bf16 %v3660_v60, %v3657_v58 }
 0x75a   : > { %15651 = vmatmul.mubr.msk.bf16.gmra.mrb[132].mxu1 %vm2574_vm9, %v17356_v20 }
 0x75b   : > { %15667 = vmatpush3.bf16.msra.mxu0 %v3687_v25  ;;  %15706 = vmatprep.mubr.msk.bf16.mxu1 %vm557_vm0, %v18237_v24 }
 0x75c   : > { %15668 = vmatprep.subr.bf16.mxu0 %v17868_v23 }
 0x75d   : > { %v15664_v29 = vpop.f32.mrb[132].mxu0 }
 0x75e   : > { %v3673_v31 = vpop.f32.mrb[133].mxu0  ;;  %v3690_v35 = vpack.c.bf16 %v15664_v29, %v15664_v29 }
 0x75f   : > { %v15665_v33 = vpop.f32.mrb[134].mxu0  ;;  %15669 = vmatpush3.bf16.msra.mxu0 %v3688_v21 }
 0x760   : > { %v3676_v37 = vpop.f32.mrb[135].mxu0  ;;  %15670 = vmatprep.subr.bf16.mxu0 %v17868_v23  ;;  %v3760_v42 = vand.u32 %v3690_v35, %v18277_v1 }
 0x761   : > { %v3689_v41 = vpack.c.bf16 %v3676_v37, %v3673_v31 }
 0x762   : > { %15707 = vmatmul.mubr.msk.bf16.vlgmr.msra.gmra.mrb[136].mxu1 %vm557_vm0, %v18235_v22 }
 0x763   : > { %15671 = vmatpush3.bf16.msra.mxu0 %v3689_v41  ;;  %15710 = vmatprep.mubr.msk.bf16.mxu1 %vm557_vm0, %v18247_v39 }
 0x764   : > { %15672 = vmatprep.subr.bf16.mxu0 %v17868_v23 }
 0x767   : > { %15673 = vmatpush3.bf16.msra.mxu0 %v3760_v42 }
 0x768   : > { %15750 = vmatprep.subr.bf16.mxu0 %v17366_v45 }
 0x76a   : > { %15675 = vmatmul.mubr.msk.bf16.vlgmr.msra.gmra.mrb[136].mxu0 %vm2574_vm9, %v17359_v49  ;;  %15711 = vmatmul.mubr.msk.bf16.gmra.mrb[140].mxu1 %vm557_vm0, %v18249_v40 }
 0x76b   : > { %15678 = vmatprep.mubr.msk.bf16.mxu0 %vm17869_vm7, %v17868_v23  ;;  %15751 = vmatpush3.bf16.msra.mxu0 %v17366_v45 }
 0x76c   : > { %15752 = vmatprep.subr.bf16.mxu0 %v17367_v51  ;;  %15722 = vmatprep.mubr.msk.bf16.mxu1 %vm17869_vm7, %v17868_v23 }
 0x76f   : > { %15753 = vmatpush3.bf16.msra.mxu0 %v17367_v51 }
 0x770   : > { %15762 = vmatprep.subr.bf16.mxu0 %v17868_v23 }
 0x772   : > { %15679 = vmatmul.mubr.msk.bf16.gmra.mrb[140].mxu0 %vm2574_vm9, %v17360_v26 }
 0x773   : > { %15682 = vmatprep.mubr.msk.bf16.mxu0 %vm17869_vm7, %v17868_v23 }
 0x77a   : > { %15683 = vmatmul.mubr.msk.bf16.gmra.mrb[144].mxu0 %vm2574_vm9, %v17361_v57 }
 0x77b   : > { %15686 = vmatprep.mubr.msk.bf16.mxu0 %vm17869_vm7, %v17868_v23 }
 0x782   : > { %15687 = vmatmul.mubr.msk.bf16.gmra.mrb[148].mxu0 %vm2574_vm9, %v17362_v48 }
 0x783   : > { %15690 = vmatprep.mubr.msk.bf16.mxu0 %vm17869_vm7, %v17868_v23 }
 0x78a   : > { %15691 = vmatmul.mubr.msk.bf16.gmra.mrb[152].mxu0 %vm2574_vm9, %v17363_v8 }
 0x78b   : > { %15694 = vmatprep.mubr.msk.bf16.mxu0 %vm17869_vm7, %v17868_v23 }
 0x792   : > { %15695 = vmatmul.mubr.msk.bf16.gmra.mrb[156].mxu0 %vm2574_vm9, %v17364_v53 }
 0x793   : > { %15698 = vmatprep.mubr.msk.bf16.mxu0 %vm17869_vm7, %v17868_v23 }
 0x79a   : > { %15699 = vmatmul.mubr.msk.bf16.gmra.mrb[160].mxu0 %vm2574_vm9, %v17365_v59 }
 0x79b   : > { %15754 = vmatprep.mubr.msk.bf16.mxu0 %vm557_vm0, %v18237_v24 }
 0x7a2   : > { %15755 = vmatmul.mubr.msk.bf16.vlgmr.msra.gmra.mrb[164].mxu0 %vm557_vm0, %v18235_v22 }
 0x7a3   : > { %15758 = vmatprep.mubr.msk.bf16.mxu0 %vm557_vm0, %v18247_v39 }
 0x7aa   : > { %15759 = vmatmul.mubr.msk.bf16.gmra.mrb[168].mxu0 %vm557_vm0, %v18249_v40 }
 0x7ab   : > { %15770 = vmatprep.mubr.msk.bf16.mxu0 %vm17869_vm7, %v17868_v23 }
 0x7fd   : > { %v3539_v61 = vpop.f32.mrb[108].mxu1 }
 0x7fe   : > { %v3593_v56 = vadd.f32 %v3539_v61, %v18600_v18  ;;  %v15628_v50 = vpop.f32.mrb[109].mxu1 }
 0x7ff   : > { %v3542_v38 = vpop.f32.mrb[110].mxu1 }
 0x800   : > { %v3594_v63 = vadd.f32 %v3542_v38, %v18602_v27  ;;  %v15629_v2 = vpop.f32.mrb[111].mxu1 }
 0x805   : > { %v3547_v44 = vpop.f32.mrb[112].mxu1 }
 0x806   : > { %v3595_v34 = vadd.f32 %v3547_v44, %v18610_v46  ;;  %v15632_v5 = vpop.f32.mrb[113].mxu1 }
 0x807   : > { %v3550_v6 = vpop.f32.mrb[114].mxu1  ;;  %v17368_v5 = vld [vmem:[%s22717_s7 + $0x138] sm:$0xff]  }
 0x808   : > { %v18761_v19 = vadd.f32 %v3550_v6, %v18616_v54  ;;  %v15633_v9 = vpop.f32.mrb[115].mxu1 }
 0x80d   : > { %v3555_v28 = vpop.f32.mrb[116].mxu1 }
 0x80e   : > { %v18764_v11 = vadd.f32 %v3555_v28, %v18625_v3  ;;  %v15636_v52 = vpop.f32.mrb[117].mxu1 }
 0x80f   : > { %v3558_v18 = vpop.f32.mrb[118].mxu1  ;;  %v17376_v52 = vld [vmem:[%s22718_s8 + $0x88] sm:$0xff]  }
 0x810   : > { %v18767_v32 = vadd.f32 %v3558_v18, %v18631_v16  ;;  %v15637_v27 = vpop.f32.mrb[119].mxu1 }
 0x815   : > { %v3563_v13 = vpop.f32.mrb[120].mxu1 }
 0x816   : > { %v18770_v36 = vadd.f32 %v3563_v13, %v18638_v62  ;;  %v15640_v46 = vpop.f32.mrb[121].mxu1 }
 0x817   : > { %v3566_v15 = vpop.f32.mrb[122].mxu1 }
 0x818   : > { %v18773_v54 = vadd.f32 %v3566_v15, %v18644_v30  ;;  %v15641_v55 = vpop.f32.mrb[123].mxu1 }
 0x81d   : > { %v3571_v17 = vpop.f32.mrb[124].mxu1 }
 0x81e   : > { %v18776_v3 = vadd.f32 %v3571_v17, %v18650_v4  ;;  %v15644_v43 = vpop.f32.mrb[125].mxu1 }
 0x81f   : > { %v3574_v58 = vpop.f32.mrb[126].mxu1  ;;  %v17370_v43 = vld [vmem:[%s22717_s7 + $0x148] sm:$0xff]  }
 0x820   : > { %v18779_v16 = vadd.f32 %v3574_v58, %v18656_v7  ;;  %v15645_v20 = vpop.f32.mrb[127].mxu1 }
 0x825   : > { %v3579_v47 = vpop.f32.mrb[128].mxu1 }
 0x826   : > { %v18782_v62 = vadd.f32 %v3579_v47, %v18662_v10  ;;  %v15648_v21 = vpop.f32.mrb[129].mxu1 }
 0x827   : > { %v3582_v60 = vpop.f32.mrb[130].mxu1 }
 0x828   : > { %v18785_v30 = vadd.f32 %v3582_v60, %v18668_v12  ;;  %v15649_v25 = vpop.f32.mrb[131].mxu1  ;;  %v17371_v60 = vld [vmem:[%s22717_s7 + $0x150] sm:$0xff]  }
 0x82d   : > { %v3587_v29 = vpop.f32.mrb[132].mxu1 }
 0x82e   : > { %v18788_v4 = vadd.f32 %v3587_v29, %v18674_v14  ;;  %v15652_v31 = vpop.f32.mrb[133].mxu1 }
 0x82f   : > { %v3590_v33 = vpop.f32.mrb[134].mxu1 }
 0x830   : > { %v15653_v37 = vpop.f32.mrb[135].mxu1 }
 0x831   : > { %v17372_v37 = vld [vmem:[%s22717_s7 + $0x158] sm:$0xff]  }
 0x835   : > { %v15708_v7 = vpop.f32.mrb[136].mxu1 }
 0x836   : > { %v3914_v35 = vpop.f32.mrb[137].mxu1 }
 0x837   : > { %v15709_v41 = vpop.f32.mrb[138].mxu1 }
 0x838   : > { %v3945_v45 = vpack.c.bf16 %v15709_v41, %v15708_v7  ;;  %v3917_v42 = vpop.f32.mrb[139].mxu1 }
 0x839   : > { %v3944_v10 = vpack.c.bf16 %v3917_v42, %v3914_v35  ;;  %v17373_v42 = vld [vmem:[%s22717_s7 + $0x160] sm:$0xff]  }
 0x83b   : > { %15715 = vmatpush3.bf16.msra.mxu1 %v3944_v10 }
 0x83c   : > { %15716 = vmatprep.subr.bf16.mxu1 %v17868_v23 }
 0x83d   : > { %v3796_v49 = vpop.f32.mrb[136].mxu0  ;;  %v15712_v12 = vpop.f32.mrb[140].mxu1 }
 0x83e   : > { %v18791_v51 = vadd.f32 %v3796_v49, %v3593_v56  ;;  %v15676_v26 = vpop.f32.mrb[137].mxu0  ;;  %v3930_v57 = vpop.f32.mrb[141].mxu1  ;;  %v3947_v61 = vpack.c.bf16 %v15712_v12, %v15712_v12  ;;  %v17375_v56 = vld [vmem:[%s22718_s8 + $0x80] sm:$0xff]  }
 0x83f   : > { %v3799_v14 = vpop.f32.mrb[138].mxu0  ;;  %v15713_v48 = vpop.f32.mrb[142].mxu1  ;;  %15717 = vmatpush3.bf16.msra.mxu1 %v3945_v45  ;;  %v17374_v26 = vld [vmem:[%s22717_s7 + $0x168] ss:$0 sps:$4 sm:$0x11]  }
 0x840   : > { %v18793_v8 = vadd.f32 %v3799_v14, %v3594_v63  ;;  %v3933_v53 = vpop.f32.mrb[143].mxu1  ;;  %15718 = vmatprep.subr.bf16.mxu1 %v17868_v23  ;;  %v15677_v59 = vpop.f32.mrb[139].mxu0  ;;  %v4017_v38 = vand.u32 %v3947_v61, %v18277_v1 }
 0x841   : > { %v3946_v50 = vpack.c.bf16 %v3933_v53, %v3930_v57 }
 0x843   : > { %15719 = vmatpush3.bf16.msra.mxu1 %v3946_v50 }
 0x844   : > { %15720 = vmatprep.subr.bf16.mxu1 %v17868_v23 }
 0x845   : > { %v3804_v2 = vpop.f32.mrb[140].mxu0 }
 0x846   : > { %v18801_v44 = vadd.f32 %v3804_v2, %v3595_v34  ;;  %v15680_v63 = vpop.f32.mrb[141].mxu0  ;;  %v17377_v2 = vld [vmem:[%s22717_s7 + $0x16c] sm:$0xff]  }
 0x847   : > { %v3807_v6 = vpop.f32.mrb[142].mxu0  ;;  %15721 = vmatpush3.bf16.msra.mxu1 %v4017_v38  ;;  %v17381_v63 = vld [vmem:[%s22717_s7 + $0x18c] sm:$0xff]  }
 0x848   : > { %v18807_v9 = vadd.f32 %v3807_v6, %v18761_v19  ;;  %v15681_v28 = vpop.f32.mrb[143].mxu0  ;;  %15798 = vmatprep.subr.bf16.mxu1 %v17375_v56  ;;  %v17369_v19 = vld [vmem:[%s22717_s7 + $0x140] sm:$0xff]   ;;  %v17383_v6 = vld [vmem:[%s22717_s7 + $0x19c] ss:$0 sps:$4 sm:$0x11]  }
 0x84a   : > { %15723 = vmatmul.mubr.msk.bf16.vlgmr.msra.gmra.mrb[144].mxu1 %vm2574_vm9, %v17368_v5  ;;  %v17382_v5 = vld [vmem:[%s22717_s7 + $0x194] sm:$0xff]  }
 0x84b   : > { %15726 = vmatprep.mubr.msk.bf16.mxu1 %vm17869_vm7, %v17868_v23  ;;  %15799 = vmatpush3.bf16.msra.mxu1 %v17375_v56 }
 0x84c   : > { %15800 = vmatprep.subr.bf16.mxu1 %v17376_v52 }
 0x84d   : > { %v3812_v34 = vpop.f32.mrb[144].mxu0 }
 0x84e   : > { %v18816_v18 = vadd.f32 %v3812_v34, %v18764_v11  ;;  %v15684_v27 = vpop.f32.mrb[145].mxu0 }
 0x84f   : > { %v3815_v13 = vpop.f32.mrb[146].mxu0  ;;  %15801 = vmatpush3.bf16.msra.mxu1 %v17376_v52 }
 0x850   : > { %v18822_v46 = vadd.f32 %v3815_v13, %v18767_v32  ;;  %v15685_v15 = vpop.f32.mrb[147].mxu0  ;;  %15810 = vmatprep.subr.bf16.mxu1 %v17868_v23 }
 0x852   : > { %15727 = vmatmul.mubr.msk.bf16.gmra.mrb[148].mxu1 %vm2574_vm9, %v17369_v19 }
 0x853   : > { %15730 = vmatprep.mubr.msk.bf16.mxu1 %vm17869_vm7, %v17868_v23 }
 0x855   : > { %v3820_v11 = vpop.f32.mrb[148].mxu0 }
 0x856   : > { %v18829_v55 = vadd.f32 %v3820_v11, %v18770_v36  ;;  %v15688_v17 = vpop.f32.mrb[149].mxu0 }
 0x857   : > { %v3823_v58 = vpop.f32.mrb[150].mxu0 }
 0x858   : > { %v18835_v32 = vadd.f32 %v3823_v58, %v18773_v54  ;;  %v15689_v20 = vpop.f32.mrb[151].mxu0 }
 0x85a   : > { %15731 = vmatmul.mubr.msk.bf16.gmra.mrb[152].mxu1 %vm2574_vm9, %v17370_v43 }
 0x85b   : > { %15734 = vmatprep.mubr.msk.bf16.mxu1 %vm17869_vm7, %v17868_v23 }
 0x85d   : > { %v3828_v47 = vpop.f32.mrb[152].mxu0 }
 0x85e   : > { %v18841_v21 = vadd.f32 %v3828_v47, %v18776_v3  ;;  %v15692_v36 = vpop.f32.mrb[153].mxu0 }
 0x85f   : > { %v3831_v25 = vpop.f32.mrb[154].mxu0 }
 0x860   : > { %v18847_v29 = vadd.f32 %v3831_v25, %v18779_v16  ;;  %v15693_v54 = vpop.f32.mrb[155].mxu0 }
 0x862   : > { %15735 = vmatmul.mubr.msk.bf16.gmra.mrb[156].mxu1 %vm2574_vm9, %v17371_v60 }
 0x863   : > { %15738 = vmatprep.mubr.msk.bf16.mxu1 %vm17869_vm7, %v17868_v23 }
 0x865   : > { %v3836_v31 = vpop.f32.mrb[156].mxu0 }
 0x866   : > { %v18853_v33 = vadd.f32 %v3836_v31, %v18782_v62  ;;  %v15696_v3 = vpop.f32.mrb[157].mxu0 }
 0x867   : > { %v3839_v7 = vpop.f32.mrb[158].mxu0 }
 0x868   : > { %v18859_v35 = vadd.f32 %v3839_v7, %v18785_v30  ;;  %v15697_v16 = vpop.f32.mrb[159].mxu0 }
 0x86a   : > { %15739 = vmatmul.mubr.msk.bf16.gmra.mrb[160].mxu1 %vm2574_vm9, %v17372_v37 }
 0x86b   : > { %15742 = vmatprep.mubr.msk.bf16.mxu1 %vm17869_vm7, %v17868_v23 }
 0x86d   : > { %v3844_v41 = vpop.f32.mrb[160].mxu0 }
 0x86e   : > { %v18865_v45 = vadd.f32 %v3844_v41, %v18788_v4  ;;  %v15700_v62 = vpop.f32.mrb[161].mxu0 }
 0x86f   : > { %v3847_v10 = vpop.f32.mrb[162].mxu0 }
 0x870   : > { %v15701_v49 = vpop.f32.mrb[163].mxu0 }
 0x872   : > { %15743 = vmatmul.mubr.msk.bf16.gmra.mrb[164].mxu1 %vm2574_vm9, %v17373_v42 }
 0x873   : > { %15746 = vmatprep.mubr.msk.bf16.mxu1 %vm17869_vm7, %v17868_v23 }
 0x875   : > { %v15756_v30 = vpop.f32.mrb[164].mxu0 }
 0x876   : > { %v4171_v12 = vpop.f32.mrb[165].mxu0 }
 0x877   : > { %v15757_v4 = vpop.f32.mrb[166].mxu0 }
 0x878   : > { %v4202_v57 = vpack.c.bf16 %v15757_v4, %v15756_v30  ;;  %v4174_v14 = vpop.f32.mrb[167].mxu0 }
 0x879   : > { %v4201_v48 = vpack.c.bf16 %v4174_v14, %v4171_v12 }
 0x87a   : > { %15747 = vmatmul.mubr.msk.bf16.gmra.mrb[168].mxu1 %vm2574_vm9, %v17374_v26 }
 0x87b   : > { %15763 = vmatpush3.bf16.msra.mxu0 %v4201_v48  ;;  %15802 = vmatprep.mubr.msk.bf16.mxu1 %vm557_vm0, %v18237_v24 }
 0x87c   : > { %15764 = vmatprep.subr.bf16.mxu0 %v17868_v23 }
 0x87d   : > { %v15760_v53 = vpop.f32.mrb[168].mxu0 }
 0x87e   : > { %v4187_v59 = vpop.f32.mrb[169].mxu0  ;;  %v4204_v56 = vpack.c.bf16 %v15760_v53, %v15760_v53 }
 0x87f   : > { %v15761_v61 = vpop.f32.mrb[170].mxu0  ;;  %15765 = vmatpush3.bf16.msra.mxu0 %v4202_v57 }
 0x880   : > { %v4190_v50 = vpop.f32.mrb[171].mxu0  ;;  %15766 = vmatprep.subr.bf16.mxu0 %v17868_v23  ;;  %v4274_v24 = vand.u32 %v4204_v56, %v18277_v1 }
 0x881   : > { %v4203_v38 = vpack.c.bf16 %v4190_v50, %v4187_v59 }
 0x882   : > { %15803 = vmatmul.mubr.msk.bf16.vlgmr.msra.gmra.mrb[172].mxu1 %vm557_vm0, %v18235_v22  ;;  %v17378_v22 = vld [vmem:[%s22717_s7 + $0x174] sm:$0xff]  }
 0x883   : > { %15767 = vmatpush3.bf16.msra.mxu0 %v4203_v38  ;;  %15806 = vmatprep.mubr.msk.bf16.mxu1 %vm557_vm0, %v18247_v39  ;;  %v17379_v39 = vld [vmem:[%s22717_s7 + $0x17c] sm:$0xff]  }
 0x884   : > { %15768 = vmatprep.subr.bf16.mxu0 %v17868_v23 }
 0x887   : > { %15769 = vmatpush3.bf16.msra.mxu0 %v4274_v24 }
 0x888   : > { %15846 = vmatprep.subr.bf16.mxu0 %v17868_v23 }
 0x88a   : > { %15771 = vmatmul.mubr.msk.bf16.vlgmr.msra.gmra.mrb[172].mxu0 %vm2574_vm9, %v17377_v2  ;;  %15807 = vmatmul.mubr.msk.bf16.gmra.mrb[176].mxu1 %vm557_vm0, %v18249_v40  ;;  %v17380_v40 = vld [vmem:[%s22717_s7 + $0x184] sm:$0xff]  }
 0x88b   : > { %15774 = vmatprep.mubr.msk.bf16.mxu0 %vm17869_vm7, %v17868_v23  ;;  %15818 = vmatprep.mubr.msk.bf16.mxu1 %vm17869_vm7, %v17868_v23 }
 0x892   : > { %15775 = vmatmul.mubr.msk.bf16.gmra.mrb[176].mxu0 %vm2574_vm9, %v17378_v22 }
 0x893   : > { %15778 = vmatprep.mubr.msk.bf16.mxu0 %vm17869_vm7, %v17868_v23 }
 0x89a   : > { %15779 = vmatmul.mubr.msk.bf16.gmra.mrb[180].mxu0 %vm2574_vm9, %v17379_v39 }
 0x89b   : > { %15782 = vmatprep.mubr.msk.bf16.mxu0 %vm17869_vm7, %v17868_v23 }
 0x8a2   : > { %15783 = vmatmul.mubr.msk.bf16.gmra.mrb[184].mxu0 %vm2574_vm9, %v17380_v40 }
 0x8a3   : > { %15786 = vmatprep.mubr.msk.bf16.mxu0 %vm17869_vm7, %v17868_v23 }
 0x8aa   : > { %15787 = vmatmul.mubr.msk.bf16.gmra.mrb[188].mxu0 %vm2574_vm9, %v17381_v63 }
 0x8ab   : > { %15790 = vmatprep.mubr.msk.bf16.mxu0 %vm17869_vm7, %v17868_v23 }
 0x8b2   : > { %15791 = vmatmul.mubr.msk.bf16.gmra.mrb[192].mxu0 %vm2574_vm9, %v17382_v5 }
 0x8b3   : > { %15794 = vmatprep.mubr.msk.bf16.mxu0 %vm17869_vm7, %v17868_v23 }
 0x8ba   : > { %15795 = vmatmul.mubr.msk.bf16.gmra.mrb[196].mxu0 %vm2574_vm9, %v17383_v6 }
 0x8bb   : > { %15848 = vmatprep.mubr.msk.bf16.mxu0 %vm17869_vm7, %v17868_v23 }
 0x91d   : > { %v4053_v28 = vpop.f32.mrb[144].mxu1 }
 0x91e   : > { %v4107_v52 = vadd.f32 %v4053_v28, %v18791_v51  ;;  %v15724_v34 = vpop.f32.mrb[145].mxu1 }
 0x91f   : > { %v4056_v27 = vpop.f32.mrb[146].mxu1  ;;  %v17384_v34 = vld [vmem:[%s22717_s7 + $0x1a0] sm:$0xff]  }
 0x920   : > { %v4108_v19 = vadd.f32 %v4056_v27, %v18793_v8  ;;  %v15725_v13 = vpop.f32.mrb[147].mxu1 }
 0x925   : > { %v4061_v15 = vpop.f32.mrb[148].mxu1 }
 0x926   : > { %v4109_v11 = vadd.f32 %v4061_v15, %v18801_v44  ;;  %v15728_v17 = vpop.f32.mrb[149].mxu1 }
 0x927   : > { %v4064_v43 = vpop.f32.mrb[150].mxu1  ;;  %v17385_v17 = vld [vmem:[%s22717_s7 + $0x1a8] sm:$0xff]  }
 0x928   : > { %v4110_v58 = vadd.f32 %v4064_v43, %v18807_v9  ;;  %v15729_v20 = vpop.f32.mrb[151].mxu1 }
 0x92d   : > { %v4069_v47 = vpop.f32.mrb[152].mxu1 }
 0x92e   : > { %v18939_v36 = vadd.f32 %v4069_v47, %v18816_v18  ;;  %v15732_v60 = vpop.f32.mrb[153].mxu1 }
 0x92f   : > { %v4072_v25 = vpop.f32.mrb[154].mxu1 }
 0x930   : > { %v18942_v51 = vadd.f32 %v4072_v25, %v18822_v46  ;;  %v15733_v54 = vpop.f32.mrb[155].mxu1  ;;  %v17386_v25 = vld [vmem:[%s22717_s7 + $0x1b0] sm:$0xff]  }
 0x935   : > { %v4077_v8 = vpop.f32.mrb[156].mxu1 }
 0x936   : > { %v18945_v31 = vadd.f32 %v4077_v8, %v18829_v55  ;;  %v15736_v44 = vpop.f32.mrb[157].mxu1 }
 0x937   : > { %v4080_v3 = vpop.f32.mrb[158].mxu1 }
 0x938   : > { %v18948_v37 = vadd.f32 %v4080_v3, %v18835_v32  ;;  %v15737_v9 = vpop.f32.mrb[159].mxu1 }
 0x939   : > { %v17387_v9 = vld [vmem:[%s22717_s7 + $0x1b8] sm:$0xff]  }
 0x93d   : > { %v4085_v7 = vpop.f32.mrb[160].mxu1 }
 0x93e   : > { %v18951_v18 = vadd.f32 %v4085_v7, %v18841_v21  ;;  %v15740_v16 = vpop.f32.mrb[161].mxu1 }
 0x93f   : > { %v4088_v41 = vpop.f32.mrb[162].mxu1 }
 0x940   : > { %v18954_v46 = vadd.f32 %v4088_v41, %v18847_v29  ;;  %v15741_v62 = vpop.f32.mrb[163].mxu1 }
 0x945   : > { %v4093_v42 = vpop.f32.mrb[164].mxu1 }
 0x946   : > { %v18957_v55 = vadd.f32 %v4093_v42, %v18853_v33  ;;  %v15744_v10 = vpop.f32.mrb[165].mxu1  ;;  %v17388_v42 = vld [vmem:[%s22717_s7 + $0x1c0] sm:$0xff]  }
 0x947   : > { %v4096_v49 = vpop.f32.mrb[166].mxu1 }
 0x948   : > { %v18960_v32 = vadd.f32 %v4096_v49, %v18859_v35  ;;  %v15745_v30 = vpop.f32.mrb[167].mxu1 }
 0x94d   : > { %v4101_v12 = vpop.f32.mrb[168].mxu1 }
 0x94e   : > { %v18963_v21 = vadd.f32 %v4101_v12, %v18865_v45  ;;  %v15748_v26 = vpop.f32.mrb[169].mxu1 }
 0x94f   : > { %v4104_v4 = vpop.f32.mrb[170].mxu1 }
 0x950   : > { %v15749_v57 = vpop.f32.mrb[171].mxu1 }
 0x955   : > { %v15804_v29 = vpop.f32.mrb[172].mxu1 }
 0x956   : > { %v4428_v14 = vpop.f32.mrb[173].mxu1 }
 0x957   : > { %v15805_v48 = vpop.f32.mrb[174].mxu1 }
 0x958   : > { %v4459_v53 = vpack.c.bf16 %v15805_v48, %v15804_v29  ;;  %v4431_v59 = vpop.f32.mrb[175].mxu1  ;;  %v17392_v29 = vld [vmem:[%s22721_s11 + $0x8] sm:$0xff]   ;;  %v19058_v48 = vld [vmem:[%s22719_s9] ss:$0 sm:$0xff] }
 0x959   : > { %v4458_v33 = vpack.c.bf16 %v4431_v59, %v4428_v14 }
 0x95b   : > { %15811 = vmatpush3.bf16.msra.mxu1 %v4458_v33 }
 0x95c   : > { %15812 = vmatprep.subr.bf16.mxu1 %v17868_v23 }
 0x95d   : > { %v4310_v61 = vpop.f32.mrb[172].mxu0  ;;  %v15808_v35 = vpop.f32.mrb[176].mxu1 }
 0x95e   : > { %v18966_v50 = vadd.f32 %v4310_v61, %v4107_v52  ;;  %v15772_v56 = vpop.f32.mrb[173].mxu0  ;;  %v4444_v38 = vpop.f32.mrb[177].mxu1  ;;  %v4461_v40 = vpack.c.bf16 %v15808_v35, %v15808_v35 }
 0x95f   : > { %v4313_v45 = vpop.f32.mrb[174].mxu0  ;;  %v15809_v24 = vpop.f32.mrb[178].mxu1  ;;  %15813 = vmatpush3.bf16.msra.mxu1 %v4459_v53 }
 0x960   : > { %v18968_v2 = vadd.f32 %v4313_v45, %v4108_v19  ;;  %v4447_v22 = vpop.f32.mrb[179].mxu1  ;;  %15814 = vmatprep.subr.bf16.mxu1 %v17868_v23  ;;  %v15773_v39 = vpop.f32.mrb[175].mxu0  ;;  %v4531_v5 = vand.u32 %v4461_v40, %v18277_v1 }
 0x961   : > { %v4460_v63 = vpack.c.bf16 %v4447_v22, %v4444_v38 }
 0x963   : > { %15815 = vmatpush3.bf16.msra.mxu1 %v4460_v63 }
 0x964   : > { %15816 = vmatprep.subr.bf16.mxu1 %v17868_v23 }
 0x965   : > { %v4318_v6 = vpop.f32.mrb[176].mxu0 }
 0x966   : > { %v18973_v28 = vadd.f32 %v4318_v6, %v4109_v11  ;;  %v15776_v52 = vpop.f32.mrb[177].mxu0 }
 0x967   : > { %v4321_v27 = vpop.f32.mrb[178].mxu0  ;;  %15817 = vmatpush3.bf16.msra.mxu1 %v4531_v5 }
 0x968   : > { %v18978_v19 = vadd.f32 %v4321_v27, %v4110_v58  ;;  %v15777_v13 = vpop.f32.mrb[179].mxu0  ;;  %15876 = vmatprep.subr.bf16.mxu1 %v17868_v23 }
 0x96a   : > { %15819 = vmatmul.mubr.msk.bf16.vlgmr.msra.gmra.mrb[180].mxu1 %vm2574_vm9, %v17384_v34 }
 0x96b   : > { %15822 = vmatprep.mubr.msk.bf16.mxu1 %vm17869_vm7, %v17868_v23  ;;  %15877 = vmatpush3.bf16.msra.mxu1 %v17392_v29 }
 0x96c   : > { %15972 = vmatprep.subr.bf16.mxu1 %v17868_v23 }
 0x96d   : > { %v4326_v1 = vpop.f32.mrb[180].mxu0 }
 0x96e   : > { %v18985_v15 = vadd.f32 %v4326_v1, %v18939_v36  ;;  %v15780_v11 = vpop.f32.mrb[181].mxu0 }
 0x96f   : > { %v4329_v43 = vpop.f32.mrb[182].mxu0 }
 0x970   : > { %v18991_v58 = vadd.f32 %v4329_v43, %v18942_v51  ;;  %v15781_v20 = vpop.f32.mrb[183].mxu0 }
 0x972   : > { %15823 = vmatmul.mubr.msk.bf16.gmra.mrb[184].mxu1 %vm2574_vm9, %v17385_v17 }
 0x973   : > { %15826 = vmatprep.mubr.msk.bf16.mxu1 %vm17869_vm7, %v17868_v23 }
 0x975   : > { %v4334_v47 = vpop.f32.mrb[184].mxu0 }
 0x976   : > { %v18997_v60 = vadd.f32 %v4334_v47, %v18945_v31  ;;  %v15784_v36 = vpop.f32.mrb[185].mxu0 }
 0x977   : > { %v4337_v54 = vpop.f32.mrb[186].mxu0 }
 0x978   : > { %v19003_v8 = vadd.f32 %v4337_v54, %v18948_v37  ;;  %v15785_v51 = vpop.f32.mrb[187].mxu0 }
 0x97a   : > { %15827 = vmatmul.mubr.msk.bf16.gmra.mrb[188].mxu1 %vm2574_vm9, %v17386_v25 }
 0x97b   : > { %15830 = vmatprep.mubr.msk.bf16.mxu1 %vm17869_vm7, %v17868_v23 }
 0x97d   : > { %v4342_v44 = vpop.f32.mrb[188].mxu0 }
 0x97e   : > { %v19009_v3 = vadd.f32 %v4342_v44, %v18951_v18  ;;  %v15788_v31 = vpop.f32.mrb[189].mxu0 }
 0x97f   : > { %v4345_v7 = vpop.f32.mrb[190].mxu0 }
 0x980   : > { %v19015_v16 = vadd.f32 %v4345_v7, %v18954_v46  ;;  %v15789_v37 = vpop.f32.mrb[191].mxu0 }
 0x982   : > { %15831 = vmatmul.mubr.msk.bf16.gmra.mrb[192].mxu1 %vm2574_vm9, %v17387_v9 }
 0x983   : > { %15834 = vmatprep.mubr.msk.bf16.mxu1 %vm17869_vm7, %v17868_v23 }
 0x985   : > { %v4350_v41 = vpop.f32.mrb[192].mxu0 }
 0x986   : > { %v19021_v62 = vadd.f32 %v4350_v41, %v18957_v55  ;;  %v15792_v18 = vpop.f32.mrb[193].mxu0  ;;  %v17389_v55 = vld [vmem:[%s22717_s7 + $0x1c8] sm:$0xff]  }
 0x987   : > { %v4353_v10 = vpop.f32.mrb[194].mxu0 }
 0x988   : > { %v19027_v49 = vadd.f32 %v4353_v10, %v18960_v32  ;;  %v15793_v46 = vpop.f32.mrb[195].mxu0  ;;  %v17390_v32 = vld [vmem:[%s22717_s7 + $0x1d0] ss:$0 sps:$4 sm:$0x11]  }
 0x98a   : > { %15835 = vmatmul.mubr.msk.bf16.gmra.mrb[196].mxu1 %vm2574_vm9, %v17388_v42 }
 0x98b   : > { %15838 = vmatprep.mubr.msk.bf16.mxu1 %vm17869_vm7, %v17868_v23 }
 0x98d   : > { %v4358_v30 = vpop.f32.mrb[196].mxu0 }
 0x98e   : > { %v19033_v12 = vadd.f32 %v4358_v30, %v18963_v21  ;;  %v15796_v26 = vpop.f32.mrb[197].mxu0  ;;  %v17391_v21 = vld [vmem:[%s22721_s11] sm:$0xff]  }
 0x98f   : > { %v4361_v4 = vpop.f32.mrb[198].mxu0  ;;  %15847 = vmatpush3.bf16.msra.mxu0 %v17391_v21 }
 0x990   : > { %v15797_v57 = vpop.f32.mrb[199].mxu0  ;;  %15906 = vmatprep.subr.bf16.mxu0 %v17868_v23 }
 0x992   : > { %15839 = vmatmul.mubr.msk.bf16.gmra.mrb[200].mxu1 %vm2574_vm9, %v17389_v55 }
 0x993   : > { %15842 = vmatprep.mubr.msk.bf16.mxu1 %vm17869_vm7, %v17868_v23 }
 0x99a   : > { %15843 = vmatmul.mubr.msk.bf16.gmra.mrb[204].mxu1 %vm2574_vm9, %v17390_v32 }
 0x99b   : > { %15878 = vmatprep.mubr.msk.bf16.mxu1 %vm17869_vm7, %v17868_v23 }
 0xa3d   : > { %v4567_v14 = vpop.f32.mrb[180].mxu1 }
 0xa3e   : > { %v4621_v53 = vadd.f32 %v4567_v14, %v18966_v50  ;;  %v15820_v59 = vpop.f32.mrb[181].mxu1 }
 0xa3f   : > { %v4570_v33 = vpop.f32.mrb[182].mxu1 }
 0xa40   : > { %v4641_v61 = vadd.f32 %v19058_v48, %v4621_v53  ;;  %v4622_v35 = vadd.f32 %v4570_v33, %v18968_v2  ;;  %v15821_v56 = vpop.f32.mrb[183].mxu1 }
 0xa42   : > { %v4642_v38 = vadd.f32 %v19058_v48, %v4622_v35  ;;  %v4654_v45 = vmax.f32 %v4641_v61, 0.0 }
 0xa44   : > { %v4655_v24 = vmax.f32 %v4642_v38, 0.0 }
 0xa45   : > { %v4575_v22 = vpop.f32.mrb[184].mxu1 }
 0xa46   : > { %v19064_v39 = vpack.c.bf16 %v4655_v24, %v4654_v45  ;;  %v4623_v40 = vadd.f32 %v4575_v22, %v18973_v28  ;;  %v15824_v63 = vpop.f32.mrb[185].mxu1 }
 0xa47   : > { %v4578_v5 = vpop.f32.mrb[186].mxu1 }
 0xa48   : > { %v4643_v50 = vadd.f32 %v19058_v48, %v4623_v40  ;;  %v4624_v6 = vadd.f32 %v4578_v5, %v18978_v19  ;;  %v15825_v52 = vpop.f32.mrb[187].mxu1  ;;  %15849 = vmatmul.mubr.msk.bf16.vlgmr.msra.gmra.mrb[200].mxu0 %vm4682_vm10, %v19064_v39  ;;  %15879 = vmatmul.mubr.msk.bf16.vlgmr.msra.gmra.mrb[208].mxu1 %vm4682_vm10, %v19064_v39 }
 0xa49   : > { %15852 = vmatprep.mubr.msk.bf16.mxu0 %vm17869_vm7, %v17868_v23  ;;  %15882 = vmatprep.mubr.msk.bf16.mxu1 %vm17869_vm7, %v17868_v23 }
 0xa4a   : > { %v4644_v2 = vadd.f32 %v19058_v48, %v4624_v6  ;;  %v4656_v28 = vmax.f32 %v4643_v50, 0.0 }
 0xa4c   : > { %v4657_v34 = vmax.f32 %v4644_v2, 0.0 }
 0xa4d   : > { %v4583_v27 = vpop.f32.mrb[188].mxu1 }
 0xa4e   : > { %v19078_v13 = vpack.c.bf16 %v4657_v34, %v4656_v28  ;;  %v4625_v19 = vadd.f32 %v4583_v27, %v18985_v15  ;;  %v15828_v1 = vpop.f32.mrb[189].mxu1 }
 0xa4f   : > { %v4586_v11 = vpop.f32.mrb[190].mxu1 }
 0xa50   : > { %v4645_v17 = vadd.f32 %v19058_v48, %v4625_v19  ;;  %v4626_v43 = vadd.f32 %v4586_v11, %v18991_v58  ;;  %v15829_v20 = vpop.f32.mrb[191].mxu1  ;;  %15853 = vmatmul.mubr.msk.bf16.gmra.mrb[204].mxu0 %vm4682_vm10, %v19078_v13  ;;  %15883 = vmatmul.mubr.msk.bf16.gmra.mrb[212].mxu1 %vm4682_vm10, %v19078_v13 }
 0xa51   : > { %15856 = vmatprep.mubr.msk.bf16.mxu0 %vm17869_vm7, %v17868_v23  ;;  %15886 = vmatprep.mubr.msk.bf16.mxu1 %vm17869_vm7, %v17868_v23 }
 0xa52   : > { %v4646_v15 = vadd.f32 %v19058_v48, %v4626_v43  ;;  %v4658_v47 = vmax.f32 %v4645_v17, 0.0 }
 0xa54   : > { %v4659_v36 = vmax.f32 %v4646_v15, 0.0 }
 0xa55   : > { %v4591_v25 = vpop.f32.mrb[192].mxu1 }
 0xa56   : > { %v19092_v54 = vpack.c.bf16 %v4659_v36, %v4658_v47  ;;  %v4627_v58 = vadd.f32 %v4591_v25, %v18997_v60  ;;  %v15832_v51 = vpop.f32.mrb[193].mxu1 }
 0xa57   : > { %v4594_v44 = vpop.f32.mrb[194].mxu1 }
 0xa58   : > { %v4647_v31 = vadd.f32 %v19058_v48, %v4627_v58  ;;  %v4628_v9 = vadd.f32 %v4594_v44, %v19003_v8  ;;  %v15833_v7 = vpop.f32.mrb[195].mxu1  ;;  %15857 = vmatmul.mubr.msk.bf16.gmra.mrb[208].mxu0 %vm4682_vm10, %v19092_v54  ;;  %15887 = vmatmul.mubr.msk.bf16.gmra.mrb[216].mxu1 %vm4682_vm10, %v19092_v54 }
 0xa59   : > { %15860 = vmatprep.mubr.msk.bf16.mxu0 %vm17869_vm7, %v17868_v23  ;;  %15890 = vmatprep.mubr.msk.bf16.mxu1 %vm17869_vm7, %v17868_v23 }
 0xa5a   : > { %v4648_v60 = vadd.f32 %v19058_v48, %v4628_v9  ;;  %v4660_v37 = vmax.f32 %v4647_v31, 0.0 }
 0xa5c   : > { %v4661_v41 = vmax.f32 %v4648_v60, 0.0 }
 0xa5d   : > { %v4599_v18 = vpop.f32.mrb[196].mxu1 }
 0xa5e   : > { %v19106_v42 = vpack.c.bf16 %v4661_v41, %v4660_v37  ;;  %v4629_v8 = vadd.f32 %v4599_v18, %v19009_v3  ;;  %v15836_v10 = vpop.f32.mrb[197].mxu1 }
 0xa5f   : > { %v4602_v46 = vpop.f32.mrb[198].mxu1 }
 0xa60   : > { %v4649_v30 = vadd.f32 %v19058_v48, %v4629_v8  ;;  %v4630_v55 = vadd.f32 %v4602_v46, %v19015_v16  ;;  %v15837_v26 = vpop.f32.mrb[199].mxu1  ;;  %15861 = vmatmul.mubr.msk.bf16.gmra.mrb[212].mxu0 %vm4682_vm10, %v19106_v42  ;;  %15891 = vmatmul.mubr.msk.bf16.gmra.mrb[220].mxu1 %vm4682_vm10, %v19106_v42 }
 0xa61   : > { %15864 = vmatprep.mubr.msk.bf16.mxu0 %vm17869_vm7, %v17868_v23  ;;  %15894 = vmatprep.mubr.msk.bf16.mxu1 %vm17869_vm7, %v17868_v23 }
 0xa62   : > { %v4650_v3 = vadd.f32 %v19058_v48, %v4630_v55  ;;  %v4662_v4 = vmax.f32 %v4649_v30, 0.0 }
 0xa64   : > { %v4663_v57 = vmax.f32 %v4650_v3, 0.0 }
 0xa65   : > { %v4607_v32 = vpop.f32.mrb[200].mxu1 }
 0xa66   : > { %v19120_v21 = vpack.c.bf16 %v4663_v57, %v4662_v4  ;;  %v4631_v16 = vadd.f32 %v4607_v32, %v19021_v62  ;;  %v15840_v29 = vpop.f32.mrb[201].mxu1 }
 0xa67   : > { %v4610_v14 = vpop.f32.mrb[202].mxu1 }
 0xa68   : > { %v4651_v53 = vadd.f32 %v19058_v48, %v4631_v16  ;;  %v4632_v59 = vadd.f32 %v4610_v14, %v19027_v49  ;;  %v15841_v33 = vpop.f32.mrb[203].mxu1  ;;  %15865 = vmatmul.mubr.msk.bf16.gmra.mrb[216].mxu0 %vm4682_vm10, %v19120_v21  ;;  %15895 = vmatmul.mubr.msk.bf16.gmra.mrb[224].mxu1 %vm4682_vm10, %v19120_v21 }
 0xa69   : > { %15868 = vmatprep.mubr.msk.bf16.mxu0 %vm17869_vm7, %v17868_v23  ;;  %15898 = vmatprep.mubr.msk.bf16.mxu1 %vm17869_vm7, %v17868_v23 }
 0xa6a   : > { %v4652_v62 = vadd.f32 %v19058_v48, %v4632_v59  ;;  %v4664_v61 = vmax.f32 %v4651_v53, 0.0 }
 0xa6c   : > { %v4665_v35 = vmax.f32 %v4652_v62, 0.0 }
 0xa6d   : > { %v4615_v56 = vpop.f32.mrb[204].mxu1 }
 0xa6e   : > { %v19134_v38 = vpack.c.bf16 %v4665_v35, %v4664_v61  ;;  %v4633_v49 = vadd.f32 %v4615_v56, %v19033_v12  ;;  %v15844_v45 = vpop.f32.mrb[205].mxu1 }
 0xa6f   : > { %v4618_v24 = vpop.f32.mrb[206].mxu1 }
 0xa70   : > { %v4653_v22 = vadd.f32 %v19058_v48, %v4633_v49  ;;  %v15845_v40 = vpop.f32.mrb[207].mxu1  ;;  %15869 = vmatmul.mubr.msk.bf16.gmra.mrb[220].mxu0 %vm4682_vm10, %v19134_v38  ;;  %15899 = vmatmul.mubr.msk.bf16.gmra.mrb[228].mxu1 %vm4682_vm10, %v19134_v38 }
 0xa71   : > { %15872 = vmatprep.mubr.msk.bf16.mxu0 %vm17869_vm7, %v17868_v23  ;;  %15902 = vmatprep.mubr.msk.bf16.mxu1 %vm17869_vm7, %v17868_v23 }
 0xa72   : > { %v4666_v63 = vmax.f32 %v4653_v22, 0.0 }
 0xa74   : > { %v19146_v5 = vpack.c.bf16 %v4666_v63, %v4666_v63 }
 0xa78   : > { %15873 = vmatmul.mubr.msk.bf16.gmra.mrb[224].mxu0 %vm4682_vm10, %v19146_v5  ;;  %15903 = vmatmul.mubr.msk.bf16.gmra.mrb[232].mxu1 %vm4682_vm10, %v19146_v5 }
 0xa79   : > { %15920 = vmatprep.mubr.msk.bf16.mxu0 %vm17869_vm7, %v17868_v23  ;;  %15986 = vmatprep.mubr.msk.bf16.mxu1 %vm17869_vm7, %v17868_v23 }
 0xb1b   : > { %v4738_v12 = vpop.f32.mrb[200].mxu0  ;;  %v4867_v48 = vpop.f32.mrb[208].mxu1 }
 0xb1c   : > { %v15850_v50 = vpop.f32.mrb[201].mxu0  ;;  %v15880_v6 = vpop.f32.mrb[209].mxu1 }
 0xb1d   : > { %v4741_v52 = vpop.f32.mrb[202].mxu0  ;;  %v4870_v2 = vpop.f32.mrb[210].mxu1 }
 0xb1e   : > { %v4792_v28 = vpack.c.bf16 %v4741_v52, %v4738_v12  ;;  %v4921_v34 = vpack.c.bf16 %v4870_v2, %v4867_v48  ;;  %v15851_v27 = vpop.f32.mrb[203].mxu0  ;;  %v15881_v19 = vpop.f32.mrb[211].mxu1 }
 0xb20   : > { %15907 = vmatpush3.bf16.msra.mxu0 %v4921_v34  ;;  %15973 = vmatpush3.bf16.msra.mxu1 %v4792_v28 }
 0xb21   : > { %15908 = vmatprep.subr.bf16.mxu0 %v17868_v23  ;;  %15974 = vmatprep.subr.bf16.mxu1 %v17868_v23 }
 0xb23   : > { %v4746_v1 = vpop.f32.mrb[204].mxu0  ;;  %v4875_v11 = vpop.f32.mrb[212].mxu1 }
 0xb24   : > { %v15854_v17 = vpop.f32.mrb[205].mxu0  ;;  %v15884_v43 = vpop.f32.mrb[213].mxu1 }
 0xb25   : > { %v4749_v20 = vpop.f32.mrb[206].mxu0  ;;  %v4878_v15 = vpop.f32.mrb[214].mxu1 }
 0xb26   : > { %v4793_v47 = vpack.c.bf16 %v4749_v20, %v4746_v1  ;;  %v4922_v36 = vpack.c.bf16 %v4878_v15, %v4875_v11  ;;  %v15855_v25 = vpop.f32.mrb[207].mxu0  ;;  %v15885_v58 = vpop.f32.mrb[215].mxu1 }
 0xb27   : > { %v17394_v25 = vld [vmem:[%s22720_s10] sm:$0xff]   ;;  %v17407_v58 = vld [vmem:[%s22721_s11 + $0x10] sm:$0xff]  }
 0xb28   : > { %15909 = vmatpush3.bf16.msra.mxu0 %v4922_v36  ;;  %15975 = vmatpush3.bf16.msra.mxu1 %v4793_v47  ;;  %v17393_v36 = vld [vmem:[%s22720_s10 + $0x64] sm:$0xff]  }
 0xb29   : > { %15910 = vmatprep.subr.bf16.mxu0 %v17868_v23  ;;  %15976 = vmatprep.subr.bf16.mxu1 %v17868_v23 }
 0xb2b   : > { %v4754_v51 = vpop.f32.mrb[208].mxu0  ;;  %v4883_v44 = vpop.f32.mrb[216].mxu1 }
 0xb2c   : > { %v15858_v31 = vpop.f32.mrb[209].mxu0  ;;  %v15888_v9 = vpop.f32.mrb[217].mxu1 }
 0xb2d   : > { %v4757_v7 = vpop.f32.mrb[210].mxu0  ;;  %v4886_v60 = vpop.f32.mrb[218].mxu1  ;;  %v17397_v31 = vld [vmem:[%s22720_s10 + $0x74] sm:$0xff]  }
 0xb2e   : > { %v4794_v37 = vpack.c.bf16 %v4757_v7, %v4754_v51  ;;  %v4923_v41 = vpack.c.bf16 %v4886_v60, %v4883_v44  ;;  %v15859_v18 = vpop.f32.mrb[211].mxu0  ;;  %v15889_v8 = vpop.f32.mrb[219].mxu1  ;;  %v17395_v51 = vld [vmem:[%s22720_s10 + $0x6c] sm:$0xff]   ;;  %v17399_v7 = vld [vmem:[%s22720_s10 + $0x7c] sm:$0xff]  }
 0xb2f   : > { %v17396_v44 = vld [vmem:[%s22720_s10 + $0x8] sm:$0xff]   ;;  %v17398_v9 = vld [vmem:[%s22720_s10 + $0x10] sm:$0xff]   ;;  %v17400_v60 = vld [vmem:[%s22720_s10 + $0x18] sm:$0xff]  }
 0xb30   : > { %15911 = vmatpush3.bf16.msra.mxu0 %v4923_v41  ;;  %15977 = vmatpush3.bf16.msra.mxu1 %v4794_v37  ;;  %v17401_v37 = vld [vmem:[%s22720_s10 + $0x84] sm:$0xff]   ;;  %v17403_v18 = vld [vmem:[%s22720_s10 + $0x8c] sm:$0xff]  }
 0xb31   : > { %15912 = vmatprep.subr.bf16.mxu0 %v17868_v23  ;;  %15978 = vmatprep.subr.bf16.mxu1 %v17868_v23  ;;  %v17402_v41 = vld [vmem:[%s22720_s10 + $0x20] sm:$0xff]   ;;  %v17404_v8 = vld [vmem:[%s22720_s10 + $0x28] sm:$0xff]  }
 0xb33   : > { %v4762_v10 = vpop.f32.mrb[212].mxu0  ;;  %v4891_v46 = vpop.f32.mrb[220].mxu1 }
 0xb34   : > { %v15862_v30 = vpop.f32.mrb[213].mxu0  ;;  %v15892_v55 = vpop.f32.mrb[221].mxu1 }
 0xb35   : > { %v4765_v26 = vpop.f32.mrb[214].mxu0  ;;  %v4894_v3 = vpop.f32.mrb[222].mxu1  ;;  %v17408_v30 = vld [vmem:[%s22720_s10 + $0x9c] sm:$0xff]  }
 0xb36   : > { %v4795_v4 = vpack.c.bf16 %v4765_v26, %v4762_v10  ;;  %v4924_v57 = vpack.c.bf16 %v4894_v3, %v4891_v46  ;;  %v15863_v32 = vpop.f32.mrb[215].mxu0  ;;  %v15893_v16 = vpop.f32.mrb[223].mxu1  ;;  %v17405_v10 = vld [vmem:[%s22720_s10 + $0x94] sm:$0xff]   ;;  %v17410_v26 = vld [vmem:[%s22720_s10 + $0xa4] sm:$0xff]  }
 0xb37   : > { %v17406_v46 = vld [vmem:[%s22720_s10 + $0x30] sm:$0xff]   ;;  %v17409_v55 = vld [vmem:[%s22720_s10 + $0x38] sm:$0xff]   ;;  %v17411_v3 = vld [vmem:[%s22720_s10 + $0x40] sm:$0xff]  }
 0xb38   : > { %15913 = vmatpush3.bf16.msra.mxu0 %v4924_v57  ;;  %15979 = vmatpush3.bf16.msra.mxu1 %v4795_v4  ;;  %v17412_v4 = vld [vmem:[%s22720_s10 + $0xac] sm:$0xff]   ;;  %v17414_v32 = vld [vmem:[%s22720_s10 + $0xb4] sm:$0xff]  }
 0xb39   : > { %15914 = vmatprep.subr.bf16.mxu0 %v17868_v23  ;;  %15980 = vmatprep.subr.bf16.mxu1 %v17868_v23  ;;  %v17413_v57 = vld [vmem:[%s22720_s10 + $0x48] sm:$0xff]   ;;  %v17415_v16 = vld [vmem:[%s22720_s10 + $0x50] sm:$0xff]  }
 0xb3b   : > { %v4770_v29 = vpop.f32.mrb[216].mxu0  ;;  %v4899_v14 = vpop.f32.mrb[224].mxu1 }
 0xb3c   : > { %v15866_v53 = vpop.f32.mrb[217].mxu0  ;;  %v15896_v59 = vpop.f32.mrb[225].mxu1 }
 0xb3d   : > { %v4773_v33 = vpop.f32.mrb[218].mxu0  ;;  %v4902_v62 = vpop.f32.mrb[226].mxu1  ;;  %v17418_v53 = vld [vmem:[%s22720_s10 + $0xc4] ss:$0 sps:$4 sm:$0x33]  }
 0xb3e   : > { %v4796_v61 = vpack.c.bf16 %v4773_v33, %v4770_v29  ;;  %v4925_v35 = vpack.c.bf16 %v4902_v62, %v4899_v14  ;;  %v15867_v56 = vpop.f32.mrb[219].mxu0  ;;  %v15897_v49 = vpop.f32.mrb[227].mxu1  ;;  %v17416_v29 = vld [vmem:[%s22720_s10 + $0xbc] sm:$0xff]  }
 0xb3f   : > { %v17417_v14 = vld [vmem:[%s22720_s10 + $0x58] sm:$0xff]   ;;  %v17419_v59 = vld [vmem:[%s22720_s10 + $0x60] ss:$0 sps:$4 sm:$0x33]  }
 0xb40   : > { %15915 = vmatpush3.bf16.msra.mxu0 %v4925_v35  ;;  %15981 = vmatpush3.bf16.msra.mxu1 %v4796_v61  ;;  %v17420_v33 = vld [vmem:[%s22721_s11 + $0x18] sm:$0xff]  }
 0xb41   : > { %15916 = vmatprep.subr.bf16.mxu0 %v17868_v23  ;;  %15982 = vmatprep.subr.bf16.mxu1 %v17868_v23 }
 0xb43   : > { %v4778_v45 = vpop.f32.mrb[220].mxu0  ;;  %v4907_v24 = vpop.f32.mrb[228].mxu1 }
 0xb44   : > { %v15870_v22 = vpop.f32.mrb[221].mxu0  ;;  %v15900_v40 = vpop.f32.mrb[229].mxu1 }
 0xb45   : > { %v4781_v63 = vpop.f32.mrb[222].mxu0  ;;  %v4910_v12 = vpop.f32.mrb[230].mxu1 }
 0xb46   : > { %v4797_v48 = vpack.c.bf16 %v4781_v63, %v4778_v45  ;;  %v4926_v50 = vpack.c.bf16 %v4910_v12, %v4907_v24  ;;  %v15871_v6 = vpop.f32.mrb[223].mxu0  ;;  %v15901_v52 = vpop.f32.mrb[231].mxu1 }
 0xb48   : > { %15917 = vmatpush3.bf16.msra.mxu0 %v4926_v50  ;;  %15983 = vmatpush3.bf16.msra.mxu1 %v4797_v48 }
 0xb49   : > { %15918 = vmatprep.subr.bf16.mxu0 %v17868_v23  ;;  %15984 = vmatprep.subr.bf16.mxu1 %v17868_v23 }
 0xb4b   : > { %v4786_v2 = vpop.f32.mrb[224].mxu0  ;;  %v4915_v28 = vpop.f32.mrb[232].mxu1 }
 0xb4c   : > { %v4798_v34 = vpack.c.bf16 %v4786_v2, %v4786_v2  ;;  %v4927_v27 = vpack.c.bf16 %v4915_v28, %v4915_v28  ;;  %v15874_v19 = vpop.f32.mrb[225].mxu0  ;;  %v15904_v1 = vpop.f32.mrb[233].mxu1 }
 0xb4d   : > { %v4789_v11 = vpop.f32.mrb[226].mxu0  ;;  %v4918_v17 = vpop.f32.mrb[234].mxu1 }
 0xb4e   : > { %v15875_v43 = vpop.f32.mrb[227].mxu0  ;;  %v15905_v20 = vpop.f32.mrb[235].mxu1  ;;  %v5058_v15 = vsel %vm2596_vm8, %v4927_v27, 0  ;;  %v5299_v47 = vsel %vm2596_vm8, %v4798_v34, 0 }
 0xb4f   : > { %15919 = vmatpush3.bf16.msra.mxu0 %v5058_v15  ;;  %15985 = vmatpush3.bf16.msra.mxu1 %v5299_v47 }
 0xb50   : > { %16038 = vmatprep.subr.bf16.mxu0 %v17868_v23  ;;  %16068 = vmatprep.subr.bf16.mxu1 %v17868_v23 }
 0xb52   : > { %15921 = vmatmul.mubr.msk.bf16.vlgmr.msra.gmra.mrb[228].mxu0 %vm5017_vm11, %v17393_v36  ;;  %15987 = vmatmul.mubr.msk.bf16.vlgmr.msra.gmra.mrb[236].mxu1 %vm5017_vm11, %v17394_v25 }
 0xb53   : > { %15924 = vmatprep.mubr.msk.bf16.mxu0 %vm17869_vm7, %v17868_v23  ;;  %15990 = vmatprep.mubr.msk.bf16.mxu1 %vm17869_vm7, %v17868_v23 }
 0xb54   : > { %16039 = vmatpush3.bf16.msra.mxu0 %v17407_v58 }
 0xb55   : > { %16134 = vmatprep.subr.bf16.mxu0 %v17868_v23 }
 0xb5a   : > { %15925 = vmatmul.mubr.msk.bf16.gmra.mrb[232].mxu0 %vm5017_vm11, %v17395_v51  ;;  %15991 = vmatmul.mubr.msk.bf16.gmra.mrb[240].mxu1 %vm5017_vm11, %v17396_v44 }
 0xb5b   : > { %15928 = vmatprep.mubr.msk.bf16.mxu0 %vm17869_vm7, %v17868_v23  ;;  %15994 = vmatprep.mubr.msk.bf16.mxu1 %vm17869_vm7, %v17868_v23 }
 0xb62   : > { %15929 = vmatmul.mubr.msk.bf16.gmra.mrb[236].mxu0 %vm5017_vm11, %v17397_v31  ;;  %15995 = vmatmul.mubr.msk.bf16.gmra.mrb[244].mxu1 %vm5017_vm11, %v17398_v9 }
 0xb63   : > { %15932 = vmatprep.mubr.msk.bf16.mxu0 %vm17869_vm7, %v17868_v23  ;;  %15998 = vmatprep.mubr.msk.bf16.mxu1 %vm17869_vm7, %v17868_v23 }
 0xb6a   : > { %15933 = vmatmul.mubr.msk.bf16.gmra.mrb[240].mxu0 %vm5017_vm11, %v17399_v7  ;;  %15999 = vmatmul.mubr.msk.bf16.gmra.mrb[248].mxu1 %vm5017_vm11, %v17400_v60 }
 0xb6b   : > { %15936 = vmatprep.mubr.msk.bf16.mxu0 %vm17869_vm7, %v17868_v23  ;;  %16002 = vmatprep.mubr.msk.bf16.mxu1 %vm17869_vm7, %v17868_v23 }
 0xb72   : > { %15937 = vmatmul.mubr.msk.bf16.gmra.mrb[244].mxu0 %vm5017_vm11, %v17401_v37  ;;  %16003 = vmatmul.mubr.msk.bf16.gmra.mrb[252].mxu1 %vm5017_vm11, %v17402_v41 }
 0xb73   : > { %15940 = vmatprep.mubr.msk.bf16.mxu0 %vm17869_vm7, %v17868_v23  ;;  %16006 = vmatprep.mubr.msk.bf16.mxu1 %vm17869_vm7, %v17868_v23 }
 0xb7a   : > { %15941 = vmatmul.mubr.msk.bf16.gmra.mrb[248].mxu0 %vm5017_vm11, %v17403_v18  ;;  %16007 = vmatmul.mubr.msk.bf16.gmra.mrb[0].mxu1 %vm5017_vm11, %v17404_v8 }
 0xb7b   : > { %15944 = vmatprep.mubr.msk.bf16.mxu0 %vm17869_vm7, %v17868_v23  ;;  %16010 = vmatprep.mubr.msk.bf16.mxu1 %vm17869_vm7, %v17868_v23 }
 0xb82   : > { %15945 = vmatmul.mubr.msk.bf16.gmra.mrb[252].mxu0 %vm5017_vm11, %v17405_v10  ;;  %16011 = vmatmul.mubr.msk.bf16.gmra.mrb[4].mxu1 %vm5017_vm11, %v17406_v46 }
 0xb83   : > { %15948 = vmatprep.mubr.msk.bf16.mxu0 %vm17869_vm7, %v17868_v23  ;;  %16014 = vmatprep.mubr.msk.bf16.mxu1 %vm17869_vm7, %v17868_v23 }
 0xb8a   : > { %15949 = vmatmul.mubr.msk.bf16.gmra.mrb[0].mxu0 %vm5017_vm11, %v17408_v30  ;;  %16015 = vmatmul.mubr.msk.bf16.gmra.mrb[8].mxu1 %vm5017_vm11, %v17409_v55 }
 0xb8b   : > { %15952 = vmatprep.mubr.msk.bf16.mxu0 %vm17869_vm7, %v17868_v23  ;;  %16018 = vmatprep.mubr.msk.bf16.mxu1 %vm17869_vm7, %v17868_v23 }
 0xb92   : > { %15953 = vmatmul.mubr.msk.bf16.gmra.mrb[4].mxu0 %vm5017_vm11, %v17410_v26  ;;  %16019 = vmatmul.mubr.msk.bf16.gmra.mrb[12].mxu1 %vm5017_vm11, %v17411_v3 }
 0xb93   : > { %15956 = vmatprep.mubr.msk.bf16.mxu0 %vm17869_vm7, %v17868_v23  ;;  %16022 = vmatprep.mubr.msk.bf16.mxu1 %vm17869_vm7, %v17868_v23 }
 0xb9a   : > { %15957 = vmatmul.mubr.msk.bf16.gmra.mrb[12].mxu0 %vm5017_vm11, %v17412_v4  ;;  %16023 = vmatmul.mubr.msk.bf16.gmra.mrb[16].mxu1 %vm5017_vm11, %v17413_v57 }
 0xb9b   : > { %15960 = vmatprep.mubr.msk.bf16.mxu0 %vm17869_vm7, %v17868_v23  ;;  %16026 = vmatprep.mubr.msk.bf16.mxu1 %vm17869_vm7, %v17868_v23 }
 0xba2   : > { %15961 = vmatmul.mubr.msk.bf16.gmra.mrb[16].mxu0 %vm5017_vm11, %v17414_v32  ;;  %16027 = vmatmul.mubr.msk.bf16.gmra.mrb[20].mxu1 %vm5017_vm11, %v17415_v16 }
 0xba3   : > { %15964 = vmatprep.mubr.msk.bf16.mxu0 %vm17869_vm7, %v17868_v23  ;;  %16030 = vmatprep.mubr.msk.bf16.mxu1 %vm17869_vm7, %v17868_v23 }
 0xbaa   : > { %15965 = vmatmul.mubr.msk.bf16.gmra.mrb[20].mxu0 %vm5017_vm11, %v17416_v29  ;;  %16031 = vmatmul.mubr.msk.bf16.gmra.mrb[24].mxu1 %vm5017_vm11, %v17417_v14 }
 0xbab   : > { %15968 = vmatprep.mubr.msk.bf16.mxu0 %vm17869_vm7, %v17868_v23  ;;  %16034 = vmatprep.mubr.msk.bf16.mxu1 %vm17869_vm7, %v17868_v23 }
 0xbb2   : > { %15969 = vmatmul.mubr.msk.bf16.gmra.mrb[24].mxu0 %vm5017_vm11, %v17418_v53  ;;  %16035 = vmatmul.mubr.msk.bf16.gmra.mrb[28].mxu1 %vm5017_vm11, %v17419_v59 }
 0xbb3   : > { %16040 = vmatprep.mubr.msk.bf16.mxu0 %vm17869_vm7, %v17868_v23  ;;  %16082 = vmatprep.mubr.msk.bf16.mxu1 %vm17869_vm7, %v17868_v23 }
 0xbba   : > { %16041 = vmatmul.mubr.msk.bf16.vlgmr.msra.gmra.mrb[28].mxu0 %vm4682_vm10, %v19064_v39 }
 0xbbb   : > { %16044 = vmatprep.mubr.msk.bf16.mxu0 %vm17869_vm7, %v17868_v23  ;;  %16135 = vmatpush3.bf16.msra.mxu0 %v17420_v33 }
 0xbbc   : > { %16164 = vmatprep.subr.bf16.mxu0 %v17868_v23 }
 0xbc2   : > { %16045 = vmatmul.mubr.msk.bf16.gmra.mrb[32].mxu0 %vm4682_vm10, %v19078_v13 }
 0xbc3   : > { %16048 = vmatprep.mubr.msk.bf16.mxu0 %vm17869_vm7, %v17868_v23 }
 0xbca   : > { %16049 = vmatmul.mubr.msk.bf16.gmra.mrb[36].mxu0 %vm4682_vm10, %v19092_v54 }
 0xbcb   : > { %16052 = vmatprep.mubr.msk.bf16.mxu0 %vm17869_vm7, %v17868_v23 }
 0xbd2   : > { %16053 = vmatmul.mubr.msk.bf16.gmra.mrb[40].mxu0 %vm4682_vm10, %v19106_v42 }
 0xbd3   : > { %16056 = vmatprep.mubr.msk.bf16.mxu0 %vm17869_vm7, %v17868_v23 }
 0xbda   : > { %16057 = vmatmul.mubr.msk.bf16.gmra.mrb[8].mxu0 %vm4682_vm10, %v19120_v21 }
 0xbdb   : > { %16060 = vmatprep.mubr.msk.bf16.mxu0 %vm17869_vm7, %v17868_v23 }
 0xbe2   : > { %16061 = vmatmul.mubr.msk.bf16.gmra.mrb[44].mxu0 %vm4682_vm10, %v19134_v38 }
 0xbe3   : > { %16064 = vmatprep.mubr.msk.bf16.mxu0 %vm17869_vm7, %v17868_v23 }
 0xbea   : > { %16065 = vmatmul.mubr.msk.bf16.gmra.mrb[48].mxu0 %vm4682_vm10, %v19146_v5 }
 0xbeb   : > { %16136 = vmatprep.mubr.msk.bf16.mxu0 %vm17869_vm7, %v17868_v23 }
 0xbf2   : > { %16137 = vmatmul.mubr.msk.bf16.vlgmr.msra.gmra.mrb[52].mxu0 %vm4682_vm10, %v19064_v39 }
 0xbf3   : > { %16140 = vmatprep.mubr.msk.bf16.mxu0 %vm17869_vm7, %v17868_v23 }
 0xbfa   : > { %16141 = vmatmul.mubr.msk.bf16.gmra.mrb[56].mxu0 %vm4682_vm10, %v19078_v13 }
 0xbfb   : > { %16144 = vmatprep.mubr.msk.bf16.mxu0 %vm17869_vm7, %v17868_v23 }
 0xc02   : > { %16145 = vmatmul.mubr.msk.bf16.gmra.mrb[60].mxu0 %vm4682_vm10, %v19092_v54 }
 0xc03   : > { %16148 = vmatprep.mubr.msk.bf16.mxu0 %vm17869_vm7, %v17868_v23 }
 0xc0a   : > { %16149 = vmatmul.mubr.msk.bf16.gmra.mrb[64].mxu0 %vm4682_vm10, %v19106_v42 }
 0xc0b   : > { %16152 = vmatprep.mubr.msk.bf16.mxu0 %vm17869_vm7, %v17868_v23 }
 0xc12   : > { %16153 = vmatmul.mubr.msk.bf16.gmra.mrb[68].mxu0 %vm4682_vm10, %v19120_v21 }
 0xc13   : > { %16156 = vmatprep.mubr.msk.bf16.mxu0 %vm17869_vm7, %v17868_v23 }
 0xc1a   : > { %16157 = vmatmul.mubr.msk.bf16.gmra.mrb[72].mxu0 %vm4682_vm10, %v19134_v38 }
 0xc1b   : > { %16160 = vmatprep.mubr.msk.bf16.mxu0 %vm17869_vm7, %v17868_v23 }
 0xc22   : > { %16161 = vmatmul.mubr.msk.bf16.gmra.mrb[76].mxu0 %vm4682_vm10, %v19146_v5 }
 0xc23   : > { %16178 = vmatprep.mubr.msk.bf16.mxu0 %vm17869_vm7, %v17868_v23 }
 0xc25   : > { %v5094_v62 = vpop.f32.mrb[228].mxu0  ;;  %v5335_v61 = vpop.f32.mrb[236].mxu1 }
 0xc26   : > { %v19392_v35 = vadd.f32 %v5335_v61, %v5094_v62  ;;  %v15922_v56 = vpop.f32.mrb[229].mxu0  ;;  %v15988_v49 = vpop.f32.mrb[237].mxu1 }
 0xc27   : > { %v5097_v45 = vpop.f32.mrb[230].mxu0  ;;  %v5338_v24 = vpop.f32.mrb[238].mxu1 }
 0xc28   : > { %v19394_v22 = vadd.f32 %v5338_v24, %v5097_v45  ;;  %v15923_v40 = vpop.f32.mrb[231].mxu0  ;;  %v15989_v63 = vpop.f32.mrb[239].mxu1 }
 0xc2d   : > { %v5102_v12 = vpop.f32.mrb[232].mxu0  ;;  %v5343_v48 = vpop.f32.mrb[240].mxu1 }
 0xc2e   : > { %v19396_v50 = vadd.f32 %v5343_v48, %v5102_v12  ;;  %v15926_v6 = vpop.f32.mrb[233].mxu0  ;;  %v15992_v52 = vpop.f32.mrb[241].mxu1 }
 0xc2f   : > { %v5105_v2 = vpop.f32.mrb[234].mxu0  ;;  %v5346_v28 = vpop.f32.mrb[242].mxu1 }
 0xc30   : > { %v19398_v34 = vadd.f32 %v5346_v28, %v5105_v2  ;;  %v15927_v27 = vpop.f32.mrb[235].mxu0  ;;  %v15993_v19 = vpop.f32.mrb[243].mxu1 }
 0xc35   : > { %v5110_v1 = vpop.f32.mrb[236].mxu0  ;;  %v5351_v11 = vpop.f32.mrb[244].mxu1 }
 0xc36   : > { %v19400_v17 = vadd.f32 %v5351_v11, %v5110_v1  ;;  %v15930_v43 = vpop.f32.mrb[237].mxu0  ;;  %v15996_v20 = vpop.f32.mrb[245].mxu1 }
 0xc37   : > { %v5113_v15 = vpop.f32.mrb[238].mxu0  ;;  %v5354_v47 = vpop.f32.mrb[246].mxu1 }
 0xc38   : > { %v19402_v36 = vadd.f32 %v5354_v47, %v5113_v15  ;;  %v15931_v25 = vpop.f32.mrb[239].mxu0  ;;  %v15997_v58 = vpop.f32.mrb[247].mxu1 }
 0xc3d   : > { %v5118_v51 = vpop.f32.mrb[240].mxu0  ;;  %v5359_v44 = vpop.f32.mrb[248].mxu1 }
 0xc3e   : > { %v19404_v31 = vadd.f32 %v5359_v44, %v5118_v51  ;;  %v15934_v9 = vpop.f32.mrb[241].mxu0  ;;  %v16000_v7 = vpop.f32.mrb[249].mxu1 }
 0xc3f   : > { %v5121_v60 = vpop.f32.mrb[242].mxu0  ;;  %v5362_v37 = vpop.f32.mrb[250].mxu1 }
 0xc40   : > { %v19406_v41 = vadd.f32 %v5362_v37, %v5121_v60  ;;  %v15935_v18 = vpop.f32.mrb[243].mxu0  ;;  %v16001_v8 = vpop.f32.mrb[251].mxu1 }
 0xc45   : > { %v5126_v10 = vpop.f32.mrb[244].mxu0  ;;  %v5367_v46 = vpop.f32.mrb[252].mxu1 }
 0xc46   : > { %v19408_v30 = vadd.f32 %v5367_v46, %v5126_v10  ;;  %v15938_v55 = vpop.f32.mrb[245].mxu0  ;;  %v16004_v26 = vpop.f32.mrb[253].mxu1 }
 0xc47   : > { %v5129_v3 = vpop.f32.mrb[246].mxu0  ;;  %v5370_v4 = vpop.f32.mrb[254].mxu1 }
 0xc48   : > { %v19410_v57 = vadd.f32 %v5370_v4, %v5129_v3  ;;  %v15939_v32 = vpop.f32.mrb[247].mxu0  ;;  %v16005_v16 = vpop.f32.mrb[255].mxu1 }
 0xc4d   : > { %v5134_v29 = vpop.f32.mrb[248].mxu0  ;;  %v5375_v14 = vpop.f32.mrb[0].mxu1 }
 0xc4e   : > { %v19412_v53 = vadd.f32 %v5375_v14, %v5134_v29  ;;  %v15942_v59 = vpop.f32.mrb[249].mxu0  ;;  %v16008_v33 = vpop.f32.mrb[1].mxu1 }
 0xc4f   : > { %v5137_v62 = vpop.f32.mrb[250].mxu0  ;;  %v5378_v61 = vpop.f32.mrb[2].mxu1 }
 0xc50   : > { %v19414_v56 = vadd.f32 %v5378_v61, %v5137_v62  ;;  %v15943_v49 = vpop.f32.mrb[251].mxu0  ;;  %v16009_v45 = vpop.f32.mrb[3].mxu1 }
 0xc55   : > { %v5142_v24 = vpop.f32.mrb[252].mxu0  ;;  %v5383_v40 = vpop.f32.mrb[4].mxu1 }
 0xc56   : > { %v19416_v63 = vadd.f32 %v5383_v40, %v5142_v24  ;;  %v15946_v12 = vpop.f32.mrb[253].mxu0  ;;  %v16012_v48 = vpop.f32.mrb[5].mxu1 }
 0xc57   : > { %v5145_v6 = vpop.f32.mrb[254].mxu0  ;;  %v5386_v52 = vpop.f32.mrb[6].mxu1 }
 0xc58   : > { %v19418_v2 = vadd.f32 %v5386_v52, %v5145_v6  ;;  %v15947_v28 = vpop.f32.mrb[255].mxu0  ;;  %v16013_v27 = vpop.f32.mrb[7].mxu1 }
 0xc5d   : > { %v5150_v19 = vpop.f32.mrb[0].mxu0  ;;  %v5391_v1 = vpop.f32.mrb[8].mxu1 }
 0xc5e   : > { %v19420_v11 = vadd.f32 %v5391_v1, %v5150_v19  ;;  %v15950_v43 = vpop.f32.mrb[1].mxu0  ;;  %v16016_v20 = vpop.f32.mrb[9].mxu1 }
 0xc5f   : > { %v5153_v15 = vpop.f32.mrb[2].mxu0  ;;  %v5394_v47 = vpop.f32.mrb[10].mxu1 }
 0xc60   : > { %v19422_v25 = vadd.f32 %v5394_v47, %v5153_v15  ;;  %v15951_v58 = vpop.f32.mrb[3].mxu0  ;;  %v16017_v51 = vpop.f32.mrb[11].mxu1 }
 0xc65   : > { %v5158_v44 = vpop.f32.mrb[4].mxu0  ;;  %v5399_v9 = vpop.f32.mrb[12].mxu1 }
 0xc66   : > { %v19424_v7 = vadd.f32 %v5399_v9, %v5158_v44  ;;  %v15954_v60 = vpop.f32.mrb[5].mxu0  ;;  %v16020_v37 = vpop.f32.mrb[13].mxu1 }
 0xc67   : > { %v5161_v18 = vpop.f32.mrb[6].mxu0  ;;  %v5402_v8 = vpop.f32.mrb[14].mxu1 }
 0xc68   : > { %v19426_v10 = vadd.f32 %v5402_v8, %v5161_v18  ;;  %v15955_v46 = vpop.f32.mrb[7].mxu0  ;;  %v16021_v55 = vpop.f32.mrb[15].mxu1 }
 0xc6d   : > { %v5166_v26 = vpop.f32.mrb[12].mxu0  ;;  %v5407_v3 = vpop.f32.mrb[16].mxu1 }
 0xc6e   : > { %v19428_v4 = vadd.f32 %v5407_v3, %v5166_v26  ;;  %v15958_v32 = vpop.f32.mrb[13].mxu0  ;;  %v16024_v16 = vpop.f32.mrb[17].mxu1 }
 0xc6f   : > { %v5169_v29 = vpop.f32.mrb[14].mxu0  ;;  %v5410_v14 = vpop.f32.mrb[18].mxu1 }
 0xc70   : > { %v19430_v59 = vadd.f32 %v5410_v14, %v5169_v29  ;;  %v15959_v33 = vpop.f32.mrb[15].mxu0  ;;  %v16025_v62 = vpop.f32.mrb[19].mxu1 }
 0xc75   : > { %v5174_v61 = vpop.f32.mrb[16].mxu0  ;;  %v5415_v49 = vpop.f32.mrb[20].mxu1 }
 0xc76   : > { %v19432_v45 = vadd.f32 %v5415_v49, %v5174_v61  ;;  %v15962_v24 = vpop.f32.mrb[17].mxu0  ;;  %v16028_v40 = vpop.f32.mrb[21].mxu1 }
 0xc77   : > { %v5177_v12 = vpop.f32.mrb[18].mxu0  ;;  %v5418_v48 = vpop.f32.mrb[22].mxu1 }
 0xc78   : > { %v19434_v6 = vadd.f32 %v5418_v48, %v5177_v12  ;;  %v15963_v52 = vpop.f32.mrb[19].mxu0  ;;  %v16029_v28 = vpop.f32.mrb[23].mxu1 }
 0xc7d   : > { %v5182_v27 = vpop.f32.mrb[20].mxu0  ;;  %v5423_v19 = vpop.f32.mrb[24].mxu1 }
 0xc7e   : > { %v19436_v1 = vadd.f32 %v5423_v19, %v5182_v27  ;;  %v15966_v43 = vpop.f32.mrb[21].mxu0  ;;  %v16032_v20 = vpop.f32.mrb[25].mxu1 }
 0xc7f   : > { %v5185_v15 = vpop.f32.mrb[22].mxu0  ;;  %v5426_v47 = vpop.f32.mrb[26].mxu1 }
 0xc80   : > { %v19438_v58 = vadd.f32 %v5426_v47, %v5185_v15  ;;  %v15967_v51 = vpop.f32.mrb[23].mxu0  ;;  %v16033_v44 = vpop.f32.mrb[27].mxu1 }
 0xc85   : > { %v5190_v9 = vpop.f32.mrb[24].mxu0  ;;  %v5431_v60 = vpop.f32.mrb[28].mxu1 }
 0xc86   : > { %v19440_v37 = vadd.f32 %v5431_v60, %v5190_v9  ;;  %v15970_v18 = vpop.f32.mrb[25].mxu0  ;;  %v16036_v8 = vpop.f32.mrb[29].mxu1 }
 0xc87   : > { %v5193_v46 = vpop.f32.mrb[26].mxu0  ;;  %v5434_v55 = vpop.f32.mrb[30].mxu1 }
 0xc88   : > { %v15971_v26 = vpop.f32.mrb[27].mxu0  ;;  %v16037_v3 = vpop.f32.mrb[31].mxu1 }
 0xc8d   : > { %v5480_v32 = vpop.f32.mrb[28].mxu0 }
 0xc8e   : > { %v16042_v16 = vpop.f32.mrb[29].mxu0 }
 0xc8f   : > { %v5483_v29 = vpop.f32.mrb[30].mxu0 }
 0xc90   : > { %v5534_v14 = vpack.c.bf16 %v5483_v29, %v5480_v32  ;;  %v16043_v33 = vpop.f32.mrb[31].mxu0 }
 0xc92   : > { %16069 = vmatpush3.bf16.msra.mxu1 %v5534_v14 }
 0xc93   : > { %16070 = vmatprep.subr.bf16.mxu1 %v17868_v23 }
 0xc95   : > { %v5488_v62 = vpop.f32.mrb[32].mxu0 }
 0xc96   : > { %v16046_v61 = vpop.f32.mrb[33].mxu0 }
 0xc97   : > { %v5491_v49 = vpop.f32.mrb[34].mxu0  ;;  %v17421_v61 = vld [vmem:[%s22720_s10 + $0xc8] sm:$0xff]  }
 0xc98   : > { %v5535_v24 = vpack.c.bf16 %v5491_v49, %v5488_v62  ;;  %v16047_v40 = vpop.f32.mrb[35].mxu0  ;;  %v17428_v49 = vld [vmem:[%s22721_s11 + $0x20] sm:$0xff]  }
 0xc9a   : > { %16071 = vmatpush3.bf16.msra.mxu1 %v5535_v24 }
 0xc9b   : > { %16072 = vmatprep.subr.bf16.mxu1 %v17868_v23 }
 0xc9d   : > { %v5496_v12 = vpop.f32.mrb[36].mxu0 }
 0xc9e   : > { %v16050_v48 = vpop.f32.mrb[37].mxu0 }
 0xc9f   : > { %v5499_v52 = vpop.f32.mrb[38].mxu0 }
 0xca0   : > { %v5536_v28 = vpack.c.bf16 %v5499_v52, %v5496_v12  ;;  %v16051_v27 = vpop.f32.mrb[39].mxu0 }
 0xca2   : > { %16073 = vmatpush3.bf16.msra.mxu1 %v5536_v28  ;;  %v17422_v28 = vld [vmem:[%s22720_s10 + $0xd0] sm:$0xff]  }
 0xca3   : > { %16074 = vmatprep.subr.bf16.mxu1 %v17868_v23 }
 0xca5   : > { %v5504_v19 = vpop.f32.mrb[40].mxu0 }
 0xca6   : > { %v16054_v43 = vpop.f32.mrb[41].mxu0 }
 0xca7   : > { %v5507_v20 = vpop.f32.mrb[42].mxu0 }
 0xca8   : > { %v5537_v15 = vpack.c.bf16 %v5507_v20, %v5504_v19  ;;  %v16055_v47 = vpop.f32.mrb[43].mxu0 }
 0xca9   : > { %v17423_v47 = vld [vmem:[%s22720_s10 + $0xd8] sm:$0xff]  }
 0xcaa   : > { %16075 = vmatpush3.bf16.msra.mxu1 %v5537_v15 }
 0xcab   : > { %16076 = vmatprep.subr.bf16.mxu1 %v17868_v23 }
 0xcad   : > { %v5512_v51 = vpop.f32.mrb[8].mxu0 }
 0xcae   : > { %v16058_v44 = vpop.f32.mrb[9].mxu0 }
 0xcaf   : > { %v5515_v9 = vpop.f32.mrb[10].mxu0 }
 0xcb0   : > { %v5538_v60 = vpack.c.bf16 %v5515_v9, %v5512_v51  ;;  %v16059_v18 = vpop.f32.mrb[11].mxu0 }
 0xcb2   : > { %16077 = vmatpush3.bf16.msra.mxu1 %v5538_v60 }
 0xcb3   : > { %16078 = vmatprep.subr.bf16.mxu1 %v17868_v23 }
 0xcb5   : > { %v5520_v8 = vpop.f32.mrb[44].mxu0 }
 0xcb6   : > { %v16062_v46 = vpop.f32.mrb[45].mxu0 }
 0xcb7   : > { %v5523_v55 = vpop.f32.mrb[46].mxu0 }
 0xcb8   : > { %v5539_v26 = vpack.c.bf16 %v5523_v55, %v5520_v8  ;;  %v16063_v3 = vpop.f32.mrb[47].mxu0  ;;  %v17424_v8 = vld [vmem:[%s22720_s10 + $0xe0] sm:$0xff]  }
 0xcba   : > { %16079 = vmatpush3.bf16.msra.mxu1 %v5539_v26 }
 0xcbb   : > { %16080 = vmatprep.subr.bf16.mxu1 %v17868_v23 }
 0xcbd   : > { %v5528_v32 = vpop.f32.mrb[48].mxu0 }
 0xcbe   : > { %v5540_v16 = vpack.c.bf16 %v5528_v32, %v5528_v32  ;;  %v16066_v29 = vpop.f32.mrb[49].mxu0 }
 0xcbf   : > { %v5531_v14 = vpop.f32.mrb[50].mxu0 }
 0xcc0   : > { %v16067_v33 = vpop.f32.mrb[51].mxu0  ;;  %v5670_v62 = vsel %vm2596_vm8, %v5540_v16, 0  ;;  %v17425_v16 = vld [vmem:[%s22720_s10 + $0xe8] sm:$0xff]  }
 0xcc1   : > { %16081 = vmatpush3.bf16.msra.mxu1 %v5670_v62 }
 0xcc2   : > { %16230 = vmatprep.subr.bf16.mxu1 %v17868_v23 }
 0xcc4   : > { %16083 = vmatmul.mubr.msk.bf16.vlgmr.msra.gmra.mrb[32].mxu1 %vm5017_vm11, %v17421_v61 }
 0xcc5   : > { %v5876_v24 = vpop.f32.mrb[52].mxu0  ;;  %16086 = vmatprep.mubr.msk.bf16.mxu1 %vm17869_vm7, %v17868_v23  ;;  %16231 = vmatpush3.bf16.msra.mxu1 %v17428_v49  ;;  %v17426_v49 = vld [vmem:[%s22720_s10 + $0xf0] sm:$0xff]  }
 0xcc6   : > { %v16138_v40 = vpop.f32.mrb[53].mxu0  ;;  %16260 = vmatprep.subr.bf16.mxu1 %v17868_v23 }
 0xcc7   : > { %v5879_v12 = vpop.f32.mrb[54].mxu0 }
 0xcc8   : > { %v5930_v48 = vpack.c.bf16 %v5879_v12, %v5876_v24  ;;  %v16139_v52 = vpop.f32.mrb[55].mxu0 }
 0xcca   : > { %16165 = vmatpush3.bf16.msra.mxu0 %v5930_v48 }
 0xccb   : > { %16166 = vmatprep.subr.bf16.mxu0 %v17868_v23 }
 0xccc   : > { %16087 = vmatmul.mubr.msk.bf16.gmra.mrb[36].mxu1 %vm5017_vm11, %v17422_v28  ;;  %v17427_v28 = vld [vmem:[%s22720_s10 + $0xf8] sm:$0xff]  }
 0xccd   : > { %v5884_v27 = vpop.f32.mrb[56].mxu0  ;;  %16090 = vmatprep.mubr.msk.bf16.mxu1 %vm17869_vm7, %v17868_v23 }
 0xcce   : > { %v16142_v19 = vpop.f32.mrb[57].mxu0 }
 0xccf   : > { %v5887_v43 = vpop.f32.mrb[58].mxu0 }
 0xcd0   : > { %v5931_v20 = vpack.c.bf16 %v5887_v43, %v5884_v27  ;;  %v16143_v15 = vpop.f32.mrb[59].mxu0 }
 0xcd2   : > { %16167 = vmatpush3.bf16.msra.mxu0 %v5931_v20 }
 0xcd3   : > { %16168 = vmatprep.subr.bf16.mxu0 %v17868_v23 }
 0xcd4   : > { %16091 = vmatmul.mubr.msk.bf16.gmra.mrb[40].mxu1 %vm5017_vm11, %v17423_v47 }
 0xcd5   : > { %v5892_v51 = vpop.f32.mrb[60].mxu0  ;;  %16094 = vmatprep.mubr.msk.bf16.mxu1 %vm17869_vm7, %v17868_v23 }
 0xcd6   : > { %v16146_v44 = vpop.f32.mrb[61].mxu0 }
 0xcd7   : > { %v5895_v9 = vpop.f32.mrb[62].mxu0  ;;  %v17430_v44 = vld [vmem:[%s22720_s10 + $0x12c] sm:$0xff]  }
 0xcd8   : > { %v5932_v60 = vpack.c.bf16 %v5895_v9, %v5892_v51  ;;  %v16147_v18 = vpop.f32.mrb[63].mxu0  ;;  %v17429_v51 = vld [vmem:[%s22720_s10 + $0x100] sm:$0xff]   ;;  %v17448_v9 = vld [vmem:[%s22721_s11 + $0x28] sm:$0xff]  }
 0xcd9   : > { %v17432_v18 = vld [vmem:[%s22720_s10 + $0x134] sm:$0xff]  }
 0xcda   : > { %16169 = vmatpush3.bf16.msra.mxu0 %v5932_v60  ;;  %v17431_v60 = vld [vmem:[%s22720_s10 + $0x108] sm:$0xff]  }
 0xcdb   : > { %16170 = vmatprep.subr.bf16.mxu0 %v17868_v23 }
 0xcdc   : > { %16095 = vmatmul.mubr.msk.bf16.gmra.mrb[44].mxu1 %vm5017_vm11, %v17424_v8  ;;  %v17433_v8 = vld [vmem:[%s22720_s10 + $0x110] sm:$0xff]  }
 0xcdd   : > { %v5900_v46 = vpop.f32.mrb[64].mxu0  ;;  %16098 = vmatprep.mubr.msk.bf16.mxu1 %vm17869_vm7, %v17868_v23 }
 0xcde   : > { %v16150_v55 = vpop.f32.mrb[65].mxu0 }
 0xcdf   : > { %v5903_v26 = vpop.f32.mrb[66].mxu0  ;;  %v17435_v55 = vld [vmem:[%s22720_s10 + $0x118] sm:$0xff]  }
 0xce0   : > { %v5933_v3 = vpack.c.bf16 %v5903_v26, %v5900_v46  ;;  %v16151_v32 = vpop.f32.mrb[67].mxu0  ;;  %v17434_v46 = vld [vmem:[%s22720_s10 + $0x13c] sm:$0xff]   ;;  %v17436_v26 = vld [vmem:[%s22720_s10 + $0x144] sm:$0xff]  }
 0xce1   : > { %v17438_v32 = vld [vmem:[%s22720_s10 + $0x14c] sm:$0xff]  }
 0xce2   : > { %16171 = vmatpush3.bf16.msra.mxu0 %v5933_v3  ;;  %v17437_v3 = vld [vmem:[%s22720_s10 + $0x120] sm:$0xff]  }
 0xce3   : > { %16172 = vmatprep.subr.bf16.mxu0 %v17868_v23 }
 0xce4   : > { %16099 = vmatmul.mubr.msk.bf16.gmra.mrb[48].mxu1 %vm5017_vm11, %v17425_v16  ;;  %v17439_v16 = vld [vmem:[%s22720_s10 + $0x128] ss:$0 sps:$4 sm:$0x33]  }
 0xce5   : > { %v5908_v29 = vpop.f32.mrb[68].mxu0  ;;  %16102 = vmatprep.mubr.msk.bf16.mxu1 %vm17869_vm7, %v17868_v23 }
 0xce6   : > { %v16154_v14 = vpop.f32.mrb[69].mxu0 }
 0xce7   : > { %v5911_v33 = vpop.f32.mrb[70].mxu0  ;;  %v17441_v14 = vld [vmem:[%s22720_s10 + $0x15c] sm:$0xff]  }
 0xce8   : > { %v5934_v62 = vpack.c.bf16 %v5911_v33, %v5908_v29  ;;  %v16155_v61 = vpop.f32.mrb[71].mxu0  ;;  %v17440_v29 = vld [vmem:[%s22720_s10 + $0x154] sm:$0xff]   ;;  %v17442_v33 = vld [vmem:[%s22720_s10 + $0x164] sm:$0xff]  }
 0xce9   : > { %v17444_v61 = vld [vmem:[%s22720_s10 + $0x174] sm:$0xff]  }
 0xcea   : > { %16173 = vmatpush3.bf16.msra.mxu0 %v5934_v62  ;;  %v17443_v62 = vld [vmem:[%s22720_s10 + $0x16c] sm:$0xff]  }
 0xceb   : > { %16174 = vmatprep.subr.bf16.mxu0 %v17868_v23 }
 0xcec   : > { %16103 = vmatmul.mubr.msk.bf16.gmra.mrb[52].mxu1 %vm5017_vm11, %v17426_v49  ;;  %v17445_v49 = vld [vmem:[%s22720_s10 + $0x17c] sm:$0xff]  }
 0xced   : > { %v5916_v24 = vpop.f32.mrb[72].mxu0  ;;  %16106 = vmatprep.mubr.msk.bf16.mxu1 %vm17869_vm7, %v17868_v23 }
 0xcee   : > { %v16158_v40 = vpop.f32.mrb[73].mxu0 }
 0xcef   : > { %v5919_v12 = vpop.f32.mrb[74].mxu0  ;;  %v17447_v40 = vld [vmem:[%s22720_s10 + $0x18c] ss:$0 sps:$4 sm:$0x33]  }
 0xcf0   : > { %v5935_v48 = vpack.c.bf16 %v5919_v12, %v5916_v24  ;;  %v16159_v52 = vpop.f32.mrb[75].mxu0  ;;  %v17446_v24 = vld [vmem:[%s22720_s10 + $0x184] sm:$0xff]  }
 0xcf2   : > { %16175 = vmatpush3.bf16.msra.mxu0 %v5935_v48 }
 0xcf3   : > { %16176 = vmatprep.subr.bf16.mxu0 %v17868_v23 }
 0xcf4   : > { %16107 = vmatmul.mubr.msk.bf16.gmra.mrb[56].mxu1 %vm5017_vm11, %v17427_v28 }
 0xcf5   : > { %v5924_v27 = vpop.f32.mrb[76].mxu0  ;;  %16110 = vmatprep.mubr.msk.bf16.mxu1 %vm17869_vm7, %v17868_v23 }
 0xcf6   : > { %v5936_v19 = vpack.c.bf16 %v5924_v27, %v5924_v27  ;;  %v16162_v43 = vpop.f32.mrb[77].mxu0 }
 0xcf7   : > { %v5927_v20 = vpop.f32.mrb[78].mxu0 }
 0xcf8   : > { %v16163_v15 = vpop.f32.mrb[79].mxu0  ;;  %v6066_v47 = vsel %vm2596_vm8, %v5936_v19, 0 }
 0xcf9   : > { %16177 = vmatpush3.bf16.msra.mxu0 %v6066_v47 }
 0xcfa   : > { %16326 = vmatprep.subr.bf16.mxu0 %v17868_v23 }
 0xcfc   : > { %16111 = vmatmul.mubr.msk.bf16.gmra.mrb[60].mxu1 %vm5017_vm11, %v17429_v51  ;;  %16179 = vmatmul.mubr.msk.bf16.vlgmr.msra.gmra.mrb[80].mxu0 %vm5017_vm11, %v17430_v44 }
 0xcfd   : > { %16114 = vmatprep.mubr.msk.bf16.mxu1 %vm17869_vm7, %v17868_v23  ;;  %16182 = vmatprep.mubr.msk.bf16.mxu0 %vm17869_vm7, %v17868_v23 }
 0xcfe   : > { %16327 = vmatpush3.bf16.msra.mxu0 %v17448_v9 }
 0xcff   : > { %16356 = vmatprep.subr.bf16.mxu0 %v17868_v23 }
 0xd04   : > { %16115 = vmatmul.mubr.msk.bf16.gmra.mrb[64].mxu1 %vm5017_vm11, %v17431_v60  ;;  %16183 = vmatmul.mubr.msk.bf16.gmra.mrb[84].mxu0 %vm5017_vm11, %v17432_v18 }
 0xd05   : > { %16118 = vmatprep.mubr.msk.bf16.mxu1 %vm17869_vm7, %v17868_v23  ;;  %16186 = vmatprep.mubr.msk.bf16.mxu0 %vm17869_vm7, %v17868_v23 }
 0xd0c   : > { %16119 = vmatmul.mubr.msk.bf16.gmra.mrb[68].mxu1 %vm5017_vm11, %v17433_v8  ;;  %16187 = vmatmul.mubr.msk.bf16.gmra.mrb[88].mxu0 %vm5017_vm11, %v17434_v46 }
 0xd0d   : > { %16122 = vmatprep.mubr.msk.bf16.mxu1 %vm17869_vm7, %v17868_v23  ;;  %16190 = vmatprep.mubr.msk.bf16.mxu0 %vm17869_vm7, %v17868_v23 }
 0xd14   : > { %16123 = vmatmul.mubr.msk.bf16.gmra.mrb[72].mxu1 %vm5017_vm11, %v17435_v55  ;;  %16191 = vmatmul.mubr.msk.bf16.gmra.mrb[92].mxu0 %vm5017_vm11, %v17436_v26 }
 0xd15   : > { %16126 = vmatprep.mubr.msk.bf16.mxu1 %vm17869_vm7, %v17868_v23  ;;  %16194 = vmatprep.mubr.msk.bf16.mxu0 %vm17869_vm7, %v17868_v23 }
 0xd1c   : > { %16127 = vmatmul.mubr.msk.bf16.gmra.mrb[76].mxu1 %vm5017_vm11, %v17437_v3  ;;  %16195 = vmatmul.mubr.msk.bf16.gmra.mrb[96].mxu0 %vm5017_vm11, %v17438_v32 }
 0xd1d   : > { %16130 = vmatprep.mubr.msk.bf16.mxu1 %vm17869_vm7, %v17868_v23  ;;  %16198 = vmatprep.mubr.msk.bf16.mxu0 %vm17869_vm7, %v17868_v23 }
 0xd24   : > { %16131 = vmatmul.mubr.msk.bf16.gmra.mrb[80].mxu1 %vm5017_vm11, %v17439_v16  ;;  %16199 = vmatmul.mubr.msk.bf16.gmra.mrb[100].mxu0 %vm5017_vm11, %v17440_v29 }
 0xd25   : > { %16202 = vmatprep.mubr.msk.bf16.mxu0 %vm17869_vm7, %v17868_v23  ;;  %16232 = vmatprep.mubr.msk.bf16.mxu1 %vm17869_vm7, %v17868_v23 }
 0xd2c   : > { %16203 = vmatmul.mubr.msk.bf16.gmra.mrb[104].mxu0 %vm5017_vm11, %v17441_v14  ;;  %16233 = vmatmul.mubr.msk.bf16.vlgmr.msra.gmra.mrb[84].mxu1 %vm4682_vm10, %v19064_v39 }
 0xd2d   : > { %16206 = vmatprep.mubr.msk.bf16.mxu0 %vm17869_vm7, %v17868_v23  ;;  %16236 = vmatprep.mubr.msk.bf16.mxu1 %vm17869_vm7, %v17868_v23 }
 0xd34   : > { %16207 = vmatmul.mubr.msk.bf16.gmra.mrb[108].mxu0 %vm5017_vm11, %v17442_v33  ;;  %16237 = vmatmul.mubr.msk.bf16.gmra.mrb[88].mxu1 %vm4682_vm10, %v19078_v13 }
 0xd35   : > { %16210 = vmatprep.mubr.msk.bf16.mxu0 %vm17869_vm7, %v17868_v23  ;;  %16240 = vmatprep.mubr.msk.bf16.mxu1 %vm17869_vm7, %v17868_v23 }
 0xd3c   : > { %16211 = vmatmul.mubr.msk.bf16.gmra.mrb[112].mxu0 %vm5017_vm11, %v17443_v62  ;;  %16241 = vmatmul.mubr.msk.bf16.gmra.mrb[92].mxu1 %vm4682_vm10, %v19092_v54 }
 0xd3d   : > { %16214 = vmatprep.mubr.msk.bf16.mxu0 %vm17869_vm7, %v17868_v23  ;;  %16244 = vmatprep.mubr.msk.bf16.mxu1 %vm17869_vm7, %v17868_v23 }
 0xd44   : > { %16215 = vmatmul.mubr.msk.bf16.gmra.mrb[116].mxu0 %vm5017_vm11, %v17444_v61  ;;  %16245 = vmatmul.mubr.msk.bf16.gmra.mrb[96].mxu1 %vm4682_vm10, %v19106_v42 }
 0xd45   : > { %16218 = vmatprep.mubr.msk.bf16.mxu0 %vm17869_vm7, %v17868_v23  ;;  %16248 = vmatprep.mubr.msk.bf16.mxu1 %vm17869_vm7, %v17868_v23 }
 0xd4c   : > { %16219 = vmatmul.mubr.msk.bf16.gmra.mrb[120].mxu0 %vm5017_vm11, %v17445_v49  ;;  %16249 = vmatmul.mubr.msk.bf16.gmra.mrb[100].mxu1 %vm4682_vm10, %v19120_v21 }
 0xd4d   : > { %16222 = vmatprep.mubr.msk.bf16.mxu0 %vm17869_vm7, %v17868_v23  ;;  %16252 = vmatprep.mubr.msk.bf16.mxu1 %vm17869_vm7, %v17868_v23 }
 0xd54   : > { %16223 = vmatmul.mubr.msk.bf16.gmra.mrb[124].mxu0 %vm5017_vm11, %v17446_v24  ;;  %16253 = vmatmul.mubr.msk.bf16.gmra.mrb[104].mxu1 %vm4682_vm10, %v19134_v38 }
 0xd55   : > { %16226 = vmatprep.mubr.msk.bf16.mxu0 %vm17869_vm7, %v17868_v23  ;;  %16256 = vmatprep.mubr.msk.bf16.mxu1 %vm17869_vm7, %v17868_v23 }
 0xd5c   : > { %16227 = vmatmul.mubr.msk.bf16.gmra.mrb[128].mxu0 %vm5017_vm11, %v17447_v40  ;;  %16257 = vmatmul.mubr.msk.bf16.gmra.mrb[108].mxu1 %vm4682_vm10, %v19146_v5 }
 0xd5d   : > { %16328 = vmatprep.mubr.msk.bf16.mxu0 %vm17869_vm7, %v17868_v23  ;;  %16274 = vmatprep.mubr.msk.bf16.mxu1 %vm17869_vm7, %v17868_v23 }
 0xd64   : > { %16329 = vmatmul.mubr.msk.bf16.vlgmr.msra.gmra.mrb[132].mxu0 %vm4682_vm10, %v19064_v39 }
 0xd65   : > { %16332 = vmatprep.mubr.msk.bf16.mxu0 %vm17869_vm7, %v17868_v23 }
 0xd6c   : > { %16333 = vmatmul.mubr.msk.bf16.gmra.mrb[136].mxu0 %vm4682_vm10, %v19078_v13 }
 0xd6d   : > { %16336 = vmatprep.mubr.msk.bf16.mxu0 %vm17869_vm7, %v17868_v23 }
 0xd74   : > { %16337 = vmatmul.mubr.msk.bf16.gmra.mrb[140].mxu0 %vm4682_vm10, %v19092_v54 }
 0xd75   : > { %16340 = vmatprep.mubr.msk.bf16.mxu0 %vm17869_vm7, %v17868_v23 }
 0xd7c   : > { %16341 = vmatmul.mubr.msk.bf16.gmra.mrb[144].mxu0 %vm4682_vm10, %v19106_v42 }
 0xd7d   : > { %16344 = vmatprep.mubr.msk.bf16.mxu0 %vm17869_vm7, %v17868_v23 }
 0xd84   : > { %16345 = vmatmul.mubr.msk.bf16.gmra.mrb[148].mxu0 %vm4682_vm10, %v19120_v21 }
 0xd85   : > { %16348 = vmatprep.mubr.msk.bf16.mxu0 %vm17869_vm7, %v17868_v23 }
 0xd8c   : > { %16349 = vmatmul.mubr.msk.bf16.gmra.mrb[152].mxu0 %vm4682_vm10, %v19134_v38 }
 0xd8d   : > { %16352 = vmatprep.mubr.msk.bf16.mxu0 %vm17869_vm7, %v17868_v23 }
 0xd94   : > { %16353 = vmatmul.mubr.msk.bf16.gmra.mrb[156].mxu0 %vm4682_vm10, %v19146_v5 }
 0xd95   : > { %16370 = vmatprep.mubr.msk.bf16.mxu0 %vm17869_vm7, %v17868_v23 }
 0xd97   : > { %v5706_v12 = vpop.f32.mrb[32].mxu1 }
 0xd98   : > { %v5808_v48 = vadd.f32 %v5706_v12, %v19392_v35  ;;  %v16084_v52 = vpop.f32.mrb[33].mxu1 }
 0xd99   : > { %v5709_v28 = vpop.f32.mrb[34].mxu1 }
 0xd9a   : > { %v5809_v27 = vadd.f32 %v5709_v28, %v19394_v22  ;;  %v16085_v19 = vpop.f32.mrb[35].mxu1 }
 0xd9f   : > { %v5714_v43 = vpop.f32.mrb[36].mxu1 }
 0xda0   : > { %v5810_v20 = vadd.f32 %v5714_v43, %v19396_v50  ;;  %v16088_v15 = vpop.f32.mrb[37].mxu1 }
 0xda1   : > { %v5717_v47 = vpop.f32.mrb[38].mxu1 }
 0xda2   : > { %v5811_v51 = vadd.f32 %v5717_v47, %v19398_v34  ;;  %v16089_v44 = vpop.f32.mrb[39].mxu1 }
 0xda7   : > { %v5722_v9 = vpop.f32.mrb[40].mxu1 }
 0xda8   : > { %v5812_v60 = vadd.f32 %v5722_v9, %v19400_v17  ;;  %v16092_v18 = vpop.f32.mrb[41].mxu1 }
 0xda9   : > { %v5725_v8 = vpop.f32.mrb[42].mxu1 }
 0xdaa   : > { %v5813_v35 = vadd.f32 %v5725_v8, %v19402_v36  ;;  %v16093_v46 = vpop.f32.mrb[43].mxu1 }
 0xdaf   : > { %v5730_v55 = vpop.f32.mrb[44].mxu1 }
 0xdb0   : > { %v5814_v22 = vadd.f32 %v5730_v55, %v19404_v31  ;;  %v16096_v26 = vpop.f32.mrb[45].mxu1 }
 0xdb1   : > { %v5733_v3 = vpop.f32.mrb[46].mxu1 }
 0xdb2   : > { %v19686_v50 = vadd.f32 %v5733_v3, %v19406_v41  ;;  %v16097_v32 = vpop.f32.mrb[47].mxu1 }
 0xdb7   : > { %v5738_v16 = vpop.f32.mrb[48].mxu1 }
 0xdb8   : > { %v19689_v34 = vadd.f32 %v5738_v16, %v19408_v30  ;;  %v16100_v29 = vpop.f32.mrb[49].mxu1 }
 0xdb9   : > { %v5741_v17 = vpop.f32.mrb[50].mxu1 }
 0xdba   : > { %v19692_v14 = vadd.f32 %v5741_v17, %v19410_v57  ;;  %v16101_v36 = vpop.f32.mrb[51].mxu1 }
 0xdbf   : > { %v5746_v33 = vpop.f32.mrb[52].mxu1 }
 0xdc0   : > { %v19695_v62 = vadd.f32 %v5746_v33, %v19412_v53  ;;  %v16104_v31 = vpop.f32.mrb[53].mxu1 }
 0xdc1   : > { %v5749_v61 = vpop.f32.mrb[54].mxu1 }
 0xdc2   : > { %v19698_v41 = vadd.f32 %v5749_v61, %v19414_v56  ;;  %v16105_v49 = vpop.f32.mrb[55].mxu1 }
 0xdc7   : > { %v5754_v24 = vpop.f32.mrb[56].mxu1 }
 0xdc8   : > { %v19701_v30 = vadd.f32 %v5754_v24, %v19416_v63  ;;  %v16108_v40 = vpop.f32.mrb[57].mxu1 }
 0xdc9   : > { %v5757_v12 = vpop.f32.mrb[58].mxu1 }
 0xdca   : > { %v19704_v57 = vadd.f32 %v5757_v12, %v19418_v2  ;;  %v16109_v52 = vpop.f32.mrb[59].mxu1 }
 0xdcf   : > { %v5762_v28 = vpop.f32.mrb[60].mxu1  ;;  %v6102_v19 = vpop.f32.mrb[80].mxu0 }
 0xdd0   : > { %v19707_v53 = vadd.f32 %v5762_v28, %v19420_v11  ;;  %v19709_v43 = vadd.f32 %v6102_v19, %v5808_v48  ;;  %v16112_v56 = vpop.f32.mrb[61].mxu1  ;;  %v16180_v15 = vpop.f32.mrb[81].mxu0 }
 0xdd1   : > { %v5765_v47 = vpop.f32.mrb[62].mxu1  ;;  %v6105_v44 = vpop.f32.mrb[82].mxu0 }
 0xdd2   : > { %v19712_v63 = vadd.f32 %v5765_v47, %v19422_v25  ;;  %v19714_v9 = vadd.f32 %v6105_v44, %v5809_v27  ;;  %v16113_v18 = vpop.f32.mrb[63].mxu1  ;;  %v16181_v2 = vpop.f32.mrb[83].mxu0 }
 0xdd7   : > { %v5770_v8 = vpop.f32.mrb[64].mxu1  ;;  %v6110_v46 = vpop.f32.mrb[84].mxu0 }
 0xdd8   : > { %v19717_v55 = vadd.f32 %v5770_v8, %v19424_v7  ;;  %v19719_v11 = vadd.f32 %v6110_v46, %v5810_v20  ;;  %v16116_v48 = vpop.f32.mrb[65].mxu1  ;;  %v16184_v26 = vpop.f32.mrb[85].mxu0 }
 0xdd9   : > { %v5773_v3 = vpop.f32.mrb[66].mxu1  ;;  %v6113_v32 = vpop.f32.mrb[86].mxu0 }
 0xdda   : > { %v19722_v16 = vadd.f32 %v5773_v3, %v19426_v10  ;;  %v19724_v25 = vadd.f32 %v6113_v32, %v5811_v51  ;;  %v16117_v27 = vpop.f32.mrb[67].mxu1  ;;  %v16185_v29 = vpop.f32.mrb[87].mxu0 }
 0xddf   : > { %v5778_v17 = vpop.f32.mrb[68].mxu1  ;;  %v6118_v36 = vpop.f32.mrb[88].mxu0 }
 0xde0   : > { %v19727_v33 = vadd.f32 %v5778_v17, %v19428_v4  ;;  %v19729_v7 = vadd.f32 %v6118_v36, %v5812_v60  ;;  %v16120_v20 = vpop.f32.mrb[69].mxu1  ;;  %v16188_v31 = vpop.f32.mrb[89].mxu0 }
 0xde1   : > { %v5781_v61 = vpop.f32.mrb[70].mxu1  ;;  %v6121_v49 = vpop.f32.mrb[90].mxu0 }
 0xde2   : > { %v19732_v24 = vadd.f32 %v5781_v61, %v19430_v59  ;;  %v19734_v10 = vadd.f32 %v6121_v49, %v5813_v35  ;;  %v16121_v51 = vpop.f32.mrb[71].mxu1  ;;  %v16189_v40 = vpop.f32.mrb[91].mxu0 }
 0xde7   : > { %v5786_v12 = vpop.f32.mrb[72].mxu1  ;;  %v6126_v52 = vpop.f32.mrb[92].mxu0 }
 0xde8   : > { %v19737_v28 = vadd.f32 %v5786_v12, %v19432_v45  ;;  %v19739_v4 = vadd.f32 %v6126_v52, %v5814_v22  ;;  %v16124_v60 = vpop.f32.mrb[73].mxu1  ;;  %v16192_v19 = vpop.f32.mrb[93].mxu0 }
 0xde9   : > { %v5789_v56 = vpop.f32.mrb[74].mxu1  ;;  %v6129_v15 = vpop.f32.mrb[94].mxu0 }
 0xdea   : > { %v19742_v47 = vadd.f32 %v5789_v56, %v19434_v6  ;;  %v19745_v59 = vadd.f32 %v6129_v15, %v19686_v50  ;;  %v16125_v35 = vpop.f32.mrb[75].mxu1  ;;  %v16193_v44 = vpop.f32.mrb[95].mxu0 }
 0xdef   : > { %v5794_v18 = vpop.f32.mrb[76].mxu1  ;;  %v6134_v2 = vpop.f32.mrb[96].mxu0 }
 0xdf0   : > { %v19748_v8 = vadd.f32 %v5794_v18, %v19436_v1  ;;  %v19751_v45 = vadd.f32 %v6134_v2, %v19689_v34  ;;  %v16128_v22 = vpop.f32.mrb[77].mxu1  ;;  %v16196_v46 = vpop.f32.mrb[97].mxu0 }
 0xdf1   : > { %v5797_v48 = vpop.f32.mrb[78].mxu1  ;;  %v6137_v26 = vpop.f32.mrb[98].mxu0 }
 0xdf2   : > { %v19754_v6 = vadd.f32 %v5797_v48, %v19438_v58  ;;  %v19757_v50 = vadd.f32 %v6137_v26, %v19692_v14  ;;  %v16129_v3 = vpop.f32.mrb[79].mxu1  ;;  %v16197_v32 = vpop.f32.mrb[99].mxu0 }
 0xdf7   : > { %v5802_v27 = vpop.f32.mrb[80].mxu1  ;;  %v6142_v29 = vpop.f32.mrb[100].mxu0 }
 0xdf8   : > { %v19760_v1 = vadd.f32 %v5802_v27, %v19440_v37  ;;  %v19763_v34 = vadd.f32 %v6142_v29, %v19695_v62  ;;  %v16200_v17 = vpop.f32.mrb[101].mxu0  ;;  %v16132_v36 = vpop.f32.mrb[81].mxu1 }
 0xdf9   : > { %v6145_v20 = vpop.f32.mrb[102].mxu0  ;;  %v5805_v31 = vpop.f32.mrb[82].mxu1 }
 0xdfa   : > { %v19766_v58 = vadd.f32 %v6145_v20, %v19698_v41  ;;  %v16133_v61 = vpop.f32.mrb[83].mxu1  ;;  %v16201_v14 = vpop.f32.mrb[103].mxu0 }
 0xdff   : > { %v6150_v49 = vpop.f32.mrb[104].mxu0  ;;  %v6272_v51 = vpop.f32.mrb[84].mxu1 }
 0xe00   : > { %v19769_v40 = vadd.f32 %v6150_v49, %v19701_v30  ;;  %v16204_v12 = vpop.f32.mrb[105].mxu0  ;;  %v16234_v37 = vpop.f32.mrb[85].mxu1 }
 0xe01   : > { %v6153_v52 = vpop.f32.mrb[106].mxu0  ;;  %v6275_v60 = vpop.f32.mrb[86].mxu1 }
 0xe02   : > { %v19772_v62 = vadd.f32 %v6153_v52, %v19704_v57  ;;  %v6326_v19 = vpack.c.bf16 %v6275_v60, %v6272_v51  ;;  %v16235_v56 = vpop.f32.mrb[87].mxu1  ;;  %v16205_v15 = vpop.f32.mrb[107].mxu0 }
 0xe04   : > { %16261 = vmatpush3.bf16.msra.mxu1 %v6326_v19 }
 0xe05   : > { %16262 = vmatprep.subr.bf16.mxu1 %v17868_v23 }
 0xe07   : > { %v6158_v41 = vpop.f32.mrb[108].mxu0  ;;  %v6280_v35 = vpop.f32.mrb[88].mxu1 }
 0xe08   : > { %v19776_v44 = vadd.f32 %v6158_v41, %v19707_v53  ;;  %v16208_v30 = vpop.f32.mrb[109].mxu0  ;;  %v16238_v18 = vpop.f32.mrb[89].mxu1 }
 0xe09   : > { %v6161_v2 = vpop.f32.mrb[110].mxu0  ;;  %v6283_v22 = vpop.f32.mrb[90].mxu1 }
 0xe0a   : > { %v19779_v46 = vadd.f32 %v6161_v2, %v19712_v63  ;;  %v6327_v57 = vpack.c.bf16 %v6283_v22, %v6280_v35  ;;  %v16239_v48 = vpop.f32.mrb[91].mxu1  ;;  %v16209_v26 = vpop.f32.mrb[111].mxu0 }
 0xe0c   : > { %16263 = vmatpush3.bf16.msra.mxu1 %v6327_v57 }
 0xe0d   : > { %16264 = vmatprep.subr.bf16.mxu1 %v17868_v23 }
 0xe0f   : > { %v6166_v3 = vpop.f32.mrb[112].mxu0  ;;  %v6288_v32 = vpop.f32.mrb[92].mxu1 }
 0xe10   : > { %v19783_v27 = vadd.f32 %v6166_v3, %v19717_v55  ;;  %v16212_v53 = vpop.f32.mrb[113].mxu0  ;;  %v16242_v29 = vpop.f32.mrb[93].mxu1 }
 0xe11   : > { %v6169_v17 = vpop.f32.mrb[114].mxu0  ;;  %v6291_v36 = vpop.f32.mrb[94].mxu1 }
 0xe12   : > { %v19786_v20 = vadd.f32 %v6169_v17, %v19722_v16  ;;  %v6328_v63 = vpack.c.bf16 %v6291_v36, %v6288_v32  ;;  %v16243_v31 = vpop.f32.mrb[95].mxu1  ;;  %v16213_v61 = vpop.f32.mrb[115].mxu0 }
 0xe14   : > { %16265 = vmatpush3.bf16.msra.mxu1 %v6328_v63 }
 0xe15   : > { %16266 = vmatprep.subr.bf16.mxu1 %v17868_v23 }
 0xe17   : > { %v6174_v14 = vpop.f32.mrb[116].mxu0  ;;  %v6296_v49 = vpop.f32.mrb[96].mxu1 }
 0xe18   : > { %v19790_v51 = vadd.f32 %v6174_v14, %v19727_v33  ;;  %v16216_v55 = vpop.f32.mrb[117].mxu0  ;;  %v16246_v12 = vpop.f32.mrb[97].mxu1 }
 0xe19   : > { %v6177_v37 = vpop.f32.mrb[118].mxu0  ;;  %v6299_v52 = vpop.f32.mrb[98].mxu1 }
 0xe1a   : > { %v19793_v60 = vadd.f32 %v6177_v37, %v19732_v24  ;;  %v6329_v16 = vpack.c.bf16 %v6299_v52, %v6296_v49  ;;  %v16247_v19 = vpop.f32.mrb[99].mxu1  ;;  %v16217_v56 = vpop.f32.mrb[119].mxu0 }
 0xe1b   : > { %v17449_v56 = vld [vmem:[%s22720_s10 + $0x190] sm:$0xff]  }
 0xe1c   : > { %16267 = vmatpush3.bf16.msra.mxu1 %v6329_v16 }
 0xe1d   : > { %16268 = vmatprep.subr.bf16.mxu1 %v17868_v23 }
 0xe1f   : > { %v6182_v15 = vpop.f32.mrb[120].mxu0  ;;  %v6304_v41 = vpop.f32.mrb[100].mxu1 }
 0xe20   : > { %v19797_v35 = vadd.f32 %v6182_v15, %v19737_v28  ;;  %v16220_v33 = vpop.f32.mrb[121].mxu0  ;;  %v16250_v30 = vpop.f32.mrb[101].mxu1  ;;  %v17456_v15 = vld [vmem:[%s22721_s11 + $0x30] sm:$0xff]  }
 0xe21   : > { %v6185_v18 = vpop.f32.mrb[122].mxu0  ;;  %v6307_v2 = vpop.f32.mrb[102].mxu1 }
 0xe22   : > { %v19800_v22 = vadd.f32 %v6185_v18, %v19742_v47  ;;  %v6330_v24 = vpack.c.bf16 %v6307_v2, %v6304_v41  ;;  %v16251_v57 = vpop.f32.mrb[103].mxu1  ;;  %v16221_v48 = vpop.f32.mrb[123].mxu0  ;;  %v17450_v2 = vld [vmem:[%s22720_s10 + $0x198] sm:$0xff]  }
 0xe24   : > { %16269 = vmatpush3.bf16.msra.mxu1 %v6330_v24 }
 0xe25   : > { %16270 = vmatprep.subr.bf16.mxu1 %v17868_v23 }
 0xe27   : > { %v6190_v26 = vpop.f32.mrb[124].mxu0  ;;  %v6312_v3 = vpop.f32.mrb[104].mxu1 }
 0xe28   : > { %v19804_v32 = vadd.f32 %v6190_v26, %v19748_v8  ;;  %v16224_v28 = vpop.f32.mrb[125].mxu0  ;;  %v16254_v53 = vpop.f32.mrb[105].mxu1 }
 0xe29   : > { %v6193_v29 = vpop.f32.mrb[126].mxu0  ;;  %v6315_v17 = vpop.f32.mrb[106].mxu1  ;;  %v17451_v28 = vld [vmem:[%s22720_s10 + $0x1a0] sm:$0xff]  }
 0xe2a   : > { %v19807_v36 = vadd.f32 %v6193_v29, %v19754_v6  ;;  %v6331_v47 = vpack.c.bf16 %v6315_v17, %v6312_v3  ;;  %v16255_v63 = vpop.f32.mrb[107].mxu1  ;;  %v16225_v31 = vpop.f32.mrb[127].mxu0 }
 0xe2b   : > { %v17452_v31 = vld [vmem:[%s22720_s10 + $0x1a8] sm:$0xff]  }
 0xe2c   : > { %16271 = vmatpush3.bf16.msra.mxu1 %v6331_v47 }
 0xe2d   : > { %16272 = vmatprep.subr.bf16.mxu1 %v17868_v23 }
 0xe2f   : > { %v6198_v61 = vpop.f32.mrb[128].mxu0  ;;  %v6320_v14 = vpop.f32.mrb[108].mxu1 }
 0xe30   : > { %v19811_v49 = vadd.f32 %v6198_v61, %v19760_v1  ;;  %v6332_v8 = vpack.c.bf16 %v6320_v14, %v6320_v14  ;;  %v16258_v55 = vpop.f32.mrb[109].mxu1  ;;  %v16228_v12 = vpop.f32.mrb[129].mxu0 }
 0xe31   : > { %v6323_v37 = vpop.f32.mrb[110].mxu1  ;;  %v6201_v52 = vpop.f32.mrb[130].mxu0 }
 0xe32   : > { %v16259_v16 = vpop.f32.mrb[111].mxu1  ;;  %v6462_v6 = vsel %vm2596_vm8, %v6332_v8, 0  ;;  %v16229_v19 = vpop.f32.mrb[131].mxu0  ;;  %v17453_v37 = vld [vmem:[%s22720_s10 + $0x1b0] sm:$0xff]  }
 0xe33   : > { %16273 = vmatpush3.bf16.msra.mxu1 %v6462_v6 }
 0xe34   : > { %16422 = vmatprep.subr.bf16.mxu1 %v17868_v23 }
 0xe36   : > { %16275 = vmatmul.mubr.msk.bf16.vlgmr.msra.gmra.mrb[112].mxu1 %vm5017_vm11, %v17449_v56 }
 0xe37   : > { %v6668_v1 = vpop.f32.mrb[132].mxu0  ;;  %16278 = vmatprep.mubr.msk.bf16.mxu1 %vm17869_vm7, %v17868_v23  ;;  %16423 = vmatpush3.bf16.msra.mxu1 %v17456_v15  ;;  %v17454_v15 = vld [vmem:[%s22720_s10 + $0x1b8] sm:$0xff]  }
 0xe38   : > { %v16330_v41 = vpop.f32.mrb[133].mxu0  ;;  %16452 = vmatprep.subr.bf16.mxu1 %v17868_v23 }
 0xe39   : > { %v6671_v33 = vpop.f32.mrb[134].mxu0 }
 0xe3a   : > { %v6722_v30 = vpack.c.bf16 %v6671_v33, %v6668_v1  ;;  %v16331_v18 = vpop.f32.mrb[135].mxu0 }
 0xe3c   : > { %16357 = vmatpush3.bf16.msra.mxu0 %v6722_v30 }
 0xe3d   : > { %16358 = vmatprep.subr.bf16.mxu0 %v17868_v23 }
 0xe3e   : > { %16279 = vmatmul.mubr.msk.bf16.gmra.mrb[116].mxu1 %vm5017_vm11, %v17450_v2  ;;  %v17455_v2 = vld [vmem:[%s22720_s10 + $0x1c0] sm:$0xff]  }
 0xe3f   : > { %v6676_v24 = vpop.f32.mrb[136].mxu0  ;;  %16282 = vmatprep.mubr.msk.bf16.mxu1 %vm17869_vm7, %v17868_v23 }
 0xe40   : > { %v16334_v57 = vpop.f32.mrb[137].mxu0 }
 0xe41   : > { %v6679_v48 = vpop.f32.mrb[138].mxu0 }
 0xe42   : > { %v6723_v26 = vpack.c.bf16 %v6679_v48, %v6676_v24  ;;  %v16335_v3 = vpop.f32.mrb[139].mxu0 }
 0xe44   : > { %16359 = vmatpush3.bf16.msra.mxu0 %v6723_v26 }
 0xe45   : > { %16360 = vmatprep.subr.bf16.mxu0 %v17868_v23 }
 0xe46   : > { %16283 = vmatmul.mubr.msk.bf16.gmra.mrb[120].mxu1 %vm5017_vm11, %v17451_v28 }
 0xe47   : > { %v6684_v53 = vpop.f32.mrb[140].mxu0  ;;  %16286 = vmatprep.mubr.msk.bf16.mxu1 %vm17869_vm7, %v17868_v23 }
 0xe48   : > { %v16338_v29 = vpop.f32.mrb[141].mxu0 }
 0xe49   : > { %v6687_v17 = vpop.f32.mrb[142].mxu0  ;;  %v17458_v29 = vld [vmem:[%s22720_s10 + $0x1f4] sm:$0xff]  }
 0xe4a   : > { %v6724_v47 = vpack.c.bf16 %v6687_v17, %v6684_v53  ;;  %v16339_v63 = vpop.f32.mrb[143].mxu0  ;;  %v17457_v53 = vld [vmem:[%s22720_s10 + $0x1c8] sm:$0xff]   ;;  %v17476_v17 = vld [vmem:[%s22721_s11 + $0x38] sm:$0xff]  }
 0xe4b   : > { %v17460_v63 = vld [vmem:[%s22720_s10 + $0x1fc] sm:$0xff]  }
 0xe4c   : > { %16361 = vmatpush3.bf16.msra.mxu0 %v6724_v47  ;;  %v17459_v47 = vld [vmem:[%s22720_s10 + $0x1d0] sm:$0xff]  }
 0xe4d   : > { %16362 = vmatprep.subr.bf16.mxu0 %v17868_v23 }
 0xe4e   : > { %16287 = vmatmul.mubr.msk.bf16.gmra.mrb[124].mxu1 %vm5017_vm11, %v17452_v31  ;;  %v17461_v31 = vld [vmem:[%s22720_s10 + $0x1d8] sm:$0xff]  }
 0xe4f   : > { %v6692_v61 = vpop.f32.mrb[144].mxu0  ;;  %16290 = vmatprep.mubr.msk.bf16.mxu1 %vm17869_vm7, %v17868_v23 }
 0xe50   : > { %v16342_v14 = vpop.f32.mrb[145].mxu0 }
 0xe51   : > { %v6695_v8 = vpop.f32.mrb[146].mxu0  ;;  %v17463_v14 = vld [vmem:[%s22720_s10 + $0x1e0] sm:$0xff]  }
 0xe52   : > { %v6725_v55 = vpack.c.bf16 %v6695_v8, %v6692_v61  ;;  %v16343_v12 = vpop.f32.mrb[147].mxu0  ;;  %v17462_v61 = vld [vmem:[%s22720_s10 + $0x204] sm:$0xff]   ;;  %v17464_v8 = vld [vmem:[%s22720_s10 + $0x20c] sm:$0xff]  }
 0xe53   : > { %v17466_v12 = vld [vmem:[%s22720_s10 + $0x214] sm:$0xff]  }
 0xe54   : > { %16363 = vmatpush3.bf16.msra.mxu0 %v6725_v55  ;;  %v17465_v55 = vld [vmem:[%s22720_s10 + $0x1e8] sm:$0xff]  }
 0xe55   : > { %16364 = vmatprep.subr.bf16.mxu0 %v17868_v23 }
 0xe56   : > { %16291 = vmatmul.mubr.msk.bf16.gmra.mrb[128].mxu1 %vm5017_vm11, %v17453_v37  ;;  %v17467_v37 = vld [vmem:[%s22720_s10 + $0x1f0] ss:$0 sps:$4 sm:$0x33]  }
 0xe57   : > { %v6700_v52 = vpop.f32.mrb[148].mxu0  ;;  %16294 = vmatprep.mubr.msk.bf16.mxu1 %vm17869_vm7, %v17868_v23 }
 0xe58   : > { %v16346_v16 = vpop.f32.mrb[149].mxu0 }
 0xe59   : > { %v6703_v6 = vpop.f32.mrb[150].mxu0  ;;  %v17469_v16 = vld [vmem:[%s22720_s10 + $0x224] sm:$0xff]  }
 0xe5a   : > { %v6726_v19 = vpack.c.bf16 %v6703_v6, %v6700_v52  ;;  %v16347_v56 = vpop.f32.mrb[151].mxu0  ;;  %v17468_v52 = vld [vmem:[%s22720_s10 + $0x21c] sm:$0xff]   ;;  %v17470_v6 = vld [vmem:[%s22720_s10 + $0x22c] sm:$0xff]  }
 0xe5b   : > { %v17472_v56 = vld [vmem:[%s22720_s10 + $0x23c] sm:$0xff]  }
 0xe5c   : > { %16365 = vmatpush3.bf16.msra.mxu0 %v6726_v19  ;;  %v17471_v19 = vld [vmem:[%s22720_s10 + $0x234] sm:$0xff]  }
 0xe5d   : > { %16366 = vmatprep.subr.bf16.mxu0 %v17868_v23 }
 0xe5e   : > { %16295 = vmatmul.mubr.msk.bf16.gmra.mrb[132].mxu1 %vm5017_vm11, %v17454_v15  ;;  %v17473_v15 = vld [vmem:[%s22720_s10 + $0x244] sm:$0xff]  }
 0xe5f   : > { %v6708_v1 = vpop.f32.mrb[152].mxu0  ;;  %16298 = vmatprep.mubr.msk.bf16.mxu1 %vm17869_vm7, %v17868_v23 }
 0xe60   : > { %v16350_v41 = vpop.f32.mrb[153].mxu0 }
 0xe61   : > { %v6711_v33 = vpop.f32.mrb[154].mxu0  ;;  %v17475_v41 = vld [vmem:[%s22720_s10 + $0x254] ss:$0 sps:$4 sm:$0x33]  }
 0xe62   : > { %v6727_v30 = vpack.c.bf16 %v6711_v33, %v6708_v1  ;;  %v16351_v18 = vpop.f32.mrb[155].mxu0  ;;  %v17474_v1 = vld [vmem:[%s22720_s10 + $0x24c] sm:$0xff]  }
 0xe64   : > { %16367 = vmatpush3.bf16.msra.mxu0 %v6727_v30 }
 0xe65   : > { %16368 = vmatprep.subr.bf16.mxu0 %v17868_v23 }
 0xe66   : > { %16299 = vmatmul.mubr.msk.bf16.gmra.mrb[136].mxu1 %vm5017_vm11, %v17455_v2 }
 0xe67   : > { %v6716_v24 = vpop.f32.mrb[156].mxu0  ;;  %16302 = vmatprep.mubr.msk.bf16.mxu1 %vm17869_vm7, %v17868_v23 }
 0xe68   : > { %v6728_v57 = vpack.c.bf16 %v6716_v24, %v6716_v24  ;;  %v16354_v48 = vpop.f32.mrb[157].mxu0 }
 0xe69   : > { %v6719_v26 = vpop.f32.mrb[158].mxu0 }
 0xe6a   : > { %v16355_v3 = vpop.f32.mrb[159].mxu0  ;;  %v6858_v28 = vsel %vm2596_vm8, %v6728_v57, 0 }
 0xe6b   : > { %16369 = vmatpush3.bf16.msra.mxu0 %v6858_v28 }
 0xe6c   : > { %16518 = vmatprep.subr.bf16.mxu0 %v17868_v23 }
 0xe6e   : > { %16303 = vmatmul.mubr.msk.bf16.gmra.mrb[140].mxu1 %vm5017_vm11, %v17457_v53  ;;  %16371 = vmatmul.mubr.msk.bf16.vlgmr.msra.gmra.mrb[160].mxu0 %vm5017_vm11, %v17458_v29 }
 0xe6f   : > { %16306 = vmatprep.mubr.msk.bf16.mxu1 %vm17869_vm7, %v17868_v23  ;;  %16374 = vmatprep.mubr.msk.bf16.mxu0 %vm17869_vm7, %v17868_v23 }
 0xe70   : > { %16519 = vmatpush3.bf16.msra.mxu0 %v17476_v17 }
 0xe71   : > { %16548 = vmatprep.subr.bf16.mxu0 %v17868_v23 }
 0xe76   : > { %16307 = vmatmul.mubr.msk.bf16.gmra.mrb[144].mxu1 %vm5017_vm11, %v17459_v47  ;;  %16375 = vmatmul.mubr.msk.bf16.gmra.mrb[164].mxu0 %vm5017_vm11, %v17460_v63 }
 0xe77   : > { %16310 = vmatprep.mubr.msk.bf16.mxu1 %vm17869_vm7, %v17868_v23  ;;  %16378 = vmatprep.mubr.msk.bf16.mxu0 %vm17869_vm7, %v17868_v23 }
 0xe7e   : > { %16311 = vmatmul.mubr.msk.bf16.gmra.mrb[148].mxu1 %vm5017_vm11, %v17461_v31  ;;  %16379 = vmatmul.mubr.msk.bf16.gmra.mrb[168].mxu0 %vm5017_vm11, %v17462_v61 }
 0xe7f   : > { %16314 = vmatprep.mubr.msk.bf16.mxu1 %vm17869_vm7, %v17868_v23  ;;  %16382 = vmatprep.mubr.msk.bf16.mxu0 %vm17869_vm7, %v17868_v23 }
 0xe86   : > { %16315 = vmatmul.mubr.msk.bf16.gmra.mrb[152].mxu1 %vm5017_vm11, %v17463_v14  ;;  %16383 = vmatmul.mubr.msk.bf16.gmra.mrb[172].mxu0 %vm5017_vm11, %v17464_v8 }
 0xe87   : > { %16318 = vmatprep.mubr.msk.bf16.mxu1 %vm17869_vm7, %v17868_v23  ;;  %16386 = vmatprep.mubr.msk.bf16.mxu0 %vm17869_vm7, %v17868_v23 }
 0xe8e   : > { %16319 = vmatmul.mubr.msk.bf16.gmra.mrb[156].mxu1 %vm5017_vm11, %v17465_v55  ;;  %16387 = vmatmul.mubr.msk.bf16.gmra.mrb[176].mxu0 %vm5017_vm11, %v17466_v12 }
 0xe8f   : > { %16322 = vmatprep.mubr.msk.bf16.mxu1 %vm17869_vm7, %v17868_v23  ;;  %16390 = vmatprep.mubr.msk.bf16.mxu0 %vm17869_vm7, %v17868_v23 }
 0xe96   : > { %16323 = vmatmul.mubr.msk.bf16.gmra.mrb[160].mxu1 %vm5017_vm11, %v17467_v37  ;;  %16391 = vmatmul.mubr.msk.bf16.gmra.mrb[180].mxu0 %vm5017_vm11, %v17468_v52 }
 0xe97   : > { %16394 = vmatprep.mubr.msk.bf16.mxu0 %vm17869_vm7, %v17868_v23  ;;  %16424 = vmatprep.mubr.msk.bf16.mxu1 %vm17869_vm7, %v17868_v23 }
 0xe9e   : > { %16395 = vmatmul.mubr.msk.bf16.gmra.mrb[184].mxu0 %vm5017_vm11, %v17469_v16  ;;  %16425 = vmatmul.mubr.msk.bf16.vlgmr.msra.gmra.mrb[164].mxu1 %vm4682_vm10, %v19064_v39 }
 0xe9f   : > { %16398 = vmatprep.mubr.msk.bf16.mxu0 %vm17869_vm7, %v17868_v23  ;;  %16428 = vmatprep.mubr.msk.bf16.mxu1 %vm17869_vm7, %v17868_v23 }
 0xea6   : > { %16399 = vmatmul.mubr.msk.bf16.gmra.mrb[188].mxu0 %vm5017_vm11, %v17470_v6  ;;  %16429 = vmatmul.mubr.msk.bf16.gmra.mrb[168].mxu1 %vm4682_vm10, %v19078_v13 }
 0xea7   : > { %16402 = vmatprep.mubr.msk.bf16.mxu0 %vm17869_vm7, %v17868_v23  ;;  %16432 = vmatprep.mubr.msk.bf16.mxu1 %vm17869_vm7, %v17868_v23 }
 0xeae   : > { %16403 = vmatmul.mubr.msk.bf16.gmra.mrb[192].mxu0 %vm5017_vm11, %v17471_v19  ;;  %16433 = vmatmul.mubr.msk.bf16.gmra.mrb[172].mxu1 %vm4682_vm10, %v19092_v54 }
 0xeaf   : > { %16406 = vmatprep.mubr.msk.bf16.mxu0 %vm17869_vm7, %v17868_v23  ;;  %16436 = vmatprep.mubr.msk.bf16.mxu1 %vm17869_vm7, %v17868_v23 }
 0xeb6   : > { %16407 = vmatmul.mubr.msk.bf16.gmra.mrb[196].mxu0 %vm5017_vm11, %v17472_v56  ;;  %16437 = vmatmul.mubr.msk.bf16.gmra.mrb[176].mxu1 %vm4682_vm10, %v19106_v42 }
 0xeb7   : > { %16410 = vmatprep.mubr.msk.bf16.mxu0 %vm17869_vm7, %v17868_v23  ;;  %16440 = vmatprep.mubr.msk.bf16.mxu1 %vm17869_vm7, %v17868_v23 }
 0xebe   : > { %16411 = vmatmul.mubr.msk.bf16.gmra.mrb[200].mxu0 %vm5017_vm11, %v17473_v15  ;;  %16441 = vmatmul.mubr.msk.bf16.gmra.mrb[180].mxu1 %vm4682_vm10, %v19120_v21 }
 0xebf   : > { %16414 = vmatprep.mubr.msk.bf16.mxu0 %vm17869_vm7, %v17868_v23  ;;  %16444 = vmatprep.mubr.msk.bf16.mxu1 %vm17869_vm7, %v17868_v23 }
 0xec6   : > { %16415 = vmatmul.mubr.msk.bf16.gmra.mrb[204].mxu0 %vm5017_vm11, %v17474_v1  ;;  %16445 = vmatmul.mubr.msk.bf16.gmra.mrb[184].mxu1 %vm4682_vm10, %v19134_v38 }
 0xec7   : > { %16418 = vmatprep.mubr.msk.bf16.mxu0 %vm17869_vm7, %v17868_v23  ;;  %16448 = vmatprep.mubr.msk.bf16.mxu1 %vm17869_vm7, %v17868_v23 }
 0xece   : > { %16419 = vmatmul.mubr.msk.bf16.gmra.mrb[208].mxu0 %vm5017_vm11, %v17475_v41  ;;  %16449 = vmatmul.mubr.msk.bf16.gmra.mrb[188].mxu1 %vm4682_vm10, %v19146_v5 }
 0xecf   : > { %16520 = vmatprep.mubr.msk.bf16.mxu0 %vm17869_vm7, %v17868_v23  ;;  %16466 = vmatprep.mubr.msk.bf16.mxu1 %vm17869_vm7, %v17868_v23 }
 0xed6   : > { %16521 = vmatmul.mubr.msk.bf16.vlgmr.msra.gmra.mrb[212].mxu0 %vm4682_vm10, %v19064_v39 }
 0xed7   : > { %16524 = vmatprep.mubr.msk.bf16.mxu0 %vm17869_vm7, %v17868_v23 }
 0xede   : > { %16525 = vmatmul.mubr.msk.bf16.gmra.mrb[216].mxu0 %vm4682_vm10, %v19078_v13 }
 0xedf   : > { %16528 = vmatprep.mubr.msk.bf16.mxu0 %vm17869_vm7, %v17868_v23 }
 0xee6   : > { %16529 = vmatmul.mubr.msk.bf16.gmra.mrb[220].mxu0 %vm4682_vm10, %v19092_v54 }
 0xee7   : > { %16532 = vmatprep.mubr.msk.bf16.mxu0 %vm17869_vm7, %v17868_v23 }
 0xeee   : > { %16533 = vmatmul.mubr.msk.bf16.gmra.mrb[224].mxu0 %vm4682_vm10, %v19106_v42 }
 0xeef   : > { %16536 = vmatprep.mubr.msk.bf16.mxu0 %vm17869_vm7, %v17868_v23 }
 0xef6   : > { %16537 = vmatmul.mubr.msk.bf16.gmra.mrb[228].mxu0 %vm4682_vm10, %v19120_v21 }
 0xef7   : > { %16540 = vmatprep.mubr.msk.bf16.mxu0 %vm17869_vm7, %v17868_v23 }
 0xefe   : > { %16541 = vmatmul.mubr.msk.bf16.gmra.mrb[232].mxu0 %vm4682_vm10, %v19134_v38 }
 0xeff   : > { %16544 = vmatprep.mubr.msk.bf16.mxu0 %vm17869_vm7, %v17868_v23 }
 0xf06   : > { %16545 = vmatmul.mubr.msk.bf16.gmra.mrb[236].mxu0 %vm4682_vm10, %v19146_v5 }
 0xf07   : > { %16562 = vmatprep.mubr.msk.bf16.mxu0 %vm17869_vm7, %v17868_v23 }
 0xf09   : > { %v6498_v33 = vpop.f32.mrb[112].mxu1 }
 0xf0a   : > { %v6600_v30 = vadd.f32 %v6498_v33, %v19709_v43  ;;  %v16276_v18 = vpop.f32.mrb[113].mxu1 }
 0xf0b   : > { %v6501_v2 = vpop.f32.mrb[114].mxu1 }
 0xf0c   : > { %v6601_v24 = vadd.f32 %v6501_v2, %v19714_v9  ;;  %v16277_v57 = vpop.f32.mrb[115].mxu1 }
 0xf11   : > { %v6506_v48 = vpop.f32.mrb[116].mxu1 }
 0xf12   : > { %v6602_v26 = vadd.f32 %v6506_v48, %v19719_v11  ;;  %v16280_v3 = vpop.f32.mrb[117].mxu1 }
 0xf13   : > { %v6509_v28 = vpop.f32.mrb[118].mxu1 }
 0xf14   : > { %v6603_v53 = vadd.f32 %v6509_v28, %v19724_v25  ;;  %v16281_v29 = vpop.f32.mrb[119].mxu1 }
 0xf19   : > { %v6514_v17 = vpop.f32.mrb[120].mxu1 }
 0xf1a   : > { %v6604_v47 = vadd.f32 %v6514_v17, %v19729_v7  ;;  %v16284_v63 = vpop.f32.mrb[121].mxu1 }
 0xf1b   : > { %v6517_v31 = vpop.f32.mrb[122].mxu1 }
 0xf1c   : > { %v6605_v43 = vadd.f32 %v6517_v31, %v19734_v10  ;;  %v16285_v61 = vpop.f32.mrb[123].mxu1 }
 0xf21   : > { %v6522_v14 = vpop.f32.mrb[124].mxu1 }
 0xf22   : > { %v6606_v9 = vadd.f32 %v6522_v14, %v19739_v4  ;;  %v16288_v8 = vpop.f32.mrb[125].mxu1 }
 0xf23   : > { %v6525_v55 = vpop.f32.mrb[126].mxu1 }
 0xf24   : > { %v20051_v11 = vadd.f32 %v6525_v55, %v19745_v59  ;;  %v16289_v12 = vpop.f32.mrb[127].mxu1 }
 0xf29   : > { %v6530_v37 = vpop.f32.mrb[128].mxu1 }
 0xf2a   : > { %v20054_v25 = vadd.f32 %v6530_v37, %v19751_v45  ;;  %v16292_v52 = vpop.f32.mrb[129].mxu1 }
 0xf2b   : > { %v6533_v7 = vpop.f32.mrb[130].mxu1 }
 0xf2c   : > { %v20057_v16 = vadd.f32 %v6533_v7, %v19757_v50  ;;  %v16293_v10 = vpop.f32.mrb[131].mxu1 }
 0xf31   : > { %v6538_v6 = vpop.f32.mrb[132].mxu1 }
 0xf32   : > { %v20060_v19 = vadd.f32 %v6538_v6, %v19763_v34  ;;  %v16296_v4 = vpop.f32.mrb[133].mxu1 }
 0xf33   : > { %v6541_v56 = vpop.f32.mrb[134].mxu1 }
 0xf34   : > { %v20063_v59 = vadd.f32 %v6541_v56, %v19766_v58  ;;  %v16297_v15 = vpop.f32.mrb[135].mxu1 }
 0xf39   : > { %v6546_v1 = vpop.f32.mrb[136].mxu1 }
 0xf3a   : > { %v20066_v45 = vadd.f32 %v6546_v1, %v19769_v40  ;;  %v16300_v41 = vpop.f32.mrb[137].mxu1 }
 0xf3b   : > { %v6549_v33 = vpop.f32.mrb[138].mxu1 }
 0xf3c   : > { %v20069_v50 = vadd.f32 %v6549_v33, %v19772_v62  ;;  %v16301_v18 = vpop.f32.mrb[139].mxu1 }
 0xf41   : > { %v6554_v2 = vpop.f32.mrb[140].mxu1  ;;  %v6894_v57 = vpop.f32.mrb[160].mxu0 }
 0xf42   : > { %v20072_v34 = vadd.f32 %v6554_v2, %v19776_v44  ;;  %v20074_v48 = vadd.f32 %v6894_v57, %v6600_v30  ;;  %v16304_v58 = vpop.f32.mrb[141].mxu1  ;;  %v16372_v3 = vpop.f32.mrb[161].mxu0 }
 0xf43   : > { %v6557_v28 = vpop.f32.mrb[142].mxu1  ;;  %v6897_v29 = vpop.f32.mrb[162].mxu0 }
 0xf44   : > { %v20077_v40 = vadd.f32 %v6557_v28, %v19779_v46  ;;  %v20079_v17 = vadd.f32 %v6897_v29, %v6601_v24  ;;  %v16305_v63 = vpop.f32.mrb[143].mxu1  ;;  %v16373_v62 = vpop.f32.mrb[163].mxu0 }
 0xf49   : > { %v6562_v31 = vpop.f32.mrb[144].mxu1  ;;  %v6902_v61 = vpop.f32.mrb[164].mxu0 }
 0xf4a   : > { %v20082_v14 = vadd.f32 %v6562_v31, %v19783_v27  ;;  %v20084_v44 = vadd.f32 %v6902_v61, %v6602_v26  ;;  %v16308_v30 = vpop.f32.mrb[145].mxu1  ;;  %v16376_v8 = vpop.f32.mrb[165].mxu0 }
 0xf4b   : > { %v6565_v55 = vpop.f32.mrb[146].mxu1  ;;  %v6905_v12 = vpop.f32.mrb[166].mxu0 }
 0xf4c   : > { %v20087_v37 = vadd.f32 %v6565_v55, %v19786_v20  ;;  %v20089_v46 = vadd.f32 %v6905_v12, %v6603_v53  ;;  %v16309_v24 = vpop.f32.mrb[147].mxu1  ;;  %v16377_v52 = vpop.f32.mrb[167].mxu0 }
 0xf51   : > { %v6570_v7 = vpop.f32.mrb[148].mxu1  ;;  %v6910_v10 = vpop.f32.mrb[168].mxu0 }
 0xf52   : > { %v20092_v6 = vadd.f32 %v6570_v7, %v19790_v51  ;;  %v20094_v27 = vadd.f32 %v6910_v10, %v6604_v47  ;;  %v16312_v26 = vpop.f32.mrb[149].mxu1  ;;  %v16380_v4 = vpop.f32.mrb[169].mxu0 }
 0xf53   : > { %v6573_v56 = vpop.f32.mrb[150].mxu1  ;;  %v6913_v15 = vpop.f32.mrb[170].mxu0 }
 0xf54   : > { %v20097_v1 = vadd.f32 %v6573_v56, %v19793_v60  ;;  %v20099_v20 = vadd.f32 %v6913_v15, %v6605_v43  ;;  %v16313_v53 = vpop.f32.mrb[151].mxu1  ;;  %v16381_v41 = vpop.f32.mrb[171].mxu0 }
 0xf59   : > { %v6578_v33 = vpop.f32.mrb[152].mxu1  ;;  %v6918_v18 = vpop.f32.mrb[172].mxu0 }
 0xf5a   : > { %v20102_v2 = vadd.f32 %v6578_v33, %v19797_v35  ;;  %v20104_v51 = vadd.f32 %v6918_v18, %v6606_v9  ;;  %v16316_v47 = vpop.f32.mrb[153].mxu1  ;;  %v16384_v57 = vpop.f32.mrb[173].mxu0 }
 0xf5b   : > { %v6581_v58 = vpop.f32.mrb[154].mxu1  ;;  %v6921_v3 = vpop.f32.mrb[174].mxu0 }
 0xf5c   : > { %v20107_v28 = vadd.f32 %v6581_v58, %v19800_v22  ;;  %v20110_v60 = vadd.f32 %v6921_v3, %v20051_v11  ;;  %v16317_v43 = vpop.f32.mrb[155].mxu1  ;;  %v16385_v29 = vpop.f32.mrb[175].mxu0 }
 0xf61   : > { %v6586_v63 = vpop.f32.mrb[156].mxu1  ;;  %v6926_v62 = vpop.f32.mrb[176].mxu0 }
 0xf62   : > { %v20113_v31 = vadd.f32 %v6586_v63, %v19804_v32  ;;  %v20116_v35 = vadd.f32 %v6926_v62, %v20054_v25  ;;  %v16320_v9 = vpop.f32.mrb[157].mxu1  ;;  %v16388_v61 = vpop.f32.mrb[177].mxu0 }
 0xf63   : > { %v6589_v30 = vpop.f32.mrb[158].mxu1  ;;  %v6929_v8 = vpop.f32.mrb[178].mxu0 }
 0xf64   : > { %v20119_v22 = vadd.f32 %v6589_v30, %v19807_v36  ;;  %v20122_v11 = vadd.f32 %v6929_v8, %v20057_v16  ;;  %v16321_v55 = vpop.f32.mrb[159].mxu1  ;;  %v16389_v12 = vpop.f32.mrb[179].mxu0 }
 0xf69   : > { %v6594_v24 = vpop.f32.mrb[160].mxu1  ;;  %v6934_v52 = vpop.f32.mrb[180].mxu0 }
 0xf6a   : > { %v20125_v32 = vadd.f32 %v6594_v24, %v19811_v49  ;;  %v20128_v25 = vadd.f32 %v6934_v52, %v20060_v19  ;;  %v16392_v7 = vpop.f32.mrb[181].mxu0  ;;  %v16324_v10 = vpop.f32.mrb[161].mxu1 }
 0xf6b   : > { %v6937_v26 = vpop.f32.mrb[182].mxu0  ;;  %v6597_v4 = vpop.f32.mrb[162].mxu1 }
 0xf6c   : > { %v20131_v36 = vadd.f32 %v6937_v26, %v20063_v59  ;;  %v16325_v56 = vpop.f32.mrb[163].mxu1  ;;  %v16393_v16 = vpop.f32.mrb[183].mxu0 }
 0xf71   : > { %v6942_v15 = vpop.f32.mrb[184].mxu0  ;;  %v7064_v53 = vpop.f32.mrb[164].mxu1 }
 0xf72   : > { %v20134_v41 = vadd.f32 %v6942_v15, %v20066_v45  ;;  %v16396_v33 = vpop.f32.mrb[185].mxu0  ;;  %v16426_v49 = vpop.f32.mrb[165].mxu1 }
 0xf73   : > { %v6945_v18 = vpop.f32.mrb[186].mxu0  ;;  %v7067_v47 = vpop.f32.mrb[166].mxu1 }
 0xf74   : > { %v20137_v19 = vadd.f32 %v6945_v18, %v20069_v50  ;;  %v7118_v57 = vpack.c.bf16 %v7067_v47, %v7064_v53  ;;  %v16427_v58 = vpop.f32.mrb[167].mxu1  ;;  %v16397_v3 = vpop.f32.mrb[187].mxu0 }
 0xf76   : > { %16453 = vmatpush3.bf16.msra.mxu1 %v7118_v57 }
 0xf77   : > { %16454 = vmatprep.subr.bf16.mxu1 %v17868_v23 }
 0xf79   : > { %v6950_v59 = vpop.f32.mrb[188].mxu0  ;;  %v7072_v43 = vpop.f32.mrb[168].mxu1 }
 0xf7a   : > { %v20141_v29 = vadd.f32 %v6950_v59, %v20072_v34  ;;  %v16400_v45 = vpop.f32.mrb[189].mxu0  ;;  %v16430_v63 = vpop.f32.mrb[169].mxu1 }
 0xf7b   : > { %v6953_v62 = vpop.f32.mrb[190].mxu0  ;;  %v7075_v9 = vpop.f32.mrb[170].mxu1 }
 0xf7c   : > { %v20144_v61 = vadd.f32 %v6953_v62, %v20077_v40  ;;  %v7119_v50 = vpack.c.bf16 %v7075_v9, %v7072_v43  ;;  %v16431_v30 = vpop.f32.mrb[171].mxu1  ;;  %v16401_v8 = vpop.f32.mrb[191].mxu0 }
 0xf7e   : > { %16455 = vmatpush3.bf16.msra.mxu1 %v7119_v50 }
 0xf7f   : > { %16456 = vmatprep.subr.bf16.mxu1 %v17868_v23 }
 0xf81   : > { %v6958_v55 = vpop.f32.mrb[192].mxu0  ;;  %v7080_v12 = vpop.f32.mrb[172].mxu1 }
 0xf82   : > { %v20148_v24 = vadd.f32 %v6958_v55, %v20082_v14  ;;  %v16404_v34 = vpop.f32.mrb[193].mxu0  ;;  %v16434_v52 = vpop.f32.mrb[173].mxu1 }
 0xf83   : > { %v6961_v7 = vpop.f32.mrb[194].mxu0  ;;  %v7083_v10 = vpop.f32.mrb[174].mxu1 }
 0xf84   : > { %v20151_v26 = vadd.f32 %v6961_v7, %v20087_v37  ;;  %v7120_v40 = vpack.c.bf16 %v7083_v10, %v7080_v12  ;;  %v16435_v4 = vpop.f32.mrb[175].mxu1  ;;  %v16405_v56 = vpop.f32.mrb[195].mxu0 }
 0xf86   : > { %16457 = vmatpush3.bf16.msra.mxu1 %v7120_v40 }
 0xf87   : > { %16458 = vmatprep.subr.bf16.mxu1 %v17868_v23 }
 0xf89   : > { %v6966_v16 = vpop.f32.mrb[196].mxu0  ;;  %v7088_v15 = vpop.f32.mrb[176].mxu1 }
 0xf8a   : > { %v20155_v53 = vadd.f32 %v6966_v16, %v20092_v6  ;;  %v16408_v14 = vpop.f32.mrb[197].mxu0  ;;  %v16438_v33 = vpop.f32.mrb[177].mxu1 }
 0xf8b   : > { %v6969_v49 = vpop.f32.mrb[198].mxu0  ;;  %v7091_v18 = vpop.f32.mrb[178].mxu1 }
 0xf8c   : > { %v20158_v47 = vadd.f32 %v6969_v49, %v20097_v1  ;;  %v7121_v37 = vpack.c.bf16 %v7091_v18, %v7088_v15  ;;  %v16439_v57 = vpop.f32.mrb[179].mxu1  ;;  %v16409_v58 = vpop.f32.mrb[199].mxu0 }
 0xf8d   : > { %v17477_v58 = vld [vmem:[%s22720_s10 + $0x258] sm:$0xff]  }
 0xf8e   : > { %16459 = vmatpush3.bf16.msra.mxu1 %v7121_v37 }
 0xf8f   : > { %16460 = vmatprep.subr.bf16.mxu1 %v17868_v23 }
 0xf91   : > { %v6974_v3 = vpop.f32.mrb[200].mxu0  ;;  %v7096_v59 = vpop.f32.mrb[180].mxu1 }
 0xf92   : > { %v20162_v43 = vadd.f32 %v6974_v3, %v20102_v2  ;;  %v16412_v6 = vpop.f32.mrb[201].mxu0  ;;  %v16442_v45 = vpop.f32.mrb[181].mxu1  ;;  %v17484_v3 = vld [vmem:[%s22721_s11 + $0x40] sm:$0xff]  }
 0xf93   : > { %v6977_v63 = vpop.f32.mrb[202].mxu0  ;;  %v7099_v62 = vpop.f32.mrb[182].mxu1 }
 0xf94   : > { %v20165_v9 = vadd.f32 %v6977_v63, %v20107_v28  ;;  %v7122_v1 = vpack.c.bf16 %v7099_v62, %v7096_v59  ;;  %v16443_v50 = vpop.f32.mrb[183].mxu1  ;;  %v16413_v30 = vpop.f32.mrb[203].mxu0  ;;  %v17478_v62 = vld [vmem:[%s22720_s10 + $0x260] sm:$0xff]  }
 0xf96   : > { %16461 = vmatpush3.bf16.msra.mxu1 %v7122_v1 }
 0xf97   : > { %16462 = vmatprep.subr.bf16.mxu1 %v17868_v23 }
 0xf99   : > { %v6982_v8 = vpop.f32.mrb[204].mxu0  ;;  %v7104_v55 = vpop.f32.mrb[184].mxu1 }
 0xf9a   : > { %v20169_v12 = vadd.f32 %v6982_v8, %v20113_v31  ;;  %v16416_v2 = vpop.f32.mrb[205].mxu0  ;;  %v16446_v34 = vpop.f32.mrb[185].mxu1 }
 0xf9b   : > { %v6985_v52 = vpop.f32.mrb[206].mxu0  ;;  %v7107_v7 = vpop.f32.mrb[186].mxu1  ;;  %v17479_v2 = vld [vmem:[%s22720_s10 + $0x268] sm:$0xff]  }
 0xf9c   : > { %v20172_v10 = vadd.f32 %v6985_v52, %v20119_v22  ;;  %v7123_v28 = vpack.c.bf16 %v7107_v7, %v7104_v55  ;;  %v16447_v40 = vpop.f32.mrb[187].mxu1  ;;  %v16417_v4 = vpop.f32.mrb[207].mxu0 }
 0xf9d   : > { %v17480_v4 = vld [vmem:[%s22720_s10 + $0x270] sm:$0xff]  }
 0xf9e   : > { %16463 = vmatpush3.bf16.msra.mxu1 %v7123_v28 }
 0xf9f   : > { %16464 = vmatprep.subr.bf16.mxu1 %v17868_v23 }
 0xfa1   : > { %v6990_v56 = vpop.f32.mrb[208].mxu0  ;;  %v7112_v16 = vpop.f32.mrb[188].mxu1 }
 0xfa2   : > { %v20176_v15 = vadd.f32 %v6990_v56, %v20125_v32  ;;  %v7124_v31 = vpack.c.bf16 %v7112_v16, %v7112_v16  ;;  %v16450_v14 = vpop.f32.mrb[189].mxu1  ;;  %v16420_v33 = vpop.f32.mrb[209].mxu0 }
 0xfa3   : > { %v7115_v49 = vpop.f32.mrb[190].mxu1  ;;  %v6993_v18 = vpop.f32.mrb[210].mxu0 }
 0xfa4   : > { %v16451_v37 = vpop.f32.mrb[191].mxu1  ;;  %v7254_v22 = vsel %vm2596_vm8, %v7124_v31, 0  ;;  %v16421_v57 = vpop.f32.mrb[211].mxu0  ;;  %v17481_v49 = vld [vmem:[%s22720_s10 + $0x278] sm:$0xff]  }
 0xfa5   : > { %16465 = vmatpush3.bf16.msra.mxu1 %v7254_v22 }
 0xfa6   : > { %16614 = vmatprep.subr.bf16.mxu1 %v17868_v23 }
 0xfa8   : > { %16467 = vmatmul.mubr.msk.bf16.vlgmr.msra.gmra.mrb[192].mxu1 %vm5017_vm11, %v17477_v58 }
 0xfa9   : > { %v7460_v32 = vpop.f32.mrb[212].mxu0  ;;  %16470 = vmatprep.mubr.msk.bf16.mxu1 %vm17869_vm7, %v17868_v23  ;;  %16615 = vmatpush3.bf16.msra.mxu1 %v17484_v3  ;;  %v17482_v3 = vld [vmem:[%s22720_s10 + $0x280] sm:$0xff]  }
 0xfaa   : > { %v16522_v59 = vpop.f32.mrb[213].mxu0  ;;  %16644 = vmatprep.subr.bf16.mxu1 %v17868_v23 }
 0xfab   : > { %v7463_v6 = vpop.f32.mrb[214].mxu0 }
 0xfac   : > { %v7514_v45 = vpack.c.bf16 %v7463_v6, %v7460_v32  ;;  %v16523_v63 = vpop.f32.mrb[215].mxu0 }
 0xfae   : > { %16549 = vmatpush3.bf16.msra.mxu0 %v7514_v45 }
 0xfaf   : > { %16550 = vmatprep.subr.bf16.mxu0 %v17868_v23 }
 0xfb0   : > { %16471 = vmatmul.mubr.msk.bf16.gmra.mrb[196].mxu1 %vm5017_vm11, %v17478_v62  ;;  %v17483_v62 = vld [vmem:[%s22720_s10 + $0x288] sm:$0xff]  }
 0xfb1   : > { %v7468_v1 = vpop.f32.mrb[216].mxu0  ;;  %16474 = vmatprep.mubr.msk.bf16.mxu1 %vm17869_vm7, %v17868_v23 }
 0xfb2   : > { %v16526_v50 = vpop.f32.mrb[217].mxu0 }
 0xfb3   : > { %v7471_v30 = vpop.f32.mrb[218].mxu0 }
 0xfb4   : > { %v7515_v8 = vpack.c.bf16 %v7471_v30, %v7468_v1  ;;  %v16527_v55 = vpop.f32.mrb[219].mxu0 }
 0xfb6   : > { %16551 = vmatpush3.bf16.msra.mxu0 %v7515_v8 }
 0xfb7   : > { %16552 = vmatprep.subr.bf16.mxu0 %v17868_v23 }
 0xfb8   : > { %16475 = vmatmul.mubr.msk.bf16.gmra.mrb[200].mxu1 %vm5017_vm11, %v17479_v2 }
 0xfb9   : > { %v7476_v34 = vpop.f32.mrb[220].mxu0  ;;  %16478 = vmatprep.mubr.msk.bf16.mxu1 %vm17869_vm7, %v17868_v23 }
 0xfba   : > { %v16530_v52 = vpop.f32.mrb[221].mxu0 }
 0xfbb   : > { %v7479_v7 = vpop.f32.mrb[222].mxu0  ;;  %v17486_v52 = vld [vmem:[%s22720_s10 + $0x2bc] sm:$0xff]  }
 0xfbc   : > { %v7516_v28 = vpack.c.bf16 %v7479_v7, %v7476_v34  ;;  %v16531_v40 = vpop.f32.mrb[223].mxu0  ;;  %v17485_v34 = vld [vmem:[%s22720_s10 + $0x290] sm:$0xff]   ;;  %v17487_v7 = vld [vmem:[%s22720_s10 + $0x298] sm:$0xff]  }
 0xfbd   : > { %v17489_v40 = vld [vmem:[%s22720_s10 + $0x2a0] sm:$0xff]  }
 0xfbe   : > { %16553 = vmatpush3.bf16.msra.mxu0 %v7516_v28  ;;  %v17488_v28 = vld [vmem:[%s22720_s10 + $0x2c4] sm:$0xff]  }
 0xfbf   : > { %16554 = vmatprep.subr.bf16.mxu0 %v17868_v23 }
 0xfc0   : > { %16479 = vmatmul.mubr.msk.bf16.gmra.mrb[204].mxu1 %vm5017_vm11, %v17480_v4  ;;  %v17490_v4 = vld [vmem:[%s22720_s10 + $0x2cc] sm:$0xff]  }
 0xfc1   : > { %v7484_v56 = vpop.f32.mrb[224].mxu0  ;;  %16482 = vmatprep.mubr.msk.bf16.mxu1 %vm17869_vm7, %v17868_v23 }
 0xfc2   : > { %v16534_v16 = vpop.f32.mrb[225].mxu0 }
 0xfc3   : > { %v7487_v31 = vpop.f32.mrb[226].mxu0  ;;  %v17492_v16 = vld [vmem:[%s22720_s10 + $0x2d4] sm:$0xff]  }
 0xfc4   : > { %v7517_v14 = vpack.c.bf16 %v7487_v31, %v7484_v56  ;;  %v16535_v33 = vpop.f32.mrb[227].mxu0  ;;  %v17491_v56 = vld [vmem:[%s22720_s10 + $0x2a8] sm:$0xff]   ;;  %v17493_v31 = vld [vmem:[%s22720_s10 + $0x2b0] sm:$0xff]  }
 0xfc5   : > { %v17495_v33 = vld [vmem:[%s22720_s10 + $0x2b8] ss:$0 sps:$4 sm:$0x33]  }
 0xfc6   : > { %16555 = vmatpush3.bf16.msra.mxu0 %v7517_v14  ;;  %v17494_v14 = vld [vmem:[%s22720_s10 + $0x2dc] sm:$0xff]  }
 0xfc7   : > { %16556 = vmatprep.subr.bf16.mxu0 %v17868_v23 }
 0xfc8   : > { %16483 = vmatmul.mubr.msk.bf16.gmra.mrb[208].mxu1 %vm5017_vm11, %v17481_v49  ;;  %v17496_v49 = vld [vmem:[%s22720_s10 + $0x2e4] sm:$0xff]  }
 0xfc9   : > { %v7492_v18 = vpop.f32.mrb[228].mxu0  ;;  %16486 = vmatprep.mubr.msk.bf16.mxu1 %vm17869_vm7, %v17868_v23 }
 0xfca   : > { %v16538_v37 = vpop.f32.mrb[229].mxu0 }
 0xfcb   : > { %v7495_v22 = vpop.f32.mrb[230].mxu0  ;;  %v17498_v37 = vld [vmem:[%s22720_s10 + $0x2f4] sm:$0xff]  }
 0xfcc   : > { %v7518_v57 = vpack.c.bf16 %v7495_v22, %v7492_v18  ;;  %v16539_v58 = vpop.f32.mrb[231].mxu0  ;;  %v17497_v18 = vld [vmem:[%s22720_s10 + $0x2ec] sm:$0xff]  }
 0xfce   : > { %16557 = vmatpush3.bf16.msra.mxu0 %v7518_v57 }
 0xfcf   : > { %16558 = vmatprep.subr.bf16.mxu0 %v17868_v23 }
 0xfd0   : > { %16487 = vmatmul.mubr.msk.bf16.gmra.mrb[212].mxu1 %vm5017_vm11, %v17482_v3 }
 0xfd1   : > { %v7500_v32 = vpop.f32.mrb[232].mxu0  ;;  %16490 = vmatprep.mubr.msk.bf16.mxu1 %vm17869_vm7, %v17868_v23 }
 0xfd2   : > { %v16542_v59 = vpop.f32.mrb[233].mxu0 }
 0xfd3   : > { %v7503_v6 = vpop.f32.mrb[234].mxu0 }
 0xfd4   : > { %v7519_v45 = vpack.c.bf16 %v7503_v6, %v7500_v32  ;;  %v16543_v63 = vpop.f32.mrb[235].mxu0 }
 0xfd6   : > { %16559 = vmatpush3.bf16.msra.mxu0 %v7519_v45 }
 0xfd7   : > { %16560 = vmatprep.subr.bf16.mxu0 %v17868_v23 }
 0xfd8   : > { %16491 = vmatmul.mubr.msk.bf16.gmra.mrb[216].mxu1 %vm5017_vm11, %v17483_v62 }
 0xfd9   : > { %v7508_v1 = vpop.f32.mrb[236].mxu0  ;;  %16494 = vmatprep.mubr.msk.bf16.mxu1 %vm17869_vm7, %v17868_v23 }
 0xfda   : > { %v7520_v50 = vpack.c.bf16 %v7508_v1, %v7508_v1  ;;  %v16546_v30 = vpop.f32.mrb[237].mxu0 }
 0xfdb   : > { %v7511_v8 = vpop.f32.mrb[238].mxu0 }
 0xfdc   : > { %v16547_v55 = vpop.f32.mrb[239].mxu0  ;;  %v7650_v2 = vsel %vm2596_vm8, %v7520_v50, 0 }
 0xfdd   : > { %16561 = vmatpush3.bf16.msra.mxu0 %v7650_v2 }
 0xfde   : > { %16710 = vmatprep.subr.bf16.mxu0 %v17868_v23 }
 0xfe0   : > { %16495 = vmatmul.mubr.msk.bf16.gmra.mrb[220].mxu1 %vm5017_vm11, %v17485_v34  ;;  %16563 = vmatmul.mubr.msk.bf16.vlgmr.msra.gmra.mrb[240].mxu0 %vm5017_vm11, %v17486_v52 }
 0xfe1   : > { %16498 = vmatprep.mubr.msk.bf16.mxu1 %vm17869_vm7, %v17868_v23  ;;  %16566 = vmatprep.mubr.msk.bf16.mxu0 %vm17869_vm7, %v17868_v23 }
 0xfe8   : > { %16499 = vmatmul.mubr.msk.bf16.gmra.mrb[224].mxu1 %vm5017_vm11, %v17487_v7  ;;  %16567 = vmatmul.mubr.msk.bf16.gmra.mrb[244].mxu0 %vm5017_vm11, %v17488_v28 }
 0xfe9   : > { %16502 = vmatprep.mubr.msk.bf16.mxu1 %vm17869_vm7, %v17868_v23  ;;  %16570 = vmatprep.mubr.msk.bf16.mxu0 %vm17869_vm7, %v17868_v23 }
 0xff0   : > { %16503 = vmatmul.mubr.msk.bf16.gmra.mrb[228].mxu1 %vm5017_vm11, %v17489_v40  ;;  %16571 = vmatmul.mubr.msk.bf16.gmra.mrb[248].mxu0 %vm5017_vm11, %v17490_v4 }
 0xff1   : > { %16506 = vmatprep.mubr.msk.bf16.mxu1 %vm17869_vm7, %v17868_v23  ;;  %16574 = vmatprep.mubr.msk.bf16.mxu0 %vm17869_vm7, %v17868_v23 }
 0xff8   : > { %16507 = vmatmul.mubr.msk.bf16.gmra.mrb[232].mxu1 %vm5017_vm11, %v17491_v56  ;;  %16575 = vmatmul.mubr.msk.bf16.gmra.mrb[252].mxu0 %vm5017_vm11, %v17492_v16 }
 0xff9   : > { %16510 = vmatprep.mubr.msk.bf16.mxu1 %vm17869_vm7, %v17868_v23  ;;  %16578 = vmatprep.mubr.msk.bf16.mxu0 %vm17869_vm7, %v17868_v23 }
0x1000   : > { %16511 = vmatmul.mubr.msk.bf16.gmra.mrb[236].mxu1 %vm5017_vm11, %v17493_v31  ;;  %16579 = vmatmul.mubr.msk.bf16.gmra.mrb[0].mxu0 %vm5017_vm11, %v17494_v14 }
0x1001   : > { %16514 = vmatprep.mubr.msk.bf16.mxu1 %vm17869_vm7, %v17868_v23  ;;  %16582 = vmatprep.mubr.msk.bf16.mxu0 %vm17869_vm7, %v17868_v23 }
0x1008   : > { %16515 = vmatmul.mubr.msk.bf16.gmra.mrb[240].mxu1 %vm5017_vm11, %v17495_v33  ;;  %16583 = vmatmul.mubr.msk.bf16.gmra.mrb[4].mxu0 %vm5017_vm11, %v17496_v49 }
0x1009   : > { %16586 = vmatprep.mubr.msk.bf16.mxu0 %vm17869_vm7, %v17868_v23  ;;  %16616 = vmatprep.mubr.msk.bf16.mxu1 %vm17869_vm7, %v17868_v23 }
0x1010   : > { %16587 = vmatmul.mubr.msk.bf16.gmra.mrb[12].mxu0 %vm5017_vm11, %v17497_v18  ;;  %16617 = vmatmul.mubr.msk.bf16.vlgmr.msra.gmra.mrb[244].mxu1 %vm4682_vm10, %v19064_v39  ;;  %v17499_v39 = vld [vmem:[%s22720_s10 + $0x2fc] sm:$0xff]  }
0x1011   : > { %16590 = vmatprep.mubr.msk.bf16.mxu0 %vm17869_vm7, %v17868_v23  ;;  %16620 = vmatprep.mubr.msk.bf16.mxu1 %vm17869_vm7, %v17868_v23 }
0x1018   : > { %16591 = vmatmul.mubr.msk.bf16.gmra.mrb[16].mxu0 %vm5017_vm11, %v17498_v37  ;;  %16621 = vmatmul.mubr.msk.bf16.gmra.mrb[248].mxu1 %vm4682_vm10, %v19078_v13  ;;  %v17500_v13 = vld [vmem:[%s22720_s10 + $0x304] sm:$0xff]  }
0x1019   : > { %16594 = vmatprep.mubr.msk.bf16.mxu0 %vm17869_vm7, %v17868_v23  ;;  %16624 = vmatprep.mubr.msk.bf16.mxu1 %vm17869_vm7, %v17868_v23 }
0x1020   : > { %16595 = vmatmul.mubr.msk.bf16.gmra.mrb[20].mxu0 %vm5017_vm11, %v17499_v39  ;;  %16625 = vmatmul.mubr.msk.bf16.gmra.mrb[252].mxu1 %vm4682_vm10, %v19092_v54  ;;  %v17501_v54 = vld [vmem:[%s22720_s10 + $0x30c] sm:$0xff]  }
0x1021   : > { %16598 = vmatprep.mubr.msk.bf16.mxu0 %vm17869_vm7, %v17868_v23  ;;  %16628 = vmatprep.mubr.msk.bf16.mxu1 %vm17869_vm7, %v17868_v23 }
0x1028   : > { %16599 = vmatmul.mubr.msk.bf16.gmra.mrb[24].mxu0 %vm5017_vm11, %v17500_v13  ;;  %16629 = vmatmul.mubr.msk.bf16.gmra.mrb[0].mxu1 %vm4682_vm10, %v19106_v42  ;;  %v17502_v42 = vld [vmem:[%s22720_s10 + $0x314] sm:$0xff]  }
0x1029   : > { %16602 = vmatprep.mubr.msk.bf16.mxu0 %vm17869_vm7, %v17868_v23  ;;  %16632 = vmatprep.mubr.msk.bf16.mxu1 %vm17869_vm7, %v17868_v23 }
0x1030   : > { %16603 = vmatmul.mubr.msk.bf16.gmra.mrb[28].mxu0 %vm5017_vm11, %v17501_v54  ;;  %16633 = vmatmul.mubr.msk.bf16.gmra.mrb[4].mxu1 %vm4682_vm10, %v19120_v21  ;;  %v17503_v21 = vld [vmem:[%s22720_s10 + $0x31c] ss:$0 sps:$4 sm:$0x33]  }
0x1031   : > { %16606 = vmatprep.mubr.msk.bf16.mxu0 %vm17869_vm7, %v17868_v23  ;;  %16636 = vmatprep.mubr.msk.bf16.mxu1 %vm17869_vm7, %v17868_v23 }
0x1038   : > { %16607 = vmatmul.mubr.msk.bf16.gmra.mrb[32].mxu0 %vm5017_vm11, %v17502_v42  ;;  %16637 = vmatmul.mubr.msk.bf16.gmra.mrb[8].mxu1 %vm4682_vm10, %v19134_v38 }
0x1039   : > { %16610 = vmatprep.mubr.msk.bf16.mxu0 %vm17869_vm7, %v17868_v23  ;;  %16640 = vmatprep.mubr.msk.bf16.mxu1 %vm17869_vm7, %v17868_v23 }
0x1040   : > { %16611 = vmatmul.mubr.msk.bf16.gmra.mrb[36].mxu0 %vm5017_vm11, %v17503_v21  ;;  %16641 = vmatmul.mubr.msk.bf16.gmra.mrb[12].mxu1 %vm4682_vm10, %v19146_v5 }
0x1041   : > { %16658 = vmatprep.mubr.msk.bf16.mxu1 %vm17869_vm7, %v17868_v23  ;;  %16712 = vmatprep.mubr.msk.bf16.mxu0 %vm17869_vm7, %v17868_v23 }
0x107b   : > { %v7290_v38 = vpop.f32.mrb[192].mxu1 }
0x107c   : > { %v7392_v22 = vadd.f32 %v7290_v38, %v20074_v48  ;;  %v16468_v57 = vpop.f32.mrb[193].mxu1 }
0x107d   : > { %v7293_v58 = vpop.f32.mrb[194].mxu1 }
0x107e   : > { %v7393_v3 = vadd.f32 %v7293_v58, %v20079_v17  ;;  %v16469_v32 = vpop.f32.mrb[195].mxu1 }
0x1083   : > { %v7298_v59 = vpop.f32.mrb[196].mxu1 }
0x1084   : > { %v7394_v6 = vadd.f32 %v7298_v59, %v20084_v44  ;;  %v16472_v45 = vpop.f32.mrb[197].mxu1 }
0x1085   : > { %v7301_v63 = vpop.f32.mrb[198].mxu1 }
0x1086   : > { %v7395_v5 = vadd.f32 %v7301_v63, %v20089_v46  ;;  %v16473_v62 = vpop.f32.mrb[199].mxu1 }
0x108b   : > { %v7306_v1 = vpop.f32.mrb[200].mxu1 }
0x108c   : > { %v7396_v50 = vadd.f32 %v7306_v1, %v20094_v27  ;;  %v16476_v30 = vpop.f32.mrb[201].mxu1 }
0x108d   : > { %v7309_v8 = vpop.f32.mrb[202].mxu1 }
0x108e   : > { %v7397_v48 = vadd.f32 %v7309_v8, %v20099_v20  ;;  %v16477_v55 = vpop.f32.mrb[203].mxu1 }
0x1093   : > { %v7314_v2 = vpop.f32.mrb[204].mxu1 }
0x1094   : > { %v7398_v17 = vadd.f32 %v7314_v2, %v20104_v51  ;;  %v16480_v34 = vpop.f32.mrb[205].mxu1 }
0x1095   : > { %v7317_v52 = vpop.f32.mrb[206].mxu1 }
0x1096   : > { %v20384_v44 = vadd.f32 %v7317_v52, %v20110_v60  ;;  %v16481_v7 = vpop.f32.mrb[207].mxu1 }
0x109b   : > { %v7322_v28 = vpop.f32.mrb[208].mxu1 }
0x109c   : > { %v20387_v46 = vadd.f32 %v7322_v28, %v20116_v35  ;;  %v16484_v40 = vpop.f32.mrb[209].mxu1 }
0x109d   : > { %v7325_v27 = vpop.f32.mrb[210].mxu1 }
0x109e   : > { %v20390_v4 = vadd.f32 %v7325_v27, %v20122_v11  ;;  %v16485_v20 = vpop.f32.mrb[211].mxu1 }
0x10a3   : > { %v7330_v56 = vpop.f32.mrb[212].mxu1 }
0x10a4   : > { %v20393_v16 = vadd.f32 %v7330_v56, %v20128_v25  ;;  %v16488_v51 = vpop.f32.mrb[213].mxu1 }
0x10a5   : > { %v7333_v31 = vpop.f32.mrb[214].mxu1 }
0x10a6   : > { %v20396_v60 = vadd.f32 %v7333_v31, %v20131_v36  ;;  %v16489_v14 = vpop.f32.mrb[215].mxu1 }
0x10ab   : > { %v7338_v33 = vpop.f32.mrb[216].mxu1 }
0x10ac   : > { %v20399_v35 = vadd.f32 %v7338_v33, %v20134_v41  ;;  %v16492_v49 = vpop.f32.mrb[217].mxu1 }
0x10ad   : > { %v7341_v18 = vpop.f32.mrb[218].mxu1 }
0x10ae   : > { %v20402_v11 = vadd.f32 %v7341_v18, %v20137_v19  ;;  %v16493_v37 = vpop.f32.mrb[219].mxu1 }
0x10b3   : > { %v7346_v39 = vpop.f32.mrb[220].mxu1  ;;  %v7686_v13 = vpop.f32.mrb[240].mxu0 }
0x10b4   : > { %v20405_v25 = vadd.f32 %v7346_v39, %v20141_v29  ;;  %v20407_v54 = vadd.f32 %v7686_v13, %v7392_v22  ;;  %v16496_v36 = vpop.f32.mrb[221].mxu1  ;;  %v16564_v42 = vpop.f32.mrb[241].mxu0 }
0x10b5   : > { %v7349_v21 = vpop.f32.mrb[222].mxu1  ;;  %v7689_v38 = vpop.f32.mrb[242].mxu0 }
0x10b6   : > { %v20410_v41 = vadd.f32 %v7349_v21, %v20144_v61  ;;  %v20412_v57 = vadd.f32 %v7689_v38, %v7393_v3  ;;  %v16497_v58 = vpop.f32.mrb[223].mxu1  ;;  %v16565_v19 = vpop.f32.mrb[243].mxu0 }
0x10bb   : > { %v7354_v32 = vpop.f32.mrb[224].mxu1  ;;  %v7694_v59 = vpop.f32.mrb[244].mxu0 }
0x10bc   : > { %v20415_v45 = vadd.f32 %v7354_v32, %v20148_v24  ;;  %v20417_v29 = vadd.f32 %v7694_v59, %v7394_v6  ;;  %v16500_v22 = vpop.f32.mrb[225].mxu1  ;;  %v16568_v63 = vpop.f32.mrb[245].mxu0 }
0x10bd   : > { %v7357_v62 = vpop.f32.mrb[226].mxu1  ;;  %v7697_v1 = vpop.f32.mrb[246].mxu0 }
0x10be   : > { %v20420_v30 = vadd.f32 %v7357_v62, %v20151_v26  ;;  %v20422_v61 = vadd.f32 %v7697_v1, %v7395_v5  ;;  %v16501_v3 = vpop.f32.mrb[227].mxu1  ;;  %v16569_v8 = vpop.f32.mrb[247].mxu0 }
0x10c3   : > { %v7362_v55 = vpop.f32.mrb[228].mxu1  ;;  %v7702_v2 = vpop.f32.mrb[248].mxu0 }
0x10c4   : > { %v20425_v34 = vadd.f32 %v7362_v55, %v20155_v53  ;;  %v20427_v24 = vadd.f32 %v7702_v2, %v7396_v50  ;;  %v16504_v6 = vpop.f32.mrb[229].mxu1  ;;  %v16572_v52 = vpop.f32.mrb[249].mxu0 }
0x10c5   : > { %v7365_v7 = vpop.f32.mrb[230].mxu1  ;;  %v7705_v28 = vpop.f32.mrb[250].mxu0 }
0x10c6   : > { %v20430_v40 = vadd.f32 %v7365_v7, %v20158_v47  ;;  %v20432_v26 = vadd.f32 %v7705_v28, %v7397_v48  ;;  %v16505_v5 = vpop.f32.mrb[231].mxu1  ;;  %v16573_v27 = vpop.f32.mrb[251].mxu0 }
0x10cb   : > { %v7370_v20 = vpop.f32.mrb[232].mxu1  ;;  %v7710_v56 = vpop.f32.mrb[252].mxu0 }
0x10cc   : > { %v20435_v51 = vadd.f32 %v7370_v20, %v20162_v43  ;;  %v20437_v53 = vadd.f32 %v7710_v56, %v7398_v17  ;;  %v16508_v50 = vpop.f32.mrb[233].mxu1  ;;  %v16576_v31 = vpop.f32.mrb[253].mxu0 }
0x10cd   : > { %v7373_v14 = vpop.f32.mrb[234].mxu1  ;;  %v7713_v33 = vpop.f32.mrb[254].mxu0 }
0x10ce   : > { %v20440_v49 = vadd.f32 %v7373_v14, %v20165_v9  ;;  %v20443_v47 = vadd.f32 %v7713_v33, %v20384_v44  ;;  %v16509_v48 = vpop.f32.mrb[235].mxu1  ;;  %v16577_v18 = vpop.f32.mrb[255].mxu0 }
0x10d3   : > { %v7378_v37 = vpop.f32.mrb[236].mxu1  ;;  %v7718_v39 = vpop.f32.mrb[0].mxu0 }
0x10d4   : > { %v20446_v13 = vadd.f32 %v7378_v37, %v20169_v12  ;;  %v20449_v43 = vadd.f32 %v7718_v39, %v20387_v46  ;;  %v16512_v17 = vpop.f32.mrb[237].mxu1  ;;  %v16580_v36 = vpop.f32.mrb[1].mxu0 }
0x10d5   : > { %v7381_v42 = vpop.f32.mrb[238].mxu1  ;;  %v7721_v21 = vpop.f32.mrb[2].mxu0 }
0x10d6   : > { %v20452_v9 = vadd.f32 %v7381_v42, %v20172_v10  ;;  %v20455_v44 = vadd.f32 %v7721_v21, %v20390_v4  ;;  %v16513_v38 = vpop.f32.mrb[239].mxu1  ;;  %v16581_v58 = vpop.f32.mrb[3].mxu0 }
0x10db   : > { %v7386_v19 = vpop.f32.mrb[240].mxu1  ;;  %v7726_v32 = vpop.f32.mrb[4].mxu0 }
0x10dc   : > { %v20458_v12 = vadd.f32 %v7386_v19, %v20176_v15  ;;  %v20461_v46 = vadd.f32 %v7726_v32, %v20393_v16  ;;  %v16584_v59 = vpop.f32.mrb[5].mxu0  ;;  %v16516_v22 = vpop.f32.mrb[241].mxu1 }
0x10dd   : > { %v7729_v63 = vpop.f32.mrb[6].mxu0  ;;  %v7389_v62 = vpop.f32.mrb[242].mxu1 }
0x10de   : > { %v20464_v10 = vadd.f32 %v7729_v63, %v20396_v60  ;;  %v16517_v1 = vpop.f32.mrb[243].mxu1  ;;  %v16585_v4 = vpop.f32.mrb[7].mxu0 }
0x10e3   : > { %v7734_v3 = vpop.f32.mrb[12].mxu0  ;;  %v7856_v8 = vpop.f32.mrb[244].mxu1 }
0x10e4   : > { %v20467_v55 = vadd.f32 %v7734_v3, %v20399_v35  ;;  %v16588_v2 = vpop.f32.mrb[13].mxu0  ;;  %v16618_v15 = vpop.f32.mrb[245].mxu1 }
0x10e5   : > { %v7737_v6 = vpop.f32.mrb[14].mxu0  ;;  %v7859_v52 = vpop.f32.mrb[246].mxu1 }
0x10e6   : > { %v20470_v16 = vadd.f32 %v7737_v6, %v20402_v11  ;;  %v7910_v7 = vpack.c.bf16 %v7859_v52, %v7856_v8  ;;  %v16619_v28 = vpop.f32.mrb[247].mxu1  ;;  %v16589_v5 = vpop.f32.mrb[15].mxu0 }
0x10e8   : > { %16645 = vmatpush3.bf16.msra.mxu1 %v7910_v7 }
0x10e9   : > { %16646 = vmatprep.subr.bf16.mxu1 %v17868_v23 }
0x10eb   : > { %v7742_v60 = vpop.f32.mrb[16].mxu0  ;;  %v7864_v27 = vpop.f32.mrb[248].mxu1 }
0x10ec   : > { %v20474_v20 = vadd.f32 %v7742_v60, %v20405_v25  ;;  %v16592_v35 = vpop.f32.mrb[17].mxu0  ;;  %v16622_v56 = vpop.f32.mrb[249].mxu1 }
0x10ed   : > { %v7745_v50 = vpop.f32.mrb[18].mxu0  ;;  %v7867_v31 = vpop.f32.mrb[250].mxu1 }
0x10ee   : > { %v20477_v14 = vadd.f32 %v7745_v50, %v20410_v41  ;;  %v7911_v11 = vpack.c.bf16 %v7867_v31, %v7864_v27  ;;  %v16623_v33 = vpop.f32.mrb[251].mxu1  ;;  %v16593_v48 = vpop.f32.mrb[19].mxu0 }
0x10f0   : > { %16647 = vmatpush3.bf16.msra.mxu1 %v7911_v11 }
0x10f1   : > { %16648 = vmatprep.subr.bf16.mxu1 %v17868_v23 }
0x10f3   : > { %v7750_v18 = vpop.f32.mrb[20].mxu0  ;;  %v7872_v37 = vpop.f32.mrb[252].mxu1 }
0x10f4   : > { %v20481_v39 = vadd.f32 %v7750_v18, %v20415_v45  ;;  %v16596_v25 = vpop.f32.mrb[21].mxu0  ;;  %v16626_v17 = vpop.f32.mrb[253].mxu1 }
0x10f5   : > { %v7753_v36 = vpop.f32.mrb[22].mxu0  ;;  %v7875_v42 = vpop.f32.mrb[254].mxu1 }
0x10f6   : > { %v20484_v21 = vadd.f32 %v7753_v36, %v20420_v30  ;;  %v7912_v41 = vpack.c.bf16 %v7875_v42, %v7872_v37  ;;  %v16627_v38 = vpop.f32.mrb[255].mxu1  ;;  %v16597_v58 = vpop.f32.mrb[23].mxu0 }
0x10f8   : > { %16649 = vmatpush3.bf16.msra.mxu1 %v7912_v41 }
0x10f9   : > { %16650 = vmatprep.subr.bf16.mxu1 %v17868_v23 }
0x10fb   : > { %v7758_v19 = vpop.f32.mrb[24].mxu0  ;;  %v7880_v32 = vpop.f32.mrb[0].mxu1 }
0x10fc   : > { %v20488_v59 = vadd.f32 %v7758_v19, %v20425_v34  ;;  %v16600_v45 = vpop.f32.mrb[25].mxu0  ;;  %v16630_v22 = vpop.f32.mrb[1].mxu1 }
0x10fd   : > { %v7761_v63 = vpop.f32.mrb[26].mxu0  ;;  %v7883_v62 = vpop.f32.mrb[2].mxu1  ;;  %v17505_v22 = vld [vmem:[%s22720_s10 + $0x328] sm:$0xff]  }
0x10fe   : > { %v20491_v1 = vadd.f32 %v7761_v63, %v20430_v40  ;;  %v7913_v30 = vpack.c.bf16 %v7883_v62, %v7880_v32  ;;  %v16631_v4 = vpop.f32.mrb[3].mxu1  ;;  %v16601_v3 = vpop.f32.mrb[27].mxu0  ;;  %v17504_v32 = vld [vmem:[%s22720_s10 + $0x320] sm:$0xff]   ;;  %v17506_v63 = vld [vmem:[%s22720_s10 + $0x330] sm:$0xff]   ;;  %v17507_v62 = vld [vmem:[%s22720_s10 + $0x338] sm:$0xff]  }
0x10ff   : > { %v17509_v4 = vld [vmem:[%s22720_s10 + $0x348] sm:$0xff]   ;;  %v17510_v3 = vld [vmem:[%s22720_s10 + $0x350] sm:$0xff]  }
0x1100   : > { %16651 = vmatpush3.bf16.msra.mxu1 %v7913_v30  ;;  %v17508_v30 = vld [vmem:[%s22720_s10 + $0x340] sm:$0xff]  }
0x1101   : > { %16652 = vmatprep.subr.bf16.mxu1 %v17868_v23 }
0x1103   : > { %v7766_v8 = vpop.f32.mrb[28].mxu0  ;;  %v7888_v2 = vpop.f32.mrb[4].mxu1 }
0x1104   : > { %v20495_v15 = vadd.f32 %v7766_v8, %v20435_v51  ;;  %v16604_v34 = vpop.f32.mrb[29].mxu0  ;;  %v16634_v6 = vpop.f32.mrb[5].mxu1  ;;  %v17511_v8 = vld [vmem:[%s22720_s10 + $0x358] sm:$0xff]  }
0x1105   : > { %v7769_v52 = vpop.f32.mrb[30].mxu0  ;;  %v7891_v7 = vpop.f32.mrb[6].mxu1  ;;  %v17513_v34 = vld [vmem:[%s22720_s10 + $0x368] sm:$0xff]   ;;  %v17514_v6 = vld [vmem:[%s22720_s10 + $0x370] sm:$0xff]  }
0x1106   : > { %v20498_v28 = vadd.f32 %v7769_v52, %v20440_v49  ;;  %v7914_v40 = vpack.c.bf16 %v7891_v7, %v7888_v2  ;;  %v16635_v5 = vpop.f32.mrb[7].mxu1  ;;  %v16605_v60 = vpop.f32.mrb[31].mxu0  ;;  %v17512_v2 = vld [vmem:[%s22720_s10 + $0x360] sm:$0xff]   ;;  %v17515_v52 = vld [vmem:[%s22720_s10 + $0x378] sm:$0xff]  }
0x1107   : > { %v8279_v7 = vld [vmem:[%s22724_s14] sm:$0xf] }
0x1108   : > { %16653 = vmatpush3.bf16.msra.mxu1 %v7914_v40  ;;  %v8321_v40 = vsel %vm880_vm5, %v8279_v7, 0  ;;  %v17516_v5 = vld [vmem:[%s22720_s10 + $0x380] ss:$0 sps:$4 sm:$0x33]  }
0x1109   : > { %16654 = vmatprep.subr.bf16.mxu1 %v17868_v23  ;;  %16711 = vmatpush3.bf16.msra.mxu0 %v8321_v40 }
0x110a   : > { %8834 = vmatprep.subr.bf16.mxu0 %v17870_v0 }
0x110b   : > { %v7774_v27 = vpop.f32.mrb[32].mxu0  ;;  %v7896_v35 = vpop.f32.mrb[8].mxu1 }
0x110c   : > { %v20502_v56 = vadd.f32 %v7774_v27, %v20446_v13  ;;  %v16608_v51 = vpop.f32.mrb[33].mxu0  ;;  %v16638_v50 = vpop.f32.mrb[9].mxu1  ;;  %v20604_v27 = vld [vmem:[%s22722_s12] ss:$0 sm:$0xff] }
0x110d   : > { %v7777_v31 = vpop.f32.mrb[34].mxu0  ;;  %v7899_v11 = vpop.f32.mrb[10].mxu1 }
0x110e   : > { %v20505_v33 = vadd.f32 %v7777_v31, %v20452_v9  ;;  %v7915_v49 = vpack.c.bf16 %v7899_v11, %v7896_v35  ;;  %v16639_v48 = vpop.f32.mrb[11].mxu1  ;;  %v16609_v18 = vpop.f32.mrb[35].mxu0  ;;  %v13923_v9 = vld [vmem:[%s22724_s14 + $0x4] sm:$0xf] }
0x1110   : > { %16655 = vmatpush3.bf16.msra.mxu1 %v7915_v49 }
0x1111   : > { %16656 = vmatprep.subr.bf16.mxu1 %v17868_v23 }
0x1113   : > { %v7782_v37 = vpop.f32.mrb[36].mxu0  ;;  %v7904_v25 = vpop.f32.mrb[12].mxu1 }
0x1114   : > { %v20509_v17 = vadd.f32 %v7782_v37, %v20458_v12  ;;  %v7916_v13 = vpack.c.bf16 %v7904_v25, %v7904_v25  ;;  %v16642_v36 = vpop.f32.mrb[13].mxu1  ;;  %v16612_v42 = vpop.f32.mrb[37].mxu0  ;;  %v8500_v12 = vsel %vm880_vm5, %v13923_v9, 0 }
0x1115   : > { %v7907_v41 = vpop.f32.mrb[14].mxu1  ;;  %v7785_v38 = vpop.f32.mrb[38].mxu0 }
0x1116   : > { %v16643_v58 = vpop.f32.mrb[15].mxu1  ;;  %v8046_v19 = vsel %vm2596_vm8, %v7916_v13, 0  ;;  %v16613_v45 = vpop.f32.mrb[39].mxu0 }
0x1117   : > { %16657 = vmatpush3.bf16.msra.mxu1 %v8046_v19 }
0x1118   : > { %16764 = vmatprep.subr.bf16.mxu1 %v17868_v23 }
0x111a   : > { %16659 = vmatmul.mubr.msk.bf16.vlgmr.msra.gmra.mrb[16].mxu1 %vm5017_vm11, %v17504_v32 }
0x111b   : > { %16662 = vmatprep.mubr.msk.bf16.mxu1 %vm17869_vm7, %v17868_v23  ;;  %16765 = vmatpush3.bf16.msra.mxu1 %v8500_v12 }
0x111c   : > { %9126 = vmatprep.subr.bf16.mxu1 %v17870_v0 }
0x1122   : > { %16663 = vmatmul.mubr.msk.bf16.gmra.mrb[20].mxu1 %vm5017_vm11, %v17505_v22 }
0x1123   : > { %16666 = vmatprep.mubr.msk.bf16.mxu1 %vm17869_vm7, %v17868_v23 }
0x112a   : > { %16667 = vmatmul.mubr.msk.bf16.gmra.mrb[24].mxu1 %vm5017_vm11, %v17506_v63 }
0x112b   : > { %16670 = vmatprep.mubr.msk.bf16.mxu1 %vm17869_vm7, %v17868_v23 }
0x1132   : > { %16671 = vmatmul.mubr.msk.bf16.gmra.mrb[28].mxu1 %vm5017_vm11, %v17507_v62 }
0x1133   : > { %16674 = vmatprep.mubr.msk.bf16.mxu1 %vm17869_vm7, %v17868_v23 }
0x113a   : > { %16675 = vmatmul.mubr.msk.bf16.gmra.mrb[32].mxu1 %vm5017_vm11, %v17508_v30 }
0x113b   : > { %16678 = vmatprep.mubr.msk.bf16.mxu1 %vm17869_vm7, %v17868_v23 }
0x1142   : > { %16679 = vmatmul.mubr.msk.bf16.gmra.mrb[36].mxu1 %vm5017_vm11, %v17509_v4 }
0x1143   : > { %16682 = vmatprep.mubr.msk.bf16.mxu1 %vm17869_vm7, %v17868_v23 }
0x114a   : > { %16683 = vmatmul.mubr.msk.bf16.gmra.mrb[40].mxu1 %vm5017_vm11, %v17510_v3 }
0x114b   : > { %16686 = vmatprep.mubr.msk.bf16.mxu1 %vm17869_vm7, %v17868_v23 }
0x1152   : > { %16687 = vmatmul.mubr.msk.bf16.gmra.mrb[44].mxu1 %vm5017_vm11, %v17511_v8 }
0x1153   : > { %16690 = vmatprep.mubr.msk.bf16.mxu1 %vm17869_vm7, %v17868_v23 }
0x115a   : > { %16691 = vmatmul.mubr.msk.bf16.gmra.mrb[48].mxu1 %vm5017_vm11, %v17512_v2 }
0x115b   : > { %16694 = vmatprep.mubr.msk.bf16.mxu1 %vm17869_vm7, %v17868_v23 }
0x1162   : > { %16695 = vmatmul.mubr.msk.bf16.gmra.mrb[52].mxu1 %vm5017_vm11, %v17513_v34 }
0x1163   : > { %16698 = vmatprep.mubr.msk.bf16.mxu1 %vm17869_vm7, %v17868_v23 }
0x116a   : > { %16699 = vmatmul.mubr.msk.bf16.gmra.mrb[56].mxu1 %vm5017_vm11, %v17514_v6 }
0x116b   : > { %16702 = vmatprep.mubr.msk.bf16.mxu1 %vm17869_vm7, %v17868_v23 }
0x1172   : > { %16703 = vmatmul.mubr.msk.bf16.gmra.mrb[60].mxu1 %vm5017_vm11, %v17515_v52 }
0x1173   : > { %16706 = vmatprep.mubr.msk.bf16.mxu1 %vm17869_vm7, %v17868_v23 }
0x117a   : > { %16707 = vmatmul.mubr.msk.bf16.gmra.mrb[64].mxu1 %vm5017_vm11, %v17516_v5 }
0x117b   : > { %16766 = vmatprep.mubr.msk.bf16.mxu1 %vm17869_vm7, %v17868_v23 }
0x11ed   : > { %v8082_v60 = vpop.f32.mrb[16].mxu1 }
0x11ee   : > { %v8184_v35 = vadd.f32 %v8082_v60, %v20407_v54  ;;  %v16660_v51 = vpop.f32.mrb[17].mxu1 }
0x11ef   : > { %v8085_v50 = vpop.f32.mrb[18].mxu1 }
0x11f0   : > { %v8216_v31 = vadd.f32 %v20604_v27, %v8184_v35  ;;  %v8185_v11 = vadd.f32 %v8085_v50, %v20412_v57  ;;  %v16661_v49 = vpop.f32.mrb[19].mxu1 }
0x11f2   : > { %v8217_v48 = vadd.f32 %v20604_v27, %v8185_v11  ;;  %v8241_v18 = vmax.f32 %v8216_v31, 0.0 }
0x11f4   : > { %v8242_v37 = vmax.f32 %v8217_v48, 0.0 }
0x11f5   : > { %v8090_v25 = vpop.f32.mrb[20].mxu1 }
0x11f6   : > { %v20610_v13 = vpack.c.bf16 %v8242_v37, %v8241_v18  ;;  %v8186_v36 = vadd.f32 %v8090_v25, %v20417_v29  ;;  %v16664_v42 = vpop.f32.mrb[21].mxu1 }
0x11f7   : > { %v8093_v41 = vpop.f32.mrb[22].mxu1 }
0x11f8   : > { %v8218_v54 = vadd.f32 %v20604_v27, %v8186_v36  ;;  %v8187_v9 = vadd.f32 %v8093_v41, %v20422_v61  ;;  %16713 = vmatmul.mubr.msk.bf16.vlgmr.msra.gmra.mrb[40].mxu0 %vm8280_vm12, %v20610_v13  ;;  %16767 = vmatmul.mubr.msk.bf16.vlgmr.msra.gmra.mrb[68].mxu1 %vm8280_vm12, %v20610_v13  ;;  %v16665_v57 = vpop.f32.mrb[23].mxu1 }
0x11f9   : > { %16716 = vmatprep.mubr.msk.bf16.mxu0 %vm17869_vm7, %v17868_v23  ;;  %16770 = vmatprep.mubr.msk.bf16.mxu1 %vm17869_vm7, %v17868_v23 }
0x11fa   : > { %v8219_v29 = vadd.f32 %v20604_v27, %v8187_v9  ;;  %v8243_v38 = vmax.f32 %v8218_v54, 0.0 }
0x11fc   : > { %v8244_v58 = vmax.f32 %v8219_v29, 0.0 }
0x11fd   : > { %v8098_v19 = vpop.f32.mrb[24].mxu1 }
0x11fe   : > { %v20624_v32 = vpack.c.bf16 %v8244_v58, %v8243_v38  ;;  %v8188_v61 = vadd.f32 %v8098_v19, %v20427_v24  ;;  %v16668_v45 = vpop.f32.mrb[25].mxu1 }
0x11ff   : > { %v8101_v12 = vpop.f32.mrb[26].mxu1 }
0x1200   : > { %v8220_v22 = vadd.f32 %v20604_v27, %v8188_v61  ;;  %v8189_v63 = vadd.f32 %v8101_v12, %v20432_v26  ;;  %16717 = vmatmul.mubr.msk.bf16.gmra.mrb[8].mxu0 %vm8280_vm12, %v20624_v32  ;;  %16771 = vmatmul.mubr.msk.bf16.gmra.mrb[72].mxu1 %vm8280_vm12, %v20624_v32  ;;  %v16669_v62 = vpop.f32.mrb[27].mxu1 }
0x1201   : > { %16720 = vmatprep.mubr.msk.bf16.mxu0 %vm17869_vm7, %v17868_v23  ;;  %16774 = vmatprep.mubr.msk.bf16.mxu1 %vm17869_vm7, %v17868_v23 }
0x1202   : > { %v8221_v24 = vadd.f32 %v20604_v27, %v8189_v63  ;;  %v8245_v30 = vmax.f32 %v8220_v22, 0.0 }
0x1204   : > { %v8246_v4 = vmax.f32 %v8221_v24, 0.0 }
0x1205   : > { %v8106_v3 = vpop.f32.mrb[28].mxu1 }
0x1206   : > { %v20638_v8 = vpack.c.bf16 %v8246_v4, %v8245_v30  ;;  %v8190_v26 = vadd.f32 %v8106_v3, %v20437_v53  ;;  %v16672_v2 = vpop.f32.mrb[29].mxu1 }
0x1207   : > { %v8109_v34 = vpop.f32.mrb[30].mxu1 }
0x1208   : > { %v8222_v6 = vadd.f32 %v20604_v27, %v8190_v26  ;;  %v8191_v52 = vadd.f32 %v8109_v34, %v20443_v47  ;;  %16721 = vmatmul.mubr.msk.bf16.gmra.mrb[44].mxu0 %vm8280_vm12, %v20638_v8  ;;  %16775 = vmatmul.mubr.msk.bf16.gmra.mrb[76].mxu1 %vm8280_vm12, %v20638_v8  ;;  %v16673_v7 = vpop.f32.mrb[31].mxu1 }
0x1209   : > { %16724 = vmatprep.mubr.msk.bf16.mxu0 %vm17869_vm7, %v17868_v23  ;;  %16778 = vmatprep.mubr.msk.bf16.mxu1 %vm17869_vm7, %v17868_v23 }
0x120a   : > { %v8223_v53 = vadd.f32 %v20604_v27, %v8191_v52  ;;  %v8247_v40 = vmax.f32 %v8222_v6, 0.0 }
0x120c   : > { %v8248_v5 = vmax.f32 %v8223_v53, 0.0 }
0x120d   : > { %v8114_v60 = vpop.f32.mrb[32].mxu1 }
0x120e   : > { %v20652_v35 = vpack.c.bf16 %v8248_v5, %v8247_v40  ;;  %v8192_v47 = vadd.f32 %v8114_v60, %v20449_v43  ;;  %v16676_v51 = vpop.f32.mrb[33].mxu1 }
0x120f   : > { %v8117_v50 = vpop.f32.mrb[34].mxu1 }
0x1210   : > { %v8224_v31 = vadd.f32 %v20604_v27, %v8192_v47  ;;  %v8193_v11 = vadd.f32 %v8117_v50, %v20455_v44  ;;  %16725 = vmatmul.mubr.msk.bf16.gmra.mrb[48].mxu0 %vm8280_vm12, %v20652_v35  ;;  %16779 = vmatmul.mubr.msk.bf16.gmra.mrb[80].mxu1 %vm8280_vm12, %v20652_v35  ;;  %v16677_v49 = vpop.f32.mrb[35].mxu1 }
0x1211   : > { %16728 = vmatprep.mubr.msk.bf16.mxu0 %vm17869_vm7, %v17868_v23  ;;  %16782 = vmatprep.mubr.msk.bf16.mxu1 %vm17869_vm7, %v17868_v23 }
0x1212   : > { %v8225_v43 = vadd.f32 %v20604_v27, %v8193_v11  ;;  %v8249_v48 = vmax.f32 %v8224_v31, 0.0 }
0x1214   : > { %v8250_v18 = vmax.f32 %v8225_v43, 0.0 }
0x1215   : > { %v8122_v37 = vpop.f32.mrb[36].mxu1 }
0x1216   : > { %v20666_v25 = vpack.c.bf16 %v8250_v18, %v8249_v48  ;;  %v8194_v44 = vadd.f32 %v8122_v37, %v20461_v46  ;;  %v16680_v36 = vpop.f32.mrb[37].mxu1 }
0x1217   : > { %v8125_v42 = vpop.f32.mrb[38].mxu1 }
0x1218   : > { %v8226_v41 = vadd.f32 %v20604_v27, %v8194_v44  ;;  %v8195_v54 = vadd.f32 %v8125_v42, %v20464_v10  ;;  %16729 = vmatmul.mubr.msk.bf16.gmra.mrb[52].mxu0 %vm8280_vm12, %v20666_v25  ;;  %16783 = vmatmul.mubr.msk.bf16.gmra.mrb[84].mxu1 %vm8280_vm12, %v20666_v25  ;;  %v16681_v9 = vpop.f32.mrb[39].mxu1 }
0x1219   : > { %16732 = vmatprep.mubr.msk.bf16.mxu0 %vm17869_vm7, %v17868_v23  ;;  %16786 = vmatprep.mubr.msk.bf16.mxu1 %vm17869_vm7, %v17868_v23 }
0x121a   : > { %v8227_v46 = vadd.f32 %v20604_v27, %v8195_v54  ;;  %v8251_v57 = vmax.f32 %v8226_v41, 0.0 }
0x121c   : > { %v8252_v29 = vmax.f32 %v8227_v46, 0.0 }
0x121d   : > { %v8130_v38 = vpop.f32.mrb[40].mxu1 }
0x121e   : > { %v20680_v58 = vpack.c.bf16 %v8252_v29, %v8251_v57  ;;  %v8196_v10 = vadd.f32 %v8130_v38, %v20467_v55  ;;  %v16684_v19 = vpop.f32.mrb[41].mxu1 }
0x121f   : > { %v8133_v61 = vpop.f32.mrb[42].mxu1 }
0x1220   : > { %v8228_v45 = vadd.f32 %v20604_v27, %v8196_v10  ;;  %v8197_v12 = vadd.f32 %v8133_v61, %v20470_v16  ;;  %16733 = vmatmul.mubr.msk.bf16.gmra.mrb[56].mxu0 %vm8280_vm12, %v20680_v58  ;;  %16787 = vmatmul.mubr.msk.bf16.gmra.mrb[88].mxu1 %vm8280_vm12, %v20680_v58  ;;  %v16685_v22 = vpop.f32.mrb[43].mxu1 }
0x1221   : > { %16736 = vmatprep.mubr.msk.bf16.mxu0 %vm17869_vm7, %v17868_v23  ;;  %16790 = vmatprep.mubr.msk.bf16.mxu1 %vm17869_vm7, %v17868_v23 }
0x1222   : > { %v8229_v55 = vadd.f32 %v20604_v27, %v8197_v12  ;;  %v8253_v63 = vmax.f32 %v8228_v45, 0.0 }
0x1224   : > { %v8254_v62 = vmax.f32 %v8229_v55, 0.0 }
0x1225   : > { %v8138_v24 = vpop.f32.mrb[44].mxu1 }
0x1226   : > { %v20694_v30 = vpack.c.bf16 %v8254_v62, %v8253_v63  ;;  %v8198_v16 = vadd.f32 %v8138_v24, %v20474_v20  ;;  %v16688_v4 = vpop.f32.mrb[45].mxu1 }
0x1227   : > { %v8141_v3 = vpop.f32.mrb[46].mxu1 }
0x1228   : > { %v8230_v26 = vadd.f32 %v20604_v27, %v8198_v16  ;;  %v8199_v2 = vadd.f32 %v8141_v3, %v20477_v14  ;;  %16737 = vmatmul.mubr.msk.bf16.gmra.mrb[60].mxu0 %vm8280_vm12, %v20694_v30  ;;  %16791 = vmatmul.mubr.msk.bf16.gmra.mrb[92].mxu1 %vm8280_vm12, %v20694_v30  ;;  %v16689_v34 = vpop.f32.mrb[47].mxu1 }
0x1229   : > { %16740 = vmatprep.mubr.msk.bf16.mxu0 %vm17869_vm7, %v17868_v23  ;;  %16794 = vmatprep.mubr.msk.bf16.mxu1 %vm17869_vm7, %v17868_v23 }
0x122a   : > { %v8231_v20 = vadd.f32 %v20604_v27, %v8199_v2  ;;  %v8255_v6 = vmax.f32 %v8230_v26, 0.0 }
0x122c   : > { %v8256_v52 = vmax.f32 %v8231_v20, 0.0 }
0x122d   : > { %v8146_v7 = vpop.f32.mrb[48].mxu1 }
0x122e   : > { %v20708_v53 = vpack.c.bf16 %v8256_v52, %v8255_v6  ;;  %v8200_v14 = vadd.f32 %v8146_v7, %v20481_v39  ;;  %v16692_v40 = vpop.f32.mrb[49].mxu1 }
0x122f   : > { %v8149_v5 = vpop.f32.mrb[50].mxu1 }
0x1230   : > { %v8232_v60 = vadd.f32 %v20604_v27, %v8200_v14  ;;  %v8201_v47 = vadd.f32 %v8149_v5, %v20484_v21  ;;  %16741 = vmatmul.mubr.msk.bf16.gmra.mrb[64].mxu0 %vm8280_vm12, %v20708_v53  ;;  %16795 = vmatmul.mubr.msk.bf16.gmra.mrb[96].mxu1 %vm8280_vm12, %v20708_v53  ;;  %v16693_v51 = vpop.f32.mrb[51].mxu1 }
0x1231   : > { %16744 = vmatprep.mubr.msk.bf16.mxu0 %vm17869_vm7, %v17868_v23  ;;  %16798 = vmatprep.mubr.msk.bf16.mxu1 %vm17869_vm7, %v17868_v23 }
0x1232   : > { %v8233_v39 = vadd.f32 %v20604_v27, %v8201_v47  ;;  %v8257_v50 = vmax.f32 %v8232_v60, 0.0 }
0x1234   : > { %v8258_v31 = vmax.f32 %v8233_v39, 0.0 }
0x1235   : > { %v8154_v11 = vpop.f32.mrb[52].mxu1 }
0x1236   : > { %v20722_v49 = vpack.c.bf16 %v8258_v31, %v8257_v50  ;;  %v8202_v21 = vadd.f32 %v8154_v11, %v20488_v59  ;;  %v16696_v43 = vpop.f32.mrb[53].mxu1 }
0x1237   : > { %v8157_v48 = vpop.f32.mrb[54].mxu1 }
0x1238   : > { %v8234_v18 = vadd.f32 %v20604_v27, %v8202_v21  ;;  %v8203_v37 = vadd.f32 %v8157_v48, %v20491_v1  ;;  %16745 = vmatmul.mubr.msk.bf16.gmra.mrb[68].mxu0 %vm8280_vm12, %v20722_v49  ;;  %16799 = vmatmul.mubr.msk.bf16.gmra.mrb[100].mxu1 %vm8280_vm12, %v20722_v49  ;;  %v16697_v44 = vpop.f32.mrb[55].mxu1 }
0x1239   : > { %16748 = vmatprep.mubr.msk.bf16.mxu0 %vm17869_vm7, %v17868_v23  ;;  %16802 = vmatprep.mubr.msk.bf16.mxu1 %vm17869_vm7, %v17868_v23 }
0x123a   : > { %v8235_v59 = vadd.f32 %v20604_v27, %v8203_v37  ;;  %v8259_v36 = vmax.f32 %v8234_v18, 0.0 }
0x123c   : > { %v8260_v42 = vmax.f32 %v8235_v59, 0.0 }
0x123d   : > { %v8162_v41 = vpop.f32.mrb[56].mxu1 }
0x123e   : > { %v20736_v54 = vpack.c.bf16 %v8260_v42, %v8259_v36  ;;  %v8204_v1 = vadd.f32 %v8162_v41, %v20495_v15  ;;  %v16700_v9 = vpop.f32.mrb[57].mxu1 }
0x123f   : > { %v8165_v46 = vpop.f32.mrb[58].mxu1 }
0x1240   : > { %v8236_v57 = vadd.f32 %v20604_v27, %v8204_v1  ;;  %v8205_v29 = vadd.f32 %v8165_v46, %v20498_v28  ;;  %16749 = vmatmul.mubr.msk.bf16.gmra.mrb[72].mxu0 %vm8280_vm12, %v20736_v54  ;;  %16803 = vmatmul.mubr.msk.bf16.gmra.mrb[104].mxu1 %vm8280_vm12, %v20736_v54  ;;  %v16701_v38 = vpop.f32.mrb[59].mxu1 }
0x1241   : > { %16752 = vmatprep.mubr.msk.bf16.mxu0 %vm17869_vm7, %v17868_v23  ;;  %16806 = vmatprep.mubr.msk.bf16.mxu1 %vm17869_vm7, %v17868_v23 }
0x1242   : > { %v8237_v15 = vadd.f32 %v20604_v27, %v8205_v29  ;;  %v8261_v10 = vmax.f32 %v8236_v57, 0.0 }
0x1244   : > { %v8262_v19 = vmax.f32 %v8237_v15, 0.0 }
0x1245   : > { %v8170_v61 = vpop.f32.mrb[60].mxu1 }
0x1246   : > { %v20750_v45 = vpack.c.bf16 %v8262_v19, %v8261_v10  ;;  %v8206_v28 = vadd.f32 %v8170_v61, %v20502_v56  ;;  %v16704_v12 = vpop.f32.mrb[61].mxu1 }
0x1247   : > { %v8173_v22 = vpop.f32.mrb[62].mxu1 }
0x1248   : > { %v8238_v55 = vadd.f32 %v20604_v27, %v8206_v28  ;;  %v8207_v63 = vadd.f32 %v8173_v22, %v20505_v33  ;;  %16753 = vmatmul.mubr.msk.bf16.gmra.mrb[76].mxu0 %vm8280_vm12, %v20750_v45  ;;  %16807 = vmatmul.mubr.msk.bf16.gmra.mrb[108].mxu1 %vm8280_vm12, %v20750_v45  ;;  %v16705_v62 = vpop.f32.mrb[63].mxu1 }
0x1249   : > { %16756 = vmatprep.mubr.msk.bf16.mxu0 %vm17869_vm7, %v17868_v23  ;;  %16810 = vmatprep.mubr.msk.bf16.mxu1 %vm17869_vm7, %v17868_v23 }
0x124a   : > { %v8239_v56 = vadd.f32 %v20604_v27, %v8207_v63  ;;  %v8263_v24 = vmax.f32 %v8238_v55, 0.0 }
0x124c   : > { %v8264_v16 = vmax.f32 %v8239_v56, 0.0 }
0x124d   : > { %v8178_v4 = vpop.f32.mrb[64].mxu1 }
0x124e   : > { %v20764_v3 = vpack.c.bf16 %v8264_v16, %v8263_v24  ;;  %v8208_v33 = vadd.f32 %v8178_v4, %v20509_v17  ;;  %v16708_v26 = vpop.f32.mrb[65].mxu1  ;;  %v17519_v17 = vld [vmem:[%s22723_s13 + $0xcc] ss:$8 sps:$4 sm:$0xff]  }
0x124f   : > { %v8181_v2 = vpop.f32.mrb[66].mxu1 }
0x1250   : > { %v8240_v34 = vadd.f32 %v20604_v27, %v8208_v33  ;;  %16757 = vmatmul.mubr.msk.bf16.gmra.mrb[80].mxu0 %vm8280_vm12, %v20764_v3  ;;  %16811 = vmatmul.mubr.msk.bf16.gmra.mrb[112].mxu1 %vm8280_vm12, %v20764_v3  ;;  %v16709_v20 = vpop.f32.mrb[67].mxu1  ;;  %v17537_v27 = vld [vmem:[%s22723_s13 + $0x4] ss:$8 sps:$4 sm:$0xff]  }
0x1251   : > { %16760 = vmatprep.mubr.msk.bf16.mxu0 %vm17869_vm7, %v17868_v23  ;;  %16814 = vmatprep.mubr.msk.bf16.mxu1 %vm17869_vm7, %v17868_v23 }
0x1252   : > { %v8265_v6 = vmax.f32 %v8240_v34, 0.0 }
0x1254   : > { %v20776_v52 = vpack.c.bf16 %v8265_v6, %v8265_v6 }
0x1258   : > { %16761 = vmatmul.mubr.msk.bf16.gmra.mrb[84].mxu0 %vm8280_vm12, %v20776_v52  ;;  %16815 = vmatmul.mubr.msk.bf16.gmra.mrb[116].mxu1 %vm8280_vm12, %v20776_v52 }
0x1259   : > { %13988 = vmatprep.mubr.msk.bf16.mxu0 %vm8791_vm13, %v17519_v17  ;;  %14027 = vmatprep.mubr.msk.bf16.mxu1 %vm8791_vm13, %v17537_v27 }
0x12cb   : > { %v8357_v7 = vpop.f32.mrb[40].mxu0  ;;  %v8536_v14 = vpop.f32.mrb[68].mxu1 }
0x12cc   : > { %v16714_v40 = vpop.f32.mrb[41].mxu0  ;;  %v16768_v5 = vpop.f32.mrb[69].mxu1 }
0x12cd   : > { %v8360_v60 = vpop.f32.mrb[42].mxu0  ;;  %v8539_v47 = vpop.f32.mrb[70].mxu1 }
0x12ce   : > { %v8459_v51 = vpack.c.bf16 %v8360_v60, %v8357_v7  ;;  %v8638_v39 = vpack.c.bf16 %v8539_v47, %v8536_v14  ;;  %v16715_v50 = vpop.f32.mrb[43].mxu0  ;;  %v16769_v31 = vpop.f32.mrb[71].mxu1 }
0x12d0   : > { %8835 = vmatpush1.bf16.msra.mxu0 %v8638_v39  ;;  %9127 = vmatpush1.bf16.msra.mxu1 %v8459_v51 }
0x12d1   : > { %8836 = vmatprep.subr.bf16.mxu0 %v17870_v0  ;;  %9128 = vmatprep.subr.bf16.mxu1 %v17870_v0 }
0x12d3   : > { %v8365_v11 = vpop.f32.mrb[8].mxu0  ;;  %v8544_v21 = vpop.f32.mrb[72].mxu1 }
0x12d4   : > { %v16718_v43 = vpop.f32.mrb[9].mxu0  ;;  %v16772_v48 = vpop.f32.mrb[73].mxu1 }
0x12d5   : > { %v8368_v18 = vpop.f32.mrb[10].mxu0  ;;  %v8547_v37 = vpop.f32.mrb[74].mxu1 }
0x12d6   : > { %v8460_v44 = vpack.c.bf16 %v8368_v18, %v8365_v11  ;;  %v8639_v59 = vpack.c.bf16 %v8547_v37, %v8544_v21  ;;  %v16719_v36 = vpop.f32.mrb[11].mxu0  ;;  %v16773_v42 = vpop.f32.mrb[75].mxu1 }
0x12d8   : > { %8837 = vmatpush1.bf16.msra.mxu0 %v8639_v59  ;;  %9129 = vmatpush1.bf16.msra.mxu1 %v8460_v44 }
0x12d9   : > { %8838 = vmatprep.subr.bf16.mxu0 %v17870_v0  ;;  %9130 = vmatprep.subr.bf16.mxu1 %v17870_v0 }
0x12db   : > { %v8373_v41 = vpop.f32.mrb[44].mxu0  ;;  %v8552_v1 = vpop.f32.mrb[76].mxu1 }
0x12dc   : > { %v16722_v9 = vpop.f32.mrb[45].mxu0  ;;  %v16776_v46 = vpop.f32.mrb[77].mxu1 }
0x12dd   : > { %v8376_v57 = vpop.f32.mrb[46].mxu0  ;;  %v8555_v29 = vpop.f32.mrb[78].mxu1 }
0x12de   : > { %v8461_v38 = vpack.c.bf16 %v8376_v57, %v8373_v41  ;;  %v8640_v15 = vpack.c.bf16 %v8555_v29, %v8552_v1  ;;  %v16723_v10 = vpop.f32.mrb[47].mxu0  ;;  %v16777_v19 = vpop.f32.mrb[79].mxu1 }
0x12e0   : > { %8839 = vmatpush1.bf16.msra.mxu0 %v8640_v15  ;;  %9131 = vmatpush1.bf16.msra.mxu1 %v8461_v38 }
0x12e1   : > { %8840 = vmatprep.subr.bf16.mxu0 %v17870_v0  ;;  %9132 = vmatprep.subr.bf16.mxu1 %v17870_v0 }
0x12e3   : > { %v8381_v61 = vpop.f32.mrb[48].mxu0  ;;  %v8560_v28 = vpop.f32.mrb[80].mxu1 }
0x12e4   : > { %v16726_v12 = vpop.f32.mrb[49].mxu0  ;;  %v16780_v22 = vpop.f32.mrb[81].mxu1 }
0x12e5   : > { %v8384_v55 = vpop.f32.mrb[50].mxu0  ;;  %v8563_v63 = vpop.f32.mrb[82].mxu1 }
0x12e6   : > { %v8462_v62 = vpack.c.bf16 %v8384_v55, %v8381_v61  ;;  %v8641_v56 = vpack.c.bf16 %v8563_v63, %v8560_v28  ;;  %v16727_v24 = vpop.f32.mrb[51].mxu0  ;;  %v16781_v16 = vpop.f32.mrb[83].mxu1 }
0x12e8   : > { %8841 = vmatpush1.bf16.msra.mxu0 %v8641_v56  ;;  %9133 = vmatpush1.bf16.msra.mxu1 %v8462_v62 }
0x12e9   : > { %8842 = vmatprep.subr.bf16.mxu0 %v17870_v0  ;;  %9134 = vmatprep.subr.bf16.mxu1 %v17870_v0 }
0x12eb   : > { %v8389_v4 = vpop.f32.mrb[52].mxu0  ;;  %v8568_v33 = vpop.f32.mrb[84].mxu1 }
0x12ec   : > { %v16730_v26 = vpop.f32.mrb[53].mxu0  ;;  %v16784_v2 = vpop.f32.mrb[85].mxu1 }
0x12ed   : > { %v8392_v34 = vpop.f32.mrb[54].mxu0  ;;  %v8571_v20 = vpop.f32.mrb[86].mxu1 }
0x12ee   : > { %v8463_v6 = vpack.c.bf16 %v8392_v34, %v8389_v4  ;;  %v8642_v17 = vpack.c.bf16 %v8571_v20, %v8568_v33  ;;  %v16731_v27 = vpop.f32.mrb[55].mxu0  ;;  %v16785_v7 = vpop.f32.mrb[87].mxu1 }
0x12f0   : > { %8843 = vmatpush1.bf16.msra.mxu0 %v8642_v17  ;;  %9135 = vmatpush1.bf16.msra.mxu1 %v8463_v6 }
0x12f1   : > { %8844 = vmatprep.subr.bf16.mxu0 %v17870_v0  ;;  %9136 = vmatprep.subr.bf16.mxu1 %v17870_v0 }
0x12f3   : > { %v8397_v14 = vpop.f32.mrb[56].mxu0  ;;  %v8576_v40 = vpop.f32.mrb[88].mxu1 }
0x12f4   : > { %v16734_v5 = vpop.f32.mrb[57].mxu0  ;;  %v16788_v60 = vpop.f32.mrb[89].mxu1 }
0x12f5   : > { %v8400_v47 = vpop.f32.mrb[58].mxu0  ;;  %v8579_v51 = vpop.f32.mrb[90].mxu1 }
0x12f6   : > { %v8464_v39 = vpack.c.bf16 %v8400_v47, %v8397_v14  ;;  %v8643_v50 = vpack.c.bf16 %v8579_v51, %v8576_v40  ;;  %v16735_v31 = vpop.f32.mrb[59].mxu0  ;;  %v16789_v11 = vpop.f32.mrb[91].mxu1 }
0x12f8   : > { %8845 = vmatpush1.bf16.msra.mxu0 %v8643_v50  ;;  %9137 = vmatpush1.bf16.msra.mxu1 %v8464_v39 }
0x12f9   : > { %8846 = vmatprep.subr.bf16.mxu0 %v17870_v0  ;;  %9138 = vmatprep.subr.bf16.mxu1 %v17870_v0 }
0x12fb   : > { %v8405_v21 = vpop.f32.mrb[60].mxu0  ;;  %v8584_v43 = vpop.f32.mrb[92].mxu1 }
0x12fc   : > { %v16738_v48 = vpop.f32.mrb[61].mxu0  ;;  %v16792_v18 = vpop.f32.mrb[93].mxu1 }
0x12fd   : > { %v8408_v37 = vpop.f32.mrb[62].mxu0  ;;  %v8587_v44 = vpop.f32.mrb[94].mxu1 }
0x12fe   : > { %v8465_v59 = vpack.c.bf16 %v8408_v37, %v8405_v21  ;;  %v8644_v36 = vpack.c.bf16 %v8587_v44, %v8584_v43  ;;  %v16739_v42 = vpop.f32.mrb[63].mxu0  ;;  %v16793_v41 = vpop.f32.mrb[95].mxu1 }
0x1300   : > { %8847 = vmatpush1.bf16.msra.mxu0 %v8644_v36  ;;  %9139 = vmatpush1.bf16.msra.mxu1 %v8465_v59 }
0x1301   : > { %8848 = vmatprep.subr.bf16.mxu0 %v17870_v0  ;;  %9140 = vmatprep.subr.bf16.mxu1 %v17870_v0 }
0x1303   : > { %v8413_v1 = vpop.f32.mrb[64].mxu0  ;;  %v8592_v9 = vpop.f32.mrb[96].mxu1 }
0x1304   : > { %v16742_v46 = vpop.f32.mrb[65].mxu0  ;;  %v16796_v57 = vpop.f32.mrb[97].mxu1 }
0x1305   : > { %v8416_v29 = vpop.f32.mrb[66].mxu0  ;;  %v8595_v38 = vpop.f32.mrb[98].mxu1 }
0x1306   : > { %v8466_v15 = vpack.c.bf16 %v8416_v29, %v8413_v1  ;;  %v8645_v10 = vpack.c.bf16 %v8595_v38, %v8592_v9  ;;  %v16743_v19 = vpop.f32.mrb[67].mxu0  ;;  %v16797_v61 = vpop.f32.mrb[99].mxu1 }
0x1307   : > { %v17517_v61 = vld [vmem:[%s22723_s13 + $0xc8] ss:$8 sps:$4 sm:$0xff]  }
0x1308   : > { %8849 = vmatpush1.bf16.msra.mxu0 %v8645_v10  ;;  %9141 = vmatpush1.bf16.msra.mxu1 %v8466_v15 }
0x1309   : > { %8850 = vmatprep.subr.bf16.mxu0 %v17870_v0  ;;  %9142 = vmatprep.subr.bf16.mxu1 %v17870_v0 }
0x130b   : > { %v8421_v28 = vpop.f32.mrb[68].mxu0  ;;  %v8600_v12 = vpop.f32.mrb[100].mxu1 }
0x130c   : > { %v16746_v22 = vpop.f32.mrb[69].mxu0  ;;  %v16800_v55 = vpop.f32.mrb[101].mxu1 }
0x130d   : > { %v8424_v63 = vpop.f32.mrb[70].mxu0  ;;  %v8603_v62 = vpop.f32.mrb[102].mxu1 }
0x130e   : > { %v8467_v56 = vpack.c.bf16 %v8424_v63, %v8421_v28  ;;  %v8646_v24 = vpack.c.bf16 %v8603_v62, %v8600_v12  ;;  %v16747_v16 = vpop.f32.mrb[71].mxu0  ;;  %v16801_v4 = vpop.f32.mrb[103].mxu1  ;;  %v17535_v28 = vld [vmem:[%s22723_s13] ss:$8 sps:$4 sm:$0xff]  }
0x130f   : > { %v14040_v62 = vld [vmem:[%s22724_s14 + $0x8] sm:$0xf]  ;;  %v17520_v4 = vld [vmem:[%s22723_s13 + $0xd8] ss:$8 sps:$4 sm:$0xff]  }
0x1310   : > { %8851 = vmatpush1.bf16.msra.mxu0 %v8646_v24  ;;  %9143 = vmatpush1.bf16.msra.mxu1 %v8467_v56  ;;  %v17522_v56 = vld [vmem:[%s22723_s13 + $0xdc] ss:$8 sps:$4 sm:$0xff]   ;;  %v9265_v16 = vsel %vm880_vm5, %v14040_v62, 0 }
0x1311   : > { %8852 = vmatprep.subr.bf16.mxu0 %v17870_v0  ;;  %9144 = vmatprep.subr.bf16.mxu1 %v17870_v0  ;;  %v17543_v24 = vld [vmem:[%s22723_s13 + $0x14] ss:$8 sps:$4 sm:$0xff]  }
0x1313   : > { %v8429_v33 = vpop.f32.mrb[72].mxu0  ;;  %v8608_v26 = vpop.f32.mrb[104].mxu1 }
0x1314   : > { %v16750_v2 = vpop.f32.mrb[73].mxu0  ;;  %v16804_v34 = vpop.f32.mrb[105].mxu1 }
0x1315   : > { %v8432_v20 = vpop.f32.mrb[74].mxu0  ;;  %v8611_v6 = vpop.f32.mrb[106].mxu1  ;;  %v17549_v2 = vld [vmem:[%s22723_s13 + $0x24] ss:$8 sps:$4 sm:$0xff]   ;;  %v17523_v34 = vld [vmem:[%s22723_s13 + $0xe8] ss:$8 sps:$4 sm:$0xff]  }
0x1316   : > { %v8468_v17 = vpack.c.bf16 %v8432_v20, %v8429_v33  ;;  %v8647_v27 = vpack.c.bf16 %v8611_v6, %v8608_v26  ;;  %v16751_v7 = vpop.f32.mrb[75].mxu0  ;;  %v16805_v14 = vpop.f32.mrb[107].mxu1  ;;  %v17541_v33 = vld [vmem:[%s22723_s13 + $0x10] ss:$8 sps:$4 sm:$0xff]   ;;  %v17525_v26 = vld [vmem:[%s22723_s13 + $0xec] ss:$8 sps:$4 sm:$0xff]  }
0x1317   : > { %v17547_v20 = vld [vmem:[%s22723_s13 + $0x20] ss:$8 sps:$4 sm:$0xff]   ;;  %v17528_v6 = vld [vmem:[%s22723_s13 + $0xfc] ss:$8 sps:$4 sm:$0xff]   ;;  %v17553_v7 = vld [vmem:[%s22723_s13 + $0x30] ss:$8 sps:$4 sm:$0xff]  }
0x1318   : > { %8853 = vmatpush1.bf16.msra.mxu0 %v8647_v27  ;;  %9145 = vmatpush1.bf16.msra.mxu1 %v8468_v17  ;;  %v17555_v17 = vld [vmem:[%s22723_s13 + $0x34] ss:$8 sps:$4 sm:$0xff]   ;;  %v17526_v27 = vld [vmem:[%s22723_s13 + $0xf8] ss:$8 sps:$4 sm:$0xff]  }
0x1319   : > { %8854 = vmatprep.subr.bf16.mxu0 %v17870_v0  ;;  %9146 = vmatprep.subr.bf16.mxu1 %v17870_v0  ;;  %v17531_v14 = vld [vmem:[%s22723_s13 + $0x10c] ss:$8 sps:$4 sm:$0xff]  }
0x131b   : > { %v8437_v40 = vpop.f32.mrb[76].mxu0  ;;  %v8616_v5 = vpop.f32.mrb[108].mxu1 }
0x131c   : > { %v16754_v60 = vpop.f32.mrb[77].mxu0  ;;  %v16808_v47 = vpop.f32.mrb[109].mxu1 }
0x131d   : > { %v8440_v51 = vpop.f32.mrb[78].mxu0  ;;  %v8619_v39 = vpop.f32.mrb[110].mxu1  ;;  %v17559_v60 = vld [vmem:[%s22723_s13 + $0x40] ss:$8 sps:$4 sm:$0xff]   ;;  %v17534_v47 = vld [vmem:[%s22723_s13 + $0x11c] ss:$8 sps:$4 sm:$0xff]  }
0x131e   : > { %v8469_v50 = vpack.c.bf16 %v8440_v51, %v8437_v40  ;;  %v8648_v31 = vpack.c.bf16 %v8619_v39, %v8616_v5  ;;  %v16755_v11 = vpop.f32.mrb[79].mxu0  ;;  %v16809_v21 = vpop.f32.mrb[111].mxu1  ;;  %v17561_v40 = vld [vmem:[%s22723_s13 + $0x44] ss:$8 sps:$4 sm:$0xff]   ;;  %v17529_v5 = vld [vmem:[%s22723_s13 + $0x108] ss:$8 sps:$4 sm:$0xff]  }
0x131f   : > { %v17567_v51 = vld [vmem:[%s22723_s13 + $0x54] ss:$8 sps:$4 sm:$0xff]   ;;  %v17532_v39 = vld [vmem:[%s22723_s13 + $0x118] ss:$8 sps:$4 sm:$0xff]   ;;  %v17573_v11 = vld [vmem:[%s22723_s13 + $0x64] ss:$8 sps:$4 sm:$0xff]  }
0x1320   : > { %8855 = vmatpush1.bf16.msra.mxu0 %v8648_v31  ;;  %9147 = vmatpush1.bf16.msra.mxu1 %v8469_v50  ;;  %v17565_v50 = vld [vmem:[%s22723_s13 + $0x50] ss:$8 sps:$4 sm:$0xff]   ;;  %v17540_v31 = vld [vmem:[%s22723_s13 + $0x12c] ss:$8 sps:$4 sm:$0xff]  }
0x1321   : > { %8856 = vmatprep.subr.bf16.mxu0 %v17870_v0  ;;  %9148 = vmatprep.subr.bf16.mxu1 %v17870_v0  ;;  %v17538_v21 = vld [vmem:[%s22723_s13 + $0x128] ss:$8 sps:$4 sm:$0xff]  }
0x1323   : > { %v8445_v43 = vpop.f32.mrb[80].mxu0  ;;  %v8624_v48 = vpop.f32.mrb[112].mxu1 }
0x1324   : > { %v16758_v18 = vpop.f32.mrb[81].mxu0  ;;  %v16812_v37 = vpop.f32.mrb[113].mxu1 }
0x1325   : > { %v8448_v44 = vpop.f32.mrb[82].mxu0  ;;  %v8627_v59 = vpop.f32.mrb[114].mxu1  ;;  %v17578_v18 = vld [vmem:[%s22723_s13 + $0x74] ss:$8 sps:$4 sm:$0xff]   ;;  %v17544_v37 = vld [vmem:[%s22723_s13 + $0x138] ss:$8 sps:$4 sm:$0xff]  }
0x1326   : > { %v8470_v36 = vpack.c.bf16 %v8448_v44, %v8445_v43  ;;  %v8649_v42 = vpack.c.bf16 %v8627_v59, %v8624_v48  ;;  %v16759_v41 = vpop.f32.mrb[83].mxu0  ;;  %v16813_v1 = vpop.f32.mrb[115].mxu1  ;;  %v17571_v43 = vld [vmem:[%s22723_s13 + $0x60] ss:$8 sps:$4 sm:$0xff]   ;;  %v17546_v48 = vld [vmem:[%s22723_s13 + $0x13c] ss:$8 sps:$4 sm:$0xff]  }
0x1327   : > { %v17576_v44 = vld [vmem:[%s22723_s13 + $0x70] ss:$8 sps:$4 sm:$0xff]   ;;  %v17552_v59 = vld [vmem:[%s22723_s13 + $0x14c] ss:$8 sps:$4 sm:$0xff]   ;;  %v17579_v41 = vld [vmem:[%s22723_s13 + $0x80] ss:$8 sps:$4 sm:$0xff]  }
0x1328   : > { %8857 = vmatpush1.bf16.msra.mxu0 %v8649_v42  ;;  %9149 = vmatpush1.bf16.msra.mxu1 %v8470_v36  ;;  %v17581_v36 = vld [vmem:[%s22723_s13 + $0x84] ss:$8 sps:$4 sm:$0xff]   ;;  %v17550_v42 = vld [vmem:[%s22723_s13 + $0x148] ss:$8 sps:$4 sm:$0xff]  }
0x1329   : > { %8858 = vmatprep.subr.bf16.mxu0 %v17870_v0  ;;  %9150 = vmatprep.subr.bf16.mxu1 %v17870_v0  ;;  %v17558_v1 = vld [vmem:[%s22723_s13 + $0x15c] ss:$8 sps:$4 sm:$0xff]  }
0x132b   : > { %v8453_v9 = vpop.f32.mrb[84].mxu0  ;;  %v8632_v46 = vpop.f32.mrb[116].mxu1 }
0x132c   : > { %v8471_v57 = vpack.c.bf16 %v8453_v9, %v8453_v9  ;;  %v8650_v29 = vpack.c.bf16 %v8632_v46, %v8632_v46  ;;  %v16762_v38 = vpop.f32.mrb[85].mxu0  ;;  %v16816_v15 = vpop.f32.mrb[117].mxu1  ;;  %v17584_v9 = vld [vmem:[%s22723_s13 + $0x94] ss:$8 sps:$4 sm:$0xff]   ;;  %v17556_v46 = vld [vmem:[%s22723_s13 + $0x158] ss:$8 sps:$4 sm:$0xff]  }
0x132d   : > { %v8456_v10 = vpop.f32.mrb[86].mxu0  ;;  %v8635_v19 = vpop.f32.mrb[118].mxu1  ;;  %v17587_v38 = vld [vmem:[%s22723_s13 + $0xa4] ss:$8 sps:$4 sm:$0xff]   ;;  %v17562_v15 = vld [vmem:[%s22723_s13 + $0x168] ss:$8 sps:$4 sm:$0xff]  }
0x132e   : > { %v16763_v12 = vpop.f32.mrb[87].mxu0  ;;  %v16817_v22 = vpop.f32.mrb[119].mxu1  ;;  %v8832_v55 = vsel %vm635_vm2, %v8650_v29, 0  ;;  %v9124_v63 = vsel %vm635_vm2, %v8471_v57, 0  ;;  %v17582_v57 = vld [vmem:[%s22723_s13 + $0x90] ss:$8 sps:$4 sm:$0xff]  }
0x132f   : > { %8859 = vmatpush1.bf16.msra.mxu0 %v8832_v55  ;;  %9151 = vmatpush1.bf16.msra.mxu1 %v9124_v63  ;;  %v17564_v29 = vld [vmem:[%s22723_s13 + $0x16c] ss:$8 sps:$4 sm:$0xff]   ;;  %v17585_v10 = vld [vmem:[%s22723_s13 + $0xa0] ss:$8 sps:$4 sm:$0xff]   ;;  %v17570_v19 = vld [vmem:[%s22723_s13 + $0x17c] ss:$8 sps:$4 sm:$0xff]  }
0x1330   : > { %16818 = vmatprep.subr.bf16.mxu0 %v17868_v23  ;;  %9598 = vmatprep.subr.bf16.mxu1 %v17870_v0  ;;  %v8496_v12 = vld [vmem:[%s22723_s13 + $0xc0] sm:$0x33]  ;;  %v17588_v55 = vld [vmem:[%s22723_s13 + $0xb0] ss:$8 sps:$4 sm:$0xff]  }
0x1331   : > { %v17568_v22 = vld [vmem:[%s22723_s13 + $0x178] ss:$8 sps:$4 sm:$0xff]   ;;  %v14026_v62 = vcombine.high %v8496_v12, %v8496_v12 }
0x1332   : > { %8867 = vmatmul.mubr.bf16.vlgmr.msra.gmra.mrb[88].mxu0 %v17517_v61  ;;  %9159 = vmatmul.mubr.bf16.vlgmr.msra.gmra.mrb[120].mxu1 %v17535_v28  ;;  %v17590_v61 = vld [vmem:[%s22723_s13 + $0xb4] ss:$8 sps:$4 sm:$0xff]   ;;  %v13961_v28 = vld [vmem:[%s22723_s13 + $0x188] sm:$0x33] }
0x1333   : > { %13989 = vmatprep.mubr.msk.bf16.mxu0 %vm8791_vm13, %v17522_v56  ;;  %14028 = vmatprep.mubr.msk.bf16.mxu1 %vm8791_vm13, %v17543_v24  ;;  %v13987_v63 = vcombine.high %v13961_v28, %v13961_v28  ;;  %v13986_v56 = vcombine.low %v13961_v28, %v13961_v28  ;;  %v14025_v24 = vcombine.low %v8496_v12, %v8496_v12 }
0x1334   : > { %16819 = vmatpush3.bf16.msra.mxu0 %v9265_v16  ;;  %v14118_v16 = vld [vmem:[%s22724_s14 + $0xc] sm:$0xf] }
0x1335   : > { %16872 = vmatprep.subr.bf16.mxu0 %v17868_v23 }
0x133a   : > { %8875 = vmatmul.mubr.bf16.gmra.mrb[92].mxu0 %v17520_v4  ;;  %9167 = vmatmul.mubr.bf16.gmra.mrb[124].mxu1 %v17541_v33  ;;  %v9762_v4 = vsel %vm880_vm5, %v14118_v16, 0  ;;  %v14196_v33 = vld [vmem:[%s22724_s14 + $0x10] sm:$0xf] }
0x133b   : > { %13990 = vmatprep.mubr.msk.bf16.mxu0 %vm8791_vm13, %v17525_v26  ;;  %14029 = vmatprep.mubr.msk.bf16.mxu1 %vm8791_vm13, %v17549_v2  ;;  %v10259_v26 = vsel %vm880_vm5, %v14196_v33, 0 }
0x1342   : > { %8883 = vmatmul.mubr.bf16.gmra.mrb[96].mxu0 %v17523_v34  ;;  %9175 = vmatmul.mubr.bf16.gmra.mrb[128].mxu1 %v17547_v20 }
0x1343   : > { %13991 = vmatprep.mubr.msk.bf16.mxu0 %vm8791_vm13, %v17528_v6  ;;  %14030 = vmatprep.mubr.msk.bf16.mxu1 %vm8791_vm13, %v17555_v17 }
0x134a   : > { %8891 = vmatmul.mubr.bf16.gmra.mrb[100].mxu0 %v17526_v27  ;;  %9183 = vmatmul.mubr.bf16.gmra.mrb[132].mxu1 %v17553_v7 }
0x134b   : > { %13992 = vmatprep.mubr.msk.bf16.mxu0 %vm8791_vm13, %v17531_v14  ;;  %14031 = vmatprep.mubr.msk.bf16.mxu1 %vm8791_vm13, %v17561_v40 }
0x1352   : > { %8899 = vmatmul.mubr.bf16.gmra.mrb[104].mxu0 %v17529_v5  ;;  %9191 = vmatmul.mubr.bf16.gmra.mrb[136].mxu1 %v17559_v60 }
0x1353   : > { %13993 = vmatprep.mubr.msk.bf16.mxu0 %vm8791_vm13, %v17534_v47  ;;  %14032 = vmatprep.mubr.msk.bf16.mxu1 %vm8791_vm13, %v17567_v51 }
0x135a   : > { %8907 = vmatmul.mubr.bf16.gmra.mrb[108].mxu0 %v17532_v39  ;;  %9199 = vmatmul.mubr.bf16.gmra.mrb[140].mxu1 %v17565_v50 }
0x135b   : > { %13994 = vmatprep.mubr.msk.bf16.mxu0 %vm8791_vm13, %v17540_v31  ;;  %14033 = vmatprep.mubr.msk.bf16.mxu1 %vm8791_vm13, %v17573_v11 }
0x1362   : > { %8915 = vmatmul.mubr.bf16.gmra.mrb[112].mxu0 %v17538_v21  ;;  %9207 = vmatmul.mubr.bf16.gmra.mrb[144].mxu1 %v17571_v43 }
0x1363   : > { %13995 = vmatprep.mubr.msk.bf16.mxu0 %vm8791_vm13, %v17546_v48  ;;  %14034 = vmatprep.mubr.msk.bf16.mxu1 %vm8791_vm13, %v17578_v18 }
0x136a   : > { %8923 = vmatmul.mubr.bf16.gmra.mrb[116].mxu0 %v17544_v37  ;;  %9215 = vmatmul.mubr.bf16.gmra.mrb[148].mxu1 %v17576_v44 }
0x136b   : > { %13996 = vmatprep.mubr.msk.bf16.mxu0 %vm8791_vm13, %v17552_v59  ;;  %14035 = vmatprep.mubr.msk.bf16.mxu1 %vm8791_vm13, %v17581_v36 }
0x1372   : > { %8931 = vmatmul.mubr.bf16.gmra.mrb[120].mxu0 %v17550_v42  ;;  %9223 = vmatmul.mubr.bf16.gmra.mrb[152].mxu1 %v17579_v41 }
0x1373   : > { %13997 = vmatprep.mubr.msk.bf16.mxu0 %vm8791_vm13, %v17558_v1  ;;  %14036 = vmatprep.mubr.msk.bf16.mxu1 %vm8791_vm13, %v17584_v9 }
0x137a   : > { %8939 = vmatmul.mubr.bf16.gmra.mrb[124].mxu0 %v17556_v46  ;;  %9231 = vmatmul.mubr.bf16.gmra.mrb[156].mxu1 %v17582_v57 }
0x137b   : > { %13998 = vmatprep.mubr.msk.bf16.mxu0 %vm8791_vm13, %v17564_v29  ;;  %14037 = vmatprep.mubr.msk.bf16.mxu1 %vm8791_vm13, %v17587_v38 }
0x1382   : > { %8947 = vmatmul.mubr.bf16.gmra.mrb[128].mxu0 %v17562_v15  ;;  %9239 = vmatmul.mubr.bf16.gmra.mrb[160].mxu1 %v17585_v10 }
0x1383   : > { %13999 = vmatprep.mubr.msk.bf16.mxu0 %vm8791_vm13, %v17570_v19  ;;  %14038 = vmatprep.mubr.msk.bf16.mxu1 %vm8791_vm13, %v17590_v61 }
0x138a   : > { %8955 = vmatmul.mubr.bf16.gmra.mrb[132].mxu0 %v17568_v22  ;;  %9247 = vmatmul.mubr.bf16.gmra.mrb[164].mxu1 %v17588_v55 }
0x138b   : > { %14000 = vmatprep.mubr.msk.bf16.mxu0 %vm8791_vm13, %v13987_v63  ;;  %14039 = vmatprep.mubr.msk.bf16.mxu1 %vm8791_vm13, %v14026_v62 }
0x1392   : > { %8963 = vmatmul.mubr.bf16.gmra.mrb[136].mxu0 %v13986_v56  ;;  %9255 = vmatmul.mubr.bf16.gmra.mrb[168].mxu1 %v14025_v24 }
0x1393   : > { %16820 = vmatprep.mubr.msk.bf16.mxu0 %vm17869_vm7, %v17868_v23 }
0x139a   : > { %16821 = vmatmul.mubr.msk.bf16.vlgmr.msra.gmra.mrb[140].mxu0 %vm8280_vm12, %v20610_v13 }
0x139b   : > { %16824 = vmatprep.mubr.msk.bf16.mxu0 %vm17869_vm7, %v17868_v23  ;;  %16873 = vmatpush3.bf16.msra.mxu0 %v9762_v4 }
0x139c   : > { %16926 = vmatprep.subr.bf16.mxu0 %v17868_v23 }
0x13a2   : > { %16825 = vmatmul.mubr.msk.bf16.gmra.mrb[144].mxu0 %vm8280_vm12, %v20624_v32 }
0x13a3   : > { %16828 = vmatprep.mubr.msk.bf16.mxu0 %vm17869_vm7, %v17868_v23 }
0x13aa   : > { %16829 = vmatmul.mubr.msk.bf16.gmra.mrb[148].mxu0 %vm8280_vm12, %v20638_v8 }
0x13ab   : > { %16832 = vmatprep.mubr.msk.bf16.mxu0 %vm17869_vm7, %v17868_v23 }
0x13b2   : > { %16833 = vmatmul.mubr.msk.bf16.gmra.mrb[152].mxu0 %vm8280_vm12, %v20652_v35 }
0x13b3   : > { %16836 = vmatprep.mubr.msk.bf16.mxu0 %vm17869_vm7, %v17868_v23 }
0x13ba   : > { %16837 = vmatmul.mubr.msk.bf16.gmra.mrb[156].mxu0 %vm8280_vm12, %v20666_v25 }
0x13bb   : > { %16840 = vmatprep.mubr.msk.bf16.mxu0 %vm17869_vm7, %v17868_v23 }
0x13c2   : > { %16841 = vmatmul.mubr.msk.bf16.gmra.mrb[160].mxu0 %vm8280_vm12, %v20680_v58 }
0x13c3   : > { %16844 = vmatprep.mubr.msk.bf16.mxu0 %vm17869_vm7, %v17868_v23 }
0x13ca   : > { %16845 = vmatmul.mubr.msk.bf16.gmra.mrb[164].mxu0 %vm8280_vm12, %v20694_v30 }
0x13cb   : > { %16848 = vmatprep.mubr.msk.bf16.mxu0 %vm17869_vm7, %v17868_v23 }
0x13d2   : > { %16849 = vmatmul.mubr.msk.bf16.gmra.mrb[168].mxu0 %vm8280_vm12, %v20708_v53 }
0x13d3   : > { %16852 = vmatprep.mubr.msk.bf16.mxu0 %vm17869_vm7, %v17868_v23 }
0x13da   : > { %16853 = vmatmul.mubr.msk.bf16.gmra.mrb[172].mxu0 %vm8280_vm12, %v20722_v49 }
0x13db   : > { %16856 = vmatprep.mubr.msk.bf16.mxu0 %vm17869_vm7, %v17868_v23 }
0x13e2   : > { %16857 = vmatmul.mubr.msk.bf16.gmra.mrb[176].mxu0 %vm8280_vm12, %v20736_v54 }
0x13e3   : > { %16860 = vmatprep.mubr.msk.bf16.mxu0 %vm17869_vm7, %v17868_v23 }
0x13ea   : > { %16861 = vmatmul.mubr.msk.bf16.gmra.mrb[180].mxu0 %vm8280_vm12, %v20750_v45 }
0x13eb   : > { %16864 = vmatprep.mubr.msk.bf16.mxu0 %vm17869_vm7, %v17868_v23 }
0x13f2   : > { %16865 = vmatmul.mubr.msk.bf16.gmra.mrb[184].mxu0 %vm8280_vm12, %v20764_v3 }
0x13f3   : > { %16868 = vmatprep.mubr.msk.bf16.mxu0 %vm17869_vm7, %v17868_v23 }
0x13fa   : > { %16869 = vmatmul.mubr.msk.bf16.gmra.mrb[188].mxu0 %vm8280_vm12, %v20776_v52 }
0x13fb   : > { %16874 = vmatprep.mubr.msk.bf16.mxu0 %vm17869_vm7, %v17868_v23 }
0x1402   : > { %16875 = vmatmul.mubr.msk.bf16.vlgmr.msra.gmra.mrb[192].mxu0 %vm8280_vm12, %v20610_v13 }
0x1403   : > { %16878 = vmatprep.mubr.msk.bf16.mxu0 %vm17869_vm7, %v17868_v23  ;;  %16927 = vmatpush3.bf16.msra.mxu0 %v10259_v26 }
0x1404   : > { %16980 = vmatprep.subr.bf16.mxu0 %v17868_v23 }
0x1405   : > { %v8868_v2 = vpop.f32.mrb[88].mxu0  ;;  %v9160_v34 = vpop.f32.mrb[120].mxu1 }
0x1406   : > { %v8870_v20 = vpop.f32.mrb[89].mxu0  ;;  %v21059_v6 = vadd.f32 %v9160_v34, %v8868_v2  ;;  %v9162_v17 = vpop.f32.mrb[121].mxu1 }
0x1407   : > { %v8871_v27 = vpop.f32.mrb[90].mxu0  ;;  %v9163_v7 = vpop.f32.mrb[122].mxu1 }
0x1408   : > { %v8873_v14 = vpop.f32.mrb[91].mxu0  ;;  %v21061_v40 = vadd.f32 %v9163_v7, %v8871_v27  ;;  %v9165_v5 = vpop.f32.mrb[123].mxu1 }
0x140a   : > { %16879 = vmatmul.mubr.msk.bf16.gmra.mrb[196].mxu0 %vm8280_vm12, %v20624_v32 }
0x140b   : > { %16882 = vmatprep.mubr.msk.bf16.mxu0 %vm17869_vm7, %v17868_v23 }
0x140d   : > { %v8876_v60 = vpop.f32.mrb[92].mxu0  ;;  %v9168_v47 = vpop.f32.mrb[124].mxu1 }
0x140e   : > { %v8878_v51 = vpop.f32.mrb[93].mxu0  ;;  %v21067_v39 = vadd.f32 %v9168_v47, %v8876_v60  ;;  %v9170_v50 = vpop.f32.mrb[125].mxu1 }
0x140f   : > { %v8879_v31 = vpop.f32.mrb[94].mxu0  ;;  %v9171_v11 = vpop.f32.mrb[126].mxu1 }
0x1410   : > { %v8881_v21 = vpop.f32.mrb[95].mxu0  ;;  %v21069_v43 = vadd.f32 %v9171_v11, %v8879_v31  ;;  %v9173_v48 = vpop.f32.mrb[127].mxu1 }
0x1412   : > { %16883 = vmatmul.mubr.msk.bf16.gmra.mrb[200].mxu0 %vm8280_vm12, %v20638_v8 }
0x1413   : > { %16886 = vmatprep.mubr.msk.bf16.mxu0 %vm17869_vm7, %v17868_v23 }
0x1415   : > { %v8884_v18 = vpop.f32.mrb[96].mxu0  ;;  %v9176_v37 = vpop.f32.mrb[128].mxu1 }
0x1416   : > { %v8886_v44 = vpop.f32.mrb[97].mxu0  ;;  %v21075_v59 = vadd.f32 %v9176_v37, %v8884_v18  ;;  %v9178_v36 = vpop.f32.mrb[129].mxu1 }
0x1417   : > { %v8887_v42 = vpop.f32.mrb[98].mxu0  ;;  %v9179_v41 = vpop.f32.mrb[130].mxu1 }
0x1418   : > { %v8889_v1 = vpop.f32.mrb[99].mxu0  ;;  %v21077_v9 = vadd.f32 %v9179_v41, %v8887_v42  ;;  %v9181_v46 = vpop.f32.mrb[131].mxu1 }
0x141a   : > { %16887 = vmatmul.mubr.msk.bf16.gmra.mrb[204].mxu0 %vm8280_vm12, %v20652_v35 }
0x141b   : > { %16890 = vmatprep.mubr.msk.bf16.mxu0 %vm17869_vm7, %v17868_v23 }
0x141d   : > { %v8892_v57 = vpop.f32.mrb[100].mxu0  ;;  %v9184_v29 = vpop.f32.mrb[132].mxu1 }
0x141e   : > { %v8894_v38 = vpop.f32.mrb[101].mxu0  ;;  %v21083_v15 = vadd.f32 %v9184_v29, %v8892_v57  ;;  %v9186_v10 = vpop.f32.mrb[133].mxu1 }
0x141f   : > { %v8895_v19 = vpop.f32.mrb[102].mxu0  ;;  %v9187_v61 = vpop.f32.mrb[134].mxu1 }
0x1420   : > { %v8897_v28 = vpop.f32.mrb[103].mxu0  ;;  %v21085_v12 = vadd.f32 %v9187_v61, %v8895_v19  ;;  %v9189_v22 = vpop.f32.mrb[135].mxu1 }
0x1422   : > { %16891 = vmatmul.mubr.msk.bf16.gmra.mrb[208].mxu0 %vm8280_vm12, %v20666_v25 }
0x1423   : > { %16894 = vmatprep.mubr.msk.bf16.mxu0 %vm17869_vm7, %v17868_v23 }
0x1425   : > { %v8900_v55 = vpop.f32.mrb[104].mxu0  ;;  %v9192_v63 = vpop.f32.mrb[136].mxu1 }
0x1426   : > { %v8902_v62 = vpop.f32.mrb[105].mxu0  ;;  %v21091_v56 = vadd.f32 %v9192_v63, %v8900_v55  ;;  %v9194_v24 = vpop.f32.mrb[137].mxu1 }
0x1427   : > { %v8903_v16 = vpop.f32.mrb[106].mxu0  ;;  %v9195_v4 = vpop.f32.mrb[138].mxu1 }
0x1428   : > { %v8905_v33 = vpop.f32.mrb[107].mxu0  ;;  %v21093_v26 = vadd.f32 %v9195_v4, %v8903_v16  ;;  %v9197_v2 = vpop.f32.mrb[139].mxu1 }
0x142a   : > { %16895 = vmatmul.mubr.msk.bf16.gmra.mrb[212].mxu0 %vm8280_vm12, %v20680_v58 }
0x142b   : > { %16898 = vmatprep.mubr.msk.bf16.mxu0 %vm17869_vm7, %v17868_v23 }
0x142d   : > { %v8908_v34 = vpop.f32.mrb[108].mxu0  ;;  %v9200_v20 = vpop.f32.mrb[140].mxu1 }
0x142e   : > { %v8910_v17 = vpop.f32.mrb[109].mxu0  ;;  %v21099_v27 = vadd.f32 %v9200_v20, %v8908_v34  ;;  %v9202_v7 = vpop.f32.mrb[141].mxu1 }
0x142f   : > { %v8911_v14 = vpop.f32.mrb[110].mxu0  ;;  %v9203_v5 = vpop.f32.mrb[142].mxu1 }
0x1430   : > { %v8913_v60 = vpop.f32.mrb[111].mxu0  ;;  %v21101_v47 = vadd.f32 %v9203_v5, %v8911_v14  ;;  %v9205_v51 = vpop.f32.mrb[143].mxu1 }
0x1432   : > { %16899 = vmatmul.mubr.msk.bf16.gmra.mrb[216].mxu0 %vm8280_vm12, %v20694_v30 }
0x1433   : > { %16902 = vmatprep.mubr.msk.bf16.mxu0 %vm17869_vm7, %v17868_v23 }
0x1435   : > { %v8916_v50 = vpop.f32.mrb[112].mxu0  ;;  %v9208_v31 = vpop.f32.mrb[144].mxu1 }
0x1436   : > { %v8918_v11 = vpop.f32.mrb[113].mxu0  ;;  %v21107_v21 = vadd.f32 %v9208_v31, %v8916_v50  ;;  %v9210_v48 = vpop.f32.mrb[145].mxu1 }
0x1437   : > { %v8919_v18 = vpop.f32.mrb[114].mxu0  ;;  %v9211_v37 = vpop.f32.mrb[146].mxu1  ;;  %v17595_v48 = vld [vmem:[%s22723_s13 + $0x194] ss:$8 sps:$4 sm:$0xff]  }
0x1438   : > { %v8921_v44 = vpop.f32.mrb[115].mxu0  ;;  %v21109_v36 = vadd.f32 %v9211_v37, %v8919_v18  ;;  %v9213_v42 = vpop.f32.mrb[147].mxu1  ;;  %14105 = vmatprep.mubr.msk.bf16.mxu1 %vm8791_vm13, %v17595_v48 }
0x143a   : > { %16903 = vmatmul.mubr.msk.bf16.gmra.mrb[220].mxu0 %vm8280_vm12, %v20708_v53 }
0x143b   : > { %16906 = vmatprep.mubr.msk.bf16.mxu0 %vm17869_vm7, %v17868_v23 }
0x143d   : > { %v8924_v41 = vpop.f32.mrb[116].mxu0  ;;  %v9216_v1 = vpop.f32.mrb[148].mxu1 }
0x143e   : > { %v8926_v46 = vpop.f32.mrb[117].mxu0  ;;  %v21115_v57 = vadd.f32 %v9216_v1, %v8924_v41  ;;  %v9218_v29 = vpop.f32.mrb[149].mxu1 }
0x143f   : > { %v8927_v38 = vpop.f32.mrb[118].mxu0  ;;  %v9219_v10 = vpop.f32.mrb[150].mxu1 }
0x1440   : > { %v8929_v19 = vpop.f32.mrb[119].mxu0  ;;  %v21117_v61 = vadd.f32 %v9219_v10, %v8927_v38  ;;  %v9221_v28 = vpop.f32.mrb[151].mxu1 }
0x1442   : > { %16907 = vmatmul.mubr.msk.bf16.gmra.mrb[224].mxu0 %vm8280_vm12, %v20722_v49 }
0x1443   : > { %16910 = vmatprep.mubr.msk.bf16.mxu0 %vm17869_vm7, %v17868_v23 }
0x1445   : > { %v8932_v22 = vpop.f32.mrb[120].mxu0  ;;  %v9224_v55 = vpop.f32.mrb[152].mxu1 }
0x1446   : > { %v8934_v63 = vpop.f32.mrb[121].mxu0  ;;  %v21123_v62 = vadd.f32 %v9224_v55, %v8932_v22  ;;  %v9226_v24 = vpop.f32.mrb[153].mxu1 }
0x1447   : > { %v8935_v16 = vpop.f32.mrb[122].mxu0  ;;  %v9227_v4 = vpop.f32.mrb[154].mxu1 }
0x1448   : > { %v8937_v33 = vpop.f32.mrb[123].mxu0  ;;  %v21125_v2 = vadd.f32 %v9227_v4, %v8935_v16  ;;  %v9229_v34 = vpop.f32.mrb[155].mxu1 }
0x144a   : > { %16911 = vmatmul.mubr.msk.bf16.gmra.mrb[228].mxu0 %vm8280_vm12, %v20736_v54 }
0x144b   : > { %16914 = vmatprep.mubr.msk.bf16.mxu0 %vm17869_vm7, %v17868_v23 }
0x144d   : > { %v8940_v20 = vpop.f32.mrb[124].mxu0  ;;  %v9232_v17 = vpop.f32.mrb[156].mxu1 }
0x144e   : > { %v8942_v7 = vpop.f32.mrb[125].mxu0  ;;  %v21131_v14 = vadd.f32 %v9232_v17, %v8940_v20  ;;  %v9234_v5 = vpop.f32.mrb[157].mxu1 }
0x144f   : > { %v8943_v60 = vpop.f32.mrb[126].mxu0  ;;  %v9235_v51 = vpop.f32.mrb[158].mxu1  ;;  %v14274_v7 = vld [vmem:[%s22724_s14 + $0x14] sm:$0xf] }
0x1450   : > { %v8945_v50 = vpop.f32.mrb[127].mxu0  ;;  %v21133_v31 = vadd.f32 %v9235_v51, %v8943_v60  ;;  %v9237_v11 = vpop.f32.mrb[159].mxu1 }
0x1452   : > { %16915 = vmatmul.mubr.msk.bf16.gmra.mrb[232].mxu0 %vm8280_vm12, %v20750_v45 }
0x1453   : > { %16918 = vmatprep.mubr.msk.bf16.mxu0 %vm17869_vm7, %v17868_v23 }
0x1455   : > { %v8948_v18 = vpop.f32.mrb[128].mxu0  ;;  %v9240_v37 = vpop.f32.mrb[160].mxu1 }
0x1456   : > { %v8950_v44 = vpop.f32.mrb[129].mxu0  ;;  %v21143_v42 = vadd.f32 %v9240_v37, %v8948_v18  ;;  %v9242_v41 = vpop.f32.mrb[161].mxu1  ;;  %v10756_v18 = vsel %vm880_vm5, %v14274_v7, 0 }
0x1457   : > { %v8951_v1 = vpop.f32.mrb[130].mxu0  ;;  %v9243_v46 = vpop.f32.mrb[162].mxu1 }
0x1458   : > { %v8953_v29 = vpop.f32.mrb[131].mxu0  ;;  %v21145_v38 = vadd.f32 %v9243_v46, %v8951_v1  ;;  %v9245_v10 = vpop.f32.mrb[163].mxu1 }
0x145a   : > { %16919 = vmatmul.mubr.msk.bf16.gmra.mrb[236].mxu0 %vm8280_vm12, %v20764_v3 }
0x145b   : > { %16922 = vmatprep.mubr.msk.bf16.mxu0 %vm17869_vm7, %v17868_v23 }
0x145d   : > { %v8956_v19 = vpop.f32.mrb[132].mxu0  ;;  %v9248_v28 = vpop.f32.mrb[164].mxu1 }
0x145e   : > { %v8958_v22 = vpop.f32.mrb[133].mxu0  ;;  %v21151_v55 = vadd.f32 %v9248_v28, %v8956_v19  ;;  %v9250_v63 = vpop.f32.mrb[165].mxu1 }
0x145f   : > { %v8959_v24 = vpop.f32.mrb[134].mxu0  ;;  %v9251_v16 = vpop.f32.mrb[166].mxu1 }
0x1460   : > { %v8961_v4 = vpop.f32.mrb[135].mxu0  ;;  %v21153_v33 = vadd.f32 %v9251_v16, %v8959_v24  ;;  %v9253_v34 = vpop.f32.mrb[167].mxu1 }
0x1462   : > { %16923 = vmatmul.mubr.msk.bf16.gmra.mrb[240].mxu0 %vm8280_vm12, %v20776_v52 }
0x1463   : > { %16928 = vmatprep.mubr.msk.bf16.mxu0 %vm17869_vm7, %v17868_v23 }
0x1465   : > { %v8964_v20 = vpop.f32.mrb[136].mxu0  ;;  %v9256_v17 = vpop.f32.mrb[168].mxu1 }
0x1466   : > { %v8966_v5 = vpop.f32.mrb[137].mxu0  ;;  %v21162_v60 = vadd.f32 %v9256_v17, %v8964_v20  ;;  %v9258_v51 = vpop.f32.mrb[169].mxu1 }
0x1467   : > { %v8967_v50 = vpop.f32.mrb[138].mxu0  ;;  %v9259_v11 = vpop.f32.mrb[170].mxu1 }
0x1468   : > { %v8968_v48 = vpop.f32.mrb[139].mxu0  ;;  %v9260_v37 = vpop.f32.mrb[171].mxu1 }
0x146a   : > { %16929 = vmatmul.mubr.msk.bf16.vlgmr.msra.gmra.mrb[244].mxu0 %vm8280_vm12, %v20610_v13 }
0x146b   : > { %16932 = vmatprep.mubr.msk.bf16.mxu0 %vm17869_vm7, %v17868_v23  ;;  %16981 = vmatpush3.bf16.msra.mxu0 %v10756_v18 }
0x146c   : > { %17034 = vmatprep.subr.bf16.mxu0 %v17868_v23 }
0x146d   : > { %v9301_v44 = vpop.f32.mrb[140].mxu0 }
0x146e   : > { %v16822_v41 = vpop.f32.mrb[141].mxu0 }
0x146f   : > { %v9304_v1 = vpop.f32.mrb[142].mxu0 }
0x1470   : > { %v9403_v46 = vpack.c.bf16 %v9304_v1, %v9301_v44  ;;  %v16823_v29 = vpop.f32.mrb[143].mxu0 }
0x1472   : > { %9599 = vmatpush1.bf16.msra.mxu1 %v9403_v46  ;;  %16933 = vmatmul.mubr.msk.bf16.gmra.mrb[248].mxu0 %vm8280_vm12, %v20624_v32 }
0x1473   : > { %9600 = vmatprep.subr.bf16.mxu1 %v17870_v0  ;;  %16936 = vmatprep.mubr.msk.bf16.mxu0 %vm17869_vm7, %v17868_v23 }
0x1475   : > { %v9309_v10 = vpop.f32.mrb[144].mxu0 }
0x1476   : > { %v16826_v19 = vpop.f32.mrb[145].mxu0 }
0x1477   : > { %v9312_v28 = vpop.f32.mrb[146].mxu0 }
0x1478   : > { %v9404_v22 = vpack.c.bf16 %v9312_v28, %v9309_v10  ;;  %v16827_v63 = vpop.f32.mrb[147].mxu0 }
0x147a   : > { %9601 = vmatpush1.bf16.msra.mxu1 %v9404_v22  ;;  %16937 = vmatmul.mubr.msk.bf16.gmra.mrb[252].mxu0 %vm8280_vm12, %v20638_v8 }
0x147b   : > { %9602 = vmatprep.subr.bf16.mxu1 %v17870_v0  ;;  %16940 = vmatprep.mubr.msk.bf16.mxu0 %vm17869_vm7, %v17868_v23 }
0x147d   : > { %v9317_v24 = vpop.f32.mrb[148].mxu0 }
0x147e   : > { %v16830_v16 = vpop.f32.mrb[149].mxu0 }
0x147f   : > { %v9320_v4 = vpop.f32.mrb[150].mxu0 }
0x1480   : > { %v9405_v34 = vpack.c.bf16 %v9320_v4, %v9317_v24  ;;  %v16831_v20 = vpop.f32.mrb[151].mxu0 }
0x1482   : > { %9603 = vmatpush1.bf16.msra.mxu1 %v9405_v34  ;;  %16941 = vmatmul.mubr.msk.bf16.gmra.mrb[0].mxu0 %vm8280_vm12, %v20652_v35 }
0x1483   : > { %9604 = vmatprep.subr.bf16.mxu1 %v17870_v0  ;;  %16944 = vmatprep.mubr.msk.bf16.mxu0 %vm17869_vm7, %v17868_v23 }
0x1485   : > { %v9325_v17 = vpop.f32.mrb[152].mxu0 }
0x1486   : > { %v16834_v7 = vpop.f32.mrb[153].mxu0 }
0x1487   : > { %v9328_v5 = vpop.f32.mrb[154].mxu0 }
0x1488   : > { %v9406_v51 = vpack.c.bf16 %v9328_v5, %v9325_v17  ;;  %v16835_v50 = vpop.f32.mrb[155].mxu0 }
0x148a   : > { %9605 = vmatpush1.bf16.msra.mxu1 %v9406_v51  ;;  %16945 = vmatmul.mubr.msk.bf16.gmra.mrb[4].mxu0 %vm8280_vm12, %v20666_v25 }
0x148b   : > { %9606 = vmatprep.subr.bf16.mxu1 %v17870_v0  ;;  %16948 = vmatprep.mubr.msk.bf16.mxu0 %vm17869_vm7, %v17868_v23 }
0x148d   : > { %v9333_v11 = vpop.f32.mrb[156].mxu0 }
0x148e   : > { %v16838_v48 = vpop.f32.mrb[157].mxu0 }
0x148f   : > { %v9336_v18 = vpop.f32.mrb[158].mxu0 }
0x1490   : > { %v9407_v37 = vpack.c.bf16 %v9336_v18, %v9333_v11  ;;  %v16839_v44 = vpop.f32.mrb[159].mxu0 }
0x1492   : > { %9607 = vmatpush1.bf16.msra.mxu1 %v9407_v37  ;;  %16949 = vmatmul.mubr.msk.bf16.gmra.mrb[12].mxu0 %vm8280_vm12, %v20680_v58 }
0x1493   : > { %9608 = vmatprep.subr.bf16.mxu1 %v17870_v0  ;;  %16952 = vmatprep.mubr.msk.bf16.mxu0 %vm17869_vm7, %v17868_v23 }
0x1495   : > { %v9341_v41 = vpop.f32.mrb[160].mxu0 }
0x1496   : > { %v16842_v1 = vpop.f32.mrb[161].mxu0 }
0x1497   : > { %v9344_v46 = vpop.f32.mrb[162].mxu0 }
0x1498   : > { %v9408_v29 = vpack.c.bf16 %v9344_v46, %v9341_v41  ;;  %v16843_v10 = vpop.f32.mrb[163].mxu0 }
0x149a   : > { %9609 = vmatpush1.bf16.msra.mxu1 %v9408_v29  ;;  %16953 = vmatmul.mubr.msk.bf16.gmra.mrb[16].mxu0 %vm8280_vm12, %v20694_v30 }
0x149b   : > { %9610 = vmatprep.subr.bf16.mxu1 %v17870_v0  ;;  %16956 = vmatprep.mubr.msk.bf16.mxu0 %vm17869_vm7, %v17868_v23 }
0x149d   : > { %v9349_v19 = vpop.f32.mrb[164].mxu0 }
0x149e   : > { %v16846_v28 = vpop.f32.mrb[165].mxu0 }
0x149f   : > { %v9352_v22 = vpop.f32.mrb[166].mxu0 }
0x14a0   : > { %v9409_v63 = vpack.c.bf16 %v9352_v22, %v9349_v19  ;;  %v16847_v24 = vpop.f32.mrb[167].mxu0 }
0x14a2   : > { %9611 = vmatpush1.bf16.msra.mxu1 %v9409_v63  ;;  %16957 = vmatmul.mubr.msk.bf16.gmra.mrb[20].mxu0 %vm8280_vm12, %v20708_v53 }
0x14a3   : > { %9612 = vmatprep.subr.bf16.mxu1 %v17870_v0  ;;  %16960 = vmatprep.mubr.msk.bf16.mxu0 %vm17869_vm7, %v17868_v23 }
0x14a5   : > { %v9357_v16 = vpop.f32.mrb[168].mxu0 }
0x14a6   : > { %v16850_v4 = vpop.f32.mrb[169].mxu0 }
0x14a7   : > { %v9360_v34 = vpop.f32.mrb[170].mxu0 }
0x14a8   : > { %v9410_v20 = vpack.c.bf16 %v9360_v34, %v9357_v16  ;;  %v16851_v17 = vpop.f32.mrb[171].mxu0  ;;  %v14352_v34 = vld [vmem:[%s22724_s14 + $0x18] sm:$0xf] }
0x14aa   : > { %9613 = vmatpush1.bf16.msra.mxu1 %v9410_v20  ;;  %16961 = vmatmul.mubr.msk.bf16.gmra.mrb[24].mxu0 %vm8280_vm12, %v20722_v49 }
0x14ab   : > { %9614 = vmatprep.subr.bf16.mxu1 %v17870_v0  ;;  %16964 = vmatprep.mubr.msk.bf16.mxu0 %vm17869_vm7, %v17868_v23 }
0x14ad   : > { %v9365_v7 = vpop.f32.mrb[172].mxu0 }
0x14ae   : > { %v16854_v5 = vpop.f32.mrb[173].mxu0 }
0x14af   : > { %v9368_v51 = vpop.f32.mrb[174].mxu0 }
0x14b0   : > { %v9411_v50 = vpack.c.bf16 %v9368_v51, %v9365_v7  ;;  %v16855_v11 = vpop.f32.mrb[175].mxu0 }
0x14b1   : > { %v11253_v11 = vsel %vm880_vm5, %v14352_v34, 0 }
0x14b2   : > { %9615 = vmatpush1.bf16.msra.mxu1 %v9411_v50  ;;  %16965 = vmatmul.mubr.msk.bf16.gmra.mrb[28].mxu0 %vm8280_vm12, %v20736_v54  ;;  %v17593_v50 = vld [vmem:[%s22723_s13 + $0x190] ss:$8 sps:$4 sm:$0xff]  }
0x14b3   : > { %9616 = vmatprep.subr.bf16.mxu1 %v17870_v0  ;;  %16968 = vmatprep.mubr.msk.bf16.mxu0 %vm17869_vm7, %v17868_v23 }
0x14b5   : > { %v9373_v48 = vpop.f32.mrb[176].mxu0 }
0x14b6   : > { %v16858_v18 = vpop.f32.mrb[177].mxu0 }
0x14b7   : > { %v9376_v37 = vpop.f32.mrb[178].mxu0 }
0x14b8   : > { %v9412_v44 = vpack.c.bf16 %v9376_v37, %v9373_v48  ;;  %v16859_v41 = vpop.f32.mrb[179].mxu0  ;;  %v17598_v48 = vld [vmem:[%s22723_s13 + $0x1a4] ss:$8 sps:$4 sm:$0xff]  }
0x14ba   : > { %9617 = vmatpush1.bf16.msra.mxu1 %v9412_v44  ;;  %16969 = vmatmul.mubr.msk.bf16.gmra.mrb[32].mxu0 %vm8280_vm12, %v20750_v45 }
0x14bb   : > { %9618 = vmatprep.subr.bf16.mxu1 %v17870_v0  ;;  %16972 = vmatprep.mubr.msk.bf16.mxu0 %vm17869_vm7, %v17868_v23 }
0x14bd   : > { %v9381_v1 = vpop.f32.mrb[180].mxu0 }
0x14be   : > { %v16862_v46 = vpop.f32.mrb[181].mxu0 }
0x14bf   : > { %v9384_v29 = vpop.f32.mrb[182].mxu0  ;;  %v17596_v46 = vld [vmem:[%s22723_s13 + $0x1a0] ss:$8 sps:$4 sm:$0xff]  }
0x14c0   : > { %v9413_v10 = vpack.c.bf16 %v9384_v29, %v9381_v1  ;;  %v16863_v19 = vpop.f32.mrb[183].mxu0  ;;  %v17601_v29 = vld [vmem:[%s22723_s13 + $0x1b4] ss:$8 sps:$4 sm:$0xff]  }
0x14c2   : > { %9619 = vmatpush1.bf16.msra.mxu1 %v9413_v10  ;;  %16973 = vmatmul.mubr.msk.bf16.gmra.mrb[36].mxu0 %vm8280_vm12, %v20764_v3 }
0x14c3   : > { %9620 = vmatprep.subr.bf16.mxu1 %v17870_v0  ;;  %16976 = vmatprep.mubr.msk.bf16.mxu0 %vm17869_vm7, %v17868_v23 }
0x14c5   : > { %v9389_v28 = vpop.f32.mrb[184].mxu0 }
0x14c6   : > { %v16866_v22 = vpop.f32.mrb[185].mxu0 }
0x14c7   : > { %v9392_v63 = vpop.f32.mrb[186].mxu0 }
0x14c8   : > { %v9414_v24 = vpack.c.bf16 %v9392_v63, %v9389_v28  ;;  %v16867_v16 = vpop.f32.mrb[187].mxu0 }
0x14c9   : > { %v17604_v16 = vld [vmem:[%s22723_s13 + $0x1c4] ss:$8 sps:$4 sm:$0xff]  }
0x14ca   : > { %9621 = vmatpush1.bf16.msra.mxu1 %v9414_v24  ;;  %16977 = vmatmul.mubr.msk.bf16.gmra.mrb[40].mxu0 %vm8280_vm12, %v20776_v52  ;;  %v17599_v24 = vld [vmem:[%s22723_s13 + $0x1b0] ss:$8 sps:$4 sm:$0xff]  }
0x14cb   : > { %9622 = vmatprep.subr.bf16.mxu1 %v17870_v0  ;;  %16982 = vmatprep.mubr.msk.bf16.mxu0 %vm17869_vm7, %v17868_v23 }
0x14cd   : > { %v9397_v4 = vpop.f32.mrb[188].mxu0 }
0x14ce   : > { %v9415_v20 = vpack.c.bf16 %v9397_v4, %v9397_v4  ;;  %v16870_v17 = vpop.f32.mrb[189].mxu0 }
0x14cf   : > { %v9400_v7 = vpop.f32.mrb[190].mxu0 }
0x14d0   : > { %v16871_v5 = vpop.f32.mrb[191].mxu0  ;;  %v9596_v51 = vsel %vm635_vm2, %v9415_v20, 0 }
0x14d1   : > { %9623 = vmatpush1.bf16.msra.mxu1 %v9596_v51  ;;  %v17602_v5 = vld [vmem:[%s22723_s13 + $0x1c0] ss:$8 sps:$4 sm:$0xff]   ;;  %v17607_v51 = vld [vmem:[%s22723_s13 + $0x1d4] ss:$8 sps:$4 sm:$0xff]  }
0x14d2   : > { %16983 = vmatmul.mubr.msk.bf16.vlgmr.msra.gmra.mrb[8].mxu0 %vm8280_vm12, %v20610_v13  ;;  %10095 = vmatprep.subr.bf16.mxu1 %v17870_v0 }
0x14d3   : > { %16986 = vmatprep.mubr.msk.bf16.mxu0 %vm17869_vm7, %v17868_v23  ;;  %17035 = vmatpush3.bf16.msra.mxu0 %v11253_v11 }
0x14d4   : > { %9631 = vmatmul.mubr.bf16.vlgmr.msra.gmra.mrb[172].mxu1 %v17593_v50  ;;  %17088 = vmatprep.subr.bf16.mxu0 %v17868_v23 }
0x14d5   : > { %v9798_v18 = vpop.f32.mrb[192].mxu0  ;;  %14106 = vmatprep.mubr.msk.bf16.mxu1 %vm8791_vm13, %v17598_v48 }
0x14d6   : > { %v16876_v37 = vpop.f32.mrb[193].mxu0 }
0x14d7   : > { %v9801_v44 = vpop.f32.mrb[194].mxu0 }
0x14d8   : > { %v9900_v41 = vpack.c.bf16 %v9801_v44, %v9798_v18  ;;  %v16877_v1 = vpop.f32.mrb[195].mxu0  ;;  %v17605_v44 = vld [vmem:[%s22723_s13 + $0x1d0] ss:$8 sps:$4 sm:$0xff]  }
0x14da   : > { %10096 = vmatpush1.bf16.msra.mxu1 %v9900_v41  ;;  %16987 = vmatmul.mubr.msk.bf16.gmra.mrb[44].mxu0 %vm8280_vm12, %v20624_v32  ;;  %v17610_v41 = vld [vmem:[%s22723_s13 + $0x1e4] ss:$8 sps:$4 sm:$0xff]  }
0x14db   : > { %10097 = vmatprep.subr.bf16.mxu1 %v17870_v0  ;;  %16990 = vmatprep.mubr.msk.bf16.mxu0 %vm17869_vm7, %v17868_v23 }
0x14dc   : > { %9639 = vmatmul.mubr.bf16.gmra.mrb[176].mxu1 %v17596_v46 }
0x14dd   : > { %v9806_v10 = vpop.f32.mrb[196].mxu0  ;;  %14107 = vmatprep.mubr.msk.bf16.mxu1 %vm8791_vm13, %v17601_v29 }
0x14de   : > { %v16880_v19 = vpop.f32.mrb[197].mxu0 }
0x14df   : > { %v9809_v28 = vpop.f32.mrb[198].mxu0 }
0x14e0   : > { %v9901_v22 = vpack.c.bf16 %v9809_v28, %v9806_v10  ;;  %v16881_v63 = vpop.f32.mrb[199].mxu0  ;;  %v17608_v28 = vld [vmem:[%s22723_s13 + $0x1e0] ss:$8 sps:$4 sm:$0xff]  }
0x14e2   : > { %10098 = vmatpush1.bf16.msra.mxu1 %v9901_v22  ;;  %16991 = vmatmul.mubr.msk.bf16.gmra.mrb[48].mxu0 %vm8280_vm12, %v20638_v8  ;;  %v17613_v22 = vld [vmem:[%s22723_s13 + $0x1f4] ss:$8 sps:$4 sm:$0xff]  }
0x14e3   : > { %10099 = vmatprep.subr.bf16.mxu1 %v17870_v0  ;;  %16994 = vmatprep.mubr.msk.bf16.mxu0 %vm17869_vm7, %v17868_v23 }
0x14e4   : > { %9647 = vmatmul.mubr.bf16.gmra.mrb[180].mxu1 %v17599_v24 }
0x14e5   : > { %v9814_v4 = vpop.f32.mrb[200].mxu0  ;;  %14108 = vmatprep.mubr.msk.bf16.mxu1 %vm8791_vm13, %v17604_v16 }
0x14e6   : > { %v16884_v34 = vpop.f32.mrb[201].mxu0 }
0x14e7   : > { %v9817_v20 = vpop.f32.mrb[202].mxu0 }
0x14e8   : > { %v9902_v17 = vpack.c.bf16 %v9817_v20, %v9814_v4  ;;  %v16885_v7 = vpop.f32.mrb[203].mxu0  ;;  %v17611_v20 = vld [vmem:[%s22723_s13 + $0x1f0] ss:$8 sps:$4 sm:$0xff]  }
0x14ea   : > { %10100 = vmatpush1.bf16.msra.mxu1 %v9902_v17  ;;  %16995 = vmatmul.mubr.msk.bf16.gmra.mrb[52].mxu0 %vm8280_vm12, %v20652_v35  ;;  %v17616_v17 = vld [vmem:[%s22723_s13 + $0x204] ss:$8 sps:$4 sm:$0xff]  }
0x14eb   : > { %10101 = vmatprep.subr.bf16.mxu1 %v17870_v0  ;;  %16998 = vmatprep.mubr.msk.bf16.mxu0 %vm17869_vm7, %v17868_v23 }
0x14ec   : > { %9655 = vmatmul.mubr.bf16.gmra.mrb[184].mxu1 %v17602_v5 }
0x14ed   : > { %v9822_v50 = vpop.f32.mrb[204].mxu0  ;;  %14109 = vmatprep.mubr.msk.bf16.mxu1 %vm8791_vm13, %v17607_v51 }
0x14ee   : > { %v16888_v11 = vpop.f32.mrb[205].mxu0 }
0x14ef   : > { %v9825_v48 = vpop.f32.mrb[206].mxu0 }
0x14f0   : > { %v9903_v18 = vpack.c.bf16 %v9825_v48, %v9822_v50  ;;  %v16889_v37 = vpop.f32.mrb[207].mxu0  ;;  %v17614_v48 = vld [vmem:[%s22723_s13 + $0x200] ss:$8 sps:$4 sm:$0xff]  }
0x14f2   : > { %10102 = vmatpush1.bf16.msra.mxu1 %v9903_v18  ;;  %16999 = vmatmul.mubr.msk.bf16.gmra.mrb[56].mxu0 %vm8280_vm12, %v20666_v25  ;;  %v17619_v18 = vld [vmem:[%s22723_s13 + $0x214] ss:$8 sps:$4 sm:$0xff]  }
0x14f3   : > { %10103 = vmatprep.subr.bf16.mxu1 %v17870_v0  ;;  %17002 = vmatprep.mubr.msk.bf16.mxu0 %vm17869_vm7, %v17868_v23 }
0x14f4   : > { %9663 = vmatmul.mubr.bf16.gmra.mrb[188].mxu1 %v17605_v44 }
0x14f5   : > { %v9830_v1 = vpop.f32.mrb[208].mxu0  ;;  %14110 = vmatprep.mubr.msk.bf16.mxu1 %vm8791_vm13, %v17610_v41 }
0x14f6   : > { %v16892_v46 = vpop.f32.mrb[209].mxu0 }
0x14f7   : > { %v9833_v29 = vpop.f32.mrb[210].mxu0 }
0x14f8   : > { %v9904_v10 = vpack.c.bf16 %v9833_v29, %v9830_v1  ;;  %v16893_v19 = vpop.f32.mrb[211].mxu0  ;;  %v17617_v29 = vld [vmem:[%s22723_s13 + $0x210] ss:$8 sps:$4 sm:$0xff]  }
0x14fa   : > { %10104 = vmatpush1.bf16.msra.mxu1 %v9904_v10  ;;  %17003 = vmatmul.mubr.msk.bf16.gmra.mrb[60].mxu0 %vm8280_vm12, %v20680_v58  ;;  %v17622_v10 = vld [vmem:[%s22723_s13 + $0x224] ss:$8 sps:$4 sm:$0xff]  }
0x14fb   : > { %10105 = vmatprep.subr.bf16.mxu1 %v17870_v0  ;;  %17006 = vmatprep.mubr.msk.bf16.mxu0 %vm17869_vm7, %v17868_v23 }
0x14fc   : > { %9671 = vmatmul.mubr.bf16.gmra.mrb[192].mxu1 %v17608_v28 }
0x14fd   : > { %v9838_v63 = vpop.f32.mrb[212].mxu0  ;;  %14111 = vmatprep.mubr.msk.bf16.mxu1 %vm8791_vm13, %v17613_v22 }
0x14fe   : > { %v16896_v24 = vpop.f32.mrb[213].mxu0 }
0x14ff   : > { %v9841_v16 = vpop.f32.mrb[214].mxu0 }
0x1500   : > { %v9905_v4 = vpack.c.bf16 %v9841_v16, %v9838_v63  ;;  %v16897_v34 = vpop.f32.mrb[215].mxu0  ;;  %v17620_v16 = vld [vmem:[%s22723_s13 + $0x220] ss:$8 sps:$4 sm:$0xff]  }
0x1502   : > { %10106 = vmatpush1.bf16.msra.mxu1 %v9905_v4  ;;  %17007 = vmatmul.mubr.msk.bf16.gmra.mrb[64].mxu0 %vm8280_vm12, %v20694_v30  ;;  %v17625_v4 = vld [vmem:[%s22723_s13 + $0x234] ss:$8 sps:$4 sm:$0xff]  }
0x1503   : > { %10107 = vmatprep.subr.bf16.mxu1 %v17870_v0  ;;  %17010 = vmatprep.mubr.msk.bf16.mxu0 %vm17869_vm7, %v17868_v23 }
0x1504   : > { %9679 = vmatmul.mubr.bf16.gmra.mrb[196].mxu1 %v17611_v20 }
0x1505   : > { %v9846_v7 = vpop.f32.mrb[216].mxu0  ;;  %14112 = vmatprep.mubr.msk.bf16.mxu1 %vm8791_vm13, %v17616_v17 }
0x1506   : > { %v16900_v5 = vpop.f32.mrb[217].mxu0 }
0x1507   : > { %v9849_v51 = vpop.f32.mrb[218].mxu0 }
0x1508   : > { %v9906_v50 = vpack.c.bf16 %v9849_v51, %v9846_v7  ;;  %v16901_v11 = vpop.f32.mrb[219].mxu0  ;;  %v17623_v51 = vld [vmem:[%s22723_s13 + $0x230] ss:$8 sps:$4 sm:$0xff]  }
0x150a   : > { %10108 = vmatpush1.bf16.msra.mxu1 %v9906_v50  ;;  %17011 = vmatmul.mubr.msk.bf16.gmra.mrb[68].mxu0 %vm8280_vm12, %v20708_v53  ;;  %v17628_v50 = vld [vmem:[%s22723_s13 + $0x244] ss:$8 sps:$4 sm:$0xff]  }
0x150b   : > { %10109 = vmatprep.subr.bf16.mxu1 %v17870_v0  ;;  %17014 = vmatprep.mubr.msk.bf16.mxu0 %vm17869_vm7, %v17868_v23 }
0x150c   : > { %9687 = vmatmul.mubr.bf16.gmra.mrb[200].mxu1 %v17614_v48 }
0x150d   : > { %v9854_v37 = vpop.f32.mrb[220].mxu0  ;;  %14113 = vmatprep.mubr.msk.bf16.mxu1 %vm8791_vm13, %v17619_v18  ;;  %v14078_v18 = vld [vmem:[%s22723_s13 + $0x250] sm:$0x33] }
0x150e   : > { %v16904_v44 = vpop.f32.mrb[221].mxu0 }
0x150f   : > { %v9857_v41 = vpop.f32.mrb[222].mxu0 }
0x1510   : > { %v9907_v1 = vpack.c.bf16 %v9857_v41, %v9854_v37  ;;  %v16905_v46 = vpop.f32.mrb[223].mxu0 }
0x1511   : > { %v14104_v46 = vcombine.high %v14078_v18, %v14078_v18 }
0x1512   : > { %10110 = vmatpush1.bf16.msra.mxu1 %v9907_v1  ;;  %17015 = vmatmul.mubr.msk.bf16.gmra.mrb[72].mxu0 %vm8280_vm12, %v20722_v49  ;;  %v17626_v1 = vld [vmem:[%s22723_s13 + $0x240] ss:$8 sps:$4 sm:$0xff]  }
0x1513   : > { %10111 = vmatprep.subr.bf16.mxu1 %v17870_v0  ;;  %17018 = vmatprep.mubr.msk.bf16.mxu0 %vm17869_vm7, %v17868_v23 }
0x1514   : > { %9695 = vmatmul.mubr.bf16.gmra.mrb[204].mxu1 %v17617_v29 }
0x1515   : > { %v9862_v19 = vpop.f32.mrb[224].mxu0  ;;  %14114 = vmatprep.mubr.msk.bf16.mxu1 %vm8791_vm13, %v17622_v10 }
0x1516   : > { %v16908_v28 = vpop.f32.mrb[225].mxu0 }
0x1517   : > { %v9865_v22 = vpop.f32.mrb[226].mxu0 }
0x1518   : > { %v9908_v63 = vpack.c.bf16 %v9865_v22, %v9862_v19  ;;  %v16909_v24 = vpop.f32.mrb[227].mxu0 }
0x1519   : > { %v17633_v24 = vld [vmem:[%s22723_s13 + $0x25c] ss:$8 sps:$4 sm:$0xff]  }
0x151a   : > { %10112 = vmatpush1.bf16.msra.mxu1 %v9908_v63  ;;  %17019 = vmatmul.mubr.msk.bf16.gmra.mrb[76].mxu0 %vm8280_vm12, %v20736_v54  ;;  %v14103_v63 = vcombine.low %v14078_v18, %v14078_v18 }
0x151b   : > { %10113 = vmatprep.subr.bf16.mxu1 %v17870_v0  ;;  %17022 = vmatprep.mubr.msk.bf16.mxu0 %vm17869_vm7, %v17868_v23 }
0x151c   : > { %9703 = vmatmul.mubr.bf16.gmra.mrb[208].mxu1 %v17620_v16 }
0x151d   : > { %v9870_v34 = vpop.f32.mrb[228].mxu0  ;;  %14115 = vmatprep.mubr.msk.bf16.mxu1 %vm8791_vm13, %v17625_v4  ;;  %v14430_v4 = vld [vmem:[%s22724_s14 + $0x1c] sm:$0xf] }
0x151e   : > { %v16912_v20 = vpop.f32.mrb[229].mxu0 }
0x151f   : > { %v9873_v17 = vpop.f32.mrb[230].mxu0 }
0x1520   : > { %v9909_v7 = vpack.c.bf16 %v9873_v17, %v9870_v34  ;;  %v16913_v5 = vpop.f32.mrb[231].mxu0 }
0x1522   : > { %10114 = vmatpush1.bf16.msra.mxu1 %v9909_v7  ;;  %17023 = vmatmul.mubr.msk.bf16.gmra.mrb[80].mxu0 %vm8280_vm12, %v20750_v45 }
0x1523   : > { %10115 = vmatprep.subr.bf16.mxu1 %v17870_v0  ;;  %17026 = vmatprep.mubr.msk.bf16.mxu0 %vm17869_vm7, %v17868_v23 }
0x1524   : > { %9711 = vmatmul.mubr.bf16.gmra.mrb[212].mxu1 %v17623_v51  ;;  %v17631_v51 = vld [vmem:[%s22723_s13 + $0x258] ss:$8 sps:$4 sm:$0xff]  }
0x1525   : > { %v9878_v11 = vpop.f32.mrb[232].mxu0  ;;  %14116 = vmatprep.mubr.msk.bf16.mxu1 %vm8791_vm13, %v17628_v50  ;;  %v11750_v50 = vsel %vm880_vm5, %v14430_v4, 0 }
0x1526   : > { %v16916_v48 = vpop.f32.mrb[233].mxu0 }
0x1527   : > { %v9881_v37 = vpop.f32.mrb[234].mxu0 }
0x1528   : > { %v9910_v44 = vpack.c.bf16 %v9881_v37, %v9878_v11  ;;  %v16917_v41 = vpop.f32.mrb[235].mxu0  ;;  %v17636_v11 = vld [vmem:[%s22723_s13 + $0x26c] ss:$8 sps:$4 sm:$0xff]  }
0x152a   : > { %10116 = vmatpush1.bf16.msra.mxu1 %v9910_v44  ;;  %17027 = vmatmul.mubr.msk.bf16.gmra.mrb[84].mxu0 %vm8280_vm12, %v20764_v3 }
0x152b   : > { %10117 = vmatprep.subr.bf16.mxu1 %v17870_v0  ;;  %17030 = vmatprep.mubr.msk.bf16.mxu0 %vm17869_vm7, %v17868_v23 }
0x152c   : > { %9719 = vmatmul.mubr.bf16.gmra.mrb[216].mxu1 %v17626_v1  ;;  %v17634_v1 = vld [vmem:[%s22723_s13 + $0x268] ss:$8 sps:$4 sm:$0xff]  }
0x152d   : > { %v9886_v29 = vpop.f32.mrb[236].mxu0  ;;  %14117 = vmatprep.mubr.msk.bf16.mxu1 %vm8791_vm13, %v14104_v46  ;;  %v17639_v46 = vld [vmem:[%s22723_s13 + $0x27c] ss:$8 sps:$4 sm:$0xff]  }
0x152e   : > { %v16920_v10 = vpop.f32.mrb[237].mxu0 }
0x152f   : > { %v9889_v19 = vpop.f32.mrb[238].mxu0 }
0x1530   : > { %v9911_v28 = vpack.c.bf16 %v9889_v19, %v9886_v29  ;;  %v16921_v22 = vpop.f32.mrb[239].mxu0 }
0x1532   : > { %10118 = vmatpush1.bf16.msra.mxu1 %v9911_v28  ;;  %17031 = vmatmul.mubr.msk.bf16.gmra.mrb[88].mxu0 %vm8280_vm12, %v20776_v52 }
0x1533   : > { %10119 = vmatprep.subr.bf16.mxu1 %v17870_v0  ;;  %17036 = vmatprep.mubr.msk.bf16.mxu0 %vm17869_vm7, %v17868_v23 }
0x1534   : > { %9727 = vmatmul.mubr.bf16.gmra.mrb[220].mxu1 %v14103_v63  ;;  %v17637_v63 = vld [vmem:[%s22723_s13 + $0x278] ss:$8 sps:$4 sm:$0xff]  }
0x1535   : > { %v9894_v16 = vpop.f32.mrb[240].mxu0  ;;  %14183 = vmatprep.mubr.msk.bf16.mxu1 %vm8791_vm13, %v17633_v24  ;;  %v17642_v24 = vld [vmem:[%s22723_s13 + $0x28c] ss:$8 sps:$4 sm:$0xff]  }
0x1536   : > { %v9912_v34 = vpack.c.bf16 %v9894_v16, %v9894_v16  ;;  %v16924_v20 = vpop.f32.mrb[241].mxu0 }
0x1537   : > { %v9897_v17 = vpop.f32.mrb[242].mxu0 }
0x1538   : > { %v16925_v7 = vpop.f32.mrb[243].mxu0  ;;  %v10093_v5 = vsel %vm635_vm2, %v9912_v34, 0 }
0x1539   : > { %10120 = vmatpush1.bf16.msra.mxu1 %v10093_v5  ;;  %v17640_v7 = vld [vmem:[%s22723_s13 + $0x288] ss:$8 sps:$4 sm:$0xff]   ;;  %v17645_v5 = vld [vmem:[%s22723_s13 + $0x29c] ss:$8 sps:$4 sm:$0xff]  }
0x153a   : > { %17037 = vmatmul.mubr.msk.bf16.vlgmr.msra.gmra.mrb[92].mxu0 %vm8280_vm12, %v20610_v13  ;;  %10592 = vmatprep.subr.bf16.mxu1 %v17870_v0 }
0x153b   : > { %17040 = vmatprep.mubr.msk.bf16.mxu0 %vm17869_vm7, %v17868_v23  ;;  %17089 = vmatpush3.bf16.msra.mxu0 %v11750_v50 }
0x153c   : > { %10128 = vmatmul.mubr.bf16.vlgmr.msra.gmra.mrb[224].mxu1 %v17631_v51  ;;  %17142 = vmatprep.subr.bf16.mxu0 %v17868_v23 }
0x153d   : > { %v10295_v48 = vpop.f32.mrb[244].mxu0  ;;  %14184 = vmatprep.mubr.msk.bf16.mxu1 %vm8791_vm13, %v17636_v11 }
0x153e   : > { %v16930_v18 = vpop.f32.mrb[245].mxu0 }
0x153f   : > { %v10298_v37 = vpop.f32.mrb[246].mxu0 }
0x1540   : > { %v10397_v44 = vpack.c.bf16 %v10298_v37, %v10295_v48  ;;  %v16931_v41 = vpop.f32.mrb[247].mxu0  ;;  %v17643_v37 = vld [vmem:[%s22723_s13 + $0x298] ss:$8 sps:$4 sm:$0xff]  }
0x1542   : > { %10593 = vmatpush1.bf16.msra.mxu1 %v10397_v44  ;;  %17041 = vmatmul.mubr.msk.bf16.gmra.mrb[96].mxu0 %vm8280_vm12, %v20624_v32  ;;  %v17648_v44 = vld [vmem:[%s22723_s13 + $0x2ac] ss:$8 sps:$4 sm:$0xff]  }
0x1543   : > { %10594 = vmatprep.subr.bf16.mxu1 %v17870_v0  ;;  %17044 = vmatprep.mubr.msk.bf16.mxu0 %vm17869_vm7, %v17868_v23 }
0x1544   : > { %10136 = vmatmul.mubr.bf16.gmra.mrb[228].mxu1 %v17634_v1 }
0x1545   : > { %v10303_v29 = vpop.f32.mrb[248].mxu0  ;;  %14185 = vmatprep.mubr.msk.bf16.mxu1 %vm8791_vm13, %v17639_v46 }
0x1546   : > { %v16934_v10 = vpop.f32.mrb[249].mxu0 }
0x1547   : > { %v10306_v19 = vpop.f32.mrb[250].mxu0 }
0x1548   : > { %v10398_v28 = vpack.c.bf16 %v10306_v19, %v10303_v29  ;;  %v16935_v22 = vpop.f32.mrb[251].mxu0  ;;  %v17646_v19 = vld [vmem:[%s22723_s13 + $0x2a8] ss:$8 sps:$4 sm:$0xff]  }
0x154a   : > { %10595 = vmatpush1.bf16.msra.mxu1 %v10398_v28  ;;  %17045 = vmatmul.mubr.msk.bf16.gmra.mrb[100].mxu0 %vm8280_vm12, %v20638_v8  ;;  %v17651_v28 = vld [vmem:[%s22723_s13 + $0x2bc] ss:$8 sps:$4 sm:$0xff]  }
0x154b   : > { %10596 = vmatprep.subr.bf16.mxu1 %v17870_v0  ;;  %17048 = vmatprep.mubr.msk.bf16.mxu0 %vm17869_vm7, %v17868_v23 }
0x154c   : > { %10144 = vmatmul.mubr.bf16.gmra.mrb[232].mxu1 %v17637_v63 }
0x154d   : > { %v10311_v16 = vpop.f32.mrb[252].mxu0  ;;  %14186 = vmatprep.mubr.msk.bf16.mxu1 %vm8791_vm13, %v17642_v24 }
0x154e   : > { %v16938_v4 = vpop.f32.mrb[253].mxu0 }
0x154f   : > { %v10314_v34 = vpop.f32.mrb[254].mxu0 }
0x1550   : > { %v10399_v20 = vpack.c.bf16 %v10314_v34, %v10311_v16  ;;  %v16939_v17 = vpop.f32.mrb[255].mxu0  ;;  %v17649_v34 = vld [vmem:[%s22723_s13 + $0x2b8] ss:$8 sps:$4 sm:$0xff]  }
0x1552   : > { %10597 = vmatpush1.bf16.msra.mxu1 %v10399_v20  ;;  %17049 = vmatmul.mubr.msk.bf16.gmra.mrb[104].mxu0 %vm8280_vm12, %v20652_v35  ;;  %v17654_v20 = vld [vmem:[%s22723_s13 + $0x2cc] ss:$8 sps:$4 sm:$0xff]  }
0x1553   : > { %10598 = vmatprep.subr.bf16.mxu1 %v17870_v0  ;;  %17052 = vmatprep.mubr.msk.bf16.mxu0 %vm17869_vm7, %v17868_v23 }
0x1554   : > { %10152 = vmatmul.mubr.bf16.gmra.mrb[236].mxu1 %v17640_v7 }
0x1555   : > { %v10319_v51 = vpop.f32.mrb[0].mxu0  ;;  %14187 = vmatprep.mubr.msk.bf16.mxu1 %vm8791_vm13, %v17645_v5 }
0x1556   : > { %v16942_v50 = vpop.f32.mrb[1].mxu0 }
0x1557   : > { %v10322_v11 = vpop.f32.mrb[2].mxu0 }
0x1558   : > { %v10400_v48 = vpack.c.bf16 %v10322_v11, %v10319_v51  ;;  %v16943_v18 = vpop.f32.mrb[3].mxu0  ;;  %v17652_v11 = vld [vmem:[%s22723_s13 + $0x2c8] ss:$8 sps:$4 sm:$0xff]  }
0x155a   : > { %10599 = vmatpush1.bf16.msra.mxu1 %v10400_v48  ;;  %17053 = vmatmul.mubr.msk.bf16.gmra.mrb[108].mxu0 %vm8280_vm12, %v20666_v25  ;;  %v17657_v48 = vld [vmem:[%s22723_s13 + $0x2dc] ss:$8 sps:$4 sm:$0xff]  }
0x155b   : > { %10600 = vmatprep.subr.bf16.mxu1 %v17870_v0  ;;  %17056 = vmatprep.mubr.msk.bf16.mxu0 %vm17869_vm7, %v17868_v23 }
0x155c   : > { %10160 = vmatmul.mubr.bf16.gmra.mrb[240].mxu1 %v17643_v37 }
0x155d   : > { %v10327_v41 = vpop.f32.mrb[4].mxu0  ;;  %14188 = vmatprep.mubr.msk.bf16.mxu1 %vm8791_vm13, %v17648_v44 }
0x155e   : > { %v16946_v1 = vpop.f32.mrb[5].mxu0 }
0x155f   : > { %v10330_v46 = vpop.f32.mrb[6].mxu0 }
0x1560   : > { %v10401_v29 = vpack.c.bf16 %v10330_v46, %v10327_v41  ;;  %v16947_v10 = vpop.f32.mrb[7].mxu0  ;;  %v17655_v46 = vld [vmem:[%s22723_s13 + $0x2d8] ss:$8 sps:$4 sm:$0xff]  }
0x1562   : > { %10601 = vmatpush1.bf16.msra.mxu1 %v10401_v29  ;;  %17057 = vmatmul.mubr.msk.bf16.gmra.mrb[112].mxu0 %vm8280_vm12, %v20680_v58  ;;  %v17660_v29 = vld [vmem:[%s22723_s13 + $0x2ec] ss:$8 sps:$4 sm:$0xff]  }
0x1563   : > { %10602 = vmatprep.subr.bf16.mxu1 %v17870_v0  ;;  %17060 = vmatprep.mubr.msk.bf16.mxu0 %vm17869_vm7, %v17868_v23 }
0x1564   : > { %10168 = vmatmul.mubr.bf16.gmra.mrb[244].mxu1 %v17646_v19 }
0x1565   : > { %v10335_v22 = vpop.f32.mrb[12].mxu0  ;;  %14189 = vmatprep.mubr.msk.bf16.mxu1 %vm8791_vm13, %v17651_v28 }
0x1566   : > { %v16950_v63 = vpop.f32.mrb[13].mxu0 }
0x1567   : > { %v10338_v24 = vpop.f32.mrb[14].mxu0 }
0x1568   : > { %v10402_v16 = vpack.c.bf16 %v10338_v24, %v10335_v22  ;;  %v16951_v4 = vpop.f32.mrb[15].mxu0  ;;  %v17658_v24 = vld [vmem:[%s22723_s13 + $0x2e8] ss:$8 sps:$4 sm:$0xff]  }
0x156a   : > { %10603 = vmatpush1.bf16.msra.mxu1 %v10402_v16  ;;  %17061 = vmatmul.mubr.msk.bf16.gmra.mrb[116].mxu0 %vm8280_vm12, %v20694_v30  ;;  %v17663_v16 = vld [vmem:[%s22723_s13 + $0x2fc] ss:$8 sps:$4 sm:$0xff]  }
0x156b   : > { %10604 = vmatprep.subr.bf16.mxu1 %v17870_v0  ;;  %17064 = vmatprep.mubr.msk.bf16.mxu0 %vm17869_vm7, %v17868_v23 }
0x156c   : > { %10176 = vmatmul.mubr.bf16.gmra.mrb[248].mxu1 %v17649_v34 }
0x156d   : > { %v10343_v17 = vpop.f32.mrb[16].mxu0  ;;  %14190 = vmatprep.mubr.msk.bf16.mxu1 %vm8791_vm13, %v17654_v20 }
0x156e   : > { %v16954_v7 = vpop.f32.mrb[17].mxu0 }
0x156f   : > { %v10346_v5 = vpop.f32.mrb[18].mxu0 }
0x1570   : > { %v10403_v51 = vpack.c.bf16 %v10346_v5, %v10343_v17  ;;  %v16955_v50 = vpop.f32.mrb[19].mxu0  ;;  %v17661_v5 = vld [vmem:[%s22723_s13 + $0x2f8] ss:$8 sps:$4 sm:$0xff]  }
0x1572   : > { %10605 = vmatpush1.bf16.msra.mxu1 %v10403_v51  ;;  %17065 = vmatmul.mubr.msk.bf16.gmra.mrb[120].mxu0 %vm8280_vm12, %v20708_v53  ;;  %v17666_v51 = vld [vmem:[%s22723_s13 + $0x30c] ss:$8 sps:$4 sm:$0xff]  }
0x1573   : > { %10606 = vmatprep.subr.bf16.mxu1 %v17870_v0  ;;  %17068 = vmatprep.mubr.msk.bf16.mxu0 %vm17869_vm7, %v17868_v23 }
0x1574   : > { %10184 = vmatmul.mubr.bf16.gmra.mrb[252].mxu1 %v17652_v11 }
0x1575   : > { %v10351_v18 = vpop.f32.mrb[20].mxu0  ;;  %14191 = vmatprep.mubr.msk.bf16.mxu1 %vm8791_vm13, %v17657_v48  ;;  %v14156_v48 = vld [vmem:[%s22723_s13 + $0x318] sm:$0x33] }
0x1576   : > { %v16958_v37 = vpop.f32.mrb[21].mxu0 }
0x1577   : > { %v10354_v44 = vpop.f32.mrb[22].mxu0 }
0x1578   : > { %v10404_v41 = vpack.c.bf16 %v10354_v44, %v10351_v18  ;;  %v16959_v1 = vpop.f32.mrb[23].mxu0 }
0x1579   : > { %v14182_v1 = vcombine.high %v14156_v48, %v14156_v48 }
0x157a   : > { %10607 = vmatpush1.bf16.msra.mxu1 %v10404_v41  ;;  %17069 = vmatmul.mubr.msk.bf16.gmra.mrb[124].mxu0 %vm8280_vm12, %v20722_v49  ;;  %v17664_v41 = vld [vmem:[%s22723_s13 + $0x308] ss:$8 sps:$4 sm:$0xff]  }
0x157b   : > { %10608 = vmatprep.subr.bf16.mxu1 %v17870_v0  ;;  %17072 = vmatprep.mubr.msk.bf16.mxu0 %vm17869_vm7, %v17868_v23 }
0x157c   : > { %10192 = vmatmul.mubr.bf16.gmra.mrb[0].mxu1 %v17655_v46 }
0x157d   : > { %v10359_v10 = vpop.f32.mrb[24].mxu0  ;;  %14192 = vmatprep.mubr.msk.bf16.mxu1 %vm8791_vm13, %v17660_v29 }
0x157e   : > { %v16962_v19 = vpop.f32.mrb[25].mxu0 }
0x157f   : > { %v10362_v28 = vpop.f32.mrb[26].mxu0 }
0x1580   : > { %v10405_v22 = vpack.c.bf16 %v10362_v28, %v10359_v10  ;;  %v16963_v63 = vpop.f32.mrb[27].mxu0 }
0x1581   : > { %v17671_v63 = vld [vmem:[%s22723_s13 + $0x324] ss:$8 sps:$4 sm:$0xff]  }
0x1582   : > { %10609 = vmatpush1.bf16.msra.mxu1 %v10405_v22  ;;  %17073 = vmatmul.mubr.msk.bf16.gmra.mrb[128].mxu0 %vm8280_vm12, %v20736_v54  ;;  %v14181_v22 = vcombine.low %v14156_v48, %v14156_v48 }
0x1583   : > { %10610 = vmatprep.subr.bf16.mxu1 %v17870_v0  ;;  %17076 = vmatprep.mubr.msk.bf16.mxu0 %vm17869_vm7, %v17868_v23 }
0x1584   : > { %10200 = vmatmul.mubr.bf16.gmra.mrb[4].mxu1 %v17658_v24 }
0x1585   : > { %v10367_v4 = vpop.f32.mrb[28].mxu0  ;;  %14193 = vmatprep.mubr.msk.bf16.mxu1 %vm8791_vm13, %v17663_v16  ;;  %v14508_v16 = vld [vmem:[%s22724_s14 + $0x20] sm:$0xf] }
0x1586   : > { %v16966_v34 = vpop.f32.mrb[29].mxu0 }
0x1587   : > { %v10370_v20 = vpop.f32.mrb[30].mxu0 }
0x1588   : > { %v10406_v17 = vpack.c.bf16 %v10370_v20, %v10367_v4  ;;  %v16967_v7 = vpop.f32.mrb[31].mxu0 }
0x158a   : > { %10611 = vmatpush1.bf16.msra.mxu1 %v10406_v17  ;;  %17077 = vmatmul.mubr.msk.bf16.gmra.mrb[132].mxu0 %vm8280_vm12, %v20750_v45 }
0x158b   : > { %10612 = vmatprep.subr.bf16.mxu1 %v17870_v0  ;;  %17080 = vmatprep.mubr.msk.bf16.mxu0 %vm17869_vm7, %v17868_v23 }
0x158c   : > { %10208 = vmatmul.mubr.bf16.gmra.mrb[8].mxu1 %v17661_v5  ;;  %v17669_v5 = vld [vmem:[%s22723_s13 + $0x320] ss:$8 sps:$4 sm:$0xff]  }
0x158d   : > { %v10375_v50 = vpop.f32.mrb[32].mxu0  ;;  %14194 = vmatprep.mubr.msk.bf16.mxu1 %vm8791_vm13, %v17666_v51  ;;  %v12247_v51 = vsel %vm880_vm5, %v14508_v16, 0 }
0x158e   : > { %v16970_v11 = vpop.f32.mrb[33].mxu0 }
0x158f   : > { %v10378_v18 = vpop.f32.mrb[34].mxu0 }
0x1590   : > { %v10407_v37 = vpack.c.bf16 %v10378_v18, %v10375_v50  ;;  %v16971_v44 = vpop.f32.mrb[35].mxu0  ;;  %v17674_v50 = vld [vmem:[%s22723_s13 + $0x334] ss:$8 sps:$4 sm:$0xff]  }
0x1592   : > { %10613 = vmatpush1.bf16.msra.mxu1 %v10407_v37  ;;  %17081 = vmatmul.mubr.msk.bf16.gmra.mrb[136].mxu0 %vm8280_vm12, %v20764_v3 }
0x1593   : > { %10614 = vmatprep.subr.bf16.mxu1 %v17870_v0  ;;  %17084 = vmatprep.mubr.msk.bf16.mxu0 %vm17869_vm7, %v17868_v23 }
0x1594   : > { %10216 = vmatmul.mubr.bf16.gmra.mrb[12].mxu1 %v17664_v41 }
0x1595   : > { %v10383_v46 = vpop.f32.mrb[36].mxu0  ;;  %14195 = vmatprep.mubr.msk.bf16.mxu1 %vm8791_vm13, %v14182_v1 }
0x1596   : > { %v16974_v29 = vpop.f32.mrb[37].mxu0 }
0x1597   : > { %v10386_v10 = vpop.f32.mrb[38].mxu0  ;;  %v17672_v29 = vld [vmem:[%s22723_s13 + $0x330] ss:$8 sps:$4 sm:$0xff]  }
0x1598   : > { %v10408_v19 = vpack.c.bf16 %v10386_v10, %v10383_v46  ;;  %v16975_v28 = vpop.f32.mrb[39].mxu0 }
0x159a   : > { %10615 = vmatpush1.bf16.msra.mxu1 %v10408_v19  ;;  %17085 = vmatmul.mubr.msk.bf16.gmra.mrb[140].mxu0 %vm8280_vm12, %v20776_v52  ;;  %v17677_v19 = vld [vmem:[%s22723_s13 + $0x344] ss:$8 sps:$4 sm:$0xff]  }
0x159b   : > { %10616 = vmatprep.subr.bf16.mxu1 %v17870_v0  ;;  %17090 = vmatprep.mubr.msk.bf16.mxu0 %vm17869_vm7, %v17868_v23 }
0x159c   : > { %10224 = vmatmul.mubr.bf16.gmra.mrb[16].mxu1 %v14181_v22 }
0x159d   : > { %v10391_v24 = vpop.f32.mrb[40].mxu0  ;;  %14261 = vmatprep.mubr.msk.bf16.mxu1 %vm8791_vm13, %v17671_v63 }
0x159e   : > { %v10409_v4 = vpack.c.bf16 %v10391_v24, %v10391_v24  ;;  %v16978_v34 = vpop.f32.mrb[41].mxu0 }
0x159f   : > { %v10394_v20 = vpop.f32.mrb[42].mxu0 }
0x15a0   : > { %v10590_v17 = vsel %vm635_vm2, %v10409_v4, 0  ;;  %v16979_v7 = vpop.f32.mrb[43].mxu0 }
0x15a1   : > { %10617 = vmatpush1.bf16.msra.mxu1 %v10590_v17  ;;  %v17675_v17 = vld [vmem:[%s22723_s13 + $0x340] ss:$8 sps:$4 sm:$0xff]  }
0x15a2   : > { %17091 = vmatmul.mubr.msk.bf16.vlgmr.msra.gmra.mrb[144].mxu0 %vm8280_vm12, %v20610_v13  ;;  %11089 = vmatprep.subr.bf16.mxu1 %v17870_v0 }
0x15a3   : > { %17094 = vmatprep.mubr.msk.bf16.mxu0 %vm17869_vm7, %v17868_v23  ;;  %17143 = vmatpush3.bf16.msra.mxu0 %v12247_v51 }
0x15a4   : > { %10625 = vmatmul.mubr.bf16.vlgmr.msra.gmra.mrb[20].mxu1 %v17669_v5  ;;  %v17680_v5 = vld [vmem:[%s22723_s13 + $0x354] ss:$8 sps:$4 sm:$0xff]  }
0x15a5   : > { %v10792_v11 = vpop.f32.mrb[8].mxu0  ;;  %14262 = vmatprep.mubr.msk.bf16.mxu1 %vm8791_vm13, %v17674_v50 }
0x15a6   : > { %v16984_v48 = vpop.f32.mrb[9].mxu0 }
0x15a7   : > { %v9632_v18 = vpop.f32.mrb[172].mxu1  ;;  %v10795_v37 = vpop.f32.mrb[10].mxu0 }
0x15a8   : > { %v21566_v44 = vadd.f32 %v9632_v18, %v21059_v6  ;;  %v10894_v41 = vpack.c.bf16 %v10795_v37, %v10792_v11  ;;  %v9634_v1 = vpop.f32.mrb[173].mxu1  ;;  %v16985_v46 = vpop.f32.mrb[11].mxu0 }
0x15a9   : > { %v9635_v10 = vpop.f32.mrb[174].mxu1  ;;  %v17678_v46 = vld [vmem:[%s22723_s13 + $0x350] ss:$8 sps:$4 sm:$0xff]  }
0x15aa   : > { %v21575_v28 = vadd.f32 %v9635_v10, %v21061_v40  ;;  %11090 = vmatpush1.bf16.msra.mxu1 %v10894_v41  ;;  %17095 = vmatmul.mubr.msk.bf16.gmra.mrb[148].mxu0 %vm8280_vm12, %v20624_v32  ;;  %v9637_v6 = vpop.f32.mrb[175].mxu1  ;;  %v17683_v10 = vld [vmem:[%s22723_s13 + $0x364] ss:$8 sps:$4 sm:$0xff]  }
0x15ab   : > { %11091 = vmatprep.subr.bf16.mxu1 %v17870_v0  ;;  %17098 = vmatprep.mubr.msk.bf16.mxu0 %vm17869_vm7, %v17868_v23 }
0x15ac   : > { %10633 = vmatmul.mubr.bf16.gmra.mrb[24].mxu1 %v17672_v29 }
0x15ad   : > { %v10800_v22 = vpop.f32.mrb[44].mxu0  ;;  %14263 = vmatprep.mubr.msk.bf16.mxu1 %vm8791_vm13, %v17677_v19 }
0x15ae   : > { %v16988_v63 = vpop.f32.mrb[45].mxu0 }
0x15af   : > { %v9640_v24 = vpop.f32.mrb[176].mxu1  ;;  %v10803_v16 = vpop.f32.mrb[46].mxu0 }
0x15b0   : > { %v21584_v40 = vadd.f32 %v9640_v24, %v21067_v39  ;;  %v10895_v4 = vpack.c.bf16 %v10803_v16, %v10800_v22  ;;  %v9642_v34 = vpop.f32.mrb[177].mxu1  ;;  %v16989_v20 = vpop.f32.mrb[47].mxu0 }
0x15b1   : > { %v9643_v7 = vpop.f32.mrb[178].mxu1  ;;  %v17681_v20 = vld [vmem:[%s22723_s13 + $0x360] ss:$8 sps:$4 sm:$0xff]  }
0x15b2   : > { %v21593_v51 = vadd.f32 %v9643_v7, %v21069_v43  ;;  %11092 = vmatpush1.bf16.msra.mxu1 %v10895_v4  ;;  %17099 = vmatmul.mubr.msk.bf16.gmra.mrb[152].mxu0 %vm8280_vm12, %v20638_v8  ;;  %v9645_v39 = vpop.f32.mrb[179].mxu1  ;;  %v17686_v7 = vld [vmem:[%s22723_s13 + $0x374] ss:$8 sps:$4 sm:$0xff]  }
0x15b3   : > { %11093 = vmatprep.subr.bf16.mxu1 %v17870_v0  ;;  %17102 = vmatprep.mubr.msk.bf16.mxu0 %vm17869_vm7, %v17868_v23 }
0x15b4   : > { %10641 = vmatmul.mubr.bf16.gmra.mrb[28].mxu1 %v17675_v17 }
0x15b5   : > { %v10808_v50 = vpop.f32.mrb[48].mxu0  ;;  %14264 = vmatprep.mubr.msk.bf16.mxu1 %vm8791_vm13, %v17680_v5 }
0x15b6   : > { %v16992_v11 = vpop.f32.mrb[49].mxu0 }
0x15b7   : > { %v9648_v48 = vpop.f32.mrb[180].mxu1  ;;  %v10811_v18 = vpop.f32.mrb[50].mxu0 }
0x15b8   : > { %v21602_v43 = vadd.f32 %v9648_v48, %v21075_v59  ;;  %v10896_v37 = vpack.c.bf16 %v10811_v18, %v10808_v50  ;;  %v9650_v41 = vpop.f32.mrb[181].mxu1  ;;  %v16993_v1 = vpop.f32.mrb[51].mxu0 }
0x15b9   : > { %v9651_v29 = vpop.f32.mrb[182].mxu1  ;;  %v17684_v1 = vld [vmem:[%s22723_s13 + $0x370] ss:$8 sps:$4 sm:$0xff]  }
0x15ba   : > { %v21611_v19 = vadd.f32 %v9651_v29, %v21077_v9  ;;  %11094 = vmatpush1.bf16.msra.mxu1 %v10896_v37  ;;  %17103 = vmatmul.mubr.msk.bf16.gmra.mrb[156].mxu0 %vm8280_vm12, %v20652_v35  ;;  %v9653_v59 = vpop.f32.mrb[183].mxu1  ;;  %v17689_v29 = vld [vmem:[%s22723_s13 + $0x384] ss:$8 sps:$4 sm:$0xff]  }
0x15bb   : > { %11095 = vmatprep.subr.bf16.mxu1 %v17870_v0  ;;  %17106 = vmatprep.mubr.msk.bf16.mxu0 %vm17869_vm7, %v17868_v23 }
0x15bc   : > { %10649 = vmatmul.mubr.bf16.gmra.mrb[32].mxu1 %v17678_v46 }
0x15bd   : > { %v10816_v6 = vpop.f32.mrb[52].mxu0  ;;  %14265 = vmatprep.mubr.msk.bf16.mxu1 %vm8791_vm13, %v17683_v10 }
0x15be   : > { %v16996_v22 = vpop.f32.mrb[53].mxu0 }
0x15bf   : > { %v9656_v63 = vpop.f32.mrb[184].mxu1  ;;  %v10819_v24 = vpop.f32.mrb[54].mxu0 }
0x15c0   : > { %v21620_v9 = vadd.f32 %v9656_v63, %v21083_v15  ;;  %v10897_v16 = vpack.c.bf16 %v10819_v24, %v10816_v6  ;;  %v9658_v4 = vpop.f32.mrb[185].mxu1  ;;  %v16997_v34 = vpop.f32.mrb[55].mxu0 }
0x15c1   : > { %v9659_v17 = vpop.f32.mrb[186].mxu1  ;;  %v17687_v34 = vld [vmem:[%s22723_s13 + $0x380] ss:$8 sps:$4 sm:$0xff]  }
0x15c2   : > { %v21629_v5 = vadd.f32 %v9659_v17, %v21085_v12  ;;  %11096 = vmatpush1.bf16.msra.mxu1 %v10897_v16  ;;  %17107 = vmatmul.mubr.msk.bf16.gmra.mrb[160].mxu0 %vm8280_vm12, %v20666_v25  ;;  %v9661_v15 = vpop.f32.mrb[187].mxu1  ;;  %v17692_v17 = vld [vmem:[%s22723_s13 + $0x394] ss:$8 sps:$4 sm:$0xff]  }
0x15c3   : > { %11097 = vmatprep.subr.bf16.mxu1 %v17870_v0  ;;  %17110 = vmatprep.mubr.msk.bf16.mxu0 %vm17869_vm7, %v17868_v23 }
0x15c4   : > { %10657 = vmatmul.mubr.bf16.gmra.mrb[36].mxu1 %v17681_v20 }
0x15c5   : > { %v10824_v39 = vpop.f32.mrb[56].mxu0  ;;  %14266 = vmatprep.mubr.msk.bf16.mxu1 %vm8791_vm13, %v17686_v7 }
0x15c6   : > { %v17000_v50 = vpop.f32.mrb[57].mxu0 }
0x15c7   : > { %v9664_v11 = vpop.f32.mrb[188].mxu1  ;;  %v10827_v48 = vpop.f32.mrb[58].mxu0 }
0x15c8   : > { %v21638_v12 = vadd.f32 %v9664_v11, %v21091_v56  ;;  %v10898_v18 = vpack.c.bf16 %v10827_v48, %v10824_v39  ;;  %v9666_v37 = vpop.f32.mrb[189].mxu1  ;;  %v17001_v41 = vpop.f32.mrb[59].mxu0 }
0x15c9   : > { %v9667_v46 = vpop.f32.mrb[190].mxu1  ;;  %v17690_v41 = vld [vmem:[%s22723_s13 + $0x390] ss:$8 sps:$4 sm:$0xff]  }
0x15ca   : > { %v21647_v10 = vadd.f32 %v9667_v46, %v21093_v26  ;;  %11098 = vmatpush1.bf16.msra.mxu1 %v10898_v18  ;;  %17111 = vmatmul.mubr.msk.bf16.gmra.mrb[164].mxu0 %vm8280_vm12, %v20680_v58  ;;  %v9669_v56 = vpop.f32.mrb[191].mxu1  ;;  %v17695_v46 = vld [vmem:[%s22723_s13 + $0x3a4] ss:$8 sps:$4 sm:$0xff]  }
0x15cb   : > { %11099 = vmatprep.subr.bf16.mxu1 %v17870_v0  ;;  %17114 = vmatprep.mubr.msk.bf16.mxu0 %vm17869_vm7, %v17868_v23 }
0x15cc   : > { %10665 = vmatmul.mubr.bf16.gmra.mrb[40].mxu1 %v17684_v1 }
0x15cd   : > { %v10832_v59 = vpop.f32.mrb[60].mxu0  ;;  %14267 = vmatprep.mubr.msk.bf16.mxu1 %vm8791_vm13, %v17689_v29 }
0x15ce   : > { %v17004_v6 = vpop.f32.mrb[61].mxu0 }
0x15cf   : > { %v9672_v22 = vpop.f32.mrb[192].mxu1  ;;  %v10835_v63 = vpop.f32.mrb[62].mxu0 }
0x15d0   : > { %v21656_v26 = vadd.f32 %v9672_v22, %v21099_v27  ;;  %v10899_v24 = vpack.c.bf16 %v10835_v63, %v10832_v59  ;;  %v9674_v16 = vpop.f32.mrb[193].mxu1  ;;  %v17005_v4 = vpop.f32.mrb[63].mxu0 }
0x15d1   : > { %v9675_v20 = vpop.f32.mrb[194].mxu1  ;;  %v17693_v4 = vld [vmem:[%s22723_s13 + $0x3a0] ss:$8 sps:$4 sm:$0xff]  }
0x15d2   : > { %v21665_v7 = vadd.f32 %v9675_v20, %v21101_v47  ;;  %11100 = vmatpush1.bf16.msra.mxu1 %v10899_v24  ;;  %17115 = vmatmul.mubr.msk.bf16.gmra.mrb[168].mxu0 %vm8280_vm12, %v20694_v30  ;;  %v9677_v27 = vpop.f32.mrb[195].mxu1  ;;  %v17698_v20 = vld [vmem:[%s22723_s13 + $0x3b4] ss:$8 sps:$4 sm:$0xff]  }
0x15d3   : > { %11101 = vmatprep.subr.bf16.mxu1 %v17870_v0  ;;  %17118 = vmatprep.mubr.msk.bf16.mxu0 %vm17869_vm7, %v17868_v23 }
0x15d4   : > { %10673 = vmatmul.mubr.bf16.gmra.mrb[44].mxu1 %v17687_v34 }
0x15d5   : > { %v10840_v15 = vpop.f32.mrb[64].mxu0  ;;  %14268 = vmatprep.mubr.msk.bf16.mxu1 %vm8791_vm13, %v17692_v17 }
0x15d6   : > { %v17008_v39 = vpop.f32.mrb[65].mxu0 }
0x15d7   : > { %v9680_v50 = vpop.f32.mrb[196].mxu1  ;;  %v10843_v11 = vpop.f32.mrb[66].mxu0 }
0x15d8   : > { %v21674_v47 = vadd.f32 %v9680_v50, %v21107_v21  ;;  %v10900_v48 = vpack.c.bf16 %v10843_v11, %v10840_v15  ;;  %v9682_v18 = vpop.f32.mrb[197].mxu1  ;;  %v17009_v37 = vpop.f32.mrb[67].mxu0 }
0x15d9   : > { %v9683_v1 = vpop.f32.mrb[198].mxu1  ;;  %v17696_v37 = vld [vmem:[%s22723_s13 + $0x3b0] ss:$8 sps:$4 sm:$0xff]  }
0x15da   : > { %v21683_v29 = vadd.f32 %v9683_v1, %v21109_v36  ;;  %11102 = vmatpush1.bf16.msra.mxu1 %v10900_v48  ;;  %17119 = vmatmul.mubr.msk.bf16.gmra.mrb[172].mxu0 %vm8280_vm12, %v20708_v53  ;;  %v9685_v21 = vpop.f32.mrb[199].mxu1  ;;  %v17701_v1 = vld [vmem:[%s22723_s13 + $0x3c4] ss:$8 sps:$4 sm:$0xff]  }
0x15db   : > { %11103 = vmatprep.subr.bf16.mxu1 %v17870_v0  ;;  %17122 = vmatprep.mubr.msk.bf16.mxu0 %vm17869_vm7, %v17868_v23 }
0x15dc   : > { %10681 = vmatmul.mubr.bf16.gmra.mrb[48].mxu1 %v17690_v41 }
0x15dd   : > { %v10848_v56 = vpop.f32.mrb[68].mxu0  ;;  %14269 = vmatprep.mubr.msk.bf16.mxu1 %vm8791_vm13, %v17695_v46 }
0x15de   : > { %v17012_v59 = vpop.f32.mrb[69].mxu0 }
0x15df   : > { %v9688_v6 = vpop.f32.mrb[200].mxu1  ;;  %v10851_v22 = vpop.f32.mrb[70].mxu0 }
0x15e0   : > { %v21692_v36 = vadd.f32 %v9688_v6, %v21115_v57  ;;  %v10901_v63 = vpack.c.bf16 %v10851_v22, %v10848_v56  ;;  %v9690_v24 = vpop.f32.mrb[201].mxu1  ;;  %v17013_v16 = vpop.f32.mrb[71].mxu0 }
0x15e1   : > { %v9691_v34 = vpop.f32.mrb[202].mxu1  ;;  %v17699_v16 = vld [vmem:[%s22723_s13 + $0x3c0] ss:$8 sps:$4 sm:$0xff]  }
0x15e2   : > { %v21701_v17 = vadd.f32 %v9691_v34, %v21117_v61  ;;  %11104 = vmatpush1.bf16.msra.mxu1 %v10901_v63  ;;  %17123 = vmatmul.mubr.msk.bf16.gmra.mrb[176].mxu0 %vm8280_vm12, %v20722_v49  ;;  %v9693_v57 = vpop.f32.mrb[203].mxu1  ;;  %v17704_v34 = vld [vmem:[%s22723_s13 + $0x3d4] ss:$8 sps:$4 sm:$0xff]  }
0x15e3   : > { %11105 = vmatprep.subr.bf16.mxu1 %v17870_v0  ;;  %17126 = vmatprep.mubr.msk.bf16.mxu0 %vm17869_vm7, %v17868_v23 }
0x15e4   : > { %10689 = vmatmul.mubr.bf16.gmra.mrb[52].mxu1 %v17693_v4 }
0x15e5   : > { %v10856_v27 = vpop.f32.mrb[72].mxu0  ;;  %14270 = vmatprep.mubr.msk.bf16.mxu1 %vm8791_vm13, %v17698_v20 }
0x15e6   : > { %v17016_v15 = vpop.f32.mrb[73].mxu0 }
0x15e7   : > { %v9696_v39 = vpop.f32.mrb[204].mxu1  ;;  %v10859_v50 = vpop.f32.mrb[74].mxu0 }
0x15e8   : > { %v21710_v61 = vadd.f32 %v9696_v39, %v21123_v62  ;;  %v10902_v11 = vpack.c.bf16 %v10859_v50, %v10856_v27  ;;  %v9698_v48 = vpop.f32.mrb[205].mxu1  ;;  %v17017_v18 = vpop.f32.mrb[75].mxu0 }
0x15e9   : > { %v9699_v41 = vpop.f32.mrb[206].mxu1 }
0x15ea   : > { %v21719_v46 = vadd.f32 %v9699_v41, %v21125_v2  ;;  %11106 = vmatpush1.bf16.msra.mxu1 %v10902_v11  ;;  %17127 = vmatmul.mubr.msk.bf16.gmra.mrb[180].mxu0 %vm8280_vm12, %v20736_v54  ;;  %v9701_v62 = vpop.f32.mrb[207].mxu1 }
0x15eb   : > { %11107 = vmatprep.subr.bf16.mxu1 %v17870_v0  ;;  %17130 = vmatprep.mubr.msk.bf16.mxu0 %vm17869_vm7, %v17868_v23 }
0x15ec   : > { %10697 = vmatmul.mubr.bf16.gmra.mrb[56].mxu1 %v17696_v37  ;;  %v17702_v37 = vld [vmem:[%s22723_s13 + $0x3d0] ss:$8 sps:$4 sm:$0xff]  }
0x15ed   : > { %v10864_v21 = vpop.f32.mrb[76].mxu0  ;;  %14271 = vmatprep.mubr.msk.bf16.mxu1 %vm8791_vm13, %v17701_v1 }
0x15ee   : > { %v17020_v56 = vpop.f32.mrb[77].mxu0 }
0x15ef   : > { %v9704_v59 = vpop.f32.mrb[208].mxu1  ;;  %v10867_v6 = vpop.f32.mrb[78].mxu0 }
0x15f0   : > { %v21728_v2 = vadd.f32 %v9704_v59, %v21131_v14  ;;  %v10903_v22 = vpack.c.bf16 %v10867_v6, %v10864_v21  ;;  %v9706_v63 = vpop.f32.mrb[209].mxu1  ;;  %v17021_v24 = vpop.f32.mrb[79].mxu0 }
0x15f1   : > { %v9707_v4 = vpop.f32.mrb[210].mxu1 }
0x15f2   : > { %v21737_v20 = vadd.f32 %v9707_v4, %v21133_v31  ;;  %11108 = vmatpush1.bf16.msra.mxu1 %v10903_v22  ;;  %17131 = vmatmul.mubr.msk.bf16.gmra.mrb[184].mxu0 %vm8280_vm12, %v20750_v45  ;;  %v9709_v14 = vpop.f32.mrb[211].mxu1  ;;  %v14234_v31 = vld [vmem:[%s22723_s13 + $0x3e0] sm:$0x33] }
0x15f3   : > { %11109 = vmatprep.subr.bf16.mxu1 %v17870_v0  ;;  %17134 = vmatprep.mubr.msk.bf16.mxu0 %vm17869_vm7, %v17868_v23  ;;  %v14260_v1 = vcombine.high %v14234_v31, %v14234_v31 }
0x15f4   : > { %10705 = vmatmul.mubr.bf16.gmra.mrb[60].mxu1 %v17699_v16  ;;  %v14259_v16 = vcombine.low %v14234_v31, %v14234_v31 }
0x15f5   : > { %v10872_v57 = vpop.f32.mrb[80].mxu0  ;;  %14272 = vmatprep.mubr.msk.bf16.mxu1 %vm8791_vm13, %v17704_v34  ;;  %v17709_v34 = vld [vmem:[%s22723_s13 + $0x3ec] ss:$8 sps:$4 sm:$0xff]  }
0x15f6   : > { %v17024_v27 = vpop.f32.mrb[81].mxu0 }
0x15f7   : > { %v9712_v15 = vpop.f32.mrb[212].mxu1  ;;  %v10875_v39 = vpop.f32.mrb[82].mxu0 }
0x15f8   : > { %v21749_v50 = vadd.f32 %v9712_v15, %v21143_v42  ;;  %v10904_v11 = vpack.c.bf16 %v10875_v39, %v10872_v57  ;;  %v9714_v48 = vpop.f32.mrb[213].mxu1  ;;  %v17025_v18 = vpop.f32.mrb[83].mxu0 }
0x15f9   : > { %v9715_v41 = vpop.f32.mrb[214].mxu1  ;;  %v17707_v18 = vld [vmem:[%s22723_s13 + $0x3e8] ss:$8 sps:$4 sm:$0xff]  }
0x15fa   : > { %v21755_v62 = vadd.f32 %v9715_v41, %v21145_v38  ;;  %11110 = vmatpush1.bf16.msra.mxu1 %v10904_v11  ;;  %17135 = vmatmul.mubr.msk.bf16.gmra.mrb[188].mxu0 %vm8280_vm12, %v20764_v3  ;;  %v9717_v21 = vpop.f32.mrb[215].mxu1 }
0x15fb   : > { %11111 = vmatprep.subr.bf16.mxu1 %v17870_v0  ;;  %17138 = vmatprep.mubr.msk.bf16.mxu0 %vm17869_vm7, %v17868_v23 }
0x15fc   : > { %10713 = vmatmul.mubr.bf16.gmra.mrb[64].mxu1 %v17702_v37 }
0x15fd   : > { %v10880_v42 = vpop.f32.mrb[84].mxu0  ;;  %14273 = vmatprep.mubr.msk.bf16.mxu1 %vm8791_vm13, %v14260_v1  ;;  %v17712_v1 = vld [vmem:[%s22723_s13 + $0x3fc] ss:$8 sps:$4 sm:$0xff]  }
0x15fe   : > { %v17028_v56 = vpop.f32.mrb[85].mxu0 }
0x15ff   : > { %v9720_v59 = vpop.f32.mrb[216].mxu1  ;;  %v10883_v6 = vpop.f32.mrb[86].mxu0 }
0x1600   : > { %v21764_v38 = vadd.f32 %v9720_v59, %v21151_v55  ;;  %v10905_v22 = vpack.c.bf16 %v10883_v6, %v10880_v42  ;;  %v9722_v63 = vpop.f32.mrb[217].mxu1  ;;  %v17029_v24 = vpop.f32.mrb[87].mxu0 }
0x1601   : > { %v9723_v4 = vpop.f32.mrb[218].mxu1 }
0x1602   : > { %v21770_v14 = vadd.f32 %v9723_v4, %v21153_v33  ;;  %11112 = vmatpush1.bf16.msra.mxu1 %v10905_v22  ;;  %17139 = vmatmul.mubr.msk.bf16.gmra.mrb[192].mxu0 %vm8280_vm12, %v20776_v52  ;;  %v9725_v57 = vpop.f32.mrb[219].mxu1  ;;  %v17715_v4 = vld [vmem:[%s22723_s13 + $0x40c] ss:$8 sps:$4 sm:$0xff]  }
0x1603   : > { %11113 = vmatprep.subr.bf16.mxu1 %v17870_v0  ;;  %17144 = vmatprep.mubr.msk.bf16.mxu0 %vm17869_vm7, %v17868_v23 }
0x1604   : > { %10721 = vmatmul.mubr.bf16.gmra.mrb[68].mxu1 %v14259_v16 }
0x1605   : > { %v10888_v55 = vpop.f32.mrb[88].mxu0  ;;  %14339 = vmatprep.mubr.msk.bf16.mxu1 %vm8791_vm13, %v17709_v34 }
0x1606   : > { %v10906_v27 = vpack.c.bf16 %v10888_v55, %v10888_v55  ;;  %v17032_v31 = vpop.f32.mrb[89].mxu0 }
0x1607   : > { %v9728_v15 = vpop.f32.mrb[220].mxu1  ;;  %v10891_v39 = vpop.f32.mrb[90].mxu0 }
0x1608   : > { %v11087_v33 = vsel %vm635_vm2, %v10906_v27, 0  ;;  %v21780_v11 = vadd.f32 %v9728_v15, %v21162_v60  ;;  %v17033_v48 = vpop.f32.mrb[91].mxu0  ;;  %v9730_v37 = vpop.f32.mrb[221].mxu1 }
0x1609   : > { %11114 = vmatpush1.bf16.msra.mxu1 %v11087_v33  ;;  %v9731_v41 = vpop.f32.mrb[222].mxu1 }
0x160a   : > { %17145 = vmatmul.mubr.msk.bf16.vlgmr.msra.gmra.mrb[196].mxu0 %vm8280_vm12, %v20610_v13  ;;  %v9732_v21 = vpop.f32.mrb[223].mxu1  ;;  %11586 = vmatprep.subr.bf16.mxu1 %v17870_v0  ;;  %v17710_v13 = vld [vmem:[%s22723_s13 + $0x3f8] ss:$8 sps:$4 sm:$0xff]  }
0x160b   : > { %17148 = vmatprep.mubr.msk.bf16.mxu0 %vm17869_vm7, %v17868_v23 }
0x160c   : > { %11122 = vmatmul.mubr.bf16.vlgmr.msra.gmra.mrb[72].mxu1 %v17707_v18  ;;  %v17718_v18 = vld [vmem:[%s22723_s13 + $0x41c] ss:$8 sps:$4 sm:$0xff]  }
0x160d   : > { %v11289_v60 = vpop.f32.mrb[92].mxu0  ;;  %14340 = vmatprep.mubr.msk.bf16.mxu1 %vm8791_vm13, %v17712_v1 }
0x160e   : > { %v17038_v42 = vpop.f32.mrb[93].mxu0 }
0x160f   : > { %v10129_v56 = vpop.f32.mrb[224].mxu1  ;;  %v11292_v59 = vpop.f32.mrb[94].mxu0 }
0x1610   : > { %v21795_v6 = vadd.f32 %v10129_v56, %v21566_v44  ;;  %v11391_v22 = vpack.c.bf16 %v11292_v59, %v11289_v60  ;;  %v10131_v63 = vpop.f32.mrb[225].mxu1  ;;  %v17039_v24 = vpop.f32.mrb[95].mxu0 }
0x1611   : > { %v10132_v16 = vpop.f32.mrb[226].mxu1  ;;  %v17721_v63 = vld [vmem:[%s22723_s13 + $0x42c] ss:$8 sps:$4 sm:$0xff]  }
0x1612   : > { %v21804_v34 = vadd.f32 %v10132_v16, %v21575_v28  ;;  %11587 = vmatpush1.bf16.msra.mxu1 %v11391_v22  ;;  %17149 = vmatmul.mubr.msk.bf16.gmra.mrb[200].mxu0 %vm8280_vm12, %v20624_v32  ;;  %v10134_v44 = vpop.f32.mrb[227].mxu1  ;;  %v17713_v32 = vld [vmem:[%s22723_s13 + $0x408] ss:$8 sps:$4 sm:$0xff]  }
0x1613   : > { %11588 = vmatprep.subr.bf16.mxu1 %v17870_v0  ;;  %17152 = vmatprep.mubr.msk.bf16.mxu0 %vm17869_vm7, %v17868_v23 }
0x1614   : > { %11130 = vmatmul.mubr.bf16.gmra.mrb[76].mxu1 %v17710_v13 }
0x1615   : > { %v11297_v57 = vpop.f32.mrb[96].mxu0  ;;  %14341 = vmatprep.mubr.msk.bf16.mxu1 %vm8791_vm13, %v17715_v4 }
0x1616   : > { %v17042_v55 = vpop.f32.mrb[97].mxu0 }
0x1617   : > { %v10137_v27 = vpop.f32.mrb[228].mxu1  ;;  %v11300_v31 = vpop.f32.mrb[98].mxu0 }
0x1618   : > { %v11392_v15 = vpack.c.bf16 %v11300_v31, %v11297_v57  ;;  %v10139_v28 = vpop.f32.mrb[229].mxu1  ;;  %v17043_v39 = vpop.f32.mrb[99].mxu0  ;;  %v21816_v33 = vadd.f32 %v10137_v27, %v21584_v40 }
0x1619   : > { %v10140_v48 = vpop.f32.mrb[230].mxu1 }
0x161a   : > { %11589 = vmatpush1.bf16.msra.mxu1 %v11392_v15  ;;  %17153 = vmatmul.mubr.msk.bf16.gmra.mrb[204].mxu0 %vm8280_vm12, %v20638_v8  ;;  %v10142_v37 = vpop.f32.mrb[231].mxu1  ;;  %v21824_v41 = vadd.f32 %v10140_v48, %v21593_v51  ;;  %v17716_v8 = vld [vmem:[%s22723_s13 + $0x418] ss:$8 sps:$4 sm:$0xff]   ;;  %v17724_v15 = vld [vmem:[%s22723_s13 + $0x43c] ss:$8 sps:$4 sm:$0xff]  }
0x161b   : > { %11590 = vmatprep.subr.bf16.mxu1 %v17870_v0  ;;  %17156 = vmatprep.mubr.msk.bf16.mxu0 %vm17869_vm7, %v17868_v23 }
0x161c   : > { %11138 = vmatmul.mubr.bf16.gmra.mrb[80].mxu1 %v17713_v32 }
0x161d   : > { %v11305_v40 = vpop.f32.mrb[100].mxu0  ;;  %14342 = vmatprep.mubr.msk.bf16.mxu1 %vm8791_vm13, %v17718_v18 }
0x161e   : > { %v17046_v1 = vpop.f32.mrb[101].mxu0 }
0x161f   : > { %v10145_v21 = vpop.f32.mrb[232].mxu1  ;;  %v11308_v60 = vpop.f32.mrb[102].mxu0 }
0x1620   : > { %v11393_v42 = vpack.c.bf16 %v11308_v60, %v11305_v40  ;;  %v10147_v56 = vpop.f32.mrb[233].mxu1  ;;  %v17047_v59 = vpop.f32.mrb[103].mxu0  ;;  %v21834_v51 = vadd.f32 %v10145_v21, %v21602_v43  ;;  %v17727_v60 = vld [vmem:[%s22723_s13 + $0x44c] ss:$8 sps:$4 sm:$0xff]  }
0x1621   : > { %v10148_v22 = vpop.f32.mrb[234].mxu1 }
0x1622   : > { %11591 = vmatpush1.bf16.msra.mxu1 %v11393_v42  ;;  %17157 = vmatmul.mubr.msk.bf16.gmra.mrb[208].mxu0 %vm8280_vm12, %v20652_v35  ;;  %v10150_v24 = vpop.f32.mrb[235].mxu1  ;;  %v21842_v13 = vadd.f32 %v10148_v22, %v21611_v19  ;;  %v17719_v35 = vld [vmem:[%s22723_s13 + $0x428] ss:$8 sps:$4 sm:$0xff]  }
0x1623   : > { %11592 = vmatprep.subr.bf16.mxu1 %v17870_v0  ;;  %17160 = vmatprep.mubr.msk.bf16.mxu0 %vm17869_vm7, %v17868_v23 }
0x1624   : > { %11146 = vmatmul.mubr.bf16.gmra.mrb[84].mxu1 %v17716_v8 }
0x1625   : > { %v11313_v43 = vpop.f32.mrb[104].mxu0  ;;  %14343 = vmatprep.mubr.msk.bf16.mxu1 %vm8791_vm13, %v17721_v63 }
0x1626   : > { %v17050_v16 = vpop.f32.mrb[105].mxu0 }
0x1627   : > { %v10153_v4 = vpop.f32.mrb[236].mxu1  ;;  %v11316_v44 = vpop.f32.mrb[106].mxu0 }
0x1628   : > { %v11394_v57 = vpack.c.bf16 %v11316_v44, %v11313_v43  ;;  %v10155_v55 = vpop.f32.mrb[237].mxu1  ;;  %v17051_v27 = vpop.f32.mrb[107].mxu0  ;;  %v21852_v19 = vadd.f32 %v10153_v4, %v21620_v9  ;;  %v17730_v4 = vld [vmem:[%s22723_s13 + $0x45c] ss:$8 sps:$4 sm:$0xff]  }
0x1629   : > { %v10156_v31 = vpop.f32.mrb[238].mxu1 }
0x162a   : > { %11593 = vmatpush1.bf16.msra.mxu1 %v11394_v57  ;;  %17161 = vmatmul.mubr.msk.bf16.gmra.mrb[212].mxu0 %vm8280_vm12, %v20666_v25  ;;  %v10158_v28 = vpop.f32.mrb[239].mxu1  ;;  %v21860_v39 = vadd.f32 %v10156_v31, %v21629_v5  ;;  %v17722_v25 = vld [vmem:[%s22723_s13 + $0x438] ss:$8 sps:$4 sm:$0xff]  }
0x162b   : > { %11594 = vmatprep.subr.bf16.mxu1 %v17870_v0  ;;  %17164 = vmatprep.mubr.msk.bf16.mxu0 %vm17869_vm7, %v17868_v23 }
0x162c   : > { %11154 = vmatmul.mubr.bf16.gmra.mrb[88].mxu1 %v17719_v35 }
0x162d   : > { %v11321_v9 = vpop.f32.mrb[108].mxu0  ;;  %14344 = vmatprep.mubr.msk.bf16.mxu1 %vm8791_vm13, %v17724_v15 }
0x162e   : > { %v17054_v32 = vpop.f32.mrb[109].mxu0 }
0x162f   : > { %v10161_v48 = vpop.f32.mrb[240].mxu1  ;;  %v11324_v18 = vpop.f32.mrb[110].mxu0  ;;  %v17733_v32 = vld [vmem:[%s22723_s13 + $0x46c] ss:$8 sps:$4 sm:$0xff]  }
0x1630   : > { %v11395_v37 = vpack.c.bf16 %v11324_v18, %v11321_v9  ;;  %v10163_v40 = vpop.f32.mrb[241].mxu1  ;;  %v17055_v1 = vpop.f32.mrb[111].mxu0  ;;  %v21870_v5 = vadd.f32 %v10161_v48, %v21638_v12 }
0x1631   : > { %v10164_v21 = vpop.f32.mrb[242].mxu1 }
0x1632   : > { %11595 = vmatpush1.bf16.msra.mxu1 %v11395_v37  ;;  %17165 = vmatmul.mubr.msk.bf16.gmra.mrb[216].mxu0 %vm8280_vm12, %v20680_v58  ;;  %v10166_v42 = vpop.f32.mrb[243].mxu1  ;;  %v21878_v56 = vadd.f32 %v10164_v21, %v21647_v10  ;;  %v17725_v58 = vld [vmem:[%s22723_s13 + $0x448] ss:$8 sps:$4 sm:$0xff]  }
0x1633   : > { %11596 = vmatprep.subr.bf16.mxu1 %v17870_v0  ;;  %17168 = vmatprep.mubr.msk.bf16.mxu0 %vm17869_vm7, %v17868_v23 }
0x1634   : > { %11162 = vmatmul.mubr.bf16.gmra.mrb[92].mxu1 %v17722_v25 }
0x1635   : > { %v11329_v12 = vpop.f32.mrb[112].mxu0  ;;  %14345 = vmatprep.mubr.msk.bf16.mxu1 %vm8791_vm13, %v17727_v60 }
0x1636   : > { %v17058_v59 = vpop.f32.mrb[113].mxu0 }
0x1637   : > { %v10169_v8 = vpop.f32.mrb[244].mxu1  ;;  %v11332_v22 = vpop.f32.mrb[114].mxu0 }
0x1638   : > { %v11396_v63 = vpack.c.bf16 %v11332_v22, %v11329_v12  ;;  %v10171_v24 = vpop.f32.mrb[245].mxu1  ;;  %v17059_v43 = vpop.f32.mrb[115].mxu0  ;;  %v21888_v10 = vadd.f32 %v10169_v8, %v21656_v26  ;;  %v17736_v12 = vld [vmem:[%s22723_s13 + $0x47c] ss:$8 sps:$4 sm:$0xff]  }
0x1639   : > { %v10172_v16 = vpop.f32.mrb[246].mxu1 }
0x163a   : > { %11597 = vmatpush1.bf16.msra.mxu1 %v11396_v63  ;;  %17169 = vmatmul.mubr.msk.bf16.gmra.mrb[220].mxu0 %vm8280_vm12, %v20694_v30  ;;  %v10174_v44 = vpop.f32.mrb[247].mxu1  ;;  %v21896_v57 = vadd.f32 %v10172_v16, %v21665_v7  ;;  %v17728_v30 = vld [vmem:[%s22723_s13 + $0x458] ss:$8 sps:$4 sm:$0xff]  }
0x163b   : > { %11598 = vmatprep.subr.bf16.mxu1 %v17870_v0  ;;  %17172 = vmatprep.mubr.msk.bf16.mxu0 %vm17869_vm7, %v17868_v23  ;;  %v17739_v44 = vld [vmem:[%s22723_s13 + $0x48c] ss:$8 sps:$4 sm:$0xff]  }
0x163c   : > { %11170 = vmatmul.mubr.bf16.gmra.mrb[96].mxu1 %v17725_v58 }
0x163d   : > { %v11337_v26 = vpop.f32.mrb[116].mxu0  ;;  %14346 = vmatprep.mubr.msk.bf16.mxu1 %vm8791_vm13, %v17730_v4 }
0x163e   : > { %v17062_v55 = vpop.f32.mrb[117].mxu0 }
0x163f   : > { %v10177_v27 = vpop.f32.mrb[248].mxu1  ;;  %v11340_v35 = vpop.f32.mrb[118].mxu0 }
0x1640   : > { %v11397_v31 = vpack.c.bf16 %v11340_v35, %v11337_v26  ;;  %v10179_v15 = vpop.f32.mrb[249].mxu1  ;;  %v17063_v28 = vpop.f32.mrb[119].mxu0  ;;  %v21906_v7 = vadd.f32 %v10177_v27, %v21674_v47 }
0x1641   : > { %v10180_v9 = vpop.f32.mrb[250].mxu1 }
0x1642   : > { %11599 = vmatpush1.bf16.msra.mxu1 %v11397_v31  ;;  %17173 = vmatmul.mubr.msk.bf16.gmra.mrb[224].mxu0 %vm8280_vm12, %v20708_v53  ;;  %v10182_v48 = vpop.f32.mrb[251].mxu1  ;;  %v21914_v18 = vadd.f32 %v10180_v9, %v21683_v29  ;;  %v17731_v53 = vld [vmem:[%s22723_s13 + $0x468] ss:$8 sps:$4 sm:$0xff]  }
0x1643   : > { %11600 = vmatprep.subr.bf16.mxu1 %v17870_v0  ;;  %17176 = vmatprep.mubr.msk.bf16.mxu0 %vm17869_vm7, %v17868_v23 }
0x1644   : > { %11178 = vmatmul.mubr.bf16.gmra.mrb[100].mxu1 %v17728_v30 }
0x1645   : > { %v11345_v47 = vpop.f32.mrb[120].mxu0  ;;  %14347 = vmatprep.mubr.msk.bf16.mxu1 %vm8791_vm13, %v17733_v32  ;;  %v17742_v32 = vld [vmem:[%s22723_s13 + $0x49c] ss:$8 sps:$4 sm:$0xff]  }
0x1646   : > { %v17066_v37 = vpop.f32.mrb[121].mxu0 }
0x1647   : > { %v10185_v40 = vpop.f32.mrb[252].mxu1  ;;  %v11348_v1 = vpop.f32.mrb[122].mxu0 }
0x1648   : > { %v11398_v25 = vpack.c.bf16 %v11348_v1, %v11345_v47  ;;  %v10187_v21 = vpop.f32.mrb[253].mxu1  ;;  %v17067_v60 = vpop.f32.mrb[123].mxu0  ;;  %v21924_v29 = vadd.f32 %v10185_v40, %v21692_v36  ;;  %v14312_v40 = vld [vmem:[%s22723_s13 + $0x4a8] sm:$0x33] }
0x1649   : > { %v10188_v42 = vpop.f32.mrb[254].mxu1  ;;  %v17740_v60 = vld [vmem:[%s22723_s13 + $0x498] ss:$8 sps:$4 sm:$0xff]  }
0x164a   : > { %11601 = vmatpush1.bf16.msra.mxu1 %v11398_v25  ;;  %17177 = vmatmul.mubr.msk.bf16.gmra.mrb[228].mxu0 %vm8280_vm12, %v20722_v49  ;;  %v10190_v59 = vpop.f32.mrb[255].mxu1  ;;  %v21932_v8 = vadd.f32 %v10188_v42, %v21701_v17  ;;  %v17734_v49 = vld [vmem:[%s22723_s13 + $0x478] ss:$8 sps:$4 sm:$0xff]  }
0x164b   : > { %11602 = vmatprep.subr.bf16.mxu1 %v17870_v0  ;;  %17180 = vmatprep.mubr.msk.bf16.mxu0 %vm17869_vm7, %v17868_v23 }
0x164c   : > { %11186 = vmatmul.mubr.bf16.gmra.mrb[104].mxu1 %v17731_v53 }
0x164d   : > { %v11353_v36 = vpop.f32.mrb[124].mxu0  ;;  %14348 = vmatprep.mubr.msk.bf16.mxu1 %vm8791_vm13, %v17736_v12  ;;  %v14338_v12 = vcombine.high %v14312_v40, %v14312_v40 }
0x164e   : > { %v17070_v22 = vpop.f32.mrb[125].mxu0 }
0x164f   : > { %v10193_v63 = vpop.f32.mrb[0].mxu1  ;;  %v11356_v24 = vpop.f32.mrb[126].mxu0 }
0x1650   : > { %v11399_v43 = vpack.c.bf16 %v11356_v24, %v11353_v36  ;;  %v10195_v58 = vpop.f32.mrb[1].mxu1  ;;  %v17071_v16 = vpop.f32.mrb[127].mxu0  ;;  %v21942_v17 = vadd.f32 %v10193_v63, %v21710_v61 }
0x1651   : > { %v10196_v4 = vpop.f32.mrb[2].mxu1 }
0x1652   : > { %11603 = vmatpush1.bf16.msra.mxu1 %v11399_v43  ;;  %17181 = vmatmul.mubr.msk.bf16.gmra.mrb[232].mxu0 %vm8280_vm12, %v20736_v54  ;;  %v10198_v26 = vpop.f32.mrb[3].mxu1  ;;  %v21950_v55 = vadd.f32 %v10196_v4, %v21719_v46  ;;  %v17737_v54 = vld [vmem:[%s22723_s13 + $0x488] ss:$8 sps:$4 sm:$0xff]   ;;  %v17747_v4 = vld [vmem:[%s22723_s13 + $0x4b4] ss:$8 sps:$4 sm:$0xff]  }
0x1653   : > { %11604 = vmatprep.subr.bf16.mxu1 %v17870_v0  ;;  %17184 = vmatprep.mubr.msk.bf16.mxu0 %vm17869_vm7, %v17868_v23 }
0x1654   : > { %11194 = vmatmul.mubr.bf16.gmra.mrb[108].mxu1 %v17734_v49 }
0x1655   : > { %v11361_v61 = vpop.f32.mrb[128].mxu0  ;;  %14349 = vmatprep.mubr.msk.bf16.mxu1 %vm8791_vm13, %v17739_v44 }
0x1656   : > { %v17074_v27 = vpop.f32.mrb[129].mxu0 }
0x1657   : > { %v10201_v35 = vpop.f32.mrb[4].mxu1  ;;  %v11364_v31 = vpop.f32.mrb[130].mxu0 }
0x1658   : > { %v11400_v15 = vpack.c.bf16 %v11364_v31, %v11361_v61  ;;  %v10203_v28 = vpop.f32.mrb[5].mxu1  ;;  %v17075_v30 = vpop.f32.mrb[131].mxu0  ;;  %v21960_v46 = vadd.f32 %v10201_v35, %v21728_v2 }
0x1659   : > { %v10204_v9 = vpop.f32.mrb[6].mxu1 }
0x165a   : > { %11605 = vmatpush1.bf16.msra.mxu1 %v11400_v15  ;;  %17185 = vmatmul.mubr.msk.bf16.gmra.mrb[236].mxu0 %vm8280_vm12, %v20750_v45  ;;  %v10206_v48 = vpop.f32.mrb[7].mxu1  ;;  %v21968_v47 = vadd.f32 %v10204_v9, %v21737_v20 }
0x165b   : > { %11606 = vmatprep.subr.bf16.mxu1 %v17870_v0  ;;  %17188 = vmatprep.mubr.msk.bf16.mxu0 %vm17869_vm7, %v17868_v23 }
0x165c   : > { %11202 = vmatmul.mubr.bf16.gmra.mrb[112].mxu1 %v17737_v54  ;;  %v17750_v54 = vld [vmem:[%s22723_s13 + $0x4c4] ss:$8 sps:$4 sm:$0xff]  }
0x165d   : > { %v11369_v2 = vpop.f32.mrb[132].mxu0  ;;  %14350 = vmatprep.mubr.msk.bf16.mxu1 %vm8791_vm13, %v17742_v32 }
0x165e   : > { %v17078_v37 = vpop.f32.mrb[133].mxu0 }
0x165f   : > { %v10209_v1 = vpop.f32.mrb[8].mxu1  ;;  %v11372_v45 = vpop.f32.mrb[134].mxu0 }
0x1660   : > { %v11401_v25 = vpack.c.bf16 %v11372_v45, %v11369_v2  ;;  %v10211_v21 = vpop.f32.mrb[9].mxu1  ;;  %v17079_v20 = vpop.f32.mrb[135].mxu0  ;;  %v21981_v53 = vadd.f32 %v10209_v1, %v21749_v50  ;;  %v17748_v45 = vld [vmem:[%s22723_s13 + $0x4c0] ss:$8 sps:$4 sm:$0xff]  }
0x1661   : > { %v10212_v42 = vpop.f32.mrb[10].mxu1  ;;  %v17753_v20 = vld [vmem:[%s22723_s13 + $0x4d4] ss:$8 sps:$4 sm:$0xff]  }
0x1662   : > { %11607 = vmatpush1.bf16.msra.mxu1 %v11401_v25  ;;  %17189 = vmatmul.mubr.msk.bf16.gmra.mrb[240].mxu0 %vm8280_vm12, %v20764_v3  ;;  %v10214_v59 = vpop.f32.mrb[11].mxu1  ;;  %v21986_v36 = vadd.f32 %v10212_v42, %v21755_v62  ;;  %v14337_v3 = vcombine.low %v14312_v40, %v14312_v40 }
0x1663   : > { %11608 = vmatprep.subr.bf16.mxu1 %v17870_v0  ;;  %17192 = vmatprep.mubr.msk.bf16.mxu0 %vm17869_vm7, %v17868_v23 }
0x1664   : > { %11210 = vmatmul.mubr.bf16.gmra.mrb[116].mxu1 %v17740_v60 }
0x1665   : > { %v11377_v22 = vpop.f32.mrb[136].mxu0  ;;  %14351 = vmatprep.mubr.msk.bf16.mxu1 %vm8791_vm13, %v14338_v12 }
0x1666   : > { %v17082_v50 = vpop.f32.mrb[137].mxu0 }
0x1667   : > { %v10217_v63 = vpop.f32.mrb[12].mxu1  ;;  %v11380_v24 = vpop.f32.mrb[138].mxu0 }
0x1668   : > { %v11402_v43 = vpack.c.bf16 %v11380_v24, %v11377_v22  ;;  %v10219_v58 = vpop.f32.mrb[13].mxu1  ;;  %v17083_v16 = vpop.f32.mrb[139].mxu0  ;;  %v21993_v49 = vadd.f32 %v10217_v63, %v21764_v38 }
0x1669   : > { %v10220_v62 = vpop.f32.mrb[14].mxu1  ;;  %v17756_v16 = vld [vmem:[%s22723_s13 + $0x4e4] ss:$8 sps:$4 sm:$0xff]  }
0x166a   : > { %11609 = vmatpush1.bf16.msra.mxu1 %v11402_v43  ;;  %17193 = vmatmul.mubr.msk.bf16.gmra.mrb[244].mxu0 %vm8280_vm12, %v20776_v52  ;;  %v10222_v23 = vpop.f32.mrb[15].mxu1  ;;  %v22001_v44 = vadd.f32 %v10220_v62, %v21770_v14  ;;  %v17745_v52 = vld [vmem:[%s22723_s13 + $0x4b0] ss:$8 sps:$4 sm:$0xff]  }
0x166b   : > { %11610 = vmatprep.subr.bf16.mxu1 %v17870_v0 }
0x166c   : > { %11218 = vmatmul.mubr.bf16.gmra.mrb[120].mxu1 %v14337_v3 }
0x166d   : > { %v11385_v26 = vpop.f32.mrb[140].mxu0  ;;  %14417 = vmatprep.mubr.msk.bf16.mxu1 %vm8791_vm13, %v17747_v4 }
0x166e   : > { %v11403_v38 = vpack.c.bf16 %v11385_v26, %v11385_v26  ;;  %v17086_v61 = vpop.f32.mrb[141].mxu0 }
0x166f   : > { %v10225_v27 = vpop.f32.mrb[16].mxu1  ;;  %v11388_v35 = vpop.f32.mrb[142].mxu0 }
0x1670   : > { %v11584_v31 = vsel %vm635_vm2, %v11403_v38, 0  ;;  %v17087_v15 = vpop.f32.mrb[143].mxu0  ;;  %v10227_v28 = vpop.f32.mrb[17].mxu1  ;;  %v22010_v14 = vadd.f32 %v10225_v27, %v21780_v11 }
0x1671   : > { %11611 = vmatpush1.bf16.msra.mxu1 %v11584_v31  ;;  %v10228_v30 = vpop.f32.mrb[18].mxu1  ;;  %v17759_v15 = vld [vmem:[%s22723_s13 + $0x4f4] ss:$8 sps:$4 sm:$0xff]  }
0x1672   : > { %v10229_v9 = vpop.f32.mrb[19].mxu1  ;;  %12083 = vmatprep.subr.bf16.mxu1 %v17870_v0 }
0x1674   : > { %11619 = vmatmul.mubr.bf16.vlgmr.msra.gmra.mrb[124].mxu1 %v17745_v52 }
0x1675   : > { %v11786_v32 = vpop.f32.mrb[144].mxu0  ;;  %14418 = vmatprep.mubr.msk.bf16.mxu1 %vm8791_vm13, %v17750_v54 }
0x1676   : > { %v17092_v48 = vpop.f32.mrb[145].mxu0 }
0x1677   : > { %v10626_v2 = vpop.f32.mrb[20].mxu1  ;;  %v11789_v37 = vpop.f32.mrb[146].mxu0 }
0x1678   : > { %v11888_v40 = vpack.c.bf16 %v11789_v37, %v11786_v32  ;;  %v10628_v1 = vpop.f32.mrb[21].mxu1  ;;  %v17093_v11 = vpop.f32.mrb[147].mxu0  ;;  %v22021_v25 = vadd.f32 %v10626_v2, %v21795_v6 }
0x1679   : > { %v10629_v21 = vpop.f32.mrb[22].mxu1  ;;  %v17762_v1 = vld [vmem:[%s22723_s13 + $0x504] ss:$8 sps:$4 sm:$0xff]  }
0x167a   : > { %12084 = vmatpush1.bf16.msra.mxu1 %v11888_v40  ;;  %v10631_v60 = vpop.f32.mrb[23].mxu1  ;;  %v22027_v42 = vadd.f32 %v10629_v21, %v21804_v34  ;;  %v17751_v34 = vld [vmem:[%s22723_s13 + $0x4d0] ss:$8 sps:$4 sm:$0xff]  }
0x167b   : > { %12085 = vmatprep.subr.bf16.mxu1 %v17870_v0 }
0x167c   : > { %11627 = vmatmul.mubr.bf16.gmra.mrb[128].mxu1 %v17748_v45 }
0x167d   : > { %v11794_v12 = vpop.f32.mrb[148].mxu0  ;;  %14419 = vmatprep.mubr.msk.bf16.mxu1 %vm8791_vm13, %v17753_v20 }
0x167e   : > { %v17096_v59 = vpop.f32.mrb[149].mxu0 }
0x167f   : > { %v10634_v22 = vpop.f32.mrb[24].mxu1  ;;  %v11797_v6 = vpop.f32.mrb[150].mxu0 }
0x1680   : > { %v22032_v50 = vadd.f32 %v10634_v22, %v21816_v33  ;;  %v11889_v63 = vpack.c.bf16 %v11797_v6, %v11794_v12  ;;  %v10636_v24 = vpop.f32.mrb[25].mxu1  ;;  %v17097_v43 = vpop.f32.mrb[151].mxu0 }
0x1681   : > { %v10637_v58 = vpop.f32.mrb[26].mxu1  ;;  %v17765_v24 = vld [vmem:[%s22723_s13 + $0x514] ss:$8 sps:$4 sm:$0xff]  }
0x1682   : > { %v22041_v3 = vadd.f32 %v10637_v58, %v21824_v41  ;;  %12086 = vmatpush1.bf16.msra.mxu1 %v11889_v63  ;;  %v10639_v62 = vpop.f32.mrb[27].mxu1  ;;  %v17754_v41 = vld [vmem:[%s22723_s13 + $0x4e0] ss:$8 sps:$4 sm:$0xff]  }
0x1683   : > { %12087 = vmatprep.subr.bf16.mxu1 %v17870_v0 }
0x1684   : > { %11635 = vmatmul.mubr.bf16.gmra.mrb[132].mxu1 %v17751_v34 }
0x1685   : > { %v11802_v33 = vpop.f32.mrb[152].mxu0  ;;  %14420 = vmatprep.mubr.msk.bf16.mxu1 %vm8791_vm13, %v17756_v16 }
0x1686   : > { %v17100_v4 = vpop.f32.mrb[153].mxu0 }
0x1687   : > { %v10642_v23 = vpop.f32.mrb[28].mxu1  ;;  %v11805_v26 = vpop.f32.mrb[154].mxu0 }
0x1688   : > { %v22046_v38 = vadd.f32 %v10642_v23, %v21834_v51  ;;  %v11890_v61 = vpack.c.bf16 %v11805_v26, %v11802_v33  ;;  %v10644_v27 = vpop.f32.mrb[29].mxu1  ;;  %v17101_v35 = vpop.f32.mrb[155].mxu0 }
0x1689   : > { %v10645_v31 = vpop.f32.mrb[30].mxu1  ;;  %v17768_v27 = vld [vmem:[%s22723_s13 + $0x524] ss:$8 sps:$4 sm:$0xff]  }
0x168a   : > { %v22055_v52 = vadd.f32 %v10645_v31, %v21842_v13  ;;  %12088 = vmatpush1.bf16.msra.mxu1 %v11890_v61  ;;  %v10647_v28 = vpop.f32.mrb[31].mxu1  ;;  %v17757_v13 = vld [vmem:[%s22723_s13 + $0x4f0] ss:$8 sps:$4 sm:$0xff]  }
0x168b   : > { %12089 = vmatprep.subr.bf16.mxu1 %v17870_v0 }
0x168c   : > { %11643 = vmatmul.mubr.bf16.gmra.mrb[136].mxu1 %v17754_v41 }
0x168d   : > { %v11810_v51 = vpop.f32.mrb[156].mxu0  ;;  %14421 = vmatprep.mubr.msk.bf16.mxu1 %vm8791_vm13, %v17759_v15 }
0x168e   : > { %v17104_v30 = vpop.f32.mrb[157].mxu0 }
0x168f   : > { %v10650_v54 = vpop.f32.mrb[32].mxu1  ;;  %v11813_v9 = vpop.f32.mrb[158].mxu0 }
0x1690   : > { %v22060_v32 = vadd.f32 %v10650_v54, %v21852_v19  ;;  %v11891_v48 = vpack.c.bf16 %v11813_v9, %v11810_v51  ;;  %v10652_v2 = vpop.f32.mrb[33].mxu1  ;;  %v17105_v37 = vpop.f32.mrb[159].mxu0 }
0x1691   : > { %v10653_v40 = vpop.f32.mrb[34].mxu1  ;;  %v17771_v2 = vld [vmem:[%s22723_s13 + $0x534] ss:$8 sps:$4 sm:$0xff]  }
0x1692   : > { %v22069_v11 = vadd.f32 %v10653_v40, %v21860_v39  ;;  %12090 = vmatpush1.bf16.msra.mxu1 %v11891_v48  ;;  %v10655_v45 = vpop.f32.mrb[35].mxu1  ;;  %v17760_v39 = vld [vmem:[%s22723_s13 + $0x500] ss:$8 sps:$4 sm:$0xff]  }
0x1693   : > { %12091 = vmatprep.subr.bf16.mxu1 %v17870_v0 }
0x1694   : > { %11651 = vmatmul.mubr.bf16.gmra.mrb[140].mxu1 %v17757_v13 }
0x1695   : > { %v11818_v19 = vpop.f32.mrb[160].mxu0  ;;  %14422 = vmatprep.mubr.msk.bf16.mxu1 %vm8791_vm13, %v17762_v1 }
0x1696   : > { %v17108_v21 = vpop.f32.mrb[161].mxu0 }
0x1697   : > { %v10658_v20 = vpop.f32.mrb[36].mxu1  ;;  %v11821_v60 = vpop.f32.mrb[162].mxu0 }
0x1698   : > { %v22074_v12 = vadd.f32 %v10658_v20, %v21870_v5  ;;  %v11892_v59 = vpack.c.bf16 %v11821_v60, %v11818_v19  ;;  %v10660_v22 = vpop.f32.mrb[37].mxu1  ;;  %v17109_v6 = vpop.f32.mrb[163].mxu0 }
0x1699   : > { %v10661_v63 = vpop.f32.mrb[38].mxu1  ;;  %v17774_v22 = vld [vmem:[%s22723_s13 + $0x544] ss:$8 sps:$4 sm:$0xff]  }
0x169a   : > { %v22083_v43 = vadd.f32 %v10661_v63, %v21878_v56  ;;  %12092 = vmatpush1.bf16.msra.mxu1 %v11892_v59  ;;  %v10663_v34 = vpop.f32.mrb[39].mxu1  ;;  %v17763_v56 = vld [vmem:[%s22723_s13 + $0x510] ss:$8 sps:$4 sm:$0xff]  }
0x169b   : > { %12093 = vmatprep.subr.bf16.mxu1 %v17870_v0 }
0x169c   : > { %11659 = vmatmul.mubr.bf16.gmra.mrb[144].mxu1 %v17760_v39 }
0x169d   : > { %v11826_v5 = vpop.f32.mrb[164].mxu0  ;;  %14423 = vmatprep.mubr.msk.bf16.mxu1 %vm8791_vm13, %v17765_v24 }
0x169e   : > { %v17112_v58 = vpop.f32.mrb[165].mxu0 }
0x169f   : > { %v10666_v16 = vpop.f32.mrb[40].mxu1  ;;  %v11829_v62 = vpop.f32.mrb[166].mxu0 }
0x16a0   : > { %v22088_v33 = vadd.f32 %v10666_v16, %v21888_v10  ;;  %v11893_v4 = vpack.c.bf16 %v11829_v62, %v11826_v5  ;;  %v10668_v23 = vpop.f32.mrb[41].mxu1  ;;  %v17113_v26 = vpop.f32.mrb[167].mxu0 }
0x16a1   : > { %v10669_v61 = vpop.f32.mrb[42].mxu1  ;;  %v17777_v23 = vld [vmem:[%s22723_s13 + $0x554] ss:$8 sps:$4 sm:$0xff]  }
0x16a2   : > { %v22097_v35 = vadd.f32 %v10669_v61, %v21896_v57  ;;  %12094 = vmatpush1.bf16.msra.mxu1 %v11893_v4  ;;  %v10671_v41 = vpop.f32.mrb[43].mxu1  ;;  %v17766_v57 = vld [vmem:[%s22723_s13 + $0x520] ss:$8 sps:$4 sm:$0xff]  }
0x16a3   : > { %12095 = vmatprep.subr.bf16.mxu1 %v17870_v0 }
0x16a4   : > { %11667 = vmatmul.mubr.bf16.gmra.mrb[148].mxu1 %v17763_v56 }
0x16a5   : > { %v11834_v10 = vpop.f32.mrb[168].mxu0  ;;  %14424 = vmatprep.mubr.msk.bf16.mxu1 %vm8791_vm13, %v17768_v27 }
0x16a6   : > { %v17116_v31 = vpop.f32.mrb[169].mxu0 }
0x16a7   : > { %v10674_v15 = vpop.f32.mrb[44].mxu1  ;;  %v11837_v28 = vpop.f32.mrb[170].mxu0 }
0x16a8   : > { %v22102_v51 = vadd.f32 %v10674_v15, %v21906_v7  ;;  %v11894_v30 = vpack.c.bf16 %v11837_v28, %v11834_v10  ;;  %v10676_v54 = vpop.f32.mrb[45].mxu1  ;;  %v17117_v9 = vpop.f32.mrb[171].mxu0 }
0x16a9   : > { %v10677_v48 = vpop.f32.mrb[46].mxu1  ;;  %v17780_v54 = vld [vmem:[%s22723_s13 + $0x564] ss:$8 sps:$4 sm:$0xff]  }
0x16aa   : > { %v22111_v37 = vadd.f32 %v10677_v48, %v21914_v18  ;;  %12096 = vmatpush1.bf16.msra.mxu1 %v11894_v30  ;;  %v10679_v13 = vpop.f32.mrb[47].mxu1  ;;  %v17769_v18 = vld [vmem:[%s22723_s13 + $0x530] ss:$8 sps:$4 sm:$0xff]  }
0x16ab   : > { %12097 = vmatprep.subr.bf16.mxu1 %v17870_v0 }
0x16ac   : > { %11675 = vmatmul.mubr.bf16.gmra.mrb[152].mxu1 %v17766_v57 }
0x16ad   : > { %v11842_v7 = vpop.f32.mrb[172].mxu0  ;;  %14425 = vmatprep.mubr.msk.bf16.mxu1 %vm8791_vm13, %v17771_v2  ;;  %v14390_v2 = vld [vmem:[%s22723_s13 + $0x570] sm:$0x33] }
0x16ae   : > { %v17120_v40 = vpop.f32.mrb[173].mxu0 }
0x16af   : > { %v10682_v1 = vpop.f32.mrb[48].mxu1  ;;  %v11845_v45 = vpop.f32.mrb[174].mxu0 }
0x16b0   : > { %v22116_v19 = vadd.f32 %v10682_v1, %v21924_v29  ;;  %v11895_v21 = vpack.c.bf16 %v11845_v45, %v11842_v7  ;;  %v10684_v20 = vpop.f32.mrb[49].mxu1  ;;  %v17121_v60 = vpop.f32.mrb[175].mxu0 }
0x16b1   : > { %v10685_v59 = vpop.f32.mrb[50].mxu1  ;;  %v14416_v60 = vcombine.high %v14390_v2, %v14390_v2 }
0x16b2   : > { %v22125_v6 = vadd.f32 %v10685_v59, %v21932_v8  ;;  %12098 = vmatpush1.bf16.msra.mxu1 %v11895_v21  ;;  %v10687_v39 = vpop.f32.mrb[51].mxu1  ;;  %v17772_v8 = vld [vmem:[%s22723_s13 + $0x540] ss:$8 sps:$4 sm:$0xff]  }
0x16b3   : > { %12099 = vmatprep.subr.bf16.mxu1 %v17870_v0  ;;  %v17778_v21 = vld [vmem:[%s22723_s13 + $0x560] ss:$8 sps:$4 sm:$0xff]  }
0x16b4   : > { %11683 = vmatmul.mubr.bf16.gmra.mrb[156].mxu1 %v17769_v18 }
0x16b5   : > { %v11850_v29 = vpop.f32.mrb[176].mxu0  ;;  %14426 = vmatprep.mubr.msk.bf16.mxu1 %vm8791_vm13, %v17774_v22 }
0x16b6   : > { %v17124_v63 = vpop.f32.mrb[177].mxu0 }
0x16b7   : > { %v10690_v24 = vpop.f32.mrb[52].mxu1  ;;  %v11853_v34 = vpop.f32.mrb[178].mxu0 }
0x16b8   : > { %v22130_v5 = vadd.f32 %v10690_v24, %v21942_v17  ;;  %v11896_v58 = vpack.c.bf16 %v11853_v34, %v11850_v29  ;;  %v10692_v16 = vpop.f32.mrb[53].mxu1  ;;  %v17125_v62 = vpop.f32.mrb[179].mxu0 }
0x16b9   : > { %v10693_v4 = vpop.f32.mrb[54].mxu1  ;;  %v14415_v16 = vcombine.low %v14390_v2, %v14390_v2  ;;  %v17785_v62 = vld [vmem:[%s22723_s13 + $0x57c] ss:$8 sps:$4 sm:$0xff]  }
0x16ba   : > { %v22139_v26 = vadd.f32 %v10693_v4, %v21950_v55  ;;  %12100 = vmatpush1.bf16.msra.mxu1 %v11896_v58  ;;  %v10695_v56 = vpop.f32.mrb[55].mxu1  ;;  %v17775_v55 = vld [vmem:[%s22723_s13 + $0x550] ss:$8 sps:$4 sm:$0xff]  }
0x16bb   : > { %12101 = vmatprep.subr.bf16.mxu1 %v17870_v0 }
0x16bc   : > { %11691 = vmatmul.mubr.bf16.gmra.mrb[160].mxu1 %v17772_v8 }
0x16bd   : > { %v11858_v17 = vpop.f32.mrb[180].mxu0  ;;  %14427 = vmatprep.mubr.msk.bf16.mxu1 %vm8791_vm13, %v17777_v23 }
0x16be   : > { %v17128_v61 = vpop.f32.mrb[181].mxu0 }
0x16bf   : > { %v10698_v27 = vpop.f32.mrb[56].mxu1  ;;  %v11861_v41 = vpop.f32.mrb[182].mxu0 }
0x16c0   : > { %v22144_v10 = vadd.f32 %v10698_v27, %v21960_v46  ;;  %v11897_v31 = vpack.c.bf16 %v11861_v41, %v11858_v17  ;;  %v10700_v15 = vpop.f32.mrb[57].mxu1  ;;  %v17129_v28 = vpop.f32.mrb[183].mxu0 }
0x16c1   : > { %v10701_v30 = vpop.f32.mrb[58].mxu1 }
0x16c2   : > { %v22153_v9 = vadd.f32 %v10701_v30, %v21968_v47  ;;  %12102 = vmatpush1.bf16.msra.mxu1 %v11897_v31  ;;  %v10703_v57 = vpop.f32.mrb[59].mxu1 }
0x16c3   : > { %12103 = vmatprep.subr.bf16.mxu1 %v17870_v0 }
0x16c4   : > { %11699 = vmatmul.mubr.bf16.gmra.mrb[164].mxu1 %v17775_v55  ;;  %v17788_v55 = vld [vmem:[%s22723_s13 + $0x58c] ss:$8 sps:$4 sm:$0xff]  }
0x16c5   : > { %v11866_v46 = vpop.f32.mrb[184].mxu0  ;;  %14428 = vmatprep.mubr.msk.bf16.mxu1 %vm8791_vm13, %v17780_v54 }
0x16c6   : > { %v17132_v48 = vpop.f32.mrb[185].mxu0 }
0x16c7   : > { %v10706_v13 = vpop.f32.mrb[60].mxu1  ;;  %v11869_v7 = vpop.f32.mrb[186].mxu0 }
0x16c8   : > { %v22161_v40 = vadd.f32 %v10706_v13, %v21981_v53  ;;  %v11898_v47 = vpack.c.bf16 %v11869_v7, %v11866_v46  ;;  %v10708_v1 = vpop.f32.mrb[61].mxu1  ;;  %v17133_v45 = vpop.f32.mrb[187].mxu0 }
0x16c9   : > { %v10709_v20 = vpop.f32.mrb[62].mxu1  ;;  %v17791_v45 = vld [vmem:[%s22723_s13 + $0x59c] ss:$8 sps:$4 sm:$0xff]  }
0x16ca   : > { %v22167_v18 = vadd.f32 %v10709_v20, %v21986_v36  ;;  %12104 = vmatpush1.bf16.msra.mxu1 %v11898_v47  ;;  %v10711_v59 = vpop.f32.mrb[63].mxu1  ;;  %v17786_v47 = vld [vmem:[%s22723_s13 + $0x588] ss:$8 sps:$4 sm:$0xff]  }
0x16cb   : > { %12105 = vmatprep.subr.bf16.mxu1 %v17870_v0 }
0x16cc   : > { %11707 = vmatmul.mubr.bf16.gmra.mrb[168].mxu1 %v17778_v21 }
0x16cd   : > { %v11874_v22 = vpop.f32.mrb[188].mxu0  ;;  %14429 = vmatprep.mubr.msk.bf16.mxu1 %vm8791_vm13, %v14416_v60 }
0x16ce   : > { %v17136_v53 = vpop.f32.mrb[189].mxu0 }
0x16cf   : > { %v10714_v39 = vpop.f32.mrb[64].mxu1  ;;  %v11877_v29 = vpop.f32.mrb[190].mxu0 }
0x16d0   : > { %v22172_v63 = vadd.f32 %v10714_v39, %v21993_v49  ;;  %v11899_v24 = vpack.c.bf16 %v11877_v29, %v11874_v22  ;;  %v10716_v34 = vpop.f32.mrb[65].mxu1  ;;  %v17137_v58 = vpop.f32.mrb[191].mxu0 }
0x16d1   : > { %v10717_v36 = vpop.f32.mrb[66].mxu1  ;;  %v17794_v58 = vld [vmem:[%s22723_s13 + $0x5ac] ss:$8 sps:$4 sm:$0xff]  }
0x16d2   : > { %v22178_v8 = vadd.f32 %v10717_v36, %v22001_v44  ;;  %12106 = vmatpush1.bf16.msra.mxu1 %v11899_v24  ;;  %v10719_v4 = vpop.f32.mrb[67].mxu1  ;;  %v17783_v44 = vld [vmem:[%s22723_s13 + $0x578] ss:$8 sps:$4 sm:$0xff]  }
0x16d3   : > { %12107 = vmatprep.subr.bf16.mxu1 %v17870_v0 }
0x16d4   : > { %11715 = vmatmul.mubr.bf16.gmra.mrb[172].mxu1 %v14415_v16 }
0x16d5   : > { %v11882_v23 = vpop.f32.mrb[192].mxu0  ;;  %14495 = vmatprep.mubr.msk.bf16.mxu1 %vm8791_vm13, %v17785_v62 }
0x16d6   : > { %v11900_v49 = vpack.c.bf16 %v11882_v23, %v11882_v23  ;;  %v17140_v56 = vpop.f32.mrb[193].mxu0 }
0x16d7   : > { %v10722_v17 = vpop.f32.mrb[68].mxu1  ;;  %v11885_v61 = vpop.f32.mrb[194].mxu0 }
0x16d8   : > { %v12081_v27 = vsel %vm635_vm2, %v11900_v49, 0  ;;  %v22184_v41 = vadd.f32 %v10722_v17, %v22010_v14  ;;  %v17141_v31 = vpop.f32.mrb[195].mxu0  ;;  %v10724_v15 = vpop.f32.mrb[69].mxu1 }
0x16d9   : > { %12108 = vmatpush1.bf16.msra.mxu1 %v12081_v27  ;;  %v10725_v28 = vpop.f32.mrb[70].mxu1  ;;  %v17797_v31 = vld [vmem:[%s22723_s13 + $0x5bc] ss:$8 sps:$4 sm:$0xff]  }
0x16da   : > { %v10726_v30 = vpop.f32.mrb[71].mxu1  ;;  %12580 = vmatprep.subr.bf16.mxu1 %v17870_v0 }
0x16dc   : > { %12116 = vmatmul.mubr.bf16.vlgmr.msra.gmra.mrb[176].mxu1 %v17783_v44 }
0x16dd   : > { %v12283_v54 = vpop.f32.mrb[196].mxu0  ;;  %14496 = vmatprep.mubr.msk.bf16.mxu1 %vm8791_vm13, %v17788_v55 }
0x16de   : > { %v17146_v14 = vpop.f32.mrb[197].mxu0 }
0x16df   : > { %v11123_v57 = vpop.f32.mrb[72].mxu1  ;;  %v12286_v46 = vpop.f32.mrb[198].mxu0 }
0x16e0   : > { %v22195_v48 = vadd.f32 %v11123_v57, %v22021_v25  ;;  %v12385_v2 = vpack.c.bf16 %v12286_v46, %v12283_v54  ;;  %v11125_v13 = vpop.f32.mrb[73].mxu1  ;;  %v17147_v7 = vpop.f32.mrb[199].mxu0 }
0x16e1   : > { %v11126_v1 = vpop.f32.mrb[74].mxu1  ;;  %v17800_v13 = vld [vmem:[%s22723_s13 + $0x5cc] ss:$8 sps:$4 sm:$0xff]  }
0x16e2   : > { %v22204_v21 = vadd.f32 %v11126_v1, %v22027_v42  ;;  %12581 = vmatpush1.bf16.msra.mxu1 %v12385_v2  ;;  %v11128_v20 = vpop.f32.mrb[75].mxu1  ;;  %v17789_v42 = vld [vmem:[%s22723_s13 + $0x598] ss:$8 sps:$4 sm:$0xff]  }
0x16e3   : > { %12582 = vmatprep.subr.bf16.mxu1 %v17870_v0 }
0x16e4   : > { %12124 = vmatmul.mubr.bf16.gmra.mrb[180].mxu1 %v17786_v47 }
0x16e5   : > { %v12291_v25 = vpop.f32.mrb[200].mxu0  ;;  %14497 = vmatprep.mubr.msk.bf16.mxu1 %vm8791_vm13, %v17791_v45 }
0x16e6   : > { %v17150_v60 = vpop.f32.mrb[201].mxu0 }
0x16e7   : > { %v11131_v59 = vpop.f32.mrb[76].mxu1  ;;  %v12294_v22 = vpop.f32.mrb[202].mxu0 }
0x16e8   : > { %v22209_v53 = vadd.f32 %v11131_v59, %v22032_v50  ;;  %v12386_v39 = vpack.c.bf16 %v12294_v22, %v12291_v25  ;;  %v11133_v29 = vpop.f32.mrb[77].mxu1  ;;  %v17151_v24 = vpop.f32.mrb[203].mxu0 }
0x16e9   : > { %v11134_v34 = vpop.f32.mrb[78].mxu1  ;;  %v17803_v29 = vld [vmem:[%s22723_s13 + $0x5dc] ss:$8 sps:$4 sm:$0xff]  }
0x16ea   : > { %v22218_v16 = vadd.f32 %v11134_v34, %v22041_v3  ;;  %12583 = vmatpush1.bf16.msra.mxu1 %v12386_v39  ;;  %v11136_v36 = vpop.f32.mrb[79].mxu1  ;;  %v17792_v3 = vld [vmem:[%s22723_s13 + $0x5a8] ss:$8 sps:$4 sm:$0xff]  }
0x16eb   : > { %12584 = vmatprep.subr.bf16.mxu1 %v17870_v0 }
0x16ec   : > { %12132 = vmatmul.mubr.bf16.gmra.mrb[184].mxu1 %v17789_v42 }
0x16ed   : > { %v12299_v50 = vpop.f32.mrb[204].mxu0  ;;  %14498 = vmatprep.mubr.msk.bf16.mxu1 %vm8791_vm13, %v17794_v58 }
0x16ee   : > { %v17154_v62 = vpop.f32.mrb[205].mxu0 }
0x16ef   : > { %v11139_v4 = vpop.f32.mrb[80].mxu1  ;;  %v12302_v23 = vpop.f32.mrb[206].mxu0 }
0x16f0   : > { %v22223_v49 = vadd.f32 %v11139_v4, %v22046_v38  ;;  %v12387_v56 = vpack.c.bf16 %v12302_v23, %v12299_v50  ;;  %v11141_v17 = vpop.f32.mrb[81].mxu1  ;;  %v17155_v61 = vpop.f32.mrb[207].mxu0 }
0x16f1   : > { %v11142_v27 = vpop.f32.mrb[82].mxu1  ;;  %v17806_v17 = vld [vmem:[%s22723_s13 + $0x5ec] ss:$8 sps:$4 sm:$0xff]  }
0x16f2   : > { %v22232_v44 = vadd.f32 %v11142_v27, %v22055_v52  ;;  %12585 = vmatpush1.bf16.msra.mxu1 %v12387_v56  ;;  %v11144_v15 = vpop.f32.mrb[83].mxu1  ;;  %v17795_v52 = vld [vmem:[%s22723_s13 + $0x5b8] ss:$8 sps:$4 sm:$0xff]  }
0x16f3   : > { %12586 = vmatprep.subr.bf16.mxu1 %v17870_v0 }
0x16f4   : > { %12140 = vmatmul.mubr.bf16.gmra.mrb[188].mxu1 %v17792_v3 }
0x16f5   : > { %v12307_v38 = vpop.f32.mrb[208].mxu0  ;;  %14499 = vmatprep.mubr.msk.bf16.mxu1 %vm8791_vm13, %v17797_v31 }
0x16f6   : > { %v17158_v28 = vpop.f32.mrb[209].mxu0 }
0x16f7   : > { %v11147_v55 = vpop.f32.mrb[84].mxu1  ;;  %v12310_v30 = vpop.f32.mrb[210].mxu0 }
0x16f8   : > { %v22237_v54 = vadd.f32 %v11147_v55, %v22060_v32  ;;  %v12388_v14 = vpack.c.bf16 %v12310_v30, %v12307_v38  ;;  %v11149_v57 = vpop.f32.mrb[85].mxu1  ;;  %v17159_v46 = vpop.f32.mrb[211].mxu0 }
0x16f9   : > { %v11150_v2 = vpop.f32.mrb[86].mxu1  ;;  %v17809_v57 = vld [vmem:[%s22723_s13 + $0x5fc] ss:$8 sps:$4 sm:$0xff]  }
0x16fa   : > { %v22246_v7 = vadd.f32 %v11150_v2, %v22069_v11  ;;  %12587 = vmatpush1.bf16.msra.mxu1 %v12388_v14  ;;  %v11152_v47 = vpop.f32.mrb[87].mxu1  ;;  %v17798_v11 = vld [vmem:[%s22723_s13 + $0x5c8] ss:$8 sps:$4 sm:$0xff]  }
0x16fb   : > { %12588 = vmatprep.subr.bf16.mxu1 %v17870_v0 }
0x16fc   : > { %12148 = vmatmul.mubr.bf16.gmra.mrb[192].mxu1 %v17795_v52 }
0x16fd   : > { %v12315_v32 = vpop.f32.mrb[212].mxu0  ;;  %14500 = vmatprep.mubr.msk.bf16.mxu1 %vm8791_vm13, %v17800_v13 }
0x16fe   : > { %v17162_v1 = vpop.f32.mrb[213].mxu0 }
0x16ff   : > { %v11155_v45 = vpop.f32.mrb[88].mxu1  ;;  %v12318_v20 = vpop.f32.mrb[214].mxu0 }
0x1700   : > { %v22251_v25 = vadd.f32 %v11155_v45, %v22074_v12  ;;  %v12389_v60 = vpack.c.bf16 %v12318_v20, %v12315_v32  ;;  %v11157_v59 = vpop.f32.mrb[89].mxu1  ;;  %v17163_v22 = vpop.f32.mrb[215].mxu0 }
0x1701   : > { %v11158_v39 = vpop.f32.mrb[90].mxu1  ;;  %v17812_v59 = vld [vmem:[%s22723_s13 + $0x60c] ss:$8 sps:$4 sm:$0xff]  }
0x1702   : > { %v22260_v24 = vadd.f32 %v11158_v39, %v22083_v43  ;;  %12589 = vmatpush1.bf16.msra.mxu1 %v12389_v60  ;;  %v11160_v42 = vpop.f32.mrb[91].mxu1  ;;  %v17801_v43 = vld [vmem:[%s22723_s13 + $0x5d8] ss:$8 sps:$4 sm:$0xff]  }
0x1703   : > { %12590 = vmatprep.subr.bf16.mxu1 %v17870_v0 }
0x1704   : > { %12156 = vmatmul.mubr.bf16.gmra.mrb[196].mxu1 %v17798_v11 }
0x1705   : > { %v12323_v12 = vpop.f32.mrb[216].mxu0  ;;  %14501 = vmatprep.mubr.msk.bf16.mxu1 %vm8791_vm13, %v17803_v29 }
0x1706   : > { %v17166_v34 = vpop.f32.mrb[217].mxu0 }
0x1707   : > { %v11163_v58 = vpop.f32.mrb[92].mxu1  ;;  %v12326_v36 = vpop.f32.mrb[218].mxu0 }
0x1708   : > { %v22265_v50 = vadd.f32 %v11163_v58, %v22088_v33  ;;  %v12390_v62 = vpack.c.bf16 %v12326_v36, %v12323_v12  ;;  %v11165_v4 = vpop.f32.mrb[93].mxu1  ;;  %v17167_v23 = vpop.f32.mrb[219].mxu0 }
0x1709   : > { %v11166_v56 = vpop.f32.mrb[94].mxu1  ;;  %v17815_v4 = vld [vmem:[%s22723_s13 + $0x61c] ss:$8 sps:$4 sm:$0xff]  }
0x170a   : > { %v22274_v61 = vadd.f32 %v11166_v56, %v22097_v35  ;;  %12591 = vmatpush1.bf16.msra.mxu1 %v12390_v62  ;;  %v11168_v3 = vpop.f32.mrb[95].mxu1  ;;  %v17804_v35 = vld [vmem:[%s22723_s13 + $0x5e8] ss:$8 sps:$4 sm:$0xff]  }
0x170b   : > { %12592 = vmatprep.subr.bf16.mxu1 %v17870_v0 }
0x170c   : > { %12164 = vmatmul.mubr.bf16.gmra.mrb[200].mxu1 %v17801_v43 }
0x170d   : > { %v12331_v33 = vpop.f32.mrb[220].mxu0  ;;  %14502 = vmatprep.mubr.msk.bf16.mxu1 %vm8791_vm13, %v17806_v17 }
0x170e   : > { %v17170_v27 = vpop.f32.mrb[221].mxu0 }
0x170f   : > { %v11171_v31 = vpop.f32.mrb[96].mxu1  ;;  %v12334_v15 = vpop.f32.mrb[222].mxu0 }
0x1710   : > { %v22279_v38 = vadd.f32 %v11171_v31, %v22102_v51  ;;  %v12391_v28 = vpack.c.bf16 %v12334_v15, %v12331_v33  ;;  %v11173_v55 = vpop.f32.mrb[97].mxu1  ;;  %v17171_v30 = vpop.f32.mrb[223].mxu0 }
0x1711   : > { %v11174_v14 = vpop.f32.mrb[98].mxu1  ;;  %v17818_v55 = vld [vmem:[%s22723_s13 + $0x62c] ss:$8 sps:$4 sm:$0xff]  }
0x1712   : > { %v22288_v46 = vadd.f32 %v11174_v14, %v22111_v37  ;;  %12593 = vmatpush1.bf16.msra.mxu1 %v12391_v28  ;;  %v11176_v52 = vpop.f32.mrb[99].mxu1  ;;  %v17807_v37 = vld [vmem:[%s22723_s13 + $0x5f8] ss:$8 sps:$4 sm:$0xff]  }
0x1713   : > { %12594 = vmatprep.subr.bf16.mxu1 %v17870_v0 }
0x1714   : > { %12172 = vmatmul.mubr.bf16.gmra.mrb[204].mxu1 %v17804_v35 }
0x1715   : > { %v12339_v51 = vpop.f32.mrb[224].mxu0  ;;  %14503 = vmatprep.mubr.msk.bf16.mxu1 %vm8791_vm13, %v17809_v57  ;;  %v14468_v57 = vld [vmem:[%s22723_s13 + $0x638] sm:$0x33] }
0x1716   : > { %v17174_v2 = vpop.f32.mrb[225].mxu0 }
0x1717   : > { %v11179_v13 = vpop.f32.mrb[100].mxu1  ;;  %v12342_v47 = vpop.f32.mrb[226].mxu0 }
0x1718   : > { %v22293_v32 = vadd.f32 %v11179_v13, %v22116_v19  ;;  %v12392_v1 = vpack.c.bf16 %v12342_v47, %v12339_v51  ;;  %v11181_v45 = vpop.f32.mrb[101].mxu1  ;;  %v17175_v20 = vpop.f32.mrb[227].mxu0 }
0x1719   : > { %v11182_v60 = vpop.f32.mrb[102].mxu1  ;;  %v14494_v20 = vcombine.high %v14468_v57, %v14468_v57 }
0x171a   : > { %v22302_v22 = vadd.f32 %v11182_v60, %v22125_v6  ;;  %12595 = vmatpush1.bf16.msra.mxu1 %v12392_v1  ;;  %v11184_v11 = vpop.f32.mrb[103].mxu1  ;;  %v17810_v6 = vld [vmem:[%s22723_s13 + $0x608] ss:$8 sps:$4 sm:$0xff]  }
0x171b   : > { %12596 = vmatprep.subr.bf16.mxu1 %v17870_v0  ;;  %v17816_v1 = vld [vmem:[%s22723_s13 + $0x628] ss:$8 sps:$4 sm:$0xff]  }
0x171c   : > { %12180 = vmatmul.mubr.bf16.gmra.mrb[208].mxu1 %v17807_v37 }
0x171d   : > { %v12347_v19 = vpop.f32.mrb[228].mxu0  ;;  %14504 = vmatprep.mubr.msk.bf16.mxu1 %vm8791_vm13, %v17812_v59 }
0x171e   : > { %v17178_v39 = vpop.f32.mrb[229].mxu0 }
0x171f   : > { %v11187_v29 = vpop.f32.mrb[104].mxu1  ;;  %v12350_v42 = vpop.f32.mrb[230].mxu0 }
0x1720   : > { %v22307_v12 = vadd.f32 %v11187_v29, %v22130_v5  ;;  %v12393_v34 = vpack.c.bf16 %v12350_v42, %v12347_v19  ;;  %v11189_v58 = vpop.f32.mrb[105].mxu1  ;;  %v17179_v36 = vpop.f32.mrb[231].mxu0 }
0x1721   : > { %v11190_v62 = vpop.f32.mrb[106].mxu1  ;;  %v14493_v58 = vcombine.low %v14468_v57, %v14468_v57  ;;  %v17823_v36 = vld [vmem:[%s22723_s13 + $0x644] ss:$8 sps:$4 sm:$0xff]  }
0x1722   : > { %v22316_v23 = vadd.f32 %v11190_v62, %v22139_v26  ;;  %12597 = vmatpush1.bf16.msra.mxu1 %v12393_v34  ;;  %v11192_v43 = vpop.f32.mrb[107].mxu1  ;;  %v17813_v26 = vld [vmem:[%s22723_s13 + $0x618] ss:$8 sps:$4 sm:$0xff]  }
0x1723   : > { %12598 = vmatprep.subr.bf16.mxu1 %v17870_v0 }
0x1724   : > { %12188 = vmatmul.mubr.bf16.gmra.mrb[212].mxu1 %v17810_v6 }
0x1725   : > { %v12355_v5 = vpop.f32.mrb[232].mxu0  ;;  %14505 = vmatprep.mubr.msk.bf16.mxu1 %vm8791_vm13, %v17815_v4 }
0x1726   : > { %v17182_v56 = vpop.f32.mrb[233].mxu0 }
0x1727   : > { %v11195_v17 = vpop.f32.mrb[108].mxu1  ;;  %v12358_v3 = vpop.f32.mrb[234].mxu0 }
0x1728   : > { %v22321_v33 = vadd.f32 %v11195_v17, %v22144_v10  ;;  %v12394_v27 = vpack.c.bf16 %v12358_v3, %v12355_v5  ;;  %v11197_v31 = vpop.f32.mrb[109].mxu1  ;;  %v17183_v15 = vpop.f32.mrb[235].mxu0 }
0x1729   : > { %v11198_v28 = vpop.f32.mrb[110].mxu1  ;;  %v17826_v15 = vld [vmem:[%s22723_s13 + $0x654] ss:$8 sps:$4 sm:$0xff]  }
0x172a   : > { %v22330_v30 = vadd.f32 %v11198_v28, %v22153_v9  ;;  %12599 = vmatpush1.bf16.msra.mxu1 %v12394_v27  ;;  %v11200_v35 = vpop.f32.mrb[111].mxu1 }
0x172b   : > { %12600 = vmatprep.subr.bf16.mxu1 %v17870_v0  ;;  %v17824_v35 = vld [vmem:[%s22723_s13 + $0x650] ss:$8 sps:$4 sm:$0xff]  }
0x172c   : > { %12196 = vmatmul.mubr.bf16.gmra.mrb[216].mxu1 %v17813_v26 }
0x172d   : > { %v12363_v10 = vpop.f32.mrb[236].mxu0  ;;  %14506 = vmatprep.mubr.msk.bf16.mxu1 %vm8791_vm13, %v17818_v55 }
0x172e   : > { %v17186_v14 = vpop.f32.mrb[237].mxu0 }
0x172f   : > { %v11203_v52 = vpop.f32.mrb[112].mxu1  ;;  %v12366_v51 = vpop.f32.mrb[238].mxu0  ;;  %v17829_v14 = vld [vmem:[%s22723_s13 + $0x664] ss:$8 sps:$4 sm:$0xff]  }
0x1730   : > { %v22338_v2 = vadd.f32 %v11203_v52, %v22161_v40  ;;  %v12395_v9 = vpack.c.bf16 %v12366_v51, %v12363_v10  ;;  %v11205_v13 = vpop.f32.mrb[113].mxu1  ;;  %v17187_v47 = vpop.f32.mrb[239].mxu0 }
0x1731   : > { %v11206_v45 = vpop.f32.mrb[114].mxu1  ;;  %v17827_v13 = vld [vmem:[%s22723_s13 + $0x660] ss:$8 sps:$4 sm:$0xff]  }
0x1732   : > { %v22344_v37 = vadd.f32 %v11206_v45, %v22167_v18  ;;  %12601 = vmatpush1.bf16.msra.mxu1 %v12395_v9  ;;  %v11208_v60 = vpop.f32.mrb[115].mxu1 }
0x1733   : > { %12602 = vmatprep.subr.bf16.mxu1 %v17870_v0 }
0x1734   : > { %12204 = vmatmul.mubr.bf16.gmra.mrb[220].mxu1 %v17816_v1  ;;  %v17832_v1 = vld [vmem:[%s22723_s13 + $0x674] ss:$8 sps:$4 sm:$0xff]  }
0x1735   : > { %v12371_v59 = vpop.f32.mrb[240].mxu0  ;;  %14507 = vmatprep.mubr.msk.bf16.mxu1 %vm8791_vm13, %v14494_v20 }
0x1736   : > { %v17190_v40 = vpop.f32.mrb[241].mxu0 }
0x1737   : > { %v11211_v11 = vpop.f32.mrb[116].mxu1  ;;  %v12374_v19 = vpop.f32.mrb[242].mxu0 }
0x1738   : > { %v22349_v39 = vadd.f32 %v11211_v11, %v22172_v63  ;;  %v12396_v29 = vpack.c.bf16 %v12374_v19, %v12371_v59  ;;  %v11213_v42 = vpop.f32.mrb[117].mxu1  ;;  %v17191_v34 = vpop.f32.mrb[243].mxu0  ;;  %v17830_v59 = vld [vmem:[%s22723_s13 + $0x670] ss:$8 sps:$4 sm:$0xff]   ;;  %v17835_v11 = vld [vmem:[%s22723_s13 + $0x684] ss:$8 sps:$4 sm:$0xff]  }
0x1739   : > { %v11214_v18 = vpop.f32.mrb[118].mxu1  ;;  %v17833_v34 = vld [vmem:[%s22723_s13 + $0x680] ss:$8 sps:$4 sm:$0xff]  }
0x173a   : > { %v22355_v6 = vadd.f32 %v11214_v18, %v22178_v8  ;;  %12603 = vmatpush1.bf16.msra.mxu1 %v12396_v29  ;;  %v11216_v62 = vpop.f32.mrb[119].mxu1  ;;  %v17821_v8 = vld [vmem:[%s22723_s13 + $0x640] ss:$8 sps:$4 sm:$0xff]   ;;  %v17838_v18 = vld [vmem:[%s22723_s13 + $0x694] ss:$8 sps:$4 sm:$0xff]  }
0x173b   : > { %12604 = vmatprep.subr.bf16.mxu1 %v17870_v0 }
0x173c   : > { %12212 = vmatmul.mubr.bf16.gmra.mrb[224].mxu1 %v14493_v58 }
0x173d   : > { %v12379_v4 = vpop.f32.mrb[244].mxu0  ;;  %14573 = vmatprep.mubr.msk.bf16.mxu1 %vm8791_vm13, %v17823_v36 }
0x173e   : > { %v12397_v63 = vpack.c.bf16 %v12379_v4, %v12379_v4  ;;  %v17194_v43 = vpop.f32.mrb[245].mxu0 }
0x173f   : > { %v11219_v5 = vpop.f32.mrb[120].mxu1  ;;  %v12382_v56 = vpop.f32.mrb[246].mxu0 }
0x1740   : > { %v12578_v17 = vsel %vm635_vm2, %v12397_v63, 0  ;;  %v22361_v3 = vadd.f32 %v11219_v5, %v22184_v41  ;;  %v17195_v27 = vpop.f32.mrb[247].mxu0  ;;  %v11221_v31 = vpop.f32.mrb[121].mxu1  ;;  %v17836_v63 = vld [vmem:[%s22723_s13 + $0x690] ss:$8 sps:$4 sm:$0xff]  }
0x1741   : > { %12605 = vmatpush1.bf16.msra.mxu1 %v12578_v17  ;;  %v11222_v0 = vpop.f32.mrb[122].mxu1  ;;  %v17841_v5 = vld [vmem:[%s22723_s13 + $0x6a4] ss:$8 sps:$4 sm:$0xff]  }
0x1742   : > { %v11223_v26 = vpop.f32.mrb[123].mxu1  ;;  %v17844_v0 = vld [vmem:[%s22723_s13 + $0x6b4] ss:$8 sps:$4 sm:$0xff]  }
0x1744   : > { %12613 = vmatmul.mubr.bf16.vlgmr.msra.gmra.mrb[228].mxu1 %v17821_v8  ;;  %v17839_v8 = vld [vmem:[%s22723_s13 + $0x6a0] ss:$8 sps:$4 sm:$0xff]  }
0x1745   : > { %14574 = vmatprep.mubr.msk.bf16.mxu1 %vm8791_vm13, %v17826_v15 }
0x1747   : > { %v11620_v28 = vpop.f32.mrb[124].mxu1 }
0x1748   : > { %v22371_v41 = vadd.f32 %v11620_v28, %v22195_v48  ;;  %v11622_v55 = vpop.f32.mrb[125].mxu1 }
0x1749   : > { %v11623_v10 = vpop.f32.mrb[126].mxu1  ;;  %v17842_v55 = vld [vmem:[%s22723_s13 + $0x6b0] ss:$8 sps:$4 sm:$0xff]  }
0x174a   : > { %v22380_v57 = vadd.f32 %v11623_v10, %v22204_v21  ;;  %v11625_v52 = vpop.f32.mrb[127].mxu1  ;;  %v17847_v10 = vld [vmem:[%s22723_s13 + $0x6c4] ss:$8 sps:$4 sm:$0xff]  }
0x174c   : > { %12621 = vmatmul.mubr.bf16.gmra.mrb[232].mxu1 %v17824_v35 }
0x174d   : > { %14575 = vmatprep.mubr.msk.bf16.mxu1 %vm8791_vm13, %v17829_v14 }
0x174f   : > { %v11628_v51 = vpop.f32.mrb[128].mxu1 }
0x1750   : > { %v22384_v48 = vadd.f32 %v11628_v51, %v22209_v53  ;;  %v11630_v9 = vpop.f32.mrb[129].mxu1 }
0x1751   : > { %v11631_v47 = vpop.f32.mrb[130].mxu1  ;;  %v17845_v9 = vld [vmem:[%s22723_s13 + $0x6c0] ss:$8 sps:$4 sm:$0xff]  }
0x1752   : > { %v22393_v21 = vadd.f32 %v11631_v47, %v22218_v16  ;;  %v11633_v45 = vpop.f32.mrb[131].mxu1  ;;  %v17850_v47 = vld [vmem:[%s22723_s13 + $0x6d4] ss:$8 sps:$4 sm:$0xff]  }
0x1754   : > { %12629 = vmatmul.mubr.bf16.gmra.mrb[236].mxu1 %v17827_v13 }
0x1755   : > { %14576 = vmatprep.mubr.msk.bf16.mxu1 %vm8791_vm13, %v17832_v1 }
0x1757   : > { %v11636_v20 = vpop.f32.mrb[132].mxu1 }
0x1758   : > { %v22397_v53 = vadd.f32 %v11636_v20, %v22223_v49  ;;  %v11638_v60 = vpop.f32.mrb[133].mxu1 }
0x1759   : > { %v11639_v40 = vpop.f32.mrb[134].mxu1  ;;  %v17848_v60 = vld [vmem:[%s22723_s13 + $0x6d0] ss:$8 sps:$4 sm:$0xff]  }
0x175a   : > { %v22406_v16 = vadd.f32 %v11639_v40, %v22232_v44  ;;  %v11641_v19 = vpop.f32.mrb[135].mxu1  ;;  %v17853_v40 = vld [vmem:[%s22723_s13 + $0x6e4] ss:$8 sps:$4 sm:$0xff]  }
0x175c   : > { %12637 = vmatmul.mubr.bf16.gmra.mrb[240].mxu1 %v17830_v59 }
0x175d   : > { %14577 = vmatprep.mubr.msk.bf16.mxu1 %vm8791_vm13, %v17835_v11 }
0x175f   : > { %v11644_v29 = vpop.f32.mrb[136].mxu1 }
0x1760   : > { %v22410_v49 = vadd.f32 %v11644_v29, %v22237_v54  ;;  %v11646_v42 = vpop.f32.mrb[137].mxu1 }
0x1761   : > { %v11647_v58 = vpop.f32.mrb[138].mxu1  ;;  %v17851_v42 = vld [vmem:[%s22723_s13 + $0x6e0] ss:$8 sps:$4 sm:$0xff]  }
0x1762   : > { %v22419_v44 = vadd.f32 %v11647_v58, %v22246_v7  ;;  %v11649_v36 = vpop.f32.mrb[139].mxu1  ;;  %v17856_v58 = vld [vmem:[%s22723_s13 + $0x6f4] ss:$8 sps:$4 sm:$0xff]  }
0x1764   : > { %12645 = vmatmul.mubr.bf16.gmra.mrb[244].mxu1 %v17833_v34 }
0x1765   : > { %14578 = vmatprep.mubr.msk.bf16.mxu1 %vm8791_vm13, %v17838_v18 }
0x1767   : > { %v11652_v62 = vpop.f32.mrb[140].mxu1 }
0x1768   : > { %v22423_v54 = vadd.f32 %v11652_v62, %v22251_v25  ;;  %v11654_v4 = vpop.f32.mrb[141].mxu1 }
0x1769   : > { %v11655_v43 = vpop.f32.mrb[142].mxu1 }
0x176a   : > { %v22432_v7 = vadd.f32 %v11655_v43, %v22260_v24  ;;  %v11657_v56 = vpop.f32.mrb[143].mxu1 }
0x176c   : > { %12653 = vmatmul.mubr.bf16.gmra.mrb[248].mxu1 %v17836_v63  ;;  %v17854_v63 = vld [vmem:[%s22723_s13 + $0x6f0] ss:$8 sps:$4 sm:$0xff]  }
0x176d   : > { %14579 = vmatprep.mubr.msk.bf16.mxu1 %vm8791_vm13, %v17841_v5 }
0x176f   : > { %v11660_v17 = vpop.f32.mrb[144].mxu1 }
0x1770   : > { %v22436_v25 = vadd.f32 %v11660_v17, %v22265_v50  ;;  %v11662_v27 = vpop.f32.mrb[145].mxu1 }
0x1771   : > { %v11663_v31 = vpop.f32.mrb[146].mxu1 }
0x1772   : > { %v22445_v24 = vadd.f32 %v11663_v31, %v22274_v61  ;;  %v11665_v15 = vpop.f32.mrb[147].mxu1 }
0x1774   : > { %12661 = vmatmul.mubr.bf16.gmra.mrb[252].mxu1 %v17839_v8 }
0x1775   : > { %14580 = vmatprep.mubr.msk.bf16.mxu1 %vm8791_vm13, %v17844_v0 }
0x1777   : > { %v11668_v26 = vpop.f32.mrb[148].mxu1 }
0x1778   : > { %v22449_v50 = vadd.f32 %v11668_v26, %v22279_v38  ;;  %v11670_v28 = vpop.f32.mrb[149].mxu1 }
0x1779   : > { %v11671_v35 = vpop.f32.mrb[150].mxu1 }
0x177a   : > { %v22458_v61 = vadd.f32 %v11671_v35, %v22288_v46  ;;  %v11673_v14 = vpop.f32.mrb[151].mxu1 }
0x177c   : > { %12669 = vmatmul.mubr.bf16.gmra.mrb[0].mxu1 %v17842_v55 }
0x177d   : > { %14581 = vmatprep.mubr.msk.bf16.mxu1 %vm8791_vm13, %v17847_v10 }
0x177f   : > { %v11676_v52 = vpop.f32.mrb[152].mxu1 }
0x1780   : > { %v22462_v38 = vadd.f32 %v11676_v52, %v22293_v32  ;;  %v11678_v51 = vpop.f32.mrb[153].mxu1 }
0x1781   : > { %v11679_v13 = vpop.f32.mrb[154].mxu1 }
0x1782   : > { %v22471_v46 = vadd.f32 %v11679_v13, %v22302_v22  ;;  %v11681_v1 = vpop.f32.mrb[155].mxu1 }
0x1784   : > { %12677 = vmatmul.mubr.bf16.gmra.mrb[4].mxu1 %v17845_v9 }
0x1785   : > { %14582 = vmatprep.mubr.msk.bf16.mxu1 %vm8791_vm13, %v17850_v47 }
0x1787   : > { %v11684_v45 = vpop.f32.mrb[156].mxu1 }
0x1788   : > { %v22475_v32 = vadd.f32 %v11684_v45, %v22307_v12  ;;  %v11686_v20 = vpop.f32.mrb[157].mxu1 }
0x1789   : > { %v11687_v59 = vpop.f32.mrb[158].mxu1 }
0x178a   : > { %v22484_v22 = vadd.f32 %v11687_v59, %v22316_v23  ;;  %v11689_v11 = vpop.f32.mrb[159].mxu1 }
0x178c   : > { %12685 = vmatmul.mubr.bf16.gmra.mrb[8].mxu1 %v17848_v60 }
0x178d   : > { %14583 = vmatprep.mubr.msk.bf16.mxu1 %vm8791_vm13, %v17853_v40 }
0x178f   : > { %v11692_v19 = vpop.f32.mrb[160].mxu1 }
0x1790   : > { %v22488_v12 = vadd.f32 %v11692_v19, %v22321_v33  ;;  %v11694_v29 = vpop.f32.mrb[161].mxu1  ;;  %v14546_v33 = vld [vmem:[%s22723_s13 + $0x700] sm:$0x33] }
0x1791   : > { %v11695_v34 = vpop.f32.mrb[162].mxu1  ;;  %v14571_v8 = vcombine.low %v14546_v33, %v14546_v33 }
0x1792   : > { %v22497_v23 = vadd.f32 %v11695_v34, %v22330_v30  ;;  %v11697_v18 = vpop.f32.mrb[163].mxu1  ;;  %v14572_v30 = vcombine.high %v14546_v33, %v14546_v33 }
0x1794   : > { %12693 = vmatmul.mubr.bf16.gmra.mrb[12].mxu1 %v17851_v42 }
0x1795   : > { %14584 = vmatprep.mubr.msk.bf16.mxu1 %vm8791_vm13, %v17856_v58 }
0x1797   : > { %v11700_v36 = vpop.f32.mrb[164].mxu1 }
0x1798   : > { %v22504_v62 = vadd.f32 %v11700_v36, %v22338_v2  ;;  %v11702_v4 = vpop.f32.mrb[165].mxu1 }
0x1799   : > { %v11703_v43 = vpop.f32.mrb[166].mxu1 }
0x179a   : > { %v22510_v5 = vadd.f32 %v11703_v43, %v22344_v37  ;;  %v11705_v56 = vpop.f32.mrb[167].mxu1 }
0x179c   : > { %12701 = vmatmul.mubr.bf16.gmra.mrb[16].mxu1 %v17854_v63 }
0x179d   : > { %14585 = vmatprep.mubr.msk.bf16.mxu1 %vm8791_vm13, %v14572_v30 }
0x179f   : > { %v11708_v17 = vpop.f32.mrb[168].mxu1 }
0x17a0   : > { %v22514_v27 = vadd.f32 %v11708_v17, %v22349_v39  ;;  %v11710_v2 = vpop.f32.mrb[169].mxu1 }
0x17a1   : > { %v11711_v31 = vpop.f32.mrb[170].mxu1 }
0x17a2   : > { %v22517_v0 = vadd.f32 %v11711_v31, %v22355_v6  ;;  %v11713_v15 = vpop.f32.mrb[171].mxu1 }
0x17a4   : > { %12709 = vmatmul.mubr.bf16.gmra.mrb[20].mxu1 %v14571_v8 }
0x17a7   : > { %v11716_v26 = vpop.f32.mrb[172].mxu1 }
0x17a8   : > { %v22520_v37 = vadd.f32 %v11716_v26, %v22361_v3  ;;  %v11718_v28 = vpop.f32.mrb[173].mxu1 }
0x17a9   : > { %v11719_v55 = vpop.f32.mrb[174].mxu1 }
0x17aa   : > { %v11720_v35 = vpop.f32.mrb[175].mxu1 }
0x17af   : > { %v12117_v10 = vpop.f32.mrb[176].mxu1 }
0x17b0   : > { %v22523_v14 = vadd.f32 %v12117_v10, %v22371_v41  ;;  %v12119_v39 = vpop.f32.mrb[177].mxu1 }
0x17b1   : > { %v12120_v52 = vpop.f32.mrb[178].mxu1 }
0x17b2   : > { %v22526_v51 = vadd.f32 %v12120_v52, %v22380_v57  ;;  %v12122_v6 = vpop.f32.mrb[179].mxu1 }
0x17b7   : > { %v12125_v9 = vpop.f32.mrb[180].mxu1 }
0x17b8   : > { %v22529_v13 = vadd.f32 %v12125_v9, %v22384_v48  ;;  %v12127_v47 = vpop.f32.mrb[181].mxu1 }
0x17b9   : > { %v12128_v3 = vpop.f32.mrb[182].mxu1 }
0x17ba   : > { %v22532_v1 = vadd.f32 %v12128_v3, %v22393_v21  ;;  %v12130_v45 = vpop.f32.mrb[183].mxu1 }
0x17bf   : > { %v12133_v20 = vpop.f32.mrb[184].mxu1 }
0x17c0   : > { %v22535_v41 = vadd.f32 %v12133_v20, %v22397_v53  ;;  %v12135_v60 = vpop.f32.mrb[185].mxu1 }
0x17c1   : > { %v12136_v59 = vpop.f32.mrb[186].mxu1 }
0x17c2   : > { %v22538_v57 = vadd.f32 %v12136_v59, %v22406_v16  ;;  %v12138_v40 = vpop.f32.mrb[187].mxu1 }
0x17c7   : > { %v12141_v11 = vpop.f32.mrb[188].mxu1 }
0x17c8   : > { %v22541_v48 = vadd.f32 %v12141_v11, %v22410_v49  ;;  %v12143_v19 = vpop.f32.mrb[189].mxu1 }
0x17c9   : > { %v12144_v29 = vpop.f32.mrb[190].mxu1 }
0x17ca   : > { %v22544_v21 = vadd.f32 %v12144_v29, %v22419_v44  ;;  %v12146_v42 = vpop.f32.mrb[191].mxu1 }
0x17cf   : > { %v12149_v34 = vpop.f32.mrb[192].mxu1 }
0x17d0   : > { %v22547_v53 = vadd.f32 %v12149_v34, %v22423_v54  ;;  %v12151_v58 = vpop.f32.mrb[193].mxu1 }
0x17d1   : > { %v12152_v18 = vpop.f32.mrb[194].mxu1 }
0x17d2   : > { %v22550_v16 = vadd.f32 %v12152_v18, %v22432_v7  ;;  %v12154_v33 = vpop.f32.mrb[195].mxu1 }
0x17d7   : > { %v12157_v36 = vpop.f32.mrb[196].mxu1 }
0x17d8   : > { %v22553_v49 = vadd.f32 %v12157_v36, %v22436_v25  ;;  %v12159_v4 = vpop.f32.mrb[197].mxu1 }
0x17d9   : > { %v12160_v63 = vpop.f32.mrb[198].mxu1 }
0x17da   : > { %v22556_v44 = vadd.f32 %v12160_v63, %v22445_v24  ;;  %v12162_v43 = vpop.f32.mrb[199].mxu1 }
0x17df   : > { %v12165_v30 = vpop.f32.mrb[200].mxu1 }
0x17e0   : > { %v22559_v54 = vadd.f32 %v12165_v30, %v22449_v50  ;;  %v12167_v56 = vpop.f32.mrb[201].mxu1 }
0x17e1   : > { %v12168_v17 = vpop.f32.mrb[202].mxu1 }
0x17e2   : > { %v22562_v7 = vadd.f32 %v12168_v17, %v22458_v61  ;;  %v12170_v2 = vpop.f32.mrb[203].mxu1 }
0x17e7   : > { %v12173_v8 = vpop.f32.mrb[204].mxu1 }
0x17e8   : > { %v22565_v25 = vadd.f32 %v12173_v8, %v22462_v38  ;;  %v12175_v31 = vpop.f32.mrb[205].mxu1 }
0x17e9   : > { %v12176_v15 = vpop.f32.mrb[206].mxu1 }
0x17ea   : > { %v22568_v24 = vadd.f32 %v12176_v15, %v22471_v46  ;;  %v12178_v26 = vpop.f32.mrb[207].mxu1 }
0x17ef   : > { %v12181_v28 = vpop.f32.mrb[208].mxu1 }
0x17f0   : > { %v22571_v50 = vadd.f32 %v12181_v28, %v22475_v32  ;;  %v12183_v55 = vpop.f32.mrb[209].mxu1 }
0x17f1   : > { %v12184_v35 = vpop.f32.mrb[210].mxu1 }
0x17f2   : > { %v22574_v61 = vadd.f32 %v12184_v35, %v22484_v22  ;;  %v12186_v10 = vpop.f32.mrb[211].mxu1 }
0x17f7   : > { %v12189_v39 = vpop.f32.mrb[212].mxu1 }
0x17f8   : > { %v22577_v38 = vadd.f32 %v12189_v39, %v22488_v12  ;;  %v12191_v52 = vpop.f32.mrb[213].mxu1 }
0x17f9   : > { %v12192_v6 = vpop.f32.mrb[214].mxu1 }
0x17fa   : > { %v22580_v46 = vadd.f32 %v12192_v6, %v22497_v23  ;;  %v12194_v9 = vpop.f32.mrb[215].mxu1 }
0x17ff   : > { %v12197_v47 = vpop.f32.mrb[216].mxu1 }
0x1800   : > { %v22583_v32 = vadd.f32 %v12197_v47, %v22504_v62  ;;  %v12199_v3 = vpop.f32.mrb[217].mxu1 }
0x1801   : > { %v12200_v45 = vpop.f32.mrb[218].mxu1 }
0x1802   : > { %v22586_v22 = vadd.f32 %v12200_v45, %v22510_v5  ;;  %v12202_v20 = vpop.f32.mrb[219].mxu1 }
0x1807   : > { %v12205_v60 = vpop.f32.mrb[220].mxu1 }
0x1808   : > { %v22589_v12 = vadd.f32 %v12205_v60, %v22514_v27  ;;  %v12207_v59 = vpop.f32.mrb[221].mxu1  ;;  %v22601_v27 = vld [vmem:[%s22725_s15] ss:$0 sm:$0xff] }
0x1809   : > { %v12208_v40 = vpop.f32.mrb[222].mxu1 }
0x180a   : > { %v22592_v23 = vadd.f32 %v12208_v40, %v22517_v0  ;;  %v12210_v11 = vpop.f32.mrb[223].mxu1 }
0x180f   : > { %v12213_v19 = vpop.f32.mrb[224].mxu1 }
0x1810   : > { %v22595_v62 = vadd.f32 %v12213_v19, %v22520_v37  ;;  %v12215_v29 = vpop.f32.mrb[225].mxu1 }
0x1811   : > { %v12216_v42 = vpop.f32.mrb[226].mxu1 }
0x1812   : > { %v12217_v34 = vpop.f32.mrb[227].mxu1 }
0x1817   : > { %v12614_v5 = vpop.f32.mrb[228].mxu1 }
0x1818   : > { %v12716_v58 = vadd.f32 %v12614_v5, %v22523_v14  ;;  %v12616_v18 = vpop.f32.mrb[229].mxu1 }
0x1819   : > { %v12617_v0 = vpop.f32.mrb[230].mxu1 }
0x181a   : > { %v12748_v37 = vadd.f32 %v22601_v27, %v12716_v58  ;;  %v12717_v33 = vadd.f32 %v12617_v0, %v22526_v51  ;;  %v12619_v36 = vpop.f32.mrb[231].mxu1 }
0x181c   : > { %12774 = vst.msk [vmem:[%s22607_s25] sm:$0xff] %vm12773_vm14, %v12748_v37  ;;  %v12749_v14 = vadd.f32 %v22601_v27, %v12717_v33 }
0x181e   : > { %12775 = vst.msk [vmem:[%s22607_s25 + $0x8] sm:$0xff] %vm12773_vm14, %v12749_v14 }
0x181f   : > { %v12622_v4 = vpop.f32.mrb[232].mxu1 }
0x1820   : > { %v12718_v63 = vadd.f32 %v12622_v4, %v22529_v13  ;;  %v12624_v43 = vpop.f32.mrb[233].mxu1 }
0x1821   : > { %v12625_v30 = vpop.f32.mrb[234].mxu1 }
0x1822   : > { %v12750_v56 = vadd.f32 %v22601_v27, %v12718_v63  ;;  %v12719_v17 = vadd.f32 %v12625_v30, %v22532_v1  ;;  %v12627_v2 = vpop.f32.mrb[235].mxu1 }
0x1824   : > { %12776 = vst.msk [vmem:[%s22607_s25 + $0x10] sm:$0xff] %vm12773_vm14, %v12750_v56  ;;  %v12751_v51 = vadd.f32 %v22601_v27, %v12719_v17 }
0x1826   : > { %12777 = vst.msk [vmem:[%s22607_s25 + $0x18] sm:$0xff] %vm12773_vm14, %v12751_v51 }
0x1827   : > { %v12630_v8 = vpop.f32.mrb[236].mxu1 }
0x1828   : > { %v12720_v31 = vadd.f32 %v12630_v8, %v22535_v41  ;;  %v12632_v13 = vpop.f32.mrb[237].mxu1 }
0x1829   : > { %v12633_v15 = vpop.f32.mrb[238].mxu1 }
0x182a   : > { %v12752_v26 = vadd.f32 %v22601_v27, %v12720_v31  ;;  %v12721_v28 = vadd.f32 %v12633_v15, %v22538_v57  ;;  %v12635_v55 = vpop.f32.mrb[239].mxu1 }
0x182c   : > { %12778 = vst.msk [vmem:[%s22607_s25 + $0x20] sm:$0xff] %vm12773_vm14, %v12752_v26  ;;  %v12753_v1 = vadd.f32 %v22601_v27, %v12721_v28 }
0x182e   : > { %12779 = vst.msk [vmem:[%s22607_s25 + $0x28] sm:$0xff] %vm12773_vm14, %v12753_v1 }
0x182f   : > { %v12638_v35 = vpop.f32.mrb[240].mxu1 }
0x1830   : > { %v12722_v10 = vadd.f32 %v12638_v35, %v22541_v48  ;;  %v12640_v41 = vpop.f32.mrb[241].mxu1 }
0x1831   : > { %v12641_v39 = vpop.f32.mrb[242].mxu1 }
0x1832   : > { %v12754_v52 = vadd.f32 %v22601_v27, %v12722_v10  ;;  %v12723_v6 = vadd.f32 %v12641_v39, %v22544_v21  ;;  %v12643_v9 = vpop.f32.mrb[243].mxu1 }
0x1834   : > { %12780 = vst.msk [vmem:[%s22607_s25 + $0x30] sm:$0xff] %vm12773_vm14, %v12754_v52  ;;  %v12755_v57 = vadd.f32 %v22601_v27, %v12723_v6 }
0x1836   : > { %12781 = vst.msk [vmem:[%s22607_s25 + $0x38] sm:$0xff] %vm12773_vm14, %v12755_v57 }
0x1837   : > { %v12646_v47 = vpop.f32.mrb[244].mxu1 }
0x1838   : > { %v12724_v3 = vadd.f32 %v12646_v47, %v22547_v53  ;;  %v12648_v48 = vpop.f32.mrb[245].mxu1 }
0x1839   : > { %v12649_v45 = vpop.f32.mrb[246].mxu1 }
0x183a   : > { %v12756_v20 = vadd.f32 %v22601_v27, %v12724_v3  ;;  %v12725_v60 = vadd.f32 %v12649_v45, %v22550_v16  ;;  %v12651_v59 = vpop.f32.mrb[247].mxu1 }
0x183c   : > { %12782 = vst.msk [vmem:[%s22607_s25 + $0x40] sm:$0xff] %vm12773_vm14, %v12756_v20  ;;  %v12757_v21 = vadd.f32 %v22601_v27, %v12725_v60 }
0x183e   : > { %12783 = vst.msk [vmem:[%s22607_s25 + $0x48] sm:$0xff] %vm12773_vm14, %v12757_v21 }
0x183f   : > { %v12654_v40 = vpop.f32.mrb[248].mxu1 }
0x1840   : > { %v12726_v11 = vadd.f32 %v12654_v40, %v22553_v49  ;;  %v12656_v53 = vpop.f32.mrb[249].mxu1 }
0x1841   : > { %v12657_v19 = vpop.f32.mrb[250].mxu1 }
0x1842   : > { %v12758_v29 = vadd.f32 %v22601_v27, %v12726_v11  ;;  %v12727_v42 = vadd.f32 %v12657_v19, %v22556_v44  ;;  %v12659_v34 = vpop.f32.mrb[251].mxu1 }
0x1844   : > { %12784 = vst.msk [vmem:[%s22607_s25 + $0x50] sm:$0xff] %vm12773_vm14, %v12758_v29  ;;  %v12759_v16 = vadd.f32 %v22601_v27, %v12727_v42 }
0x1846   : > { %12785 = vst.msk [vmem:[%s22607_s25 + $0x58] sm:$0xff] %vm12773_vm14, %v12759_v16 }
0x1847   : > { %v12662_v5 = vpop.f32.mrb[252].mxu1 }
0x1848   : > { %v12728_v58 = vadd.f32 %v12662_v5, %v22559_v54  ;;  %v12664_v49 = vpop.f32.mrb[253].mxu1 }
0x1849   : > { %v12665_v18 = vpop.f32.mrb[254].mxu1 }
0x184a   : > { %v12760_v0 = vadd.f32 %v22601_v27, %v12728_v58  ;;  %v12729_v37 = vadd.f32 %v12665_v18, %v22562_v7  ;;  %v12667_v33 = vpop.f32.mrb[255].mxu1 }
0x184c   : > { %12786 = vst.msk [vmem:[%s22607_s25 + $0x60] sm:$0xff] %vm12773_vm14, %v12760_v0  ;;  %v12761_v44 = vadd.f32 %v22601_v27, %v12729_v37 }
0x184e   : > { %12787 = vst.msk [vmem:[%s22607_s25 + $0x68] sm:$0xff] %vm12773_vm14, %v12761_v44 }
0x184f   : > { %v12670_v36 = vpop.f32.mrb[0].mxu1 }
0x1850   : > { %v12730_v14 = vadd.f32 %v12670_v36, %v22565_v25  ;;  %v12672_v54 = vpop.f32.mrb[1].mxu1 }
0x1851   : > { %v12673_v4 = vpop.f32.mrb[2].mxu1 }
0x1852   : > { %v12762_v63 = vadd.f32 %v22601_v27, %v12730_v14  ;;  %v12731_v43 = vadd.f32 %v12673_v4, %v22568_v24  ;;  %v12675_v30 = vpop.f32.mrb[3].mxu1 }
0x1854   : > { %12788 = vst.msk [vmem:[%s22607_s25 + $0x70] sm:$0xff] %vm12773_vm14, %v12762_v63  ;;  %v12763_v7 = vadd.f32 %v22601_v27, %v12731_v43 }
0x1856   : > { %12789 = vst.msk [vmem:[%s22607_s25 + $0x78] sm:$0xff] %vm12773_vm14, %v12763_v7 }
0x1857   : > { %v12678_v56 = vpop.f32.mrb[4].mxu1 }
0x1858   : > { %v12732_v17 = vadd.f32 %v12678_v56, %v22571_v50  ;;  %v12680_v25 = vpop.f32.mrb[5].mxu1 }
0x1859   : > { %v12681_v2 = vpop.f32.mrb[6].mxu1 }
0x185a   : > { %v12764_v51 = vadd.f32 %v22601_v27, %v12732_v17  ;;  %v12733_v8 = vadd.f32 %v12681_v2, %v22574_v61  ;;  %v12683_v31 = vpop.f32.mrb[7].mxu1 }
0x185c   : > { %12790 = vst.msk [vmem:[%s22607_s25 + $0x80] sm:$0xff] %vm12773_vm14, %v12764_v51  ;;  %v12765_v24 = vadd.f32 %v22601_v27, %v12733_v8 }
0x185e   : > { %12791 = vst.msk [vmem:[%s22607_s25 + $0x88] sm:$0xff] %vm12773_vm14, %v12765_v24 }
0x185f   : > { %v12686_v13 = vpop.f32.mrb[8].mxu1 }
0x1860   : > { %v12734_v15 = vadd.f32 %v12686_v13, %v22577_v38  ;;  %v12688_v50 = vpop.f32.mrb[9].mxu1 }
0x1861   : > { %v12689_v26 = vpop.f32.mrb[10].mxu1 }
0x1862   : > { %v12766_v28 = vadd.f32 %v22601_v27, %v12734_v15  ;;  %v12735_v55 = vadd.f32 %v12689_v26, %v22580_v46  ;;  %v12691_v1 = vpop.f32.mrb[11].mxu1 }
0x1864   : > { %12792 = vst.msk [vmem:[%s22607_s25 + $0x90] sm:$0xff] %vm12773_vm14, %v12766_v28  ;;  %v12767_v61 = vadd.f32 %v22601_v27, %v12735_v55 }
0x1866   : > { %12793 = vst.msk [vmem:[%s22607_s25 + $0x98] sm:$0xff] %vm12773_vm14, %v12767_v61 }
0x1867   : > { %v12694_v35 = vpop.f32.mrb[12].mxu1 }
0x1868   : > { %v12736_v10 = vadd.f32 %v12694_v35, %v22583_v32  ;;  %v12696_v38 = vpop.f32.mrb[13].mxu1 }
0x1869   : > { %v12697_v41 = vpop.f32.mrb[14].mxu1 }
0x186a   : > { %v12768_v39 = vadd.f32 %v22601_v27, %v12736_v10  ;;  %v12737_v52 = vadd.f32 %v12697_v41, %v22586_v22  ;;  %v12699_v6 = vpop.f32.mrb[15].mxu1 }
0x186c   : > { %12794 = vst.msk [vmem:[%s22607_s25 + $0xa0] sm:$0xff] %vm12773_vm14, %v12768_v39  ;;  %v12769_v46 = vadd.f32 %v22601_v27, %v12737_v52 }
0x186e   : > { %12795 = vst.msk [vmem:[%s22607_s25 + $0xa8] sm:$0xff] %vm12773_vm14, %v12769_v46 }
0x186f   : > { %v12702_v9 = vpop.f32.mrb[16].mxu1 }
0x1870   : > { %v12738_v57 = vadd.f32 %v12702_v9, %v22589_v12  ;;  %v12704_v32 = vpop.f32.mrb[17].mxu1 }
0x1871   : > { %v12705_v47 = vpop.f32.mrb[18].mxu1 }
0x1872   : > { %v12770_v3 = vadd.f32 %v22601_v27, %v12738_v57  ;;  %v12739_v48 = vadd.f32 %v12705_v47, %v22592_v23  ;;  %v12707_v45 = vpop.f32.mrb[19].mxu1 }
0x1874   : > { %12796 = vst.msk [vmem:[%s22607_s25 + $0xb0] sm:$0xff] %vm12773_vm14, %v12770_v3  ;;  %v12771_v22 = vadd.f32 %v22601_v27, %v12739_v48 }
0x1876   : > { %12797 = vst.msk [vmem:[%s22607_s25 + $0xb8] sm:$0xff] %vm12773_vm14, %v12771_v22 }
0x1877   : > { %v12710_v20 = vpop.f32.mrb[20].mxu1 }
0x1878   : > { %v12740_v60 = vadd.f32 %v12710_v20, %v22595_v62  ;;  %v12712_v59 = vpop.f32.mrb[21].mxu1 }
0x1879   : > { %v12713_v12 = vpop.f32.mrb[22].mxu1 }
0x187a   : > { %v12772_v21 = vadd.f32 %v22601_v27, %v12740_v60  ;;  %v12714_v40 = vpop.f32.mrb[23].mxu1 }
0x187c   : > { %12799 = vst.msk [vmem:[%s22607_s25 + $0xc0] sm:$0xf] %vm12798_vm15, %v12772_v21 }
0x187d PF: > { %s26_s21 = sadd.s32 1, %s17865_s21  }
0x187e   : > { %p23_p4 = scmp.ge.s32.totalorder %s26_s21, 4  }
0x1880   :  { %25 = sbr.rel (!%p23_p4) target bundleno = 2 (0x2), region = 178 }

</bundles_post_ra>
